<compile_context>
chip_gen: v6e
topology: v6e:2x2x1
jax: 0.10.0
libtpu: 0.0.40
codegen_flags: <defaults>
</compile_context>

<pallas_src>
import jax
import jax.numpy as jnp
from jax import lax
from jax.experimental import pallas as pl
from jax.experimental.pallas import tpu as pltpu

D_WORD = 300   # the module hard-codes hidden_size=300 for the GloVe embedding path
LANE = 128
NEG_INF = -1e30


def _round_up(x, m):
    return ((x + m - 1) // m) * m


def _elementwise_dtype():
    """bf16 elementwise on chips with a bf16 VPU/EUP (v6e/v7x); f32 elsewhere (v5e)."""
    try:
        kind = jax.devices()[0].device_kind.lower()
    except Exception:
        return jnp.float32
    if any(tag in kind for tag in ("v6", "v7", "tpu7", "7x")):
        return jnp.bfloat16
    return jnp.float32


EW_DTYPE = _elementwise_dtype()


# ----------------------------------------------------------------------------
# Fused kernel (TB batch elements per grid step):
#   x      = highway2(proj(glove))                       # layers.Embedding
#   c      = relu(bert) @ w_down + b_down                # proj_down
#   c      = c * (1 + x)                                 # c + c*glove
#   logits = w_se_t @ c^T + b_se                         # start/end heads, (8, Lp)
#   out    = masked log-softmax over the sequence (lane) axis
# ----------------------------------------------------------------------------
def bert_fused_kernel(glove_ref, bert_ref, idxs_ref,
                      wp_ref, wgt1_ref, bgt1_ref, wgt2_ref, bgt2_ref,
                      wd_ref, bd_ref, wse_t_ref, bse_ref,
                      out_ref):
    TB, Lp, Dp = glove_ref.shape
    Hp = bert_ref.shape[-1]
    rows = TB * Lp                       # Lp % 128 == 0 -> reshape is layout-free

    # ---- layers.Embedding encoder: proj (no bias) + 2-layer highway ---------
    e = glove_ref[...].reshape(rows, Dp)                               # bf16
    x = jnp.dot(e, wp_ref[...],
                preferred_element_type=jnp.float32).astype(EW_DTYPE)   # (rows, Dp)
    for wgt_ref, bgt_ref in ((wgt1_ref, bgt1_ref), (wgt2_ref, bgt2_ref)):
        # fused [gate | trans] weights: one MXU pass per highway layer
        gt = (jnp.dot(x.astype(jnp.bfloat16), wgt_ref[...],
                      preferred_element_type=jnp.float32)
              + bgt_ref[...]).astype(EW_DTYPE)                         # (rows, 2*Dp)
        g = jax.nn.sigmoid(gt[:, :Dp])      # lane-aligned column slices (Dp = 3*128)
        t = jax.nn.relu(gt[:, Dp:])
        x = x + g * (t - x)                                            # == g*t + (1-g)*x

    # ---- BERT head: proj_down(relu(bert)); mix with the glove encoding ------
    # bert arrives in its native dtype (or bf16 if the wrapper had to pad
    # anyway); relu + bf16 cast happen here, no extra HBM pass is spent.
    b = jax.nn.relu(bert_ref[...].reshape(rows, Hp)).astype(jnp.bfloat16)
    c = (jnp.dot(b, wd_ref[...], preferred_element_type=jnp.float32)
         + bd_ref[...]).astype(EW_DTYPE)
    c = c * (1.0 + x)                                                  # c + c*glove
    cb = c.astype(jnp.bfloat16)                                        # (rows, Dp)

    # ---- start/end heads + masked log-softmax, per batch element ------------
    # logits are lane-dense: rows 0/1 of the (8, Lp) tile are start/end heads,
    # rows 2..7 are zero padding.  (dot_general transpose cost only matters if
    # a bundle dump shows the XLU on the critical path.)
    for bi in range(TB):                                   # static, TB <= 4
        c_b = cb[bi * Lp:(bi + 1) * Lp]                                # (Lp, Dp)
        logits = lax.dot_general(
            wse_t_ref[...], c_b,
            dimension_numbers=(((1,), (1,)), ((), ())),
            preferred_element_type=jnp.float32) + bse_ref[...]         # (8, Lp) f32
        valid = idxs_ref[bi] != 0                                      # (1, Lp)
        masked = jnp.where(valid, logits, NEG_INF)
        m = jnp.max(masked, axis=-1, keepdims=True)
        sh = masked - m
        lse = jnp.log(jnp.sum(jnp.exp(sh), axis=-1, keepdims=True))
        out_ref[bi] = sh - lse                                         # (8, Lp)


# ----------------------------------------------------------------------------
# Forward pass (jitted wrapper; gather/pad glue in plain JAX, rest in Pallas)
# ----------------------------------------------------------------------------
@jax.jit
def bert_forward(cw_idxs, qw_idxs, bert_embeddings, params):
    # The torch code also runs self.emb(qw_idxs) but never uses the result;
    # that dead branch is dropped here.
    del qw_idxs

    B, Lc = cw_idxs.shape
    H = bert_embeddings.shape[-1]
    Dp = params["w_proj"].shape[0]
    Hp = params["w_down"].shape[0]
    Lp = _round_up(Lc, LANE)

    # NOTE: the torch forward slices bert_embeddings to max(c_len); combined
    # with the elementwise mix that requires max(c_len) == Lc, so Lc is used
    # directly (no device->host sync).

    # Dominant input: avoid the pad+cast HBM round trip when already aligned;
    # if a pad is unavoidable, fuse the bf16 cast into that single pass.
    if (Lp != Lc) or (Hp != H):
        bert_in = jnp.pad(bert_embeddings.astype(jnp.bfloat16),
                          ((0, 0), (0, Lp - Lc), (0, Hp - H)))
    else:
        bert_in = bert_embeddings            # native dtype; relu+cast in-kernel

    # TODO(synk): the embedding lookup is a data-dependent row gather with no
    # clean blocked-BlockSpec form, so it stays in plain JAX (table is bf16).
    glove_c = jnp.take(params["word_vectors"], cw_idxs, axis=0)        # (B, Lc, 300) bf16
    glove_c = jnp.pad(glove_c, ((0, 0), (0, Lp - Lc),
                                (0, Dp - glove_c.shape[-1])))          # (B, Lp, Dp)

    idxs_p = cw_idxs.astype(jnp.int32)
    if Lp != Lc:
        idxs_p = jnp.pad(idxs_p, ((0, 0), (0, Lp - Lc)))
    idxs_p = idxs_p[:, None, :]                                        # (B, 1, Lp)

    # Batch tile: amortize the ~0.35us/step overhead; keep each bert block
    # <= ~4 MiB so double-buffered blocks stay well inside v7x's 64 MiB VMEM.
    TB = 1
    for cand in (4, 2):
        if B % cand == 0 and cand * Lp * Hp * bert_in.dtype.itemsize <= 4 * 1024 * 1024:
            TB = cand
            break

    const_w = lambda b: (0, 0)               # weights DMA'd once, VMEM-resident
    out = pl.pallas_call(
        bert_fused_kernel,
        out_shape=jax.ShapeDtypeStruct((B, 8, Lp), jnp.float32),
        grid=(B // TB,),
        in_specs=[
            pl.BlockSpec((TB, Lp, Dp), lambda b: (b, 0, 0)),   # glove_c
            pl.BlockSpec((TB, Lp, Hp), lambda b: (b, 0, 0)),   # bert
            pl.BlockSpec((TB, 1, Lp), lambda b: (b, 0, 0)),    # idxs (mask)
            pl.BlockSpec((Dp, Dp), const_w),                   # w_proj
            pl.BlockSpec((Dp, 2 * Dp), const_w),               # w_gt1 (gate|trans)
            pl.BlockSpec((1, 2 * Dp), const_w),                # b_gt1
            pl.BlockSpec((Dp, 2 * Dp), const_w),               # w_gt2
            pl.BlockSpec((1, 2 * Dp), const_w),                # b_gt2
            pl.BlockSpec((Hp, Dp), const_w),                   # w_down
            pl.BlockSpec((1, Dp), const_w),                    # b_down
            pl.BlockSpec((8, Dp), const_w),                    # w_se_t
            pl.BlockSpec((8, 1), const_w),                     # b_se
        ],
        out_specs=pl.BlockSpec((TB, 8, Lp), lambda b: (b, 0, 0)),
        compiler_params=pltpu.CompilerParams(
            # Batch steps are independent -> shard across v7x's 2 TensorCores.
            # (If xprof shows one TC idle, switch to pltpu.CORE_PARALLEL.)
            dimension_semantics=("parallel",),
            vmem_limit_bytes=32 * 1024 * 1024,   # fits v7x's 64 MiB with headroom
        ),
    )(glove_c, bert_in, idxs_p,
      params["w_proj"],
      params["w_gt1"], params["b_gt1"], params["w_gt2"], params["b_gt2"],
      params["w_down"], params["b_down"], params["w_se_t"], params["b_se"])

    log_p1 = out[:, 0, :Lc]
    log_p2 = out[:, 1, :Lc]
    return log_p1, log_p2


# ----------------------------------------------------------------------------
# Parameter init (deterministic, synthetic; mirrors shapes in BERT.__init__).
# Weights stored pre-transposed (in, out), zero-padded to lane multiples;
# highway gate/trans fused into (Dp, 2*Dp); matmul weights bf16, biases f32.
# ----------------------------------------------------------------------------
def init_params(key, vocab_size, hidden_size):
    Dp = _round_up(D_WORD, LANE)          # 384
    Hp = _round_up(hidden_size, LANE)
    ks = jax.random.split(key, 16)

    def xavier(k, fan_in, fan_out, shape):
        bound = (6.0 / (fan_in + fan_out)) ** 0.5
        return jax.random.uniform(k, shape, jnp.float32, -bound, bound)

    def torch_default(k, fan_in, shape):  # nn.Linear default init
        bound = 1.0 / (fan_in ** 0.5)
        return jax.random.uniform(k, shape, jnp.float32, -bound, bound)

    def pad2(w, rows, cols, dtype=jnp.bfloat16):
        return jnp.pad(w, ((0, rows - w.shape[0]), (0, cols - w.shape[1]))).astype(dtype)

    # layers.Embedding: proj (300->300, no bias) + 2-layer highway
    w_proj = torch_default(ks[1], D_WORD, (D_WORD, D_WORD))

    def fused_highway(kg, kbg, kt, kbt):
        wg = torch_default(kg, D_WORD, (D_WORD, D_WORD))
        bg = torch_default(kbg, D_WORD, (1, D_WORD))
        wt = torch_default(kt, D_WORD, (D_WORD, D_WORD))
        bt = torch_default(kbt, D_WORD, (1, D_WORD))
        w = jnp.concatenate([pad2(wg, Dp, Dp), pad2(wt, Dp, Dp)], axis=1)   # (Dp, 2Dp)
        b = jnp.concatenate([pad2(bg, 1, Dp, jnp.float32),
                             pad2(bt, 1, Dp, jnp.float32)], axis=1)         # (1, 2Dp)
        return w, b

    w_gt1, b_gt1 = fused_highway(ks[2], ks[3], ks[4], ks[5])
    w_gt2, b_gt2 = fused_highway(ks[6], ks[7], ks[8], ks[9])

    # bert_start / bert_end stacked lane-dense into an (8, Dp) head (rows 2..7 zero)
    w_start = xavier(ks[10], D_WORD, 1, (1, D_WORD))
    w_end = xavier(ks[11], D_WORD, 1, (1, D_WORD))
    b_start = torch_default(ks[12], D_WORD, (1,))
    b_end = torch_default(ks[13], D_WORD, (1,))
    w_se_t = jnp.zeros((8, Dp), jnp.float32)
    w_se_t = w_se_t.at[0, :D_WORD].set(w_start[0]).at[1, :D_WORD].set(w_end[0])
    b_se = jnp.zeros((8, 1), jnp.float32)
    b_se = b_se.at[0, 0].set(b_start[0]).at[1, 0].set(b_end[0])

    # proj_down: Linear(hidden_size -> 300), xavier weight + default bias
    w_down = xavier(ks[14], hidden_size, D_WORD, (hidden_size, D_WORD))
    b_down = torch_default(ks[15], hidden_size, (1, D_WORD))

    # GloVe table stored UNPADDED in bf16 (smaller HBM footprint / gather
    # bandwidth); the tiny gathered (B, Lc, 300) slice is padded in the wrapper.
    word_vectors = (jax.random.normal(ks[0], (vocab_size, D_WORD), jnp.float32)
                    * 0.1).astype(jnp.bfloat16)

    # NOTE: self.proj_up is defined in __init__ but never used in forward -> omitted.
    return {
        "word_vectors": word_vectors,                    # (V, 300) bf16
        "w_proj": pad2(w_proj, Dp, Dp),
        "w_gt1": w_gt1, "b_gt1": b_gt1,
        "w_gt2": w_gt2, "b_gt2": b_gt2,
        "w_down": pad2(w_down, Hp, Dp),
        "b_down": pad2(b_down, 1, Dp, jnp.float32),
        "w_se_t": w_se_t.astype(jnp.bfloat16),           # (8, Dp)
        "b_se": b_se,                                    # (8, 1)
    }


if __name__ == "__main__":
    key = jax.random.PRNGKey(0)
    B, Lc, Lq, H, VOCAB = 2, 8, 8, 32, 50
    k_c, k_q, k_b, k_p = jax.random.split(key, 4)

    cw_idxs = jax.random.randint(k_c, (B, Lc), 1, VOCAB, dtype=jnp.int32)
    cw_idxs = cw_idxs.at[1, 6:].set(0)   # padding on row 1; row 0 full -> max(c_len)==Lc
    qw_idxs = jax.random.randint(k_q, (B, Lq), 1, VOCAB, dtype=jnp.int32)
    qw_idxs = qw_idxs.at[1, 5:].set(0)
    bert_embeddings = jax.random.normal(k_b, (B, Lc, H), jnp.float32)

    params = init_params(k_p, VOCAB, H)

    log_p1, log_p2 = bert_forward(cw_idxs, qw_idxs, bert_embeddings, params)
    jax.block_until_ready((log_p1, log_p2))

    # sanity: each row of exp(log_softmax) sums to ~1 and shapes match the spec
    assert log_p1.shape == (B, Lc) and log_p2.shape == (B, Lc)
    s1 = jnp.exp(log_p1).sum(-1)
    s2 = jnp.exp(log_p2).sum(-1)
    assert bool(jnp.all(jnp.abs(s1 - 1.0) < 1e-3)) and bool(jnp.all(jnp.abs(s2 - 1.0) < 1e-3))

    print("KERNEL_OK")
</pallas_src>

<mosaic_0001>
module attributes {stable_mosaic.version = 11 : i64} {
  func.func @bert_fused_kernel(%arg0: i32, %arg1: memref<2x128x384xbf16, #tpu.memory_space<vmem>>, %arg2: memref<2x128x128xbf16, #tpu.memory_space<vmem>>, %arg3: memref<2x1x128xi32, #tpu.memory_space<vmem>>, %arg4: memref<384x384xbf16, #tpu.memory_space<vmem>>, %arg5: memref<384x768xbf16, #tpu.memory_space<vmem>>, %arg6: memref<1x768xf32, #tpu.memory_space<vmem>>, %arg7: memref<384x768xbf16, #tpu.memory_space<vmem>>, %arg8: memref<1x768xf32, #tpu.memory_space<vmem>>, %arg9: memref<128x384xbf16, #tpu.memory_space<vmem>>, %arg10: memref<1x384xf32, #tpu.memory_space<vmem>>, %arg11: memref<8x384xbf16, #tpu.memory_space<vmem>>, %arg12: memref<8x1xf32, #tpu.memory_space<vmem>>, %arg13: memref<2x8x128xf32, #tpu.memory_space<vmem>>) attributes {dimension_semantics = [#tpu.dimension_semantics<parallel>], iteration_bounds = array<i64: 1>, scalar_prefetch = 0 : i64, scratch_operands = 0 : i64, tpu.core_type = #tpu.core_type<tc>, window_params = [{transform_indices = @transform_0, window_bounds = array<i64: 2, 128, 384>}, {transform_indices = @transform_1, window_bounds = array<i64: 2, 128, 128>}, {transform_indices = @transform_2, window_bounds = array<i64: 2, 1, 128>}, {pipeline_mode = #tpu.pipeline_mode<synchronous>, transform_indices = @transform_3, window_bounds = array<i64: 384, 384>}, {pipeline_mode = #tpu.pipeline_mode<synchronous>, transform_indices = @transform_4, window_bounds = array<i64: 384, 768>}, {pipeline_mode = #tpu.pipeline_mode<synchronous>, transform_indices = @transform_5, window_bounds = array<i64: 1, 768>}, {pipeline_mode = #tpu.pipeline_mode<synchronous>, transform_indices = @transform_6, window_bounds = array<i64: 384, 768>}, {pipeline_mode = #tpu.pipeline_mode<synchronous>, transform_indices = @transform_7, window_bounds = array<i64: 1, 768>}, {pipeline_mode = #tpu.pipeline_mode<synchronous>, transform_indices = @transform_8, window_bounds = array<i64: 128, 384>}, {pipeline_mode = #tpu.pipeline_mode<synchronous>, transform_indices = @transform_9, window_bounds = array<i64: 1, 384>}, {pipeline_mode = #tpu.pipeline_mode<synchronous>, transform_indices = @transform_10, window_bounds = array<i64: 8, 384>}, {pipeline_mode = #tpu.pipeline_mode<synchronous>, transform_indices = @transform_11, window_bounds = array<i64: 8, 1>}, {transform_indices = @transform_12, window_bounds = array<i64: 2, 8, 128>}]} {
    %c0 = arith.constant 0 : index
    %c0_0 = arith.constant 0 : index
    %c0_1 = arith.constant 0 : index
    %0 = vector.load %arg1[%c0, %c0_0, %c0_1] : memref<2x128x384xbf16, #tpu.memory_space<vmem>>, vector<2x128x384xbf16>
    %1 = vector.shape_cast %0 : vector<2x128x384xbf16> to vector<256x384xbf16>
    %c0_2 = arith.constant 0 : index
    %c0_3 = arith.constant 0 : index
    %2 = vector.load %arg4[%c0_2, %c0_3] : memref<384x384xbf16, #tpu.memory_space<vmem>>, vector<384x384xbf16>
    %cst = arith.constant dense<0.000000e+00> : vector<256x384xf32>
    %3 = tpu.matmul %1, %2, %cst {dimension_numbers = #tpu.dot_dimension_numbers<[1], [0], [0], [1], [0, 0, 1, 1], [], []>} : vector<256x384xbf16>, vector<384x384xbf16>, vector<256x384xf32> -> vector<256x384xf32>
    %4 = arith.truncf %3 : vector<256x384xf32> to vector<256x384xbf16>
    %c0_4 = arith.constant 0 : index
    %c0_5 = arith.constant 0 : index
    %5 = vector.load %arg5[%c0_4, %c0_5] : memref<384x768xbf16, #tpu.memory_space<vmem>>, vector<384x768xbf16>
    %cst_6 = arith.constant dense<0.000000e+00> : vector<256x768xf32>
    %6 = tpu.matmul %4, %5, %cst_6 {dimension_numbers = #tpu.dot_dimension_numbers<[1], [0], [0], [1], [0, 0, 1, 1], [], []>} : vector<256x384xbf16>, vector<384x768xbf16>, vector<256x768xf32> -> vector<256x768xf32>
    %c0_7 = arith.constant 0 : index
    %c0_8 = arith.constant 0 : index
    %7 = vector.load %arg6[%c0_7, %c0_8] : memref<1x768xf32, #tpu.memory_space<vmem>>, vector<1x768xf32>
    %8 = vector.broadcast %7 : vector<1x768xf32> to vector<256x768xf32>
    %9 = arith.addf %6, %8 : vector<256x768xf32>
    %10 = vector.extract_strided_slice %9 {offsets = [0, 0], sizes = [256, 384], strides = [1, 1]} : vector<256x768xf32> to vector<256x384xf32>
    %11 = arith.negf %10 : vector<256x384xf32>
    %12 = math.exp %11 : vector<256x384xf32>
    %cst_9 = arith.constant 1.000000e+00 : f32
    %13 = vector.broadcast %cst_9 : f32 to vector<256x384xf32>
    %14 = arith.addf %13, %12 : vector<256x384xf32>
    %15 = arith.divf %13, %14 : vector<256x384xf32>
    %16 = vector.extract_strided_slice %9 {offsets = [0, 384], sizes = [256, 384], strides = [1, 1]} : vector<256x768xf32> to vector<256x384xf32>
    %cst_10 = arith.constant 0.000000e+00 : f32
    %17 = vector.broadcast %cst_10 : f32 to vector<256x384xf32>
    %18 = arith.maximumf %16, %17 : vector<256x384xf32>
    %19 = arith.subf %18, %3 : vector<256x384xf32>
    %20 = arith.mulf %15, %19 : vector<256x384xf32>
    %21 = arith.addf %3, %20 : vector<256x384xf32>
    %22 = arith.truncf %21 : vector<256x384xf32> to vector<256x384xbf16>
    %c0_11 = arith.constant 0 : index
    %c0_12 = arith.constant 0 : index
    %23 = vector.load %arg7[%c0_11, %c0_12] : memref<384x768xbf16, #tpu.memory_space<vmem>>, vector<384x768xbf16>
    %cst_13 = arith.constant dense<0.000000e+00> : vector<256x768xf32>
    %24 = tpu.matmul %22, %23, %cst_13 {dimension_numbers = #tpu.dot_dimension_numbers<[1], [0], [0], [1], [0, 0, 1, 1], [], []>} : vector<256x384xbf16>, vector<384x768xbf16>, vector<256x768xf32> -> vector<256x768xf32>
    %c0_14 = arith.constant 0 : index
    %c0_15 = arith.constant 0 : index
    %25 = vector.load %arg8[%c0_14, %c0_15] : memref<1x768xf32, #tpu.memory_space<vmem>>, vector<1x768xf32>
    %26 = vector.broadcast %25 : vector<1x768xf32> to vector<256x768xf32>
    %27 = arith.addf %24, %26 : vector<256x768xf32>
    %28 = vector.extract_strided_slice %27 {offsets = [0, 0], sizes = [256, 384], strides = [1, 1]} : vector<256x768xf32> to vector<256x384xf32>
    %29 = arith.negf %28 : vector<256x384xf32>
    %30 = math.exp %29 : vector<256x384xf32>
    %cst_16 = arith.constant 1.000000e+00 : f32
    %31 = vector.broadcast %cst_16 : f32 to vector<256x384xf32>
    %32 = arith.addf %31, %30 : vector<256x384xf32>
    %33 = arith.divf %31, %32 : vector<256x384xf32>
    %34 = vector.extract_strided_slice %27 {offsets = [0, 384], sizes = [256, 384], strides = [1, 1]} : vector<256x768xf32> to vector<256x384xf32>
    %cst_17 = arith.constant 0.000000e+00 : f32
    %35 = vector.broadcast %cst_17 : f32 to vector<256x384xf32>
    %36 = arith.maximumf %34, %35 : vector<256x384xf32>
    %37 = arith.subf %36, %21 : vector<256x384xf32>
    %38 = arith.mulf %33, %37 : vector<256x384xf32>
    %39 = arith.addf %21, %38 : vector<256x384xf32>
    %c0_18 = arith.constant 0 : index
    %c0_19 = arith.constant 0 : index
    %c0_20 = arith.constant 0 : index
    %40 = vector.load %arg2[%c0_18, %c0_19, %c0_20] : memref<2x128x128xbf16, #tpu.memory_space<vmem>>, vector<2x128x128xbf16>
    %41 = vector.shape_cast %40 : vector<2x128x128xbf16> to vector<256x128xbf16>
    %cst_21 = arith.constant 0.000000e+00 : bf16
    %42 = vector.broadcast %cst_21 : bf16 to vector<256x128xbf16>
    %43 = arith.maximumf %41, %42 : vector<256x128xbf16>
    %c0_22 = arith.constant 0 : index
    %c0_23 = arith.constant 0 : index
    %44 = vector.load %arg9[%c0_22, %c0_23] : memref<128x384xbf16, #tpu.memory_space<vmem>>, vector<128x384xbf16>
    %cst_24 = arith.constant dense<0.000000e+00> : vector<256x384xf32>
    %45 = tpu.matmul %43, %44, %cst_24 {dimension_numbers = #tpu.dot_dimension_numbers<[1], [0], [0], [1], [0, 0, 1, 1], [], []>} : vector<256x128xbf16>, vector<128x384xbf16>, vector<256x384xf32> -> vector<256x384xf32>
    %c0_25 = arith.constant 0 : index
    %c0_26 = arith.constant 0 : index
    %46 = vector.load %arg10[%c0_25, %c0_26] : memref<1x384xf32, #tpu.memory_space<vmem>>, vector<1x384xf32>
    %47 = vector.broadcast %46 : vector<1x384xf32> to vector<256x384xf32>
    %48 = arith.addf %45, %47 : vector<256x384xf32>
    %cst_27 = arith.constant 1.000000e+00 : f32
    %49 = vector.broadcast %cst_27 : f32 to vector<256x384xf32>
    %50 = arith.addf %49, %39 : vector<256x384xf32>
    %51 = arith.mulf %48, %50 : vector<256x384xf32>
    %52 = arith.truncf %51 : vector<256x384xf32> to vector<256x384xbf16>
    %53 = vector.extract_strided_slice %52 {offsets = [0, 0], sizes = [128, 384], strides = [1, 1]} : vector<256x384xbf16> to vector<128x384xbf16>
    %c0_28 = arith.constant 0 : index
    %c0_29 = arith.constant 0 : index
    %54 = vector.load %arg11[%c0_28, %c0_29] : memref<8x384xbf16, #tpu.memory_space<vmem>>, vector<8x384xbf16>
    %cst_30 = arith.constant dense<0.000000e+00> : vector<8x128xf32>
    %55 = tpu.matmul %54, %53, %cst_30 {dimension_numbers = #tpu.dot_dimension_numbers<[1], [1], [0], [0], [0, 0, 1, 0], [], []>} : vector<8x384xbf16>, vector<128x384xbf16>, vector<8x128xf32> -> vector<8x128xf32>
    %c0_31 = arith.constant 0 : index
    %c0_32 = arith.constant 0 : index
    %56 = vector.load %arg12[%c0_31, %c0_32] : memref<8x1xf32, #tpu.memory_space<vmem>>, vector<8x1xf32>
    %57 = vector.broadcast %56 : vector<8x1xf32> to vector<8x128xf32>
    %58 = arith.addf %55, %57 : vector<8x128xf32>
    %c0_33 = arith.constant 0 : index
    %c0_34 = arith.constant 0 : index
    %c0_35 = arith.constant 0 : index
    %59 = vector.load %arg3[%c0_33, %c0_34, %c0_35] : memref<2x1x128xi32, #tpu.memory_space<vmem>>, vector<1x1x128xi32>
    %60 = vector.shape_cast %59 : vector<1x1x128xi32> to vector<1x128xi32>
    %c0_i32 = arith.constant 0 : i32
    %61 = vector.broadcast %c0_i32 : i32 to vector<1x128xi32>
    %62 = arith.cmpi ne, %60, %61 : vector<1x128xi32>
    %cst_36 = arith.constant -1.000000e+30 : f32
    %63 = vector.shape_cast %62 : vector<1x128xi1> to vector<1x128xi1>
    %64 = vector.broadcast %63 : vector<1x128xi1> to vector<8x128xi1>
    %65 = vector.broadcast %cst_36 : f32 to vector<8x128xf32>
    %66 = arith.select %64, %58, %65 : vector<8x128xi1>, vector<8x128xf32>
    %cst_37 = arith.constant dense<0xFF800000> : vector<8xf32>
    %67 = vector.multi_reduction <maximumf>, %66, %cst_37 [1] : vector<8x128xf32> to vector<8xf32>
    %68 = vector.shape_cast %67 : vector<8xf32> to vector<8x1xf32>
    %69 = vector.broadcast %68 : vector<8x1xf32> to vector<8x128xf32>
    %70 = arith.subf %66, %69 : vector<8x128xf32>
    %71 = math.exp %70 : vector<8x128xf32>
    %cst_38 = arith.constant dense<0.000000e+00> : vector<8xf32>
    %72 = vector.multi_reduction <add>, %71, %cst_38 [1] : vector<8x128xf32> to vector<8xf32>
    %73 = vector.shape_cast %72 : vector<8xf32> to vector<8x1xf32>
    %74 = math.log %73 : vector<8x1xf32>
    %75 = vector.broadcast %74 : vector<8x1xf32> to vector<8x128xf32>
    %76 = arith.subf %70, %75 : vector<8x128xf32>
    %c0_39 = arith.constant 0 : index
    %c0_40 = arith.constant 0 : index
    %c0_41 = arith.constant 0 : index
    %77 = vector.load %arg13[%c0_39, %c0_40, %c0_41] : memref<2x8x128xf32, #tpu.memory_space<vmem>>, vector<1x8x128xf32>
    %78 = vector.shape_cast %77 : vector<1x8x128xf32> to vector<8x128xf32>
    %79 = vector.shape_cast %76 : vector<8x128xf32> to vector<1x8x128xf32>
    tpu.vector_store %arg13[%c0_39, %c0_40, %c0_41], %79 {strides = array<i32>} : memref<2x8x128xf32, #tpu.memory_space<vmem>>, vector<1x8x128xf32>,
    %80 = vector.extract_strided_slice %52 {offsets = [128, 0], sizes = [128, 384], strides = [1, 1]} : vector<256x384xbf16> to vector<128x384xbf16>
    %c0_42 = arith.constant 0 : index
    %c0_43 = arith.constant 0 : index
    %81 = vector.load %arg11[%c0_42, %c0_43] : memref<8x384xbf16, #tpu.memory_space<vmem>>, vector<8x384xbf16>
    %cst_44 = arith.constant dense<0.000000e+00> : vector<8x128xf32>
    %82 = tpu.matmul %81, %80, %cst_44 {dimension_numbers = #tpu.dot_dimension_numbers<[1], [1], [0], [0], [0, 0, 1, 0], [], []>} : vector<8x384xbf16>, vector<128x384xbf16>, vector<8x128xf32> -> vector<8x128xf32>
    %c0_45 = arith.constant 0 : index
    %c0_46 = arith.constant 0 : index
    %83 = vector.load %arg12[%c0_45, %c0_46] : memref<8x1xf32, #tpu.memory_space<vmem>>, vector<8x1xf32>
    %84 = vector.broadcast %83 : vector<8x1xf32> to vector<8x128xf32>
    %85 = arith.addf %82, %84 : vector<8x128xf32>
    %c1 = arith.constant 1 : index
    %c0_47 = arith.constant 0 : index
    %c0_48 = arith.constant 0 : index
    %86 = vector.load %arg3[%c1, %c0_47, %c0_48] : memref<2x1x128xi32, #tpu.memory_space<vmem>>, vector<1x1x128xi32>
    %87 = vector.shape_cast %86 : vector<1x1x128xi32> to vector<1x128xi32>
    %c0_i32_49 = arith.constant 0 : i32
    %88 = vector.broadcast %c0_i32_49 : i32 to vector<1x128xi32>
    %89 = arith.cmpi ne, %87, %88 : vector<1x128xi32>
    %cst_50 = arith.constant -1.000000e+30 : f32
    %90 = vector.shape_cast %89 : vector<1x128xi1> to vector<1x128xi1>
    %91 = vector.broadcast %90 : vector<1x128xi1> to vector<8x128xi1>
    %92 = vector.broadcast %cst_50 : f32 to vector<8x128xf32>
    %93 = arith.select %91, %85, %92 : vector<8x128xi1>, vector<8x128xf32>
    %cst_51 = arith.constant dense<0xFF800000> : vector<8xf32>
    %94 = vector.multi_reduction <maximumf>, %93, %cst_51 [1] : vector<8x128xf32> to vector<8xf32>
    %95 = vector.shape_cast %94 : vector<8xf32> to vector<8x1xf32>
    %96 = vector.broadcast %95 : vector<8x1xf32> to vector<8x128xf32>
    %97 = arith.subf %93, %96 : vector<8x128xf32>
    %98 = math.exp %97 : vector<8x128xf32>
    %cst_52 = arith.constant dense<0.000000e+00> : vector<8xf32>
    %99 = vector.multi_reduction <add>, %98, %cst_52 [1] : vector<8x128xf32> to vector<8xf32>
    %100 = vector.shape_cast %99 : vector<8xf32> to vector<8x1xf32>
    %101 = math.log %100 : vector<8x1xf32>
    %102 = vector.broadcast %101 : vector<8x1xf32> to vector<8x128xf32>
    %103 = arith.subf %97, %102 : vector<8x128xf32>
    %c1_53 = arith.constant 1 : index
    %c0_54 = arith.constant 0 : index
    %c0_55 = arith.constant 0 : index
    %104 = vector.load %arg13[%c1_53, %c0_54, %c0_55] : memref<2x8x128xf32, #tpu.memory_space<vmem>>, vector<1x8x128xf32>
    %105 = vector.shape_cast %104 : vector<1x8x128xf32> to vector<8x128xf32>
    %106 = vector.shape_cast %103 : vector<8x128xf32> to vector<1x8x128xf32>
    tpu.vector_store %arg13[%c1_53, %c0_54, %c0_55], %106 {strides = array<i32>} : memref<2x8x128xf32, #tpu.memory_space<vmem>>, vector<1x8x128xf32>,
    return
  }
  func.func @transform_0(%arg0: i32) -> (i32, i32, i32) {
    %c0_i32 = arith.constant 0 : i32
    %c0_i32_0 = arith.constant 0 : i32
    %c0_i32_1 = arith.constant 0 : i32
    return %arg0, %c0_i32, %c0_i32_0 : i32, i32, i32
  }
  func.func @transform_1(%arg0: i32) -> (i32, i32, i32) {
    %c0_i32 = arith.constant 0 : i32
    %c0_i32_0 = arith.constant 0 : i32
    %c0_i32_1 = arith.constant 0 : i32
    return %arg0, %c0_i32, %c0_i32_0 : i32, i32, i32
  }
  func.func @transform_2(%arg0: i32) -> (i32, i32, i32) {
    %c0_i32 = arith.constant 0 : i32
    %c0_i32_0 = arith.constant 0 : i32
    %c0_i32_1 = arith.constant 0 : i32
    return %arg0, %c0_i32, %c0_i32_0 : i32, i32, i32
  }
  func.func @transform_3(%arg0: i32) -> (i32, i32) {
    %c0_i32 = arith.constant 0 : i32
    %c0_i32_0 = arith.constant 0 : i32
    %c0_i32_1 = arith.constant 0 : i32
    return %c0_i32, %c0_i32_0 : i32, i32
  }
  func.func @transform_4(%arg0: i32) -> (i32, i32) {
    %c0_i32 = arith.constant 0 : i32
    %c0_i32_0 = arith.constant 0 : i32
    %c0_i32_1 = arith.constant 0 : i32
    return %c0_i32, %c0_i32_0 : i32, i32
  }
  func.func @transform_5(%arg0: i32) -> (i32, i32) {
    %c0_i32 = arith.constant 0 : i32
    %c0_i32_0 = arith.constant 0 : i32
    %c0_i32_1 = arith.constant 0 : i32
    return %c0_i32, %c0_i32_0 : i32, i32
  }
  func.func @transform_6(%arg0: i32) -> (i32, i32) {
    %c0_i32 = arith.constant 0 : i32
    %c0_i32_0 = arith.constant 0 : i32
    %c0_i32_1 = arith.constant 0 : i32
    return %c0_i32, %c0_i32_0 : i32, i32
  }
  func.func @transform_7(%arg0: i32) -> (i32, i32) {
    %c0_i32 = arith.constant 0 : i32
    %c0_i32_0 = arith.constant 0 : i32
    %c0_i32_1 = arith.constant 0 : i32
    return %c0_i32, %c0_i32_0 : i32, i32
  }
  func.func @transform_8(%arg0: i32) -> (i32, i32) {
    %c0_i32 = arith.constant 0 : i32
    %c0_i32_0 = arith.constant 0 : i32
    %c0_i32_1 = arith.constant 0 : i32
    return %c0_i32, %c0_i32_0 : i32, i32
  }
  func.func @transform_9(%arg0: i32) -> (i32, i32) {
    %c0_i32 = arith.constant 0 : i32
    %c0_i32_0 = arith.constant 0 : i32
    %c0_i32_1 = arith.constant 0 : i32
    return %c0_i32, %c0_i32_0 : i32, i32
  }
  func.func @transform_10(%arg0: i32) -> (i32, i32) {
    %c0_i32 = arith.constant 0 : i32
    %c0_i32_0 = arith.constant 0 : i32
    %c0_i32_1 = arith.constant 0 : i32
    return %c0_i32, %c0_i32_0 : i32, i32
  }
  func.func @transform_11(%arg0: i32) -> (i32, i32) {
    %c0_i32 = arith.constant 0 : i32
    %c0_i32_0 = arith.constant 0 : i32
    %c0_i32_1 = arith.constant 0 : i32
    return %c0_i32, %c0_i32_0 : i32, i32
  }
  func.func @transform_12(%arg0: i32) -> (i32, i32, i32) {
    %c0_i32 = arith.constant 0 : i32
    %c0_i32_0 = arith.constant 0 : i32
    %c0_i32_1 = arith.constant 0 : i32
    return %arg0, %c0_i32, %c0_i32_0 : i32, i32, i32
  }
}

</mosaic_0001>

<bundles_post_ra>
// kernel: bert_forward.1
= control target key start
LH: loop header
LB: loop body
LE: loop exit
PB: predicated region body
PF: predicated region fallthrough
CT: control target
= control target key end

     0   :  { %17 = vsyncpa [#allocation3], 0  ;;  %s17225_s0 = inlined_call_operand.vmem [shape: bf16[2,128,384], index: 0, kind: input, shape index: {}]   ;;  %s17226_s1 = inlined_call_operand.vmem [shape: bf16[2,128,128], index: 1, kind: input, shape index: {}]   ;;  %s17227_s2 = inlined_call_operand.vmem [shape: s32[2,1,128], index: 2, kind: input, shape index: {}]   ;;  %s17228_s3 = inlined_call_operand.vmem [shape: bf16[384,384], index: 3, kind: input, shape index: {}]   ;;  %s17229_s4 = inlined_call_operand.hbm [shape: bf16[384,768], index: 4, kind: input, shape index: {}]   ;;  %s17230_s5 = inlined_call_operand.vmem [shape: f32[1,768], index: 5, kind: input, shape index: {}]   ;;  %s17231_s6 = inlined_call_operand.hbm [shape: bf16[384,768], index: 6, kind: input, shape index: {}]   ;;  %s17232_s7 = inlined_call_operand.vmem [shape: f32[1,768], index: 7, kind: input, shape index: {}]   ;;  %s17233_s8 = inlined_call_operand.vmem [shape: bf16[128,384], index: 8, kind: input, shape index: {}]   ;;  %s17234_s9 = inlined_call_operand.vmem [shape: f32[1,384], index: 9, kind: input, shape index: {}]   ;;  %s17235_s10 = inlined_call_operand.vmem [shape: bf16[8,384], index: 10, kind: input, shape index: {}]   ;;  %s17236_s11 = inlined_call_operand.vmem [shape: f32[8,1], index: 11, kind: input, shape index: {}]   ;;  %s17237_s12 = inlined_call_operand.vmem [shape: f32[2,8,128], index: 12, kind: output, shape index: {}]  }
   0x1   :  { %18 = vsyncpa [#allocation5], 0  ;;  %s11303_s21 = smov [#allocation2]  }
   0x2   :  { %s32_s22 = sshll.u32 %s11303_s21, 4  ;;  %s33_s22 = int_to_ptr.vmem [resolvable:$true] %s32_s22 }
   0x3   :  { %s11267_s23 = scalar_lea.vmem %s33_s22, 18432  ;;  %p11272_p1 = scmp.lt.s32.totalorder %s33_s22, %s33_s22 }
   0x4   :  { %p11268_p0 = scmp.ne.s32.totalorder %s33_s22, %s11267_s23  ;;  %p11273_p2 = scmp.lt.s32.totalorder %s11267_s23, %s11267_s23 }
   0x6   :  { %p11274_p3 = por %p11273_p2, %p11272_p1 }
   0x8   :  { %p11275_p4 = pnand %p11274_p3, %p11268_p0 }
   0xa   :  { %11278 = shalt.err (!%p11275_p4)
}
   0xb   :  { %s11304_s24 = smov 384   ;;  %s11305_s25 = smov 24  }
   0xc   :  { %38 = dma.hbm_to_vmem [thread:$0]  %s17229_s4, 18432, %s33_s22, [#allocation3], %s11304_s24, %s11304_s24, %s11305_s25  }
   0xd   :  { %s11306_s28 = smov [#allocation4]  }
   0xe   :  { %s46_s29 = sshll.u32 %s11306_s28, 4  ;;  %s47_s29 = int_to_ptr.vmem [resolvable:$true] %s46_s29 }
   0xf   :  { %s11287_s30 = scalar_lea.vmem %s47_s29, 18432  ;;  %p11292_p6 = scmp.lt.s32.totalorder %s47_s29, %s47_s29 }
  0x10   :  { %p11288_p5 = scmp.ne.s32.totalorder %s47_s29, %s11287_s30  ;;  %p11293_p7 = scmp.lt.s32.totalorder %s11287_s30, %s11287_s30 }
  0x12   :  { %p11294_p8 = por %p11293_p7, %p11292_p6 }
  0x14   :  { %p11295_p9 = pnand %p11294_p8, %p11288_p5 }
  0x16   :  { %11298 = shalt.err (!%p11295_p9)
}
  0x17   :  { %52 = dma.hbm_to_vmem [thread:$0]  %s17231_s6, 18432, %s47_s29, [#allocation5], %s11304_s24, %s11304_s24, %s11305_s25  }
  0x18   :  { %11299 = dma.done.wait [#allocation3], 18432  }
  0x19   :  { %11300 = vsyncadd [#allocation3], 4294948864 }
  0x1a   :  { %11301 = dma.done.wait [#allocation5], 18432  }
  0x1b   :  { %11302 = vsyncadd [#allocation5], 4294948864  ;;  %v17238_v0 = vmov 0   ;;  %v9849_v1 = vld [vmem:[%s17228_s3 + $0xac] ss:$12 sps:$4 sm:$0xff]   ;;  %vm11309_vm0 = vmmov 0  }
  0x1c   :  { %1095 = vmatprep.mubr.bf16.mxu1 %v17238_v0  ;;  %9848 = vset.pattern.permute.xlu0 %v17238_v0  ;;  %v9851_v2 = vld [vmem:[%s17228_s3 + $0xa8] ss:$12 sps:$4 sm:$0xff]   ;;  %v9854_v4 = vld [vmem:[%s17228_s3 + $0x90] ss:$12 sps:$4 sm:$0xff]   ;;  %v9857_v6 = vld [vmem:[%s17228_s3 + $0x78] ss:$12 sps:$4 sm:$0xff]  }
  0x1d   :  { %870 = vmatprep.subr.bf16.mxu0 %v9849_v1  ;;  %v9852_v3 = vld [vmem:[%s17228_s3 + $0x94] ss:$12 sps:$4 sm:$0xff]   ;;  %v9855_v5 = vld [vmem:[%s17228_s3 + $0x7c] ss:$12 sps:$4 sm:$0xff]   ;;  %v9863_v7 = vld [vmem:[%s17228_s3 + $0x22c] ss:$12 sps:$4 sm:$0xff]  }
  0x1e   :  { %871 = vmatpush1.bf16.msra.mxu0 %v9851_v2  ;;  %v9866_v8 = vld [vmem:[%s17228_s3 + $0x228] ss:$12 sps:$4 sm:$0xff]   ;;  %v9858_v9 = vld [vmem:[%s17228_s3 + $0x64] ss:$12 sps:$4 sm:$0xff]   ;;  %1063 = vmatprep.subr.bf16.mxu1 %v9863_v7  ;;  %v9860_v12 = vld [vmem:[%s17228_s3 + $0x60] ss:$12 sps:$4 sm:$0xff]  }
  0x1f   :  { %872 = vmatprep.subr.bf16.mxu0 %v9852_v3  ;;  %v9869_v10 = vld [vmem:[%s17228_s3 + $0x214] ss:$12 sps:$4 sm:$0xff]   ;;  %1064 = vmatpush1.bf16.msra.mxu1 %v9866_v8  ;;  %v9872_v11 = vld [vmem:[%s17228_s3 + $0x210] ss:$12 sps:$4 sm:$0xff]   ;;  %v9861_v13 = vld [vmem:[%s17228_s3 + $0x4c] ss:$12 sps:$4 sm:$0xff]  }
  0x20   :  { %1065 = vmatprep.subr.bf16.mxu1 %v9869_v10  ;;  %v9875_v14 = vld [vmem:[%s17228_s3 + $0x1fc] ss:$12 sps:$4 sm:$0xff]   ;;  %v9878_v15 = vld [vmem:[%s17228_s3 + $0x1f8] ss:$12 sps:$4 sm:$0xff]   ;;  %v9867_v18 = vld [vmem:[%s17228_s3 + $0x34] ss:$12 sps:$4 sm:$0xff]  }
  0x21   :  { %v9865_v16 = vld [vmem:[%s17228_s3 + $0x48] ss:$12 sps:$4 sm:$0xff]   ;;  %v9881_v17 = vld [vmem:[%s17228_s3 + $0x1e4] ss:$12 sps:$4 sm:$0xff]   ;;  %v9884_v20 = vld [vmem:[%s17228_s3 + $0x1e0] ss:$12 sps:$4 sm:$0xff]  }
  0x22   :  { %873 = vmatpush1.bf16.msra.mxu0 %v9854_v4  ;;  %v9871_v19 = vld [vmem:[%s17228_s3 + $0x30] ss:$12 sps:$4 sm:$0xff]   ;;  %v9887_v21 = vld [vmem:[%s17228_s3 + $0x1cc] ss:$12 sps:$4 sm:$0xff]   ;;  %v9890_v23 = vld [vmem:[%s17228_s3 + $0x1c8] ss:$12 sps:$4 sm:$0xff]  }
  0x23   :  { %874 = vmatprep.subr.bf16.mxu0 %v9855_v5  ;;  %1066 = vmatpush1.bf16.msra.mxu1 %v9872_v11  ;;  %v9873_v22 = vld [vmem:[%s17228_s3 + $0x1c] ss:$12 sps:$4 sm:$0xff]   ;;  %v9877_v24 = vld [vmem:[%s17228_s3 + $0x18] ss:$12 sps:$4 sm:$0xff]   ;;  %v9893_v25 = vld [vmem:[%s17228_s3 + $0x1b4] ss:$12 sps:$4 sm:$0xff]  }
  0x24   :  { %1067 = vmatprep.subr.bf16.mxu1 %v9875_v14  ;;  %v9879_v26 = vld [vmem:[%s17228_s3 + $0x4] ss:$12 sps:$4 sm:$0xff]   ;;  %v9883_v27 = vld [vmem:[%s17228_s3] ss:$12 sps:$4 sm:$0xff]   ;;  %v9899_v29 = vld [vmem:[%s17228_s3 + $0x19c] ss:$12 sps:$4 sm:$0xff]  }
  0x25   :  { %v9896_v28 = vld [vmem:[%s17228_s3 + $0x1b0] ss:$12 sps:$4 sm:$0xff]   ;;  %v9885_v30 = vld [vmem:[%s17228_s3 + $0x16c] ss:$12 sps:$4 sm:$0xff]   ;;  %v9889_v31 = vld [vmem:[%s17228_s3 + $0x168] ss:$12 sps:$4 sm:$0xff]  }
  0x26   :  { %875 = vmatpush1.bf16.msra.mxu0 %v9857_v6  ;;  %v9902_v32 = vld [vmem:[%s17228_s3 + $0x198] ss:$12 sps:$4 sm:$0xff]   ;;  %v9891_v34 = vld [vmem:[%s17228_s3 + $0x154] ss:$12 sps:$4 sm:$0xff]   ;;  %v9895_v35 = vld [vmem:[%s17228_s3 + $0x150] ss:$12 sps:$4 sm:$0xff]  }
  0x27   :  { %876 = vmatprep.subr.bf16.mxu0 %v9858_v9  ;;  %1068 = vmatpush1.bf16.msra.mxu1 %v9878_v15  ;;  %v9905_v33 = vld [vmem:[%s17228_s3 + $0x184] ss:$12 sps:$4 sm:$0xff]   ;;  %v9908_v36 = vld [vmem:[%s17228_s3 + $0x180] ss:$12 sps:$4 sm:$0xff]   ;;  %v9897_v38 = vld [vmem:[%s17228_s3 + $0x13c] ss:$12 sps:$4 sm:$0xff]  }
  0x28   :  { %1069 = vmatprep.subr.bf16.mxu1 %v9881_v17  ;;  %v11494_v37 = vld [vmem:[%s17225_s0 + $0x4] ss:$12 sps:$4 sm:$0xff]   ;;  %v9911_v39 = vld [vmem:[%s17225_s0 + $0x8] ss:$12 sps:$4 sm:$0xff]   ;;  %v9907_v42 = vld [vmem:[%s17228_s3 + $0x120] ss:$12 sps:$4 sm:$0xff]  }
  0x29   :  { %902 = vmatprep.mubr.bf16.mxu0 %v11494_v37  ;;  %v9901_v40 = vld [vmem:[%s17228_s3 + $0x138] ss:$12 sps:$4 sm:$0xff]   ;;  %v9918_v44 = vld [vmem:[%s17225_s0 + $0x20] ss:$12 sps:$4 sm:$0xff]   ;;  %v9939_v45 = vld [vmem:[%s17228_s3 + $0x170] ss:$12 sps:$4 sm:$0xff]  }
  0x2a   :  { %877 = vmatpush1.bf16.msra.mxu0 %v9860_v12  ;;  %v9903_v41 = vld [vmem:[%s17228_s3 + $0x124] ss:$12 sps:$4 sm:$0xff]   ;;  %v9909_v43 = vld [vmem:[%s17228_s3 + $0x10c] ss:$12 sps:$4 sm:$0xff]   ;;  %v9912_v47 = vld [vmem:[%s17228_s3 + $0x108] ss:$12 sps:$4 sm:$0xff]  }
  0x2b   :  { %878 = vmatprep.subr.bf16.mxu0 %v9861_v13  ;;  %1070 = vmatpush1.bf16.msra.mxu1 %v9884_v20  ;;  %v9940_v46 = vld [vmem:[%s17228_s3 + $0xb0] ss:$12 sps:$4 sm:$0xff]   ;;  %v9913_v48 = vld [vmem:[%s17228_s3 + $0xf4] ss:$12 sps:$4 sm:$0xff]   ;;  %v9950_v51 = vld [vmem:[%s17228_s3 + $0x158] ss:$12 sps:$4 sm:$0xff]  }
  0x2c   :  { %1071 = vmatprep.subr.bf16.mxu1 %v9887_v21  ;;  %v9915_v49 = vld [vmem:[%s17228_s3 + $0xf0] ss:$12 sps:$4 sm:$0xff]   ;;  %v9951_v52 = vld [vmem:[%s17228_s3 + $0x98] ss:$12 sps:$4 sm:$0xff]   ;;  %v9922_v56 = vld [vmem:[%s17228_s3 + $0xc0] ss:$12 sps:$4 sm:$0xff]  }
  0x2d   :  { %v9916_v50 = vld [vmem:[%s17228_s3 + $0xdc] ss:$12 sps:$4 sm:$0xff]   ;;  %v9926_v53 = vld [vmem:[%s17225_s0 + $0x38] ss:$12 sps:$4 sm:$0xff]   ;;  %v9961_v58 = vld [vmem:[%s17228_s3 + $0x140] ss:$12 sps:$4 sm:$0xff]  }
  0x2e   :  { %879 = vmatpush1.bf16.msra.mxu0 %v9865_v16  ;;  %v9919_v54 = vld [vmem:[%s17228_s3 + $0xd8] ss:$12 sps:$4 sm:$0xff]   ;;  %v9941_v57 = vld [vmem:[%s17228_s3 + $0x230] ss:$12 sps:$4 sm:$0xff]   ;;  %v9962_v59 = vld [vmem:[%s17228_s3 + $0x80] ss:$12 sps:$4 sm:$0xff]  }
  0x2f   :  { %880 = vmatprep.subr.bf16.mxu0 %v9867_v18  ;;  %1072 = vmatpush1.bf16.msra.mxu1 %v9890_v23  ;;  %v9920_v55 = vld [vmem:[%s17228_s3 + $0xc4] ss:$12 sps:$4 sm:$0xff]   ;;  %v11572_v61 = vld [vmem:[%s17225_s0] ss:$12 sps:$4 sm:$0xff]   ;;  %v11577_v62 = vld [vmem:[%s17225_s0 + $0x1c] ss:$12 sps:$4 sm:$0xff]  }
  0x30   :  { %1073 = vmatprep.subr.bf16.mxu1 %v9893_v25  ;;  %v9930_v60 = vld [vmem:[%s17225_s0 + $0x50] ss:$12 sps:$4 sm:$0xff]   ;;  %v9952_v63 = vld [vmem:[%s17228_s3 + $0x218] ss:$12 sps:$4 sm:$0xff]   ;;  %v9963_v1 = vld [vmem:[%s17228_s3 + $0x200] ss:$12 sps:$4 sm:$0xff]  }
  0x31   :  { %v9972_v2 = vld [vmem:[%s17228_s3 + $0x128] ss:$12 sps:$4 sm:$0xff]   ;;  %v11602_v5 = vld [vmem:[%s17225_s0 + $0x18] ss:$12 sps:$4 sm:$0xff]   ;;  %v9983_v8 = vld [vmem:[%s17228_s3 + $0x110] ss:$12 sps:$4 sm:$0xff]  }
  0x32   :  { %881 = vmatpush1.bf16.msra.mxu0 %v9871_v19  ;;  %v9973_v3 = vld [vmem:[%s17228_s3 + $0x68] ss:$12 sps:$4 sm:$0xff]   ;;  %v9984_v9 = vld [vmem:[%s17228_s3 + $0x50] ss:$12 sps:$4 sm:$0xff]   ;;  %v11628_v11 = vld [vmem:[%s17225_s0 + $0x80] ss:$12 sps:$4 sm:$0xff]  }
  0x33   :  { %882 = vmatprep.subr.bf16.mxu0 %v9873_v22  ;;  %1074 = vmatpush1.bf16.msra.mxu1 %v9896_v28  ;;  %v11597_v4 = vld [vmem:[%s17225_s0 + $0x68] ss:$12 sps:$4 sm:$0xff]   ;;  %v9985_v10 = vld [vmem:[%s17228_s3 + $0x1d0] ss:$12 sps:$4 sm:$0xff]   ;;  %v11638_v13 = vld [vmem:[%s17225_s0 + $0x4c] ss:$12 sps:$4 sm:$0xff]  }
  0x34   :  { %1075 = vmatprep.subr.bf16.mxu1 %v9899_v29  ;;  %v11607_v6 = vld [vmem:[%s17225_s0 + $0x34] ss:$12 sps:$4 sm:$0xff]   ;;  %v11633_v12 = vld [vmem:[%s17225_s0 + $0x30] ss:$12 sps:$4 sm:$0xff]   ;;  %v9990_v14 = vld [vmem:[%s17228_s3 + $0xf8] ss:$12 sps:$4 sm:$0xff]  }
  0x35   :  { %v9974_v7 = vld [vmem:[%s17228_s3 + $0x1e8] ss:$12 sps:$4 sm:$0xff]   ;;  %v9991_v15 = vld [vmem:[%s17228_s3 + $0x38] ss:$12 sps:$4 sm:$0xff]   ;;  %v9996_v17 = vld [vmem:[%s17228_s3 + $0xe0] ss:$12 sps:$4 sm:$0xff]  }
  0x36   :  { %883 = vmatpush1.bf16.msra.mxu0 %v9877_v24  ;;  %v11653_v16 = vld [vmem:[%s17225_s0 + $0x48] ss:$12 sps:$4 sm:$0xff]   ;;  %v11661_v18 = vld [vmem:[%s17225_s0 + $0x64] ss:$12 sps:$4 sm:$0xff]   ;;  %v9997_v21 = vld [vmem:[%s17228_s3 + $0x20] ss:$12 sps:$4 sm:$0xff]  }
  0x37   :  { %884 = vmatprep.subr.bf16.mxu0 %v9879_v26  ;;  %1076 = vmatpush1.bf16.msra.mxu1 %v9902_v32  ;;  %v11666_v19 = vld [vmem:[%s17225_s0 + $0x98] ss:$12 sps:$4 sm:$0xff]   ;;  %v9999_v22 = vld [vmem:[%s17228_s3 + $0xc8] ss:$12 sps:$4 sm:$0xff]   ;;  %v11684_v23 = vld [vmem:[%s17225_s0 + $0xb0] ss:$12 sps:$4 sm:$0xff]  }
  0x38   :  { %1077 = vmatprep.subr.bf16.mxu1 %v9905_v33  ;;  %v9998_v20 = vld [vmem:[%s17228_s3 + $0x1b8] ss:$12 sps:$4 sm:$0xff]   ;;  %v10000_v24 = vld [vmem:[%s17228_s3 + $0x8] ss:$12 sps:$4 sm:$0xff]   ;;  %v10007_v25 = vld [vmem:[%s17228_s3 + $0x1a0] ss:$12 sps:$4 sm:$0xff]  }
  0x39   :  { %v10008_v26 = vld [vmem:[%s17228_s3 + $0x188] ss:$12 sps:$4 sm:$0xff]   ;;  %v11731_v33 = vld [vmem:[%s17225_s0 + $0x90] ss:$12 sps:$4 sm:$0xff]  }
  0x3a   :  { %885 = vmatpush1.bf16.msra.mxu0 %v9883_v27  ;;  %v11698_v27 = vld [vmem:[%s17225_s0 + $0x60] ss:$12 sps:$4 sm:$0xff]   ;;  %v11703_v28 = vld [vmem:[%s17225_s0 + $0x7c] ss:$12 sps:$4 sm:$0xff]  }
  0x3b   :  { %886 = vmatprep.subr.bf16.mxu0 %v9885_v30  ;;  %1078 = vmatpush1.bf16.msra.mxu1 %v9908_v36  ;;  %v10011_v29 = vld [vmem:[#allocation2 + $0x154] ss:$24 sps:$4 sm:$0xff]  }
  0x3c   :  { %9527 = vmatprep.subr.bf16.mxu1 %v9939_v45  ;;  %v11712_v30 = vld [vmem:[%s17225_s0 + $0xc8] ss:$12 sps:$4 sm:$0xff]  }
  0x3d   :  { %v11722_v32 = vld [vmem:[%s17225_s0 + $0x94] ss:$12 sps:$4 sm:$0xff]  }
  0x3e   :  { %887 = vmatpush2.bf16.msra.mxu0 %v9889_v31  ;;  %1096 = vmatmul.mubr.bf16.vlgmr.msra.gmra.mxu1 %v9911_v39  ;;  %v11717_v31 = vld [vmem:[%s17225_s0 + $0x78] ss:$12 sps:$4 sm:$0xff]   ;;  %v11750_v36 = vld [vmem:[%s17225_s0 + $0xa8] ss:$12 sps:$4 sm:$0xff]  }
  0x3f   :  { %888 = vmatprep.subr.bf16.mxu0 %v9891_v34  ;;  %1105 = vmatprep.mubr.bf16.mxu1 %v17238_v0  ;;  %v11736_v34 = vld [vmem:[%s17225_s0 + $0xac] ss:$12 sps:$4 sm:$0xff]   ;;  %v11798_v45 = vld [vmem:[%s17225_s0 + $0x128] ss:$12 sps:$4 sm:$0xff]  }
  0x40   :  { %9528 = vmatpush3.bf16.msra.mxu1 %v9940_v46  ;;  %v11760_v39 = vld [vmem:[%s17225_s0 + $0xf8] ss:$12 sps:$4 sm:$0xff]   ;;  %v11807_v46 = vld [vmem:[%s17225_s0 + $0x140] ss:$12 sps:$4 sm:$0xff]  }
  0x41   :  { %9529 = vmatprep.subr.bf16.mxu1 %v9950_v51  ;;  %v11836_v51 = vld [vmem:[%s17225_s0 + $0x124] ss:$12 sps:$4 sm:$0xff]  }
  0x42   :  { %889 = vmatpush2.bf16.msra.mxu0 %v9895_v35  ;;  %v11741_v35 = vld [vmem:[%s17225_s0 + $0xe0] ss:$12 sps:$4 sm:$0xff]  }
  0x43   :  { %890 = vmatprep.subr.bf16.mxu0 %v9897_v38  ;;  %v11755_v38 = vld [vmem:[%s17225_s0 + $0xc4] ss:$12 sps:$4 sm:$0xff]  }
  0x44   :  { %9530 = vmatpush3.bf16.msra.mxu1 %v9951_v52  ;;  %v11845_v52 = vld [vmem:[%s17225_s0 + $0x170] ss:$12 sps:$4 sm:$0xff]  }
  0x45   :  { %9531 = vmatprep.subr.bf16.mxu1 %v9961_v58  ;;  %v10059_v58 = vld [vmem:[#allocation2 + $0x454] ss:$24 sps:$4 sm:$0xff]  }
  0x46   :  { %891 = vmatpush2.bf16.msra.mxu0 %v9901_v40  ;;  %1106 = vmatmul.mubr.bf16.gmra.mxu1 %v9918_v44  ;;  %v11769_v40 = vld [vmem:[%s17225_s0 + $0x110] ss:$12 sps:$4 sm:$0xff]   ;;  %v11793_v44 = vld [vmem:[%s17225_s0 + $0xf4] ss:$12 sps:$4 sm:$0xff]  }
  0x47   :  { %892 = vmatprep.subr.bf16.mxu0 %v9903_v41  ;;  %1115 = vmatprep.mubr.bf16.mxu1 %v17238_v0  ;;  %v11774_v41 = vld [vmem:[%s17225_s0 + $0xc0] ss:$12 sps:$4 sm:$0xff]  }
  0x48   :  { %9532 = vmatpush3.bf16.msra.mxu1 %v9962_v59  ;;  %v11883_v59 = vld [vmem:[%s17225_s0 + $0x16c] ss:$12 sps:$4 sm:$0xff]  }
  0x49   :  { %9533 = vmatprep.subr.bf16.mxu1 %v9972_v2  ;;  %v10014_v2 = vld [vmem:[#allocation2 + $0x124] ss:$24 sps:$4 sm:$0xff]  }
  0x4a   :  { %893 = vmatpush2.bf16.msra.mxu0 %v9907_v42  ;;  %v11779_v42 = vld [vmem:[%s17225_s0 + $0xdc] ss:$12 sps:$4 sm:$0xff]  }
  0x4b   :  { %894 = vmatprep.subr.bf16.mxu0 %v9909_v43  ;;  %v11788_v43 = vld [vmem:[%s17225_s0 + $0xd8] ss:$12 sps:$4 sm:$0xff]  }
  0x4c   :  { %9534 = vmatpush3.bf16.msra.mxu1 %v9973_v3  ;;  %v10012_v3 = vld [vmem:[#allocation2 + $0x120] ss:$24 sps:$4 sm:$0xff]  }
  0x4d   :  { %9535 = vmatprep.subr.bf16.mxu1 %v9983_v8  ;;  %v10015_v8 = vld [vmem:[#allocation2 + $0xf0] ss:$24 sps:$4 sm:$0xff]  }
  0x4e   :  { %895 = vmatpush2.bf16.msra.mxu0 %v9912_v47  ;;  %1116 = vmatmul.mubr.bf16.gmra.mxu1 %v9926_v53  ;;  %v11812_v47 = vld [vmem:[%s17225_s0 + $0xf0] ss:$12 sps:$4 sm:$0xff]   ;;  %v11850_v53 = vld [vmem:[%s17225_s0 + $0x120] ss:$12 sps:$4 sm:$0xff]  }
  0x4f   :  { %896 = vmatprep.subr.bf16.mxu0 %v9913_v48  ;;  %1125 = vmatprep.mubr.bf16.mxu1 %v17238_v0  ;;  %v11817_v48 = vld [vmem:[%s17225_s0 + $0x10c] ss:$12 sps:$4 sm:$0xff]  }
  0x50   :  { %9536 = vmatpush3.bf16.msra.mxu1 %v9984_v9  ;;  %v10020_v9 = vld [vmem:[#allocation2 + $0xc4] ss:$24 sps:$4 sm:$0xff]  }
  0x51   :  { %9537 = vmatprep.subr.bf16.mxu1 %v9990_v14  ;;  %v11256_v14 = vld [vmem:[%s17225_s0 + $0x50] ss:$12 sps:$4 sm:$0xff]  }
  0x52   :  { %897 = vmatpush2.bf16.msra.mxu0 %v9915_v49  ;;  %v11826_v49 = vld [vmem:[%s17225_s0 + $0x158] ss:$12 sps:$4 sm:$0xff]  }
  0x53   :  { %898 = vmatprep.subr.bf16.mxu0 %v9916_v50  ;;  %v11831_v50 = vld [vmem:[%s17225_s0 + $0x108] ss:$12 sps:$4 sm:$0xff]  }
  0x54   :  { %9538 = vmatpush3.bf16.msra.mxu1 %v9991_v15  ;;  %v10023_v15 = vld [vmem:[#allocation2 + $0x94] ss:$24 sps:$4 sm:$0xff]  }
  0x55   :  { %9539 = vmatprep.subr.bf16.mxu1 %v9996_v17  ;;  %v10026_v17 = vld [vmem:[#allocation2 + $0x64] ss:$24 sps:$4 sm:$0xff]  }
  0x56   :  { %899 = vmatpush2.bf16.msra.mxu0 %v9919_v54  ;;  %1126 = vmatmul.mubr.bf16.gmra.mxu1 %v9930_v60  ;;  %v11855_v54 = vld [vmem:[%s17225_s0 + $0x13c] ss:$12 sps:$4 sm:$0xff]  }
  0x57   :  { %900 = vmatprep.subr.bf16.mxu0 %v9920_v55  ;;  %1135 = vmatprep.mubr.bf16.mxu1 %v17238_v0  ;;  %v11864_v55 = vld [vmem:[%s17225_s0 + $0x138] ss:$12 sps:$4 sm:$0xff]   ;;  %v11892_v60 = vld [vmem:[%s17225_s0 + $0x168] ss:$12 sps:$4 sm:$0xff]  }
  0x58   :  { %9540 = vmatpush3.bf16.msra.mxu1 %v9997_v21  ;;  %v10032_v21 = vld [vmem:[#allocation2 + $0x4] ss:$24 sps:$4 sm:$0xff]  }
  0x59   :  { %9541 = vmatprep.subr.bf16.mxu1 %v9999_v22  ;;  %v10075_v22 = vld [vmem:[#allocation2 + $0x3c0] ss:$24 sps:$4 sm:$0xff]  }
  0x5a   :  { %901 = vmatpush2.bf16.msra.mxu0 %v9922_v56  ;;  %v11869_v56 = vld [vmem:[%s17225_s0 + $0x154] ss:$12 sps:$4 sm:$0xff]  }
  0x5b   :  { %9705 = vmatprep.subr.bf16.mxu0 %v9941_v57 }
  0x5c   :  { %9542 = vmatpush3.bf16.msra.mxu1 %v10000_v24  ;;  %v10077_v24 = vld [vmem:[#allocation2 + $0x3c4] ss:$24 sps:$4 sm:$0xff]  }
  0x5d   :  { %903 = vmatmul.mubr.bf16.vlgmr.msra.gmra.mxu0 %v11572_v61  ;;  %2715 = vmatprep.subr.bf16.mxu1 %v10059_v58 }
  0x5e   :  { %912 = vmatprep.mubr.bf16.mxu0 %v11577_v62  ;;  %9706 = vmatpush3.bf16.msra.mxu0 %v9941_v57  ;;  %v10057_v57 = vld [vmem:[#allocation2 + $0x450] ss:$24 sps:$4 sm:$0xff]  }
  0x5f   :  { %9707 = vmatprep.subr.bf16.mxu0 %v9952_v63  ;;  %1136 = vmatmul.mubr.bf16.gmra.mxu1 %v11597_v4 }
  0x60   :  { %1145 = vmatprep.mubr.bf16.mxu1 %v17238_v0 }
  0x62   :  { %9708 = vmatpush3.bf16.msra.mxu0 %v9952_v63  ;;  %v11253_v63 = vld [vmem:[%s17225_s0 + $0x8] ss:$12 sps:$4 sm:$0xff]  }
  0x63   :  { %9709 = vmatprep.subr.bf16.mxu0 %v9963_v1 }
  0x65   :  { %913 = vmatmul.mubr.bf16.gmra.mxu0 %v11602_v5 }
  0x66   :  { %922 = vmatprep.mubr.bf16.mxu0 %v11607_v6  ;;  %9710 = vmatpush3.bf16.msra.mxu0 %v9963_v1  ;;  %v10009_v1 = vld [vmem:[#allocation2 + $0x150] ss:$24 sps:$4 sm:$0xff]  }
  0x67   :  { %9711 = vmatprep.subr.bf16.mxu0 %v9974_v7  ;;  %1146 = vmatmul.mubr.bf16.gmra.mxu1 %v11628_v11 }
  0x68   :  { %1155 = vmatprep.mubr.bf16.mxu1 %v17238_v0 }
  0x6a   :  { %9712 = vmatpush3.bf16.msra.mxu0 %v9974_v7  ;;  %v11255_v7 = vld [vmem:[%s17225_s0 + $0x38] ss:$12 sps:$4 sm:$0xff]  }
  0x6b   :  { %9713 = vmatprep.subr.bf16.mxu0 %v9985_v10 }
  0x6d   :  { %923 = vmatmul.mubr.bf16.gmra.mxu0 %v11633_v12 }
  0x6e   :  { %932 = vmatprep.mubr.bf16.mxu0 %v11638_v13  ;;  %9714 = vmatpush3.bf16.msra.mxu0 %v9985_v10  ;;  %v10018_v10 = vld [vmem:[#allocation2 + $0xc0] ss:$24 sps:$4 sm:$0xff]  }
  0x6f   :  { %9715 = vmatprep.subr.bf16.mxu0 %v9998_v20  ;;  %1156 = vmatmul.mubr.bf16.gmra.mxu1 %v11666_v19 }
  0x70   :  { %1165 = vmatprep.mubr.bf16.mxu1 %v17238_v0 }
  0x72   :  { %9716 = vmatpush3.bf16.msra.mxu0 %v9998_v20  ;;  %v10027_v20 = vld [vmem:[#allocation2 + $0x30] ss:$24 sps:$4 sm:$0xff]  }
  0x73   :  { %9717 = vmatprep.subr.bf16.mxu0 %v10007_v25 }
  0x75   :  { %933 = vmatmul.mubr.bf16.gmra.mxu0 %v11653_v16 }
  0x76   :  { %942 = vmatprep.mubr.bf16.mxu0 %v11661_v18  ;;  %9718 = vmatpush3.bf16.msra.mxu0 %v10007_v25  ;;  %v10033_v25 = vld [vmem:[#allocation2 + $0x2d0] ss:$24 sps:$4 sm:$0xff]  }
  0x77   :  { %9719 = vmatprep.subr.bf16.mxu0 %v10008_v26  ;;  %1166 = vmatmul.mubr.bf16.gmra.mxu1 %v11684_v23 }
  0x78   :  { %1175 = vmatprep.mubr.bf16.mxu1 %v17238_v0 }
  0x7a   :  { %9720 = vmatpush3.bf16.msra.mxu0 %v10008_v26  ;;  %v10038_v26 = vld [vmem:[#allocation2 + $0x2a4] ss:$24 sps:$4 sm:$0xff]  }
  0x7b   :  { %2522 = vmatprep.subr.bf16.mxu0 %v10011_v29  ;;  %v10044_v29 = vld [vmem:[#allocation2 + $0x244] ss:$24 sps:$4 sm:$0xff]  }
  0x7d   :  { %943 = vmatmul.mubr.bf16.gmra.mxu0 %v11698_v27 }
  0x7e   :  { %952 = vmatprep.mubr.bf16.mxu0 %v11703_v28 }
  0x7f   :  { %1176 = vmatmul.mubr.bf16.gmra.mxu1 %v11712_v30 }
  0x80   :  { %1185 = vmatprep.mubr.bf16.mxu1 %v17238_v0 }
  0x85   :  { %953 = vmatmul.mubr.bf16.gmra.mxu0 %v11717_v31 }
  0x86   :  { %962 = vmatprep.mubr.bf16.mxu0 %v11722_v32 }
  0x87   :  { %1186 = vmatmul.mubr.bf16.gmra.mxu1 %v11741_v35 }
  0x88   :  { %1195 = vmatprep.mubr.bf16.mxu1 %v17238_v0 }
  0x8d   :  { %963 = vmatmul.mubr.bf16.gmra.mxu0 %v11731_v33 }
  0x8e   :  { %972 = vmatprep.mubr.bf16.mxu0 %v11736_v34 }
  0x8f   :  { %1196 = vmatmul.mubr.bf16.gmra.mxu1 %v11760_v39 }
  0x90   :  { %1205 = vmatprep.mubr.bf16.mxu1 %v17238_v0 }
  0x95   :  { %973 = vmatmul.mubr.bf16.gmra.mxu0 %v11750_v36 }
  0x96   :  { %982 = vmatprep.mubr.bf16.mxu0 %v11755_v38 }
  0x97   :  { %1206 = vmatmul.mubr.bf16.gmra.mxu1 %v11769_v40 }
  0x98   :  { %1215 = vmatprep.mubr.bf16.mxu1 %v17238_v0 }
  0x9d   :  { %983 = vmatmul.mubr.bf16.gmra.mxu0 %v11774_v41 }
  0x9e   :  { %992 = vmatprep.mubr.bf16.mxu0 %v11779_v42 }
  0x9f   :  { %1216 = vmatmul.mubr.bf16.gmra.mxu1 %v11798_v45 }
  0xa0   :  { %1225 = vmatprep.mubr.bf16.mxu1 %v17238_v0 }
  0xa5   :  { %993 = vmatmul.mubr.bf16.gmra.mxu0 %v11788_v43 }
  0xa6   :  { %1002 = vmatprep.mubr.bf16.mxu0 %v11793_v44 }
  0xa7   :  { %1226 = vmatmul.mubr.bf16.gmra.mxu1 %v11807_v46 }
  0xa8   :  { %1235 = vmatprep.mubr.bf16.mxu1 %v17238_v0 }
  0xad   :  { %1003 = vmatmul.mubr.bf16.gmra.mxu0 %v11812_v47 }
  0xae   :  { %1012 = vmatprep.mubr.bf16.mxu0 %v11817_v48 }
  0xaf   :  { %1236 = vmatmul.mubr.bf16.gmra.mxu1 %v11826_v49 }
  0xb0   :  { %1245 = vmatprep.mubr.bf16.mxu1 %v17238_v0 }
  0xb5   :  { %1013 = vmatmul.mubr.bf16.gmra.mxu0 %v11831_v50 }
  0xb6   :  { %1022 = vmatprep.mubr.bf16.mxu0 %v11836_v51 }
  0xb7   :  { %1246 = vmatmul.mubr.bf16.gmra.mxu1 %v11845_v52 }
  0xb8   :  { %1288 = vmatprep.mubr.bf16.mxu1 %v11494_v37  ;;  %v11878_v37 = vld [vmem:[%s17225_s0 + $0x150] ss:$12 sps:$4 sm:$0xff]  }
  0xbd   :  { %1023 = vmatmul.mubr.bf16.gmra.mxu0 %v11850_v53 }
  0xbe   :  { %1032 = vmatprep.mubr.bf16.mxu0 %v11855_v54 }
  0xbf   :  { %1289 = vmatmul.mubr.bf16.vlgmr.msra.gmra.mxu1 %v11572_v61  ;;  %v10060_v61 = vld [vmem:[#allocation2 + $0x420] ss:$24 sps:$4 sm:$0xff]  }
  0xc0   :  { %1296 = vmatprep.mubr.bf16.mxu1 %v11577_v62  ;;  %2716 = vmatpush1.bf16.msra.mxu1 %v10057_v57  ;;  %v10062_v62 = vld [vmem:[#allocation2 + $0x424] ss:$24 sps:$4 sm:$0xff]  }
  0xc1   :  { %2717 = vmatprep.subr.bf16.mxu1 %v10062_v62  ;;  %v10051_v62 = vld [vmem:[#allocation2 + $0x1b0] ss:$24 sps:$4 sm:$0xff]  }
  0xc4   :  { %2718 = vmatpush1.bf16.msra.mxu1 %v10060_v61 }
  0xc5   :  { %1033 = vmatmul.mubr.bf16.gmra.mxu0 %v11864_v55 }
  0xc6   :  { %1042 = vmatprep.mubr.bf16.mxu0 %v11869_v56 }
  0xc7   :  { %1297 = vmatmul.mubr.bf16.gmra.mxu1 %v11602_v5  ;;  %v11254_v5 = vld [vmem:[%s17225_s0 + $0x20] ss:$12 sps:$4 sm:$0xff]  }
  0xc8   :  { %1304 = vmatprep.mubr.bf16.mxu1 %v11607_v6  ;;  %v10017_v6 = vld [vmem:[#allocation2 + $0xf4] ss:$24 sps:$4 sm:$0xff]  }
  0xcd   :  { %1043 = vmatmul.mubr.bf16.gmra.mxu0 %v11878_v37 }
  0xce   :  { %1052 = vmatprep.mubr.bf16.mxu0 %v11883_v59 }
  0xcf   :  { %1305 = vmatmul.mubr.bf16.gmra.mxu1 %v11633_v12  ;;  %v10063_v12 = vld [vmem:[#allocation2 + $0x3f0] ss:$24 sps:$4 sm:$0xff]  }
  0xd0   :  { %1312 = vmatprep.mubr.bf16.mxu1 %v11638_v13  ;;  %v10065_v13 = vld [vmem:[#allocation2 + $0x3f4] ss:$24 sps:$4 sm:$0xff]  }
  0xd1   :  { %2719 = vmatprep.subr.bf16.mxu1 %v10065_v13  ;;  %v10125_v13 = vld [vmem:[#allocation2 + $0x304] ss:$24 sps:$4 sm:$0xff]  }
  0xd2   :  { %2720 = vmatpush1.bf16.msra.mxu1 %v10063_v12 }
  0xd3   :  { %2721 = vmatprep.subr.bf16.mxu1 %v10077_v24 }
  0xd5   :  { %1053 = vmatmul.mubr.bf16.gmra.mxu0 %v11892_v60 }
  0xd6   :  { %9721 = vmatprep.mubr.bf16.mxu0 %v11253_v63  ;;  %2722 = vmatpush1.bf16.msra.mxu1 %v10075_v22  ;;  %v10056_v63 = vld [vmem:[#allocation2 + $0x184] ss:$24 sps:$4 sm:$0xff]   ;;  %v10066_v22 = vld [vmem:[#allocation2 + $0x158] ss:$24 sps:$4 sm:$0xff]  }
  0xd7   :  { %1313 = vmatmul.mubr.bf16.gmra.mxu1 %v11653_v16  ;;  %v10021_v16 = vld [vmem:[#allocation2 + $0x90] ss:$24 sps:$4 sm:$0xff]  }
  0xd8   :  { %1320 = vmatprep.mubr.bf16.mxu1 %v11661_v18  ;;  %v10024_v18 = vld [vmem:[#allocation2 + $0x60] ss:$24 sps:$4 sm:$0xff]  }
  0xdd   :  { %9722 = vmatmul.mubr.bf16.vlgmr.msra.gmra.mxu0 %v11254_v5 }
  0xde   :  { %9725 = vmatprep.mubr.bf16.mxu0 %v11255_v7  ;;  %2523 = vmatpush1.bf16.msra.mxu0 %v10009_v1  ;;  %v10054_v1 = vld [vmem:[#allocation2 + $0x180] ss:$24 sps:$4 sm:$0xff]  }
  0xdf   :  { %2524 = vmatprep.subr.bf16.mxu0 %v10014_v2  ;;  %1321 = vmatmul.mubr.bf16.gmra.mxu1 %v11698_v27  ;;  %v10041_v27 = vld [vmem:[#allocation2 + $0x274] ss:$24 sps:$4 sm:$0xff]  }
  0xe0   :  { %1328 = vmatprep.mubr.bf16.mxu1 %v11703_v28  ;;  %v10039_v28 = vld [vmem:[#allocation2 + $0x270] ss:$24 sps:$4 sm:$0xff]   ;;  %v10068_v2 = vld [vmem:[#allocation2 + $0x15c] ss:$24 sps:$4 sm:$0xff]  }
  0xe2   :  { %2525 = vmatpush1.bf16.msra.mxu0 %v10012_v3 }
  0xe3   :  { %2526 = vmatprep.subr.bf16.mxu0 %v10017_v6  ;;  %v10119_v6 = vld [vmem:[#allocation2 + $0x334] ss:$24 sps:$4 sm:$0xff]  }
  0xe5   :  { %9726 = vmatmul.mubr.bf16.gmra.mxu0 %v11256_v14 }
  0xe6   :  { %2527 = vmatpush1.bf16.msra.mxu0 %v10015_v8  ;;  %9729 = vmatprep.mubr.bf16.mxu0 %v11597_v4  ;;  %v10029_v4 = vld [vmem:[#allocation2 + $0x34] ss:$24 sps:$4 sm:$0xff]   ;;  %v10117_v8 = vld [vmem:[#allocation2 + $0x330] ss:$24 sps:$4 sm:$0xff]  }
  0xe7   :  { %2528 = vmatprep.subr.bf16.mxu0 %v10020_v9  ;;  %1329 = vmatmul.mubr.bf16.gmra.mxu1 %v11717_v31  ;;  %v10090_v31 = vld [vmem:[#allocation2 + $0x390] ss:$24 sps:$4 sm:$0xff]  }
  0xe8   :  { %1336 = vmatprep.mubr.bf16.mxu1 %v11722_v32  ;;  %v10092_v32 = vld [vmem:[#allocation2 + $0x394] ss:$24 sps:$4 sm:$0xff]  }
  0xe9   :  { %2723 = vmatprep.subr.bf16.mxu1 %v10092_v32 }
  0xea   :  { %2529 = vmatpush1.bf16.msra.mxu0 %v10018_v10  ;;  %2724 = vmatpush1.bf16.msra.mxu1 %v10090_v31 }
  0xeb   :  { %2530 = vmatprep.subr.bf16.mxu0 %v10023_v15 }
  0xed   :  { %9730 = vmatmul.mubr.bf16.gmra.mxu0 %v11628_v11  ;;  %v10030_v11 = vld [vmem:[#allocation2] ss:$24 sps:$4 sm:$0xff]  }
  0xee   :  { %2531 = vmatpush1.bf16.msra.mxu0 %v10021_v16  ;;  %9733 = vmatprep.mubr.bf16.mxu0 %v11666_v19  ;;  %v10035_v19 = vld [vmem:[#allocation2 + $0x2d4] ss:$24 sps:$4 sm:$0xff]  }
  0xef   :  { %2532 = vmatprep.subr.bf16.mxu0 %v10026_v17  ;;  %1337 = vmatmul.mubr.bf16.gmra.mxu1 %v11731_v33 }
  0xf0   :  { %1344 = vmatprep.mubr.bf16.mxu1 %v11736_v34  ;;  %v10042_v34 = vld [vmem:[#allocation2 + $0x240] ss:$24 sps:$4 sm:$0xff]  }
  0xf2   :  { %2533 = vmatpush1.bf16.msra.mxu0 %v10024_v18 }
  0xf3   :  { %2534 = vmatprep.subr.bf16.mxu0 %v10029_v4 }
  0xf5   :  { %9734 = vmatmul.mubr.bf16.gmra.mxu0 %v11684_v23  ;;  %v10036_v23 = vld [vmem:[#allocation2 + $0x2a0] ss:$24 sps:$4 sm:$0xff]  }
  0xf6   :  { %2535 = vmatpush1.bf16.msra.mxu0 %v10027_v20  ;;  %9737 = vmatprep.mubr.bf16.mxu0 %v11712_v30 }
  0xf7   :  { %2536 = vmatprep.subr.bf16.mxu0 %v10032_v21  ;;  %1345 = vmatmul.mubr.bf16.gmra.mxu1 %v11750_v36 }
  0xf8   :  { %1352 = vmatprep.mubr.bf16.mxu1 %v11755_v38 }
  0xfa   :  { %2537 = vmatpush1.bf16.msra.mxu0 %v10030_v11  ;;  %v10071_v11 = vld [vmem:[#allocation2 + $0x12c] ss:$24 sps:$4 sm:$0xff]  }
  0xfb   :  { %2538 = vmatprep.subr.bf16.mxu0 %v10035_v19 }
  0xfd   :  { %9738 = vmatmul.mubr.bf16.gmra.mxu0 %v11741_v35  ;;  %v10047_v35 = vld [vmem:[#allocation2 + $0x214] ss:$24 sps:$4 sm:$0xff]  }
  0xfe   :  { %2539 = vmatpush2.bf16.msra.mxu0 %v10033_v25  ;;  %9741 = vmatprep.mubr.bf16.mxu0 %v11760_v39  ;;  %v11926_v30 = vpop.f32.mrf.mxu1  ;;  %v10045_v39 = vld [vmem:[#allocation2 + $0x210] ss:$24 sps:$4 sm:$0xff]  }
  0xff   :  { %2540 = vmatprep.subr.bf16.mxu0 %v10038_v26  ;;  %1353 = vmatmul.mubr.bf16.gmra.mxu1 %v11774_v41  ;;  %v10050_v41 = vld [vmem:[#allocation2 + $0x1e4] ss:$24 sps:$4 sm:$0xff]   ;;  %v10069_v26 = vld [vmem:[#allocation2 + $0x128] ss:$24 sps:$4 sm:$0xff]  }
 0x100   :  { %1360 = vmatprep.mubr.bf16.mxu1 %v11779_v42  ;;  %v11931_v33 = vpop.f32.mrf.mxu1  ;;  %v10048_v42 = vld [vmem:[#allocation2 + $0x1e0] ss:$24 sps:$4 sm:$0xff]  }
 0x102   :  { %2541 = vmatpush2.bf16.msra.mxu0 %v10036_v23  ;;  %v1101_v36 = vpop.f32.mrf.mxu1 }
 0x103   :  { %2542 = vmatprep.subr.bf16.mxu0 %v10041_v27 }
 0x104   :  { %v1103_v38 = vpop.f32.mrf.mxu1 }
 0x105   :  { %9742 = vmatmul.mubr.bf16.gmra.mxu0 %v11769_v40 }
 0x106   :  { %2543 = vmatpush2.bf16.msra.mxu0 %v10039_v28  ;;  %9745 = vmatprep.mubr.bf16.mxu0 %v11798_v45  ;;  %v11934_v57 = vpop.f32.mrf.mxu1  ;;  %v10053_v45 = vld [vmem:[#allocation2 + $0x1b4] ss:$24 sps:$4 sm:$0xff]  }
 0x107   :  { %2544 = vmatprep.subr.bf16.mxu0 %v10044_v29  ;;  %1361 = vmatmul.mubr.bf16.gmra.mxu1 %v11788_v43  ;;  %v10074_v28 = vld [vmem:[#allocation2 + $0xfc] ss:$24 sps:$4 sm:$0xff]  }
 0x108   :  { %1368 = vmatprep.mubr.bf16.mxu1 %v11793_v44  ;;  %v11939_v40 = vpop.f32.mrf.mxu1  ;;  %v10105_v44 = vld [vmem:[#allocation2 + $0x360] ss:$24 sps:$4 sm:$0xff]  }
 0x10a   :  { %2545 = vmatpush2.bf16.msra.mxu0 %v10042_v34  ;;  %v1111_v58 = vpop.f32.mrf.mxu1 }
 0x10b   :  { %2546 = vmatprep.subr.bf16.mxu0 %v10047_v35 }
 0x10c   :  { %v11942_v61 = vpop.f32.mrf.mxu1 }
 0x10d   :  { %9746 = vmatmul.mubr.bf16.gmra.mxu0 %v11807_v46  ;;  %v10107_v46 = vld [vmem:[#allocation2 + $0x364] ss:$24 sps:$4 sm:$0xff]  }
 0x10e   :  { %2547 = vmatpush2.bf16.msra.mxu0 %v10045_v39  ;;  %9749 = vmatprep.mubr.bf16.mxu0 %v11826_v49  ;;  %v11944_v43 = vpop.f32.mrf.mxu1 }
 0x10f   :  { %2548 = vmatprep.subr.bf16.mxu0 %v10050_v41  ;;  %1369 = vmatmul.mubr.bf16.gmra.mxu1 %v11812_v47 }
 0x110   :  { %1376 = vmatprep.mubr.bf16.mxu1 %v11817_v48  ;;  %v11949_v49 = vpop.f32.mrf.mxu1  ;;  %2725 = vmatprep.subr.bf16.mxu1 %v10107_v46 }
 0x111   :  { %2726 = vmatpush1.bf16.msra.mxu1 %v10105_v44 }
 0x112   :  { %2549 = vmatpush2.bf16.msra.mxu0 %v10048_v42  ;;  %v11951_v3 = vpop.f32.mrf.mxu1  ;;  %2727 = vmatprep.subr.bf16.mxu1 %v10119_v6  ;;  %v10084_v6 = vld [vmem:[#allocation2 + $0x68] ss:$24 sps:$4 sm:$0xff]  }
 0x113   :  { %2550 = vmatprep.subr.bf16.mxu0 %v10053_v45 }
 0x114   :  { %v11953_v5 = vpop.f32.mrf.mxu1 }
 0x115   :  { %9750 = vmatmul.mubr.bf16.gmra.mxu0 %v11845_v52  ;;  %2728 = vmatpush1.bf16.msra.mxu1 %v10117_v8 }
 0x116   :  { %2551 = vmatpush2.bf16.msra.mxu0 %v10051_v62  ;;  %v11955_v47 = vpop.f32.mrf.mxu1  ;;  %2729 = vmatprep.subr.bf16.mxu1 %v10125_v13 }
 0x117   :  { %2552 = vmatprep.subr.bf16.mxu0 %v10056_v63  ;;  %1377 = vmatmul.mubr.bf16.gmra.mxu1 %v11831_v50  ;;  %v10123_v50 = vld [vmem:[#allocation2 + $0x300] ss:$24 sps:$4 sm:$0xff]  }
 0x118   :  { %1384 = vmatprep.mubr.bf16.mxu1 %v11836_v51  ;;  %v11959_v48 = vpop.f32.mrf.mxu1 }
 0x119   :  { %2730 = vmatpush1.bf16.msra.mxu1 %v10123_v50 }
 0x11a   :  { %2553 = vmatpush2.bf16.msra.mxu0 %v10054_v1  ;;  %v11961_v9 = vpop.f32.mrf.mxu1 }
 0x11b   :  { %2908 = vmatprep.subr.bf16.mxu0 %v10068_v2 }
 0x11c   :  { %v11963_v12 = vpop.f32.mrf.mxu1 }
 0x11d   :  { %v904_v52 = vpop.f32.mrf.mxu0 }
 0x11e   :  { %v11976_v18 = vadd.f32 %v11926_v30, %v904_v52 }
 0x11f   :  { %v906_v7 = vpop.f32.mrf.mxu0  ;;  %v11972_v17 = vpop.f32.mrf.mxu1  ;;  %1385 = vmatmul.mubr.bf16.gmra.mxu1 %v11850_v53 }
 0x120   :  { %v11968_v16 = vadd.f32 %v11931_v33, %v906_v7  ;;  %17763 = vst [vmem:[#allocation11_spill] sm:$0xff] %v11976_v18  ;;  %1392 = vmatprep.mubr.bf16.mxu1 %v11855_v54 }
 0x121   :  { %v908_v10 = vpop.f32.mrf.mxu0  ;;  %v11983_v21 = vpop.f32.mrf.mxu1 }
 0x122   :  { %v11965_v14 = vadd.f32 %v1101_v36, %v908_v10  ;;  %17761 = vst [vmem:[#allocation9_spill] sm:$0xff] %v11968_v16  ;;  %v10072_v36 = vld [vmem:[#allocation2 + $0xf8] ss:$24 sps:$4 sm:$0xff]   ;;  %v10089_v10 = vld [vmem:[#allocation2 + $0x3c] ss:$24 sps:$4 sm:$0xff]  }
 0x123   :  { %v910_v15 = vpop.f32.mrf.mxu0  ;;  %v11990_v19 = vpop.f32.mrf.mxu1 }
 0x124   :  { %17760 = vst [vmem:[#allocation8_spill] sm:$0xff] %v11965_v14  ;;  %v11970_v51 = vadd.f32 %v1103_v38, %v910_v15  ;;  %v11987_v24 = vpack.c.bf16 %v11965_v14, %v11976_v18 }
 0x125   :  { %v914_v4 = vpop.f32.mrf.mxu0  ;;  %v11993_v54 = vpop.f32.mrf.mxu1 }
 0x126   :  { %17762 = vst [vmem:[#allocation10_spill] sm:$0xff] %v11970_v51  ;;  %v11981_v20 = vpack.c.bf16 %v11970_v51, %v11968_v16  ;;  %17764 = vst [vmem:[#allocation12_spill] sm:$0xff] %v11987_v24  ;;  %v12007_v32 = vadd.f32 %v11934_v57, %v914_v4 }
 0x127   :  { %v916_v53 = vpop.f32.mrf.mxu0  ;;  %v12003_v31 = vpop.f32.mrf.mxu1  ;;  %1393 = vmatmul.mubr.bf16.gmra.mxu1 %v11864_v55  ;;  %v10080_v55 = vld [vmem:[#allocation2 + $0xcc] ss:$24 sps:$4 sm:$0xff]  }
 0x128   :  { %2554 = vmatprep.mubr.bf16.mxu0 %v11981_v20  ;;  %v11998_v29 = vadd.f32 %v11939_v40, %v916_v53  ;;  %17768 = vst [vmem:[#allocation16_spill] sm:$0xff] %v12007_v32  ;;  %1400 = vmatprep.mubr.bf16.mxu1 %v11869_v56  ;;  %v10078_v40 = vld [vmem:[#allocation2 + $0xc8] ss:$24 sps:$4 sm:$0xff]  }
 0x129   :  { %v918_v25 = vpop.f32.mrf.mxu0  ;;  %2555 = vmatmul.mubr.bf16.vlgmr.msra.gmra.mxu0 %v11987_v24  ;;  %v12014_v35 = vpop.f32.mrf.mxu1 }
 0x12a   :  { %2909 = vmatpush1.bf16.msra.mxu0 %v10066_v22  ;;  %v11995_v23 = vadd.f32 %v1111_v58, %v918_v25  ;;  %17766 = vst [vmem:[#allocation14_spill] sm:$0xff] %v11998_v29  ;;  %v10083_v58 = vld [vmem:[#allocation2 + $0x9c] ss:$24 sps:$4 sm:$0xff]  }
 0x12b   :  { %v920_v27 = vpop.f32.mrf.mxu0  ;;  %2910 = vmatprep.subr.bf16.mxu0 %v10071_v11  ;;  %v12021_v41 = vpop.f32.mrf.mxu1 }
 0x12c   :  { %17765 = vst [vmem:[#allocation13_spill] sm:$0xff] %v11995_v23  ;;  %v12001_v30 = vadd.f32 %v11942_v61, %v920_v27  ;;  %v12018_v39 = vpack.c.bf16 %v11995_v23, %v12007_v32  ;;  %v10093_v27 = vld [vmem:[#allocation2 + $0x8] ss:$24 sps:$4 sm:$0xff]  }
 0x12d   :  { %v924_v33 = vpop.f32.mrf.mxu0  ;;  %v12024_v57 = vpop.f32.mrf.mxu1  ;;  %v10138_v23 = vld [vmem:[#allocation2 + $0x160] ss:$24 sps:$4 sm:$0xff]  }
 0x12e   :  { %17767 = vst [vmem:[#allocation15_spill] sm:$0xff] %v12001_v30  ;;  %v12012_v34 = vpack.c.bf16 %v12001_v30, %v11998_v29  ;;  %2911 = vmatpush1.bf16.msra.mxu0 %v10069_v26  ;;  %17770 = vst [vmem:[#allocation18_spill] sm:$0xff] %v12018_v39  ;;  %v12039_v44 = vadd.f32 %v11944_v43, %v924_v33 }
 0x12f   :  { %v926_v38 = vpop.f32.mrf.mxu0  ;;  %2912 = vmatprep.subr.bf16.mxu0 %v10074_v28  ;;  %v12035_v63 = vpop.f32.mrf.mxu1  ;;  %1401 = vmatmul.mubr.bf16.gmra.mxu1 %v11878_v37  ;;  %v10086_v37 = vld [vmem:[#allocation2 + $0x6c] ss:$24 sps:$4 sm:$0xff]   ;;  %v10131_v28 = vld [vmem:[#allocation2 + $0x45c] ss:$24 sps:$4 sm:$0xff]  }
 0x130   :  { %17769 = vst [vmem:[#allocation17_spill] sm:$0xff] %v12012_v34  ;;  %2564 = vmatprep.mubr.bf16.mxu0 %v12012_v34  ;;  %v12030_v61 = vadd.f32 %v11949_v49, %v926_v38  ;;  %17774 = vst [vmem:[#allocation22_spill] sm:$0xff] %v12039_v44  ;;  %1408 = vmatprep.mubr.bf16.mxu1 %v11883_v59  ;;  %v10081_v49 = vld [vmem:[#allocation2 + $0x98] ss:$24 sps:$4 sm:$0xff]   ;;  %v10098_v38 = vld [vmem:[#allocation2 + $0x2dc] ss:$24 sps:$4 sm:$0xff]  }
 0x131   :  { %v928_v56 = vpop.f32.mrf.mxu0  ;;  %2565 = vmatmul.mubr.bf16.gmra.mxu0 %v12018_v39  ;;  %v12046_v2 = vpop.f32.mrf.mxu1  ;;  %3101 = vmatprep.subr.bf16.mxu1 %v10131_v28 }
 0x132   :  { %2913 = vmatpush1.bf16.msra.mxu0 %v10072_v36  ;;  %v12027_v42 = vadd.f32 %v11951_v3, %v928_v56  ;;  %17772 = vst [vmem:[#allocation20_spill] sm:$0xff] %v12030_v61 }
 0x133   :  { %v930_v45 = vpop.f32.mrf.mxu0  ;;  %2914 = vmatprep.subr.bf16.mxu0 %v10080_v55  ;;  %v12053_v43 = vpop.f32.mrf.mxu1 }
 0x134   :  { %17771 = vst [vmem:[#allocation19_spill] sm:$0xff] %v12027_v42  ;;  %v12033_v62 = vadd.f32 %v11953_v5, %v930_v45  ;;  %v12050_v5 = vpack.c.bf16 %v12027_v42, %v12039_v44 }
 0x135   :  { %v934_v46 = vpop.f32.mrf.mxu0  ;;  %v12056_v52 = vpop.f32.mrf.mxu1 }
 0x136   :  { %17773 = vst [vmem:[#allocation21_spill] sm:$0xff] %v12033_v62  ;;  %v12044_v1 = vpack.c.bf16 %v12033_v62, %v12030_v61  ;;  %2915 = vmatpush1.bf16.msra.mxu0 %v10078_v40  ;;  %17775 = vst [vmem:[#allocation23_spill] sm:$0xff] %v12050_v5  ;;  %v12071_v4 = vadd.f32 %v11955_v47, %v934_v46 }
 0x137   :  { %v936_v3 = vpop.f32.mrf.mxu0  ;;  %2916 = vmatprep.subr.bf16.mxu0 %v10083_v58  ;;  %v12067_v50 = vpop.f32.mrf.mxu1  ;;  %1409 = vmatmul.mubr.bf16.gmra.mxu1 %v11892_v60  ;;  %v10095_v60 = vld [vmem:[#allocation2 + $0xc] ss:$24 sps:$4 sm:$0xff]  }
 0x138   :  { %2574 = vmatprep.mubr.bf16.mxu0 %v12044_v1  ;;  %v12062_v13 = vadd.f32 %v11959_v48, %v936_v3  ;;  %17779 = vst [vmem:[#allocation27_spill] sm:$0xff] %v12071_v4  ;;  %2747 = vmatprep.mubr.bf16.mxu1 %v17238_v0  ;;  %v10087_v48 = vld [vmem:[#allocation2 + $0x38] ss:$24 sps:$4 sm:$0xff]   ;;  %v10101_v3 = vld [vmem:[#allocation2 + $0x2ac] ss:$24 sps:$4 sm:$0xff]  }
 0x139   :  { %v938_v59 = vpop.f32.mrf.mxu0  ;;  %2575 = vmatmul.mubr.bf16.gmra.mxu0 %v12050_v5  ;;  %v12078_v53 = vpop.f32.mrf.mxu1 }
 0x13a   :  { %2917 = vmatpush1.bf16.msra.mxu0 %v10081_v49  ;;  %v12059_v7 = vadd.f32 %v11961_v9, %v938_v59  ;;  %17777 = vst [vmem:[#allocation25_spill] sm:$0xff] %v12062_v13  ;;  %v10096_v49 = vld [vmem:[#allocation2 + $0x2d8] ss:$24 sps:$4 sm:$0xff]  }
 0x13b   :  { %v940_v8 = vpop.f32.mrf.mxu0  ;;  %2918 = vmatprep.subr.bf16.mxu0 %v10086_v37  ;;  %v12085_v47 = vpop.f32.mrf.mxu1 }
 0x13c   :  { %17776 = vst [vmem:[#allocation24_spill] sm:$0xff] %v12059_v7  ;;  %v12065_v15 = vadd.f32 %v11963_v12, %v940_v8  ;;  %v12082_v11 = vpack.c.bf16 %v12059_v7, %v12071_v4 }
 0x13d   :  { %v944_v22 = vpop.f32.mrf.mxu0  ;;  %v12088_v26 = vpop.f32.mrf.mxu1 }
 0x13e   :  { %17778 = vst [vmem:[#allocation26_spill] sm:$0xff] %v12065_v15  ;;  %v12076_v9 = vpack.c.bf16 %v12065_v15, %v12062_v13  ;;  %2919 = vmatpush1.bf16.msra.mxu0 %v10084_v6  ;;  %17781 = vst [vmem:[#allocation29_spill] sm:$0xff] %v12082_v11  ;;  %v12102_v45 = vadd.f32 %v11972_v17, %v944_v22  ;;  %v10099_v6 = vld [vmem:[#allocation2 + $0x2a8] ss:$24 sps:$4 sm:$0xff]   ;;  %v10104_v22 = vld [vmem:[#allocation2 + $0x27c] ss:$24 sps:$4 sm:$0xff]  }
 0x13f   :  { %v946_v12 = vpop.f32.mrf.mxu0  ;;  %2920 = vmatprep.subr.bf16.mxu0 %v10089_v10  ;;  %v12099_v40 = vpop.f32.mrf.mxu1 }
 0x140   :  { %17780 = vst [vmem:[#allocation28_spill] sm:$0xff] %v12076_v9  ;;  %2584 = vmatprep.mubr.bf16.mxu0 %v12076_v9  ;;  %v12094_v55 = vadd.f32 %v11983_v21, %v946_v12  ;;  %17785 = vst [vmem:[#allocation33_spill] sm:$0xff] %v12102_v45 }
 0x141   :  { %v948_v25 = vpop.f32.mrf.mxu0  ;;  %2585 = vmatmul.mubr.bf16.gmra.mxu0 %v12082_v11  ;;  %v12108_v46 = vpop.f32.mrf.mxu1 }
 0x142   :  { %2921 = vmatpush1.bf16.msra.mxu0 %v10087_v48  ;;  %v12091_v33 = vadd.f32 %v11990_v19, %v948_v25  ;;  %17783 = vst [vmem:[#allocation31_spill] sm:$0xff] %v12094_v55 }
 0x143   :  { %v950_v36 = vpop.f32.mrf.mxu0  ;;  %2922 = vmatprep.subr.bf16.mxu0 %v10095_v60  ;;  %v12115_v17 = vpop.f32.mrf.mxu1 }
 0x144   :  { %17782 = vst [vmem:[#allocation30_spill] sm:$0xff] %v12091_v33  ;;  %v12097_v56 = vadd.f32 %v11993_v54, %v950_v36  ;;  %v12112_v21 = vpack.c.bf16 %v12091_v33, %v12102_v45  ;;  %v10102_v36 = vld [vmem:[#allocation2 + $0x278] ss:$24 sps:$4 sm:$0xff]  }
 0x145   :  { %v954_v58 = vpop.f32.mrf.mxu0  ;;  %v12118_v59 = vpop.f32.mrf.mxu1 }
 0x146   :  { %17784 = vst [vmem:[#allocation32_spill] sm:$0xff] %v12097_v56  ;;  %v12106_v19 = vpack.c.bf16 %v12097_v56, %v12094_v55  ;;  %2923 = vmatpush1.bf16.msra.mxu0 %v10093_v27  ;;  %17786 = vst [vmem:[#allocation34_spill] sm:$0xff] %v12112_v21  ;;  %v12132_v25 = vadd.f32 %v12003_v31, %v954_v58 }
 0x147   :  { %v956_v54 = vpop.f32.mrf.mxu0  ;;  %2924 = vmatprep.subr.bf16.mxu0 %v10098_v38  ;;  %v12129_v60 = vpop.f32.mrf.mxu1  ;;  %v10110_v38 = vld [vmem:[#allocation2 + $0x24c] ss:$24 sps:$4 sm:$0xff]  }
 0x148   :  { %2594 = vmatprep.mubr.bf16.mxu0 %v12106_v19  ;;  %v12124_v48 = vadd.f32 %v12014_v35, %v956_v54  ;;  %17790 = vst [vmem:[#allocation38_spill] sm:$0xff] %v12132_v25  ;;  %v10108_v54 = vld [vmem:[#allocation2 + $0x248] ss:$24 sps:$4 sm:$0xff]  }
 0x149   :  { %v958_v37 = vpop.f32.mrf.mxu0  ;;  %2595 = vmatmul.mubr.bf16.gmra.mxu0 %v12112_v21 }
 0x14a   :  { %2925 = vmatpush2.bf16.msra.mxu0 %v10096_v49  ;;  %v12121_v8 = vadd.f32 %v12021_v41, %v958_v37  ;;  %17788 = vst [vmem:[#allocation36_spill] sm:$0xff] %v12124_v48  ;;  %v12138_v41 = vpop.f32.mrf.mxu1 }
 0x14b   :  { %v960_v10 = vpop.f32.mrf.mxu0  ;;  %2926 = vmatprep.subr.bf16.mxu0 %v10101_v3 }
 0x14c   :  { %17787 = vst [vmem:[#allocation35_spill] sm:$0xff] %v12121_v8  ;;  %v12127_v12 = vadd.f32 %v12024_v57, %v960_v10  ;;  %v12142_v35 = vpack.c.bf16 %v12121_v8, %v12132_v25  ;;  %v12145_v31 = vpop.f32.mrf.mxu1 }
 0x14d   :  { %v964_v27 = vpop.f32.mrf.mxu0 }
 0x14e   :  { %17789 = vst [vmem:[#allocation37_spill] sm:$0xff] %v12127_v12  ;;  %v12136_v28 = vpack.c.bf16 %v12127_v12, %v12124_v48  ;;  %2927 = vmatpush2.bf16.msra.mxu0 %v10099_v6  ;;  %17792 = vst [vmem:[#allocation40_spill] sm:$0xff] %v12142_v35  ;;  %v12148_v49 = vpop.f32.mrf.mxu1  ;;  %v10113_v6 = vld [vmem:[#allocation2 + $0x21c] ss:$24 sps:$4 sm:$0xff]   ;;  %v12162_v12 = vadd.f32 %v12035_v63, %v964_v27 }
 0x14f   :  { %v966_v57 = vpop.f32.mrf.mxu0  ;;  %2928 = vmatprep.subr.bf16.mxu0 %v10104_v22 }
 0x150   :  { %17791 = vst [vmem:[#allocation39_spill] sm:$0xff] %v12136_v28  ;;  %2604 = vmatprep.mubr.bf16.mxu0 %v12136_v28  ;;  %v12154_v10 = vadd.f32 %v12046_v2, %v966_v57  ;;  %v12159_v0 = vpop.f32.mrf.mxu1  ;;  %17796 = vst [vmem:[#allocation44_spill] sm:$0xff] %v12162_v12  ;;  %v10116_v57 = vld [vmem:[#allocation2 + $0x1ec] ss:$24 sps:$4 sm:$0xff]  }
 0x151   :  { %v968_v58 = vpop.f32.mrf.mxu0  ;;  %2605 = vmatmul.mubr.bf16.gmra.mxu0 %v12142_v35 }
 0x152   :  { %2929 = vmatpush2.bf16.msra.mxu0 %v10102_v36  ;;  %v12151_v3 = vadd.f32 %v12053_v43, %v968_v58  ;;  %17794 = vst [vmem:[#allocation42_spill] sm:$0xff] %v12154_v10  ;;  %v12168_v43 = vpop.f32.mrf.mxu1 }
 0x153   :  { %v970_v37 = vpop.f32.mrf.mxu0  ;;  %2930 = vmatprep.subr.bf16.mxu0 %v10110_v38  ;;  %v10111_v38 = vld [vmem:[#allocation2 + $0x218] ss:$24 sps:$4 sm:$0xff]  }
 0x154   :  { %17793 = vst [vmem:[#allocation41_spill] sm:$0xff] %v12151_v3  ;;  %v12157_v22 = vadd.f32 %v12056_v52, %v970_v37  ;;  %v12172_v2 = vpack.c.bf16 %v12151_v3, %v12162_v12  ;;  %v12175_v63 = vpop.f32.mrf.mxu1  ;;  %v10114_v37 = vld [vmem:[#allocation2 + $0x1e8] ss:$24 sps:$4 sm:$0xff]  }
 0x155   :  { %v974_v48 = vpop.f32.mrf.mxu0 }
 0x156   :  { %17795 = vst [vmem:[#allocation43_spill] sm:$0xff] %v12157_v22  ;;  %v12166_v36 = vpack.c.bf16 %v12157_v22, %v12154_v10  ;;  %2931 = vmatpush2.bf16.msra.mxu0 %v10108_v54  ;;  %17797 = vst [vmem:[#allocation45_spill] sm:$0xff] %v12172_v2  ;;  %v12178_v58 = vpop.f32.mrf.mxu1  ;;  %v10122_v10 = vld [vmem:[#allocation2 + $0x1bc] ss:$24 sps:$4 sm:$0xff]   ;;  %v12192_v15 = vadd.f32 %v12067_v50, %v974_v48 }
 0x157   :  { %v976_v52 = vpop.f32.mrf.mxu0  ;;  %2932 = vmatprep.subr.bf16.mxu0 %v10113_v6 }
 0x158   :  { %2614 = vmatprep.mubr.bf16.mxu0 %v12166_v36  ;;  %v12184_v6 = vadd.f32 %v12078_v53, %v976_v52  ;;  %v12189_v55 = vpop.f32.mrf.mxu1  ;;  %17801 = vst [vmem:[#allocation49_spill] sm:$0xff] %v12192_v15 }
 0x159   :  { %v978_v27 = vpop.f32.mrf.mxu0  ;;  %2615 = vmatmul.mubr.bf16.gmra.mxu0 %v12172_v2 }
 0x15a   :  { %2933 = vmatpush2.bf16.msra.mxu0 %v10111_v38  ;;  %v12181_v54 = vadd.f32 %v12085_v47, %v978_v27  ;;  %17799 = vst [vmem:[#allocation47_spill] sm:$0xff] %v12184_v6  ;;  %v12198_v47 = vpop.f32.mrf.mxu1  ;;  %v10126_v27 = vld [vmem:[#allocation2 + $0x188] ss:$24 sps:$4 sm:$0xff]  }
 0x15b   :  { %v980_v22 = vpop.f32.mrf.mxu0  ;;  %2934 = vmatprep.subr.bf16.mxu0 %v10116_v57  ;;  %v10120_v57 = vld [vmem:[#allocation2 + $0x1b8] ss:$24 sps:$4 sm:$0xff]  }
 0x15c   :  { %17798 = vst [vmem:[#allocation46_spill] sm:$0xff] %v12181_v54  ;;  %v12187_v56 = vadd.f32 %v12088_v26, %v980_v22  ;;  %v12202_v53 = vpack.c.bf16 %v12181_v54, %v12192_v15  ;;  %v10128_v22 = vld [vmem:[#allocation2 + $0x18c] ss:$24 sps:$4 sm:$0xff]   ;;  %v1211_v50 = vpop.f32.mrf.mxu1 }
 0x15d   :  { %v984_v13 = vpop.f32.mrf.mxu0 }
 0x15e   :  { %17800 = vst [vmem:[#allocation48_spill] sm:$0xff] %v12187_v56  ;;  %v12196_v38 = vpack.c.bf16 %v12187_v56, %v12184_v6  ;;  %2935 = vmatpush2.bf16.msra.mxu0 %v10114_v37  ;;  %v1213_v52 = vpop.f32.mrf.mxu1  ;;  %v12218_v61 = vadd.f32 %v12099_v40, %v984_v13 }
 0x15f   :  { %v986_v26 = vpop.f32.mrf.mxu0  ;;  %2936 = vmatprep.subr.bf16.mxu0 %v10122_v10 }
 0x160   :  { %2624 = vmatprep.mubr.bf16.mxu0 %v12196_v38  ;;  %v12210_v6 = vadd.f32 %v12108_v46, %v986_v26  ;;  %v12215_v62 = vpop.f32.mrf.mxu1  ;;  %17805 = vst [vmem:[#allocation53_spill] sm:$0xff] %v12218_v61  ;;  %v10140_v26 = vld [vmem:[#allocation2 + $0x164] ss:$24 sps:$4 sm:$0xff]  }
 0x161   :  { %v988_v48 = vpop.f32.mrf.mxu0  ;;  %2625 = vmatmul.mubr.bf16.gmra.mxu0 %v12202_v53 }
 0x162   :  { %2937 = vmatpush2.bf16.msra.mxu0 %v10120_v57  ;;  %v12207_v56 = vadd.f32 %v12115_v17, %v988_v48  ;;  %17803 = vst [vmem:[#allocation51_spill] sm:$0xff] %v12210_v6  ;;  %v1219_v17 = vpop.f32.mrf.mxu1 }
 0x163   :  { %v990_v37 = vpop.f32.mrf.mxu0  ;;  %2938 = vmatprep.subr.bf16.mxu0 %v10128_v22 }
 0x164   :  { %17802 = vst [vmem:[#allocation50_spill] sm:$0xff] %v12207_v56  ;;  %v12213_v10 = vadd.f32 %v12118_v59, %v990_v37  ;;  %v12226_v22 = vpack.c.bf16 %v12207_v56, %v12218_v61  ;;  %v1221_v59 = vpop.f32.mrf.mxu1 }
 0x165   :  { %v994_v30 = vpop.f32.mrf.mxu0 }
 0x166   :  { %17804 = vst [vmem:[#allocation52_spill] sm:$0xff] %v12213_v10  ;;  %v12222_v57 = vpack.c.bf16 %v12213_v10, %v12210_v6  ;;  %2939 = vmatpush2.bf16.msra.mxu0 %v10126_v27  ;;  %v1223_v13 = vpop.f32.mrf.mxu1  ;;  %v12242_v29 = vadd.f32 %v12129_v60, %v994_v30 }
 0x167   :  { %v996_v46 = vpop.f32.mrf.mxu0  ;;  %3294 = vmatprep.subr.bf16.mxu0 %v10140_v26 }
 0x168   :  { %2634 = vmatprep.mubr.bf16.mxu0 %v12222_v57  ;;  %v12234_v27 = vadd.f32 %v12138_v41, %v996_v46  ;;  %v12239_v6 = vpop.f32.mrf.mxu1  ;;  %17809 = vst [vmem:[#allocation57_spill] sm:$0xff] %v12242_v29 }
 0x169   :  { %v998_v48 = vpop.f32.mrf.mxu0  ;;  %2635 = vmatmul.mubr.bf16.gmra.mxu0 %v12226_v22 }
 0x16a   :  { %v12231_v40 = vadd.f32 %v12145_v31, %v998_v48  ;;  %17807 = vst [vmem:[#allocation55_spill] sm:$0xff] %v12234_v27  ;;  %v1229_v51 = vpop.f32.mrf.mxu1 }
 0x16b   :  { %v1000_v37 = vpop.f32.mrf.mxu0 }
 0x16c   :  { %17806 = vst [vmem:[#allocation54_spill] sm:$0xff] %v12231_v40  ;;  %v12237_v10 = vadd.f32 %v12148_v49, %v1000_v37  ;;  %v12250_v31 = vpack.c.bf16 %v12231_v40, %v12242_v29  ;;  %v1231_v49 = vpop.f32.mrf.mxu1 }
 0x16d   :  { %v1004_v56 = vpop.f32.mrf.mxu0 }
 0x16e   :  { %17808 = vst [vmem:[#allocation56_spill] sm:$0xff] %v12237_v10  ;;  %v12246_v26 = vpack.c.bf16 %v12237_v10, %v12234_v27  ;;  %17810 = vst [vmem:[#allocation58_spill] sm:$0xff] %v12250_v31  ;;  %v1233_v48 = vpop.f32.mrf.mxu1  ;;  %v12266_v40 = vadd.f32 %v12159_v0, %v1004_v56 }
 0x16f   :  { %v1006_v41 = vpop.f32.mrf.mxu0 }
 0x170   :  { %2644 = vmatprep.mubr.bf16.mxu0 %v12246_v26  ;;  %v12258_v37 = vadd.f32 %v12168_v43, %v1006_v41  ;;  %v12263_v27 = vpop.f32.mrf.mxu1  ;;  %17814 = vst [vmem:[#allocation62_spill] sm:$0xff] %v12266_v40 }
 0x171   :  { %v1008_v46 = vpop.f32.mrf.mxu0  ;;  %2645 = vmatmul.mubr.bf16.gmra.mxu0 %v12250_v31 }
 0x172   :  { %v12255_v30 = vadd.f32 %v12175_v63, %v1008_v46  ;;  %17812 = vst [vmem:[#allocation60_spill] sm:$0xff] %v12258_v37  ;;  %v1239_v3 = vpop.f32.mrf.mxu1 }
 0x173   :  { %v1010_v60 = vpop.f32.mrf.mxu0 }
 0x174   :  { %17811 = vst [vmem:[#allocation59_spill] sm:$0xff] %v12255_v30  ;;  %v12261_v10 = vadd.f32 %v12178_v58, %v1010_v60  ;;  %v12274_v63 = vpack.c.bf16 %v12255_v30, %v12266_v40  ;;  %v1241_v58 = vpop.f32.mrf.mxu1 }
 0x175   :  { %v1014_v16 = vpop.f32.mrf.mxu0 }
 0x176   :  { %17813 = vst [vmem:[#allocation61_spill] sm:$0xff] %v12261_v10  ;;  %v12270_v54 = vpack.c.bf16 %v12261_v10, %v12258_v37  ;;  %17815 = vst [vmem:[#allocation63_spill] sm:$0xff] %v12274_v63  ;;  %v1243_v46 = vpop.f32.mrf.mxu1  ;;  %v12288_v30 = vadd.f32 %v12189_v55, %v1014_v16 }
 0x177   :  { %v1016_v43 = vpop.f32.mrf.mxu0 }
 0x178   :  { %2654 = vmatprep.mubr.bf16.mxu0 %v12270_v54  ;;  %v12281_v60 = vadd.f32 %v12198_v47, %v1016_v43  ;;  %v12285_v37 = vpop.f32.mrf.mxu1  ;;  %17819 = vst [vmem:[#allocation67_spill] sm:$0xff] %v12288_v30 }
 0x179   :  { %v1018_v41 = vpop.f32.mrf.mxu0  ;;  %2655 = vmatmul.mubr.bf16.gmra.mxu0 %v12274_v63 }
 0x17a   :  { %v12278_v0 = vadd.f32 %v1211_v50, %v1018_v41  ;;  %17817 = vst [vmem:[#allocation65_spill] sm:$0xff] %v12281_v60  ;;  %v1249_v40 = vpop.f32.mrf.mxu1 }
 0x17b   :  { %v1020_v56 = vpop.f32.mrf.mxu0 }
 0x17c   :  { %17816 = vst [vmem:[#allocation64_spill] sm:$0xff] %v12278_v0  ;;  %v12283_v10 = vadd.f32 %v1213_v52, %v1020_v56  ;;  %v12296_v50 = vpack.c.bf16 %v12278_v0, %v12288_v30  ;;  %v1251_v47 = vpop.f32.mrf.mxu1 }
 0x17d   :  { %v1024_v8 = vpop.f32.mrf.mxu0 }
 0x17e   :  { %17818 = vst [vmem:[#allocation66_spill] sm:$0xff] %v12283_v10  ;;  %v12292_v33 = vpack.c.bf16 %v12283_v10, %v12281_v60  ;;  %17820 = vst [vmem:[#allocation68_spill] sm:$0xff] %v12296_v50  ;;  %v1253_v43 = vpop.f32.mrf.mxu1  ;;  %v12307_v29 = vadd.f32 %v12215_v62, %v1024_v8 }
 0x17f   :  { %v1026_v41 = vpop.f32.mrf.mxu0 }
 0x180   :  { %2664 = vmatprep.mubr.bf16.mxu0 %v12292_v33  ;;  %v12302_v56 = vadd.f32 %v1219_v17, %v1026_v41  ;;  %v9543_v60 = vpop.f32.mrf.mxu1  ;;  %17824 = vst [vmem:[#allocation72_spill] sm:$0xff] %v12307_v29 }
 0x181   :  { %v1028_v52 = vpop.f32.mrf.mxu0  ;;  %2665 = vmatmul.mubr.bf16.gmra.mxu0 %v12296_v50 }
 0x182   :  { %v12300_v16 = vadd.f32 %v1221_v59, %v1028_v52  ;;  %17822 = vst [vmem:[#allocation70_spill] sm:$0xff] %v12302_v56  ;;  %v9544_v61 = vpop.f32.mrf.mxu1 }
 0x183   :  { %v1030_v55 = vpop.f32.mrf.mxu0 }
 0x184   :  { %17821 = vst [vmem:[#allocation69_spill] sm:$0xff] %v12300_v16  ;;  %v12304_v10 = vadd.f32 %v1223_v13, %v1030_v55  ;;  %v12315_v15 = vpack.c.bf16 %v12300_v16, %v12307_v29  ;;  %v9546_v17 = vpop.f32.mrf.mxu1 }
 0x185   :  { %v1034_v0 = vpop.f32.mrf.mxu0 }
 0x186   :  { %17823 = vst [vmem:[#allocation71_spill] sm:$0xff] %v12304_v10  ;;  %v12311_v30 = vpack.c.bf16 %v12304_v10, %v12302_v56  ;;  %17825 = vst [vmem:[#allocation73_spill] sm:$0xff] %v12315_v15  ;;  %v9547_v41 = vpop.f32.mrf.mxu1  ;;  %v12326_v56 = vadd.f32 %v12239_v6, %v1034_v0 }
 0x187   :  { %v1036_v59 = vpop.f32.mrf.mxu0 }
 0x188   :  { %2674 = vmatprep.mubr.bf16.mxu0 %v12311_v30  ;;  %v12321_v52 = vadd.f32 %v1229_v51, %v1036_v59  ;;  %v9549_v10 = vpop.f32.mrf.mxu1  ;;  %17829 = vst [vmem:[#allocation77_spill] sm:$0xff] %v12326_v56 }
 0x189   :  { %v1038_v13 = vpop.f32.mrf.mxu0  ;;  %2675 = vmatmul.mubr.bf16.gmra.mxu0 %v12315_v15 }
 0x18a   :  { %v12319_v62 = vadd.f32 %v1231_v49, %v1038_v13  ;;  %17827 = vst [vmem:[#allocation75_spill] sm:$0xff] %v12321_v52  ;;  %v9550_v12 = vpop.f32.mrf.mxu1 }
 0x18b   :  { %v1040_v8 = vpop.f32.mrf.mxu0  ;;  %v9551_v32 = vadd.f32 %v9550_v12, %v9549_v10  ;;  %v10137_v10 = vld [vmem:[#allocation2 + $0x3fc] ss:$24 sps:$4 sm:$0xff]  }
 0x18c   :  { %17826 = vst [vmem:[#allocation74_spill] sm:$0xff] %v12319_v62  ;;  %v12323_v55 = vadd.f32 %v1233_v48, %v1040_v8  ;;  %v12334_v25 = vpack.c.bf16 %v12319_v62, %v12326_v56  ;;  %v9552_v51 = vpop.f32.mrf.mxu1 }
 0x18d   :  { %v1044_v16 = vpop.f32.mrf.mxu0 }
 0x18e   :  { %17828 = vst [vmem:[#allocation76_spill] sm:$0xff] %v12323_v55  ;;  %v12330_v29 = vpack.c.bf16 %v12323_v55, %v12321_v52  ;;  %v9553_v59 = vpop.f32.mrf.mxu1  ;;  %v12347_v52 = vadd.f32 %v12263_v27, %v1044_v16 }
 0x18f   :  { %v1046_v49 = vpop.f32.mrf.mxu0  ;;  %v9554_v42 = vadd.f32 %v9553_v59, %v9552_v51  ;;  %v17842_v51 = vmov 0  }
 0x190   :  { %2684 = vmatprep.mubr.bf16.mxu0 %v12330_v29  ;;  %v12340_v13 = vadd.f32 %v1239_v3, %v1046_v49  ;;  %v12344_v55 = vpop.f32.mrf.mxu1  ;;  %17833 = vst [vmem:[#allocation81_spill] sm:$0xff] %v12347_v52 }
 0x191   :  { %v1048_v48 = vpop.f32.mrf.mxu0  ;;  %2685 = vmatmul.mubr.bf16.gmra.mxu0 %v12334_v25 }
 0x192   :  { %v12338_v6 = vadd.f32 %v1241_v58, %v1048_v48  ;;  %17831 = vst [vmem:[#allocation79_spill] sm:$0xff] %v12340_v13  ;;  %v9556_v45 = vpop.f32.mrf.mxu1 }
 0x193   :  { %v1050_v0 = vpop.f32.mrf.mxu0 }
 0x194   :  { %17830 = vst [vmem:[#allocation78_spill] sm:$0xff] %v12338_v6  ;;  %v12342_v8 = vadd.f32 %v1243_v46, %v1050_v0  ;;  %v12355_v58 = vpack.c.bf16 %v12338_v6, %v12347_v52  ;;  %v9558_v3 = vpop.f32.mrf.mxu1 }
 0x195   :  { %v1054_v62 = vpop.f32.mrf.mxu0 }
 0x196   :  { %17832 = vst [vmem:[#allocation80_spill] sm:$0xff] %v12342_v8  ;;  %v12351_v56 = vpack.c.bf16 %v12342_v8, %v12340_v13  ;;  %v9559_v49 = vpop.f32.mrf.mxu1  ;;  %v12368_v6 = vadd.f32 %v12285_v37, %v1054_v62  ;;  %v9545_v37 = vadd.f32 %v9544_v61, %v9543_v60  ;;  %v9548_v62 = vadd.f32 %v9547_v41, %v9546_v17  ;;  %v10129_v60 = vld [vmem:[#allocation2 + $0x458] ss:$24 sps:$4 sm:$0xff]   ;;  %v10134_v41 = vld [vmem:[#allocation2 + $0x42c] ss:$24 sps:$4 sm:$0xff]  }
 0x197   :  { %v1056_v48 = vpop.f32.mrf.mxu0 }
 0x198   :  { %2694 = vmatprep.mubr.bf16.mxu0 %v12351_v56  ;;  %v12361_v0 = vadd.f32 %v1249_v40, %v1056_v48  ;;  %v12365_v13 = vpop.f32.mrf.mxu1  ;;  %17837 = vst [vmem:[#allocation85_spill] sm:$0xff] %v12368_v6 }
 0x199   :  { %v1058_v46 = vpop.f32.mrf.mxu0  ;;  %2695 = vmatmul.mubr.bf16.gmra.mxu0 %v12355_v58 }
 0x19a   :  { %v12359_v27 = vadd.f32 %v1251_v47, %v1058_v46  ;;  %17835 = vst [vmem:[#allocation83_spill] sm:$0xff] %v12361_v0  ;;  %v12374_v4 = vpop.f32.mrf.mxu1 }
 0x19b   :  { %v1060_v16 = vpop.f32.mrf.mxu0 }
 0x19c   :  { %17834 = vst [vmem:[#allocation82_spill] sm:$0xff] %v12359_v27  ;;  %v12363_v8 = vadd.f32 %v1253_v43, %v1060_v16  ;;  %v12378_v47 = vpack.c.bf16 %v12359_v27, %v12368_v6  ;;  %v12381_v43 = vpop.f32.mrf.mxu1 }
 0x19d   :  { %v9723_v52 = vpop.f32.mrf.mxu0 }
 0x19e   :  { %17836 = vst [vmem:[#allocation84_spill] sm:$0xff] %v12363_v8  ;;  %v12372_v7 = vpack.c.bf16 %v12363_v8, %v12361_v0  ;;  %17838 = vst [vmem:[#allocation86_spill] sm:$0xff] %v12378_v47  ;;  %v12385_v46 = vpop.f32.mrf.mxu1  ;;  %v12413_v14 = vadd.f32 %v9723_v52, %v9551_v32  ;;  %v10144_v32 = vld [vmem:[#allocation2 + $0x100] ss:$24 sps:$4 sm:$0xff]   ;;  %v10149_v52 = vld [vmem:[#allocation2 + $0x3cc] ss:$24 sps:$4 sm:$0xff]  }
 0x19f   :  { %v1451_v40 = vpop.f32.mrf.mxu0 }
 0x1a0   :  { %2704 = vmatprep.mubr.bf16.mxu0 %v12372_v7  ;;  %v12387_v8 = vadd.f32 %v9545_v37, %v1451_v40  ;;  %v12391_v27 = vpop.f32.mrf.mxu1  ;;  %v10143_v37 = vld [vmem:[#allocation2 + $0x134] ss:$24 sps:$4 sm:$0xff]   ;;  %17844 = vst [vmem:[#allocation91_spill] sm:$0xff] %v12413_v14 }
 0x1a1   :  { %v9724_v48 = vpop.f32.mrf.mxu0  ;;  %2705 = vmatmul.mubr.bf16.gmra.mxu0 %v12378_v47 }
 0x1a2   :  { %2940 = vmatprep.mubr.bf16.mxu0 %v11981_v20  ;;  %17839 = vst [vmem:[#allocation87_spill] sm:$0xff] %v12387_v8  ;;  %v12399_v61 = vpop.f32.mrf.mxu1  ;;  %v12408_v59 = vadd.f32 %v9724_v48, %v9554_v42  ;;  %v9557_v42 = vadd.f32 %v9556_v45, %v12344_v55  ;;  %v10152_v45 = vld [vmem:[#allocation2 + $0xd4] ss:$24 sps:$4 sm:$0xff]  }
 0x1a3   :  { %v1454_v16 = vpop.f32.mrf.mxu0 }
 0x1a4   :  { %v12389_v0 = vadd.f32 %v9548_v62, %v1454_v16  ;;  %v12402_v40 = vpop.f32.mrf.mxu1  ;;  %17843 = vst [vmem:[#allocation90_spill] sm:$0xff] %v12408_v59  ;;  %v12422_v48 = vpack.c.bf16 %v12408_v59, %v12413_v14  ;;  %v10164_v59 = vld [vmem:[#allocation2 + $0x39c] ss:$24 sps:$4 sm:$0xff]  }
 0x1a5   :  { %v12393_v6 = vpop.f32.mrf.mxu0 }
 0x1a6   :  { %17840 = vst [vmem:[#allocation88_spill] sm:$0xff] %v12389_v0  ;;  %v12397_v44 = vpack.c.bf16 %v12389_v0, %v12387_v8  ;;  %v12411_v16 = vpop.f32.mrf.mxu1  ;;  %v10132_v0 = vld [vmem:[#allocation2 + $0x428] ss:$24 sps:$4 sm:$0xff]   ;;  %17845 = vst [vmem:[#allocation92_spill] sm:$0xff] %v12422_v48 }
 0x1a7   :  { %v1467_v17 = vpop.f32.mrf.mxu0  ;;  %v10141_v8 = vld [vmem:[#allocation2 + $0x130] ss:$24 sps:$4 sm:$0xff]  }
 0x1a8   :  { %17841 = vst [vmem:[#allocation89_spill] sm:$0xff] %v12397_v44  ;;  %2748 = vmatmul.mubr.bf16.vlgmr.msra.gmra.mxu1 %v12397_v44  ;;  %v12415_v18 = vpop.f32.mrf.mxu1 }
 0x1a9   :  { %2941 = vmatmul.mubr.bf16.vlgmr.msra.gmra.mxu0 %v11987_v24  ;;  %v12405_v62 = vpop.f32.mrf.mxu0  ;;  %2757 = vmatprep.mubr.bf16.mxu1 %v17842_v51  ;;  %v10146_v24 = vld [vmem:[#allocation2 + $0x104] ss:$24 sps:$4 sm:$0xff]  }
 0x1aa   :  { %2950 = vmatprep.mubr.bf16.mxu0 %v12012_v34  ;;  %3102 = vmatpush1.bf16.msra.mxu1 %v10129_v60  ;;  %v9560_v60 = vadd.f32 %v9559_v49, %v9558_v3  ;;  %v12424_v34 = vpop.f32.mrf.mxu1  ;;  %v12435_v3 = vadd.f32 %v9557_v42, %v1467_v17  ;;  %v9563_v17 = vadd.f32 %v12374_v4, %v12365_v13  ;;  %v10158_v13 = vld [vmem:[#allocation2 + $0x74] ss:$24 sps:$4 sm:$0xff]  }
 0x1ab   :  { %v1470_v12 = vpop.f32.mrf.mxu0  ;;  %3103 = vmatprep.subr.bf16.mxu1 %v10134_v41  ;;  %3295 = vmatpush1.bf16.msra.mxu0 %v10138_v23  ;;  %v10135_v23 = vld [vmem:[#allocation2 + $0x3f8] ss:$24 sps:$4 sm:$0xff]  }
 0x1ac   :  { %3296 = vmatprep.subr.bf16.mxu0 %v10143_v37  ;;  %v12429_v37 = vpop.f32.mrf.mxu1  ;;  %17846 = vst [vmem:[#allocation93_spill] sm:$0xff] %v12435_v3  ;;  %v12437_v49 = vadd.f32 %v9560_v60, %v1470_v12  ;;  %v9566_v12 = vadd.f32 %v12385_v46, %v12381_v43  ;;  %v12466_v46 = vadd.f32 %v12393_v6, %v9563_v17  ;;  %v10161_v6 = vld [vmem:[#allocation2 + $0x44] ss:$24 sps:$4 sm:$0xff]  }
 0x1ad   :  { %v12417_v44 = vpop.f32.mrf.mxu0 }
 0x1ae   :  { %3104 = vmatpush1.bf16.msra.mxu1 %v10132_v0  ;;  %17847 = vst [vmem:[#allocation94_spill] sm:$0xff] %v12437_v49  ;;  %v10147_v0 = vld [vmem:[#allocation2 + $0x3c8] ss:$24 sps:$4 sm:$0xff]   ;;  %v12452_v42 = vpack.c.bf16 %v12437_v49, %v12435_v3  ;;  %17849 = vst [vmem:[#allocation96_spill] sm:$0xff] %v12466_v46  ;;  %v10191_v3 = vld [vmem:[#allocation2 + $0x33c] ss:$24 sps:$4 sm:$0xff]  }
 0x1af   :  { %v12426_v41 = vpop.f32.mrf.mxu0  ;;  %3105 = vmatprep.subr.bf16.mxu1 %v10137_v10  ;;  %3297 = vmatpush1.bf16.msra.mxu0 %v10141_v8  ;;  %v12440_v8 = vpop.f32.mrf.mxu1  ;;  %v10156_v49 = vld [vmem:[#allocation2 + $0x70] ss:$24 sps:$4 sm:$0xff]  }
 0x1b0   :  { %2758 = vmatmul.mubr.bf16.gmra.mxu1 %v12422_v48  ;;  %3298 = vmatprep.subr.bf16.mxu0 %v10146_v24  ;;  %v10150_v24 = vld [vmem:[#allocation2 + $0xd0] ss:$24 sps:$4 sm:$0xff]   ;;  %17848 = vst [vmem:[#allocation95_spill] sm:$0xff] %v12452_v42 }
 0x1b1   :  { %2951 = vmatmul.mubr.bf16.gmra.mxu0 %v12018_v39  ;;  %2767 = vmatprep.mubr.bf16.mxu1 %v17842_v51  ;;  %v12433_v55 = vpop.f32.mrf.mxu0  ;;  %v12442_v14 = vpop.f32.mrf.mxu1  ;;  %v10155_v39 = vld [vmem:[#allocation2 + $0xa4] ss:$24 sps:$4 sm:$0xff]  }
 0x1b2   :  { %2960 = vmatprep.mubr.bf16.mxu0 %v12044_v1  ;;  %3106 = vmatpush1.bf16.msra.mxu1 %v10135_v23  ;;  %v10162_v23 = vld [vmem:[#allocation2 + $0x398] ss:$24 sps:$4 sm:$0xff]  }
 0x1b3   :  { %v1486_v10 = vpop.f32.mrf.mxu0  ;;  %3299 = vmatpush1.bf16.msra.mxu0 %v10144_v32  ;;  %3107 = vmatprep.subr.bf16.mxu1 %v10149_v52  ;;  %v12454_v60 = vpop.f32.mrf.mxu1  ;;  %v10153_v52 = vld [vmem:[#allocation2 + $0xa0] ss:$24 sps:$4 sm:$0xff]  }
 0x1b4   :  { %3300 = vmatprep.subr.bf16.mxu0 %v10152_v45  ;;  %v10179_v45 = vld [vmem:[#allocation2 + $0x36c] ss:$24 sps:$4 sm:$0xff]  }
 0x1b5   :  { %v12444_v48 = vpop.f32.mrf.mxu0  ;;  %v12459_v4 = vpop.f32.mrf.mxu1 }
 0x1b6   :  { %3108 = vmatpush1.bf16.msra.mxu1 %v10147_v0  ;;  %v12469_v0 = vadd.f32 %v12405_v62, %v9566_v12  ;;  %v9569_v12 = vadd.f32 %v12399_v61, %v12391_v27 }
 0x1b7   :  { %v12456_v32 = vpop.f32.mrf.mxu0  ;;  %3301 = vmatpush1.bf16.msra.mxu0 %v10150_v24  ;;  %3109 = vmatprep.subr.bf16.mxu1 %v10164_v59  ;;  %v12472_v59 = vpop.f32.mrf.mxu1  ;;  %v10177_v24 = vld [vmem:[#allocation2 + $0x368] ss:$24 sps:$4 sm:$0xff]  }
 0x1b8   :  { %2768 = vmatmul.mubr.bf16.gmra.mxu1 %v12452_v42  ;;  %3302 = vmatprep.subr.bf16.mxu0 %v10155_v39  ;;  %17850 = vst [vmem:[#allocation97_spill] sm:$0xff] %v12469_v0  ;;  %v12482_v62 = vpack.c.bf16 %v12469_v0, %v12466_v46  ;;  %v10197_v42 = vld [vmem:[#allocation2 + $0x30c] ss:$24 sps:$4 sm:$0xff]   ;;  %v12500_v61 = vadd.f32 %v9569_v12, %v12426_v41 }
 0x1b9   :  { %2961 = vmatmul.mubr.bf16.gmra.mxu0 %v12050_v5  ;;  %2777 = vmatprep.mubr.bf16.mxu1 %v17842_v51  ;;  %v12463_v43 = vpop.f32.mrf.mxu0  ;;  %v12476_v5 = vpop.f32.mrf.mxu1  ;;  %v10167_v46 = vld [vmem:[#allocation2 + $0x14] ss:$24 sps:$4 sm:$0xff]   ;;  %v9578_v12 = vadd.f32 %v12440_v8, %v12429_v37 }
 0x1ba   :  { %2970 = vmatprep.mubr.bf16.mxu0 %v12076_v9  ;;  %3110 = vmatpush1.bf16.msra.mxu1 %v10162_v23  ;;  %17851 = vst [vmem:[#allocation98_spill] sm:$0xff] %v12482_v62  ;;  %v9572_v23 = vadd.f32 %v12411_v16, %v12402_v40  ;;  %17852 = vst [vmem:[#allocation99_spill] sm:$0xff] %v12500_v61 }
 0x1bb   :  { %v12474_v39 = vpop.f32.mrf.mxu0  ;;  %3303 = vmatpush1.bf16.msra.mxu0 %v10153_v52  ;;  %3111 = vmatprep.subr.bf16.mxu1 %v10179_v45  ;;  %v12488_v52 = vpop.f32.mrf.mxu1  ;;  %v10189_v45 = vld [vmem:[#allocation2 + $0x338] ss:$24 sps:$4 sm:$0xff]   ;;  %v12536_v8 = vadd.f32 %v12433_v55, %v9578_v12  ;;  %v9581_v55 = vadd.f32 %v12454_v60, %v12442_v14 }
 0x1bc   :  { %3304 = vmatprep.subr.bf16.mxu0 %v10158_v13  ;;  %v10159_v13 = vld [vmem:[#allocation2 + $0x40] ss:$24 sps:$4 sm:$0xff]   ;;  %v12502_v40 = vadd.f32 %v9572_v23, %v1486_v10  ;;  %v9575_v10 = vadd.f32 %v12424_v34, %v12415_v18  ;;  %v10173_v18 = vld [vmem:[#allocation2 + $0x2b4] ss:$24 sps:$4 sm:$0xff]  }
 0x1bd   :  { %v12478_v17 = vpop.f32.mrf.mxu0  ;;  %v12493_v0 = vpop.f32.mrf.mxu1  ;;  %17856 = vst [vmem:[#allocation103_spill] sm:$0xff] %v12536_v8  ;;  %v12563_v14 = vadd.f32 %v9581_v55, %v12456_v32 }
 0x1be   :  { %3112 = vmatpush1.bf16.msra.mxu1 %v10177_v24  ;;  %17853 = vst [vmem:[#allocation100_spill] sm:$0xff] %v12502_v40  ;;  %v10165_v24 = vld [vmem:[#allocation2 + $0x10] ss:$24 sps:$4 sm:$0xff]   ;;  %v12519_v23 = vpack.c.bf16 %v12502_v40, %v12500_v61  ;;  %v12533_v37 = vadd.f32 %v12417_v44, %v9575_v10  ;;  %v10176_v40 = vld [vmem:[#allocation2 + $0x284] ss:$24 sps:$4 sm:$0xff]   ;;  %v9584_v10 = vadd.f32 %v12472_v59, %v12459_v4 }
 0x1bf   :  { %v12490_v9 = vpop.f32.mrf.mxu0  ;;  %3305 = vmatpush1.bf16.msra.mxu0 %v10156_v49  ;;  %3113 = vmatprep.subr.bf16.mxu1 %v10191_v3  ;;  %v12505_v16 = vpop.f32.mrf.mxu1  ;;  %v10195_v3 = vld [vmem:[#allocation2 + $0x308] ss:$24 sps:$4 sm:$0xff]   ;;  %17858 = vst [vmem:[#allocation105_spill] sm:$0xff] %v12563_v14 }
 0x1c0   :  { %2778 = vmatmul.mubr.bf16.gmra.mxu1 %v12482_v62  ;;  %3306 = vmatprep.subr.bf16.mxu0 %v10161_v6  ;;  %v10203_v62 = vld [vmem:[#allocation2 + $0x464] ss:$24 sps:$4 sm:$0xff]   ;;  %17854 = vst [vmem:[#allocation101_spill] sm:$0xff] %v12519_v23  ;;  %17855 = vst [vmem:[#allocation102_spill] sm:$0xff] %v12533_v37  ;;  %v12547_v44 = vpack.c.bf16 %v12536_v8, %v12533_v37  ;;  %v12566_v60 = vadd.f32 %v9584_v10, %v12474_v39  ;;  %v10180_v59 = vld [vmem:[#allocation2 + $0x250] ss:$24 sps:$4 sm:$0xff]  }
 0x1c1   :  { %2971 = vmatmul.mubr.bf16.gmra.mxu0 %v12082_v11  ;;  %2787 = vmatprep.mubr.bf16.mxu1 %v17842_v51  ;;  %v12497_v27 = vpop.f32.mrf.mxu0  ;;  %v12509_v6 = vpop.f32.mrf.mxu1  ;;  %v10170_v11 = vld [vmem:[#allocation2 + $0x2e4] ss:$24 sps:$4 sm:$0xff]   ;;  %v9590_v39 = vadd.f32 %v12505_v16, %v12493_v0  ;;  %v10186_v16 = vld [vmem:[#allocation2 + $0x1f0] ss:$24 sps:$4 sm:$0xff]  }
 0x1c2   :  { %2980 = vmatprep.mubr.bf16.mxu0 %v12106_v19  ;;  %3114 = vmatpush1.bf16.msra.mxu1 %v10189_v45  ;;  %17857 = vst [vmem:[#allocation104_spill] sm:$0xff] %v12547_v44  ;;  %17859 = vst [vmem:[#allocation106_spill] sm:$0xff] %v12566_v60  ;;  %v12577_v32 = vpack.c.bf16 %v12566_v60, %v12563_v14 }
 0x1c3   :  { %v12507_v49 = vpop.f32.mrf.mxu0  ;;  %3307 = vmatpush1.bf16.msra.mxu0 %v10159_v13  ;;  %3115 = vmatprep.subr.bf16.mxu1 %v10197_v42  ;;  %v12521_v45 = vpop.f32.mrf.mxu1  ;;  %v12590_v60 = vadd.f32 %v12463_v43, %v9590_v39  ;;  %v10192_v43 = vld [vmem:[#allocation2 + $0x1c0] ss:$24 sps:$4 sm:$0xff]  }
 0x1c4   :  { %3308 = vmatprep.subr.bf16.mxu0 %v10167_v46  ;;  %v10168_v46 = vld [vmem:[#allocation2 + $0x2e0] ss:$24 sps:$4 sm:$0xff]   ;;  %17860 = vst [vmem:[#allocation107_spill] sm:$0xff] %v12577_v32 }
 0x1c5   :  { %v12511_v41 = vpop.f32.mrf.mxu0  ;;  %v12526_v13 = vpop.f32.mrf.mxu1  ;;  %17862 = vst [vmem:[#allocation109_spill] sm:$0xff] %v12590_v60 }
 0x1c6   :  { %3116 = vmatpush1.bf16.msra.mxu1 %v10195_v3 }
 0x1c7   :  { %v12523_v42 = vpop.f32.mrf.mxu0  ;;  %3309 = vmatpush1.bf16.msra.mxu0 %v10165_v24  ;;  %3487 = vmatprep.subr.bf16.mxu1 %v10203_v62  ;;  %v9595_v62 = vpop.f32.mrf.mxu1 }
 0x1c8   :  { %2788 = vmatmul.mubr.bf16.gmra.mxu1 %v12519_v23  ;;  %3310 = vmatprep.subr.bf16.mxu0 %v10170_v11  ;;  %v10171_v11 = vld [vmem:[#allocation2 + $0x2b0] ss:$24 sps:$4 sm:$0xff]  }
 0x1c9   :  { %2981 = vmatmul.mubr.bf16.gmra.mxu0 %v12112_v21  ;;  %2797 = vmatprep.mubr.bf16.mxu1 %v17842_v51  ;;  %v12530_v34 = vpop.f32.mrf.mxu0  ;;  %v12541_v24 = vpop.f32.mrf.mxu1  ;;  %v10182_v21 = vld [vmem:[#allocation2 + $0x254] ss:$24 sps:$4 sm:$0xff]  }
 0x1ca   :  { %2990 = vmatprep.mubr.bf16.mxu0 %v12136_v28  ;;  %v10174_v28 = vld [vmem:[#allocation2 + $0x280] ss:$24 sps:$4 sm:$0xff]  }
 0x1cb   :  { %v12539_v3 = vpop.f32.mrf.mxu0  ;;  %3311 = vmatpush2.bf16.msra.mxu0 %v10168_v46  ;;  %v12553_v12 = vpop.f32.mrf.mxu1 }
 0x1cc   :  { %3312 = vmatprep.subr.bf16.mxu0 %v10173_v18 }
 0x1cd   :  { %v12543_v61 = vpop.f32.mrf.mxu0  ;;  %v9600_v18 = vpop.f32.mrf.mxu1 }
 0x1cf   :  { %v12555_v46 = vpop.f32.mrf.mxu0  ;;  %3313 = vmatpush2.bf16.msra.mxu0 %v10171_v11  ;;  %v9601_v4 = vpop.f32.mrf.mxu1 }
 0x1d0   :  { %2798 = vmatmul.mubr.bf16.gmra.mxu1 %v12547_v44  ;;  %3314 = vmatprep.subr.bf16.mxu0 %v10176_v40  ;;  %v10185_v40 = vld [vmem:[#allocation2 + $0x224] ss:$24 sps:$4 sm:$0xff]  }
 0x1d1   :  { %2991 = vmatmul.mubr.bf16.gmra.mxu0 %v12142_v35  ;;  %2807 = vmatprep.mubr.bf16.mxu1 %v17842_v51  ;;  %v12560_v8 = vpop.f32.mrf.mxu0  ;;  %v12569_v11 = vpop.f32.mrf.mxu1  ;;  %v9587_v35 = vadd.f32 %v12488_v52, %v12476_v5 }
 0x1d2   :  { %3000 = vmatprep.mubr.bf16.mxu0 %v12166_v36 }
 0x1d3   :  { %3315 = vmatpush2.bf16.msra.mxu0 %v10174_v28  ;;  %v12571_v37 = vpop.f32.mrf.mxu0  ;;  %v9604_v55 = vpop.f32.mrf.mxu1  ;;  %v10183_v28 = vld [vmem:[#allocation2 + $0x220] ss:$24 sps:$4 sm:$0xff]   ;;  %v12587_v52 = vadd.f32 %v12444_v48, %v9587_v35 }
 0x1d4   :  { %3316 = vmatprep.subr.bf16.mxu0 %v10182_v21  ;;  %v10188_v21 = vld [vmem:[#allocation2 + $0x1f4] ss:$24 sps:$4 sm:$0xff]  }
 0x1d5   :  { %v9606_v10 = vpop.f32.mrf.mxu1  ;;  %v12584_v5 = vpop.f32.mrf.mxu0  ;;  %17861 = vst [vmem:[#allocation108_spill] sm:$0xff] %v12587_v52  ;;  %v12600_v35 = vpack.c.bf16 %v12590_v60, %v12587_v52  ;;  %v9599_v60 = vadd.f32 %v12553_v12, %v12541_v24  ;;  %v9602_v52 = vadd.f32 %v9601_v4, %v9600_v18 }
 0x1d7   :  { %3317 = vmatpush2.bf16.msra.mxu0 %v10180_v59  ;;  %v9607_v0 = vpop.f32.mrf.mxu1  ;;  %v12593_v14 = vpop.f32.mrf.mxu0  ;;  %17863 = vst [vmem:[#allocation110_spill] sm:$0xff] %v12600_v35  ;;  %v12631_v24 = vadd.f32 %v12497_v27, %v9602_v52 }
 0x1d8   :  { %2808 = vmatmul.mubr.bf16.gmra.mxu1 %v12577_v32  ;;  %3318 = vmatprep.subr.bf16.mxu0 %v10185_v40  ;;  %v10194_v40 = vld [vmem:[#allocation2 + $0x1c4] ss:$24 sps:$4 sm:$0xff]   ;;  %v9596_v32 = vadd.f32 %v9595_v62, %v12526_v13  ;;  %v10198_v62 = vld [vmem:[#allocation2 + $0x190] ss:$24 sps:$4 sm:$0xff]  }
 0x1d9   :  { %3001 = vmatmul.mubr.bf16.gmra.mxu0 %v12172_v2  ;;  %2817 = vmatprep.mubr.bf16.mxu1 %v17842_v51  ;;  %v9609_v59 = vpop.f32.mrf.mxu1  ;;  %v9593_v2 = vadd.f32 %v12521_v45, %v12509_v6  ;;  %17868 = vst [vmem:[#allocation115_spill] sm:$0xff] %v12631_v24 }
 0x1da   :  { %3010 = vmatprep.mubr.bf16.mxu0 %v12196_v38  ;;  %v12611_v45 = vadd.f32 %v9596_v32, %v12507_v49 }
 0x1db   :  { %3319 = vmatpush2.bf16.msra.mxu0 %v10183_v28  ;;  %v9610_v48 = vpop.f32.mrf.mxu1  ;;  %v10200_v28 = vld [vmem:[#allocation2 + $0x194] ss:$24 sps:$4 sm:$0xff]   ;;  %v12608_v6 = vadd.f32 %v9593_v2, %v12490_v9 }
 0x1dc   :  { %3320 = vmatprep.subr.bf16.mxu0 %v10188_v21  ;;  %v12604_v21 = vpop.f32.mrf.mxu0  ;;  %17865 = vst [vmem:[#allocation112_spill] sm:$0xff] %v12611_v45 }
 0x1dd   :  { %v9612_v39 = vpop.f32.mrf.mxu1  ;;  %17864 = vst [vmem:[#allocation111_spill] sm:$0xff] %v12608_v6  ;;  %v12620_v9 = vpack.c.bf16 %v12611_v45, %v12608_v6  ;;  %v9608_v45 = vadd.f32 %v9607_v0, %v9606_v10 }
 0x1df   :  { %3321 = vmatpush2.bf16.msra.mxu0 %v10186_v16  ;;  %v9613_v13 = vpop.f32.mrf.mxu1  ;;  %17866 = vst [vmem:[#allocation113_spill] sm:$0xff] %v12620_v9 }
 0x1e0   :  { %2818 = vmatmul.mubr.bf16.gmra.mxu1 %v12600_v35  ;;  %3322 = vmatprep.subr.bf16.mxu0 %v10194_v40  ;;  %v12614_v40 = vpop.f32.mrf.mxu0 }
 0x1e1   :  { %3011 = vmatmul.mubr.bf16.gmra.mxu0 %v12202_v53  ;;  %2827 = vmatprep.mubr.bf16.mxu1 %v17842_v51  ;;  %v9615_v16 = vpop.f32.mrf.mxu1 }
 0x1e2   :  { %3020 = vmatprep.mubr.bf16.mxu0 %v12222_v57 }
 0x1e3   :  { %3323 = vmatpush2.bf16.msra.mxu0 %v10192_v43  ;;  %v9616_v2 = vpop.f32.mrf.mxu1  ;;  %v12628_v43 = vadd.f32 %v12478_v17, %v9599_v60 }
 0x1e4   :  { %3324 = vmatprep.subr.bf16.mxu0 %v10200_v28 }
 0x1e5   :  { %v9618_v49 = vpop.f32.mrf.mxu1  ;;  %17867 = vst [vmem:[#allocation114_spill] sm:$0xff] %v12628_v43  ;;  %v12641_v6 = vpack.c.bf16 %v12631_v24, %v12628_v43  ;;  %v9611_v24 = vadd.f32 %v9610_v48, %v9609_v59  ;;  %v9614_v43 = vadd.f32 %v9613_v13, %v9612_v39 }
 0x1e7   :  { %3325 = vmatpush2.bf16.msra.mxu0 %v10198_v62  ;;  %v9619_v12 = vpop.f32.mrf.mxu1  ;;  %v9605_v62 = vadd.f32 %v9604_v55, %v12569_v11  ;;  %17870 = vst [vmem:[#allocation117_spill] sm:$0xff] %v12641_v6  ;;  %v12654_v11 = vadd.f32 %v9608_v45, %v12539_v3  ;;  %v12673_v45 = vadd.f32 %v12511_v41, %v9611_v24 }
 0x1e8   :  { %2828 = vmatmul.mubr.bf16.gmra.mxu1 %v12620_v9  ;;  %v12676_v59 = vadd.f32 %v12530_v34, %v9614_v43 }
 0x1e9   :  { %v12623_v32 = vpop.f32.mrf.mxu0  ;;  %3021 = vmatmul.mubr.bf16.gmra.mxu0 %v12226_v22  ;;  %2837 = vmatprep.mubr.bf16.mxu1 %v17842_v51  ;;  %v9621_v4 = vpop.f32.mrf.mxu1  ;;  %17872 = vst [vmem:[#allocation119_spill] sm:$0xff] %v12654_v11  ;;  %17874 = vst [vmem:[#allocation121_spill] sm:$0xff] %v12673_v45 }
 0x1ea   :  { %3030 = vmatprep.mubr.bf16.mxu0 %v12246_v26  ;;  %17875 = vst [vmem:[#allocation122_spill] sm:$0xff] %v12676_v59 }
 0x1eb   :  { %v12634_v18 = vpop.f32.mrf.mxu0  ;;  %v9622_v17 = vpop.f32.mrf.mxu1 }
 0x1ed   :  { %v12636_v28 = vpop.f32.mrf.mxu0  ;;  %v9624_v27 = vpop.f32.mrf.mxu1 }
 0x1ee   :  { %17869 = vst [vmem:[#allocation116_spill] sm:$0xff] %v12636_v28  ;;  %v12651_v28 = vadd.f32 %v9605_v62, %v12523_v42  ;;  %v9617_v62 = vadd.f32 %v9616_v2, %v9615_v16 }
 0x1ef   :  { %v12643_v60 = vpop.f32.mrf.mxu0  ;;  %v9625_v10 = vpop.f32.mrf.mxu1 }
 0x1f0   :  { %2838 = vmatmul.mubr.bf16.gmra.mxu1 %v12641_v6  ;;  %17871 = vst [vmem:[#allocation118_spill] sm:$0xff] %v12651_v28  ;;  %v12695_v43 = vadd.f32 %v9617_v62, %v12555_v46 }
 0x1f1   :  { %v12646_v52 = vpop.f32.mrf.mxu0  ;;  %3031 = vmatmul.mubr.bf16.gmra.mxu0 %v12250_v31  ;;  %2847 = vmatprep.mubr.bf16.mxu1 %v17842_v51  ;;  %v12663_v31 = vpack.c.bf16 %v12654_v11, %v12651_v28  ;;  %v9627_v42 = vpop.f32.mrf.mxu1  ;;  %v9620_v11 = vadd.f32 %v9619_v12, %v9618_v49  ;;  %v12685_v28 = vpack.c.bf16 %v12676_v59, %v12673_v45 }
 0x1f2   :  { %3040 = vmatprep.mubr.bf16.mxu0 %v12270_v54  ;;  %17877 = vst [vmem:[#allocation124_spill] sm:$0xff] %v12695_v43  ;;  %v9623_v12 = vadd.f32 %v9622_v17, %v9621_v4  ;;  %v9626_v59 = vadd.f32 %v9625_v10, %v9624_v27 }
 0x1f3   :  { %v12657_v55 = vpop.f32.mrf.mxu0  ;;  %17873 = vst [vmem:[#allocation120_spill] sm:$0xff] %v12663_v31  ;;  %v9628_v39 = vpop.f32.mrf.mxu1  ;;  %17876 = vst [vmem:[#allocation123_spill] sm:$0xff] %v12685_v28  ;;  %v12698_v16 = vadd.f32 %v9620_v11, %v12571_v37 }
 0x1f4   :  { %v12717_v46 = vadd.f32 %v12543_v61, %v9623_v12  ;;  %v12720_v4 = vadd.f32 %v12560_v8, %v9626_v59  ;;  %v9629_v10 = vadd.f32 %v9628_v39, %v9627_v42 }
 0x1f5   :  { %v12659_v0 = vpop.f32.mrf.mxu0  ;;  %v9630_v41 = vpop.f32.mrf.mxu1  ;;  %17878 = vst [vmem:[#allocation125_spill] sm:$0xff] %v12698_v16  ;;  %v12707_v45 = vpack.c.bf16 %v12698_v16, %v12695_v43 }
 0x1f6   :  { %17880 = vst [vmem:[#allocation127_spill] sm:$0xff] %v12717_v46  ;;  %17881 = vst [vmem:[#allocation128_spill] sm:$0xff] %v12720_v4  ;;  %v12729_v16 = vpack.c.bf16 %v12720_v4, %v12717_v46  ;;  %v12739_v8 = vadd.f32 %v9629_v10, %v12593_v14 }
 0x1f7   :  { %v12665_v6 = vpop.f32.mrf.mxu0  ;;  %v9631_v2 = vpop.f32.mrf.mxu1  ;;  %17879 = vst [vmem:[#allocation126_spill] sm:$0xff] %v12707_v45 }
 0x1f8   :  { %2848 = vmatmul.mubr.bf16.gmra.mxu1 %v12663_v31  ;;  %v9632_v62 = vadd.f32 %v9631_v2, %v9630_v41  ;;  %17882 = vst [vmem:[#allocation129_spill] sm:$0xff] %v12729_v16  ;;  %17883 = vst [vmem:[#allocation130_spill] sm:$0xff] %v12739_v8 }
 0x1f9   :  { %v12668_v3 = vpop.f32.mrf.mxu0  ;;  %3041 = vmatmul.mubr.bf16.gmra.mxu0 %v12274_v63  ;;  %2857 = vmatprep.mubr.bf16.mxu1 %v17842_v51 }
 0x1fa   :  { %3050 = vmatprep.mubr.bf16.mxu0 %v12292_v33  ;;  %v12742_v42 = vadd.f32 %v9632_v62, %v12614_v40 }
 0x1fb   :  { %v12679_v48 = vpop.f32.mrf.mxu0 }
 0x1fc   :  { %17884 = vst [vmem:[#allocation131_spill] sm:$0xff] %v12742_v42  ;;  %v12751_v4 = vpack.c.bf16 %v12742_v42, %v12739_v8  ;;  %v17896_v8 = vld [vmem:[#allocation12_spill] sm:$0xff] }
 0x1fd   :  { %v12681_v13 = vpop.f32.mrf.mxu0 }
 0x1fe   :  { %17885 = vst [vmem:[#allocation132_spill] sm:$0xff] %v12751_v4 }
 0x1ff   :  { %v12687_v63 = vpop.f32.mrf.mxu0 }
 0x200   :  { %2858 = vmatmul.mubr.bf16.gmra.mxu1 %v12685_v28 }
 0x201   :  { %v12690_v34 = vpop.f32.mrf.mxu0  ;;  %3051 = vmatmul.mubr.bf16.gmra.mxu0 %v12296_v50  ;;  %2867 = vmatprep.mubr.bf16.mxu1 %v17842_v51  ;;  %v9633_v50 = vpop.f32.mrf.mxu1 }
 0x202   :  { %3060 = vmatprep.mubr.bf16.mxu0 %v12311_v30 }
 0x203   :  { %v12701_v49 = vpop.f32.mrf.mxu0  ;;  %v9634_v17 = vpop.f32.mrf.mxu1 }
 0x204   :  { %v9635_v2 = vadd.f32 %v9634_v17, %v9633_v50 }
 0x205   :  { %v12703_v24 = vpop.f32.mrf.mxu0  ;;  %v9636_v43 = vpop.f32.mrf.mxu1 }
 0x206   :  { %v12761_v40 = vadd.f32 %v12584_v5, %v9635_v2  ;;  %v10201_v2 = vld [vmem:[#allocation2 + $0x460] ss:$24 sps:$4 sm:$0xff]  }
 0x207   :  { %v12709_v28 = vpop.f32.mrf.mxu0  ;;  %v9637_v59 = vpop.f32.mrf.mxu1 }
 0x208   :  { %2868 = vmatmul.mubr.bf16.gmra.mxu1 %v12707_v45  ;;  %v9638_v12 = vadd.f32 %v9637_v59, %v9636_v43  ;;  %17886 = vst [vmem:[#allocation133_spill] sm:$0xff] %v12761_v40 }
 0x209   :  { %v12712_v37 = vpop.f32.mrf.mxu0  ;;  %3061 = vmatmul.mubr.bf16.gmra.mxu0 %v12315_v15  ;;  %2877 = vmatprep.mubr.bf16.mxu1 %v17842_v51 }
 0x20a   :  { %3070 = vmatprep.mubr.bf16.mxu0 %v12330_v29  ;;  %v12764_v50 = vadd.f32 %v12604_v21, %v9638_v12 }
 0x20b   :  { %v12723_v27 = vpop.f32.mrf.mxu0 }
 0x20c   :  { %17887 = vst [vmem:[#allocation134_spill] sm:$0xff] %v12764_v50  ;;  %v12773_v10 = vpack.c.bf16 %v12764_v50, %v12761_v40  ;;  %v10206_v50 = vld [vmem:[#allocation2 + $0x434] ss:$24 sps:$4 sm:$0xff]  }
 0x20d   :  { %v12725_v11 = vpop.f32.mrf.mxu0  ;;  %v17894_v40 = vld [vmem:[#allocation89_spill] sm:$0xff] }
 0x20e   :  { %17888 = vst [vmem:[#allocation135_spill] sm:$0xff] %v12773_v10 }
 0x20f   :  { %v12731_v15 = vpop.f32.mrf.mxu0 }
 0x210   :  { %2878 = vmatmul.mubr.bf16.gmra.mxu1 %v12729_v16 }
 0x211   :  { %v12734_v61 = vpop.f32.mrf.mxu0  ;;  %3071 = vmatmul.mubr.bf16.gmra.mxu0 %v12334_v25  ;;  %2887 = vmatprep.mubr.bf16.mxu1 %v17842_v51 }
 0x212   :  { %3080 = vmatprep.mubr.bf16.mxu0 %v12351_v56 }
 0x213   :  { %v12745_v39 = vpop.f32.mrf.mxu0 }
 0x215   :  { %v12747_v41 = vpop.f32.mrf.mxu0 }
 0x217   :  { %v12753_v46 = vpop.f32.mrf.mxu0 }
 0x218   :  { %2888 = vmatmul.mubr.bf16.gmra.mxu1 %v12751_v4 }
 0x219   :  { %v12756_v14 = vpop.f32.mrf.mxu0  ;;  %3081 = vmatmul.mubr.bf16.gmra.mxu0 %v12355_v58  ;;  %2897 = vmatprep.mubr.bf16.mxu1 %v17842_v51 }
 0x21a   :  { %3090 = vmatprep.mubr.bf16.mxu0 %v12372_v7 }
 0x21b   :  { %v12767_v43 = vpop.f32.mrf.mxu0 }
 0x21d   :  { %v12769_v17 = vpop.f32.mrf.mxu0 }
 0x21f   :  { %v12775_v62 = vpop.f32.mrf.mxu0 }
 0x220   :  { %17889 = vst [vmem:[#allocation136_spill] sm:$0xff] %v12775_v62  ;;  %2898 = vmatmul.mubr.bf16.gmra.mxu1 %v12773_v10  ;;  %v17902_v62 = vld [vmem:[#allocation18_spill] sm:$0xff] }
 0x221   :  { %v12778_v59 = vpop.f32.mrf.mxu0  ;;  %3091 = vmatmul.mubr.bf16.gmra.mxu0 %v12378_v47  ;;  %3133 = vmatprep.mubr.bf16.mxu1 %v17842_v51  ;;  %v17897_v47 = vld [vmem:[#allocation17_spill] sm:$0xff] }
 0x222   :  { %17890 = vst [vmem:[#allocation137_spill] sm:$0xff] %v12778_v59  ;;  %3326 = vmatprep.mubr.bf16.mxu0 %v11981_v20  ;;  %v10204_v20 = vld [vmem:[#allocation2 + $0x430] ss:$24 sps:$4 sm:$0xff]  }
 0x223   :  { %v12783_v5 = vpop.f32.mrf.mxu0 }
 0x224   :  { %17891 = vst [vmem:[#allocation138_spill] sm:$0xff] %v12783_v5 }
 0x225   :  { %v12785_v21 = vpop.f32.mrf.mxu0 }
 0x226   :  { %17892 = vst [vmem:[#allocation139_spill] sm:$0xff] %v12785_v21  ;;  %v10209_v21 = vld [vmem:[#allocation2 + $0x404] ss:$24 sps:$4 sm:$0xff]  }
 0x227   :  { %v12787_v12 = vpop.f32.mrf.mxu0 }
 0x228   :  { %17893 = vst [vmem:[#allocation140_spill] sm:$0xff] %v12787_v12  ;;  %3134 = vmatmul.mubr.bf16.vlgmr.msra.gmra.mxu1 %v17894_v40  ;;  %v10207_v12 = vld [vmem:[#allocation2 + $0x400] ss:$24 sps:$4 sm:$0xff]   ;;  %v10212_v40 = vld [vmem:[#allocation2 + $0x3d4] ss:$24 sps:$4 sm:$0xff]  }
 0x229   :  { %v12790_v42 = vpop.f32.mrf.mxu0  ;;  %3327 = vmatmul.mubr.bf16.vlgmr.msra.gmra.mxu0 %v17896_v8  ;;  %3143 = vmatprep.mubr.bf16.mxu1 %v17842_v51 }
 0x22a   :  { %17895 = vst [vmem:[#allocation141_spill] sm:$0xff] %v12790_v42  ;;  %3336 = vmatprep.mubr.bf16.mxu0 %v17897_v47  ;;  %3488 = vmatpush1.bf16.msra.mxu1 %v10201_v2  ;;  %v17900_v42 = vld [vmem:[#allocation92_spill] sm:$0xff]  ;;  %v10210_v47 = vld [vmem:[#allocation2 + $0x3d0] ss:$24 sps:$4 sm:$0xff]  }
 0x22b   :  { %v12795_v10 = vpop.f32.mrf.mxu0  ;;  %3489 = vmatprep.subr.bf16.mxu1 %v10206_v50  ;;  %v10215_v2 = vld [vmem:[#allocation2 + $0x3a4] ss:$24 sps:$4 sm:$0xff]  }
 0x22d   :  { %v12797_v5 = vpop.f32.mrf.mxu0 }
 0x22e   :  { %17898 = vst [vmem:[#allocation12_spill] sm:$0xff] %v12797_v5  ;;  %3490 = vmatpush1.bf16.msra.mxu1 %v10204_v20  ;;  %v17908_v5 = vld [vmem:[#allocation23_spill] sm:$0xff] }
 0x22f   :  { %v12799_v59 = vpop.f32.mrf.mxu0  ;;  %3491 = vmatprep.subr.bf16.mxu1 %v10209_v21  ;;  %v10213_v21 = vld [vmem:[#allocation2 + $0x3a0] ss:$24 sps:$4 sm:$0xff]  }
 0x230   :  { %17899 = vst [vmem:[#allocation17_spill] sm:$0xff] %v12799_v59  ;;  %3144 = vmatmul.mubr.bf16.gmra.mxu1 %v17900_v42  ;;  %v10218_v42 = vld [vmem:[#allocation2 + $0x374] ss:$24 sps:$4 sm:$0xff]  }
 0x231   :  { %v12802_v8 = vpop.f32.mrf.mxu0  ;;  %3337 = vmatmul.mubr.bf16.gmra.mxu0 %v17902_v62  ;;  %3153 = vmatprep.mubr.bf16.mxu1 %v17842_v51 }
 0x232   :  { %17901 = vst [vmem:[#allocation142_spill] sm:$0xff] %v12802_v8  ;;  %3346 = vmatprep.mubr.bf16.mxu0 %v12044_v1  ;;  %3492 = vmatpush1.bf16.msra.mxu1 %v10207_v12  ;;  %v17906_v8 = vld [vmem:[#allocation95_spill] sm:$0xff]  ;;  %v17909_v1 = vld [vmem:[#allocation28_spill] sm:$0xff] }
 0x233   :  { %v12807_v50 = vpop.f32.mrf.mxu0  ;;  %3493 = vmatprep.subr.bf16.mxu1 %v10212_v40  ;;  %v10216_v40 = vld [vmem:[#allocation2 + $0x370] ss:$24 sps:$4 sm:$0xff]  }
 0x234   :  { %17903 = vst [vmem:[#allocation18_spill] sm:$0xff] %v12807_v50  ;;  %v17911_v50 = vld [vmem:[#allocation29_spill] sm:$0xff] }
 0x235   :  { %v12809_v20 = vpop.f32.mrf.mxu0 }
 0x236   :  { %17904 = vst [vmem:[#allocation143_spill] sm:$0xff] %v12809_v20  ;;  %3494 = vmatpush1.bf16.msra.mxu1 %v10210_v47  ;;  %v10221_v47 = vld [vmem:[#allocation2 + $0x344] ss:$24 sps:$4 sm:$0xff]  }
 0x237   :  { %v12811_v59 = vpop.f32.mrf.mxu0  ;;  %3495 = vmatprep.subr.bf16.mxu1 %v10215_v2  ;;  %v10219_v2 = vld [vmem:[#allocation2 + $0x340] ss:$24 sps:$4 sm:$0xff]  }
 0x238   :  { %17905 = vst [vmem:[#allocation144_spill] sm:$0xff] %v12811_v59  ;;  %3154 = vmatmul.mubr.bf16.gmra.mxu1 %v17906_v8  ;;  %v10224_v8 = vld [vmem:[#allocation2 + $0x314] ss:$24 sps:$4 sm:$0xff]  }
 0x239   :  { %v12814_v62 = vpop.f32.mrf.mxu0  ;;  %3347 = vmatmul.mubr.bf16.gmra.mxu0 %v17908_v5  ;;  %3163 = vmatprep.mubr.bf16.mxu1 %v17842_v51 }
 0x23a   :  { %17907 = vst [vmem:[#allocation145_spill] sm:$0xff] %v12814_v62  ;;  %3356 = vmatprep.mubr.bf16.mxu0 %v17909_v1  ;;  %3496 = vmatpush1.bf16.msra.mxu1 %v10213_v21  ;;  %v17910_v62 = vld [vmem:[#allocation98_spill] sm:$0xff] }
 0x23b   :  { %v12819_v12 = vpop.f32.mrf.mxu0  ;;  %3497 = vmatprep.subr.bf16.mxu1 %v10218_v42  ;;  %v10222_v42 = vld [vmem:[#allocation2 + $0x310] ss:$24 sps:$4 sm:$0xff]  }
 0x23d   :  { %v12821_v20 = vpop.f32.mrf.mxu0 }
 0x23e   :  { %3498 = vmatpush1.bf16.msra.mxu1 %v10216_v40 }
 0x23f   :  { %v12823_v59 = vpop.f32.mrf.mxu0  ;;  %3499 = vmatprep.subr.bf16.mxu1 %v10221_v47 }
 0x240   :  { %3164 = vmatmul.mubr.bf16.gmra.mxu1 %v17910_v62  ;;  %v17913_v62 = vld [vmem:[#allocation34_spill] sm:$0xff] }
 0x241   :  { %v12826_v5 = vpop.f32.mrf.mxu0  ;;  %3357 = vmatmul.mubr.bf16.gmra.mxu0 %v17911_v50  ;;  %3173 = vmatprep.mubr.bf16.mxu1 %v17842_v51  ;;  %v17914_v50 = vld [vmem:[#allocation39_spill] sm:$0xff] }
 0x242   :  { %3366 = vmatprep.mubr.bf16.mxu0 %v12106_v19  ;;  %3500 = vmatpush1.bf16.msra.mxu1 %v10219_v2 }
 0x243   :  { %v12831_v21 = vpop.f32.mrf.mxu0  ;;  %3501 = vmatprep.subr.bf16.mxu1 %v10224_v8 }
 0x245   :  { %v12833_v1 = vpop.f32.mrf.mxu0 }
 0x246   :  { %3502 = vmatpush1.bf16.msra.mxu1 %v10222_v42 }
 0x247   :  { %v12835_v40 = vpop.f32.mrf.mxu0 }
 0x248   :  { %17912 = vst [vmem:[#allocation23_spill] sm:$0xff] %v12835_v40  ;;  %3174 = vmatmul.mubr.bf16.gmra.mxu1 %v12519_v23  ;;  %v17918_v40 = vld [vmem:[#allocation40_spill] sm:$0xff] }
 0x249   :  { %v12838_v47 = vpop.f32.mrf.mxu0  ;;  %3367 = vmatmul.mubr.bf16.gmra.mxu0 %v17913_v62  ;;  %3183 = vmatprep.mubr.bf16.mxu1 %v17842_v51 }
 0x24a   :  { %3376 = vmatprep.mubr.bf16.mxu0 %v17914_v50  ;;  %v1772_v50 = vlaneseq }
 0x24b   :  { %v12843_v19 = vpop.f32.mrf.mxu0 }
 0x24c   :  { %17915 = vst [vmem:[#allocation28_spill] sm:$0xff] %v12843_v19 }
 0x24d   :  { %v12845_v2 = vpop.f32.mrf.mxu0 }
 0x24e   :  { %17916 = vst [vmem:[#allocation29_spill] sm:$0xff] %v12845_v2  ;;  %v17922_v2 = vld [vmem:[#allocation107_spill] sm:$0xff] }
 0x24f   :  { %v12847_v8 = vpop.f32.mrf.mxu0 }
 0x250   :  { %17917 = vst [vmem:[#allocation34_spill] sm:$0xff] %v12847_v8  ;;  %3184 = vmatmul.mubr.bf16.gmra.mxu1 %v12547_v44  ;;  %v17923_v44 = vld [vmem:[#allocation45_spill] sm:$0xff] }
 0x251   :  { %v12850_v42 = vpop.f32.mrf.mxu0  ;;  %3377 = vmatmul.mubr.bf16.gmra.mxu0 %v17918_v40  ;;  %3193 = vmatprep.mubr.bf16.mxu1 %v17842_v51  ;;  %v12867_v40 = vshrl.u32 %v1772_v50, 7 }
 0x252   :  { %3386 = vmatprep.mubr.bf16.mxu0 %v12166_v36 }
 0x253   :  { %v12855_v62 = vpop.f32.mrf.mxu0  ;;  %17924 = vst [vmem:[#allocation45_spill] sm:$0xff] %v12867_v40 }
 0x254   :  { %17919 = vst [vmem:[#allocation39_spill] sm:$0xff] %v12855_v62 }
 0x255   :  { %v12857_v23 = vpop.f32.mrf.mxu0 }
 0x256   :  { %17920 = vst [vmem:[#allocation40_spill] sm:$0xff] %v12857_v23  ;;  %v12874_v23 = vsub.s32 0, %v12867_v40 }
 0x257   :  { %v12859_v19 = vpop.f32.mrf.mxu0 }
 0x258   :  { %17921 = vst [vmem:[#allocation146_spill] sm:$0xff] %v12859_v19  ;;  %3194 = vmatmul.mubr.bf16.gmra.mxu1 %v17922_v2  ;;  %17927 = vst [vmem:[#allocation149_spill] sm:$0xff] %v12874_v23  ;;  %v12881_v2 = vld [vmem:[%s17230_s5] sm:$0x3f] }
 0x259   :  { %v12862_v8 = vpop.f32.mrf.mxu0  ;;  %3387 = vmatmul.mubr.bf16.gmra.mxu0 %v17923_v44  ;;  %3203 = vmatprep.mubr.bf16.mxu1 %v17842_v51  ;;  %17929 = vst [vmem:[#allocation151_spill] sm:$0xff] %v12881_v2  ;;  %v12894_v50 = vrot.slane %v12881_v2, %v12874_v23 }
 0x25a   :  { %3396 = vmatprep.mubr.bf16.mxu0 %v12196_v38  ;;  %v12885_v38 = vsub.s32 1, %v12867_v40 }
 0x25b   :  { %v12869_v36 = vpop.f32.mrf.mxu0 }
 0x25c   :  { %17925 = vst [vmem:[#allocation147_spill] sm:$0xff] %v12869_v36  ;;  %17930 = vst [vmem:[#allocation152_spill] sm:$0xff] %v12885_v38 }
 0x25d   :  { %v12871_v62 = vpop.f32.mrf.mxu0 }
 0x25e   :  { %17926 = vst [vmem:[#allocation148_spill] sm:$0xff] %v12871_v62 }
 0x25f   :  { %v12876_v19 = vpop.f32.mrf.mxu0 }
 0x260   :  { %17928 = vst [vmem:[#allocation150_spill] sm:$0xff] %v12876_v19  ;;  %3204 = vmatmul.mubr.bf16.gmra.mxu1 %v12600_v35  ;;  %v12900_v35 = vrot.slane %v12881_v2, %v12885_v38 }
 0x261   :  { %v12887_v44 = vpop.f32.mrf.mxu0  ;;  %3397 = vmatmul.mubr.bf16.gmra.mxu0 %v12202_v53  ;;  %3213 = vmatprep.mubr.bf16.mxu1 %v17842_v51 }
 0x262   :  { %17931 = vst [vmem:[#allocation153_spill] sm:$0xff] %v12887_v44  ;;  %3406 = vmatprep.mubr.bf16.mxu0 %v12222_v57  ;;  %v2557_v44 = vadd.f32 %v12623_v32, %v12894_v50  ;;  %v2559_v57 = vadd.f32 %v12634_v18, %v12900_v35  ;;  %v17936_v32 = vld [vmem:[#allocation116_spill] sm:$0xff]  ;;  %v2563_v18 = vadd.f32 %v12643_v60, %v12900_v35 }
 0x263   :  { %v12896_v19 = vpop.f32.mrf.mxu0 }
 0x264   :  { %17932 = vst [vmem:[#allocation154_spill] sm:$0xff] %v12896_v19 }
 0x265   :  { %v12902_v40 = vpop.f32.mrf.mxu0 }
 0x266   :  { %17933 = vst [vmem:[#allocation155_spill] sm:$0xff] %v12902_v40 }
 0x267   :  { %v12906_v53 = vpop.f32.mrf.mxu0 }
 0x268   :  { %17934 = vst [vmem:[#allocation156_spill] sm:$0xff] %v12906_v53  ;;  %v2749_v62 = vpop.f32.mrf.mxu1  ;;  %3214 = vmatmul.mubr.bf16.gmra.mxu1 %v12620_v9  ;;  %v2561_v53 = vadd.f32 %v17936_v32, %v12894_v50  ;;  %v2569_v32 = vadd.f32 %v12657_v55, %v12900_v35  ;;  %v2573_v55 = vadd.f32 %v12665_v6, %v12900_v35 }
 0x269   :  { %v12911_v23 = vadd.f32 %v2749_v62, %v2557_v44  ;;  %v12913_v19 = vpop.f32.mrf.mxu0  ;;  %3407 = vmatmul.mubr.bf16.gmra.mxu0 %v12226_v22  ;;  %3223 = vmatprep.mubr.bf16.mxu1 %v17842_v51 }
 0x26a   :  { %17935 = vst [vmem:[#allocation157_spill] sm:$0xff] %v12913_v19  ;;  %v2751_v38 = vpop.f32.mrf.mxu1  ;;  %3416 = vmatprep.mubr.bf16.mxu0 %v12246_v26  ;;  %v2567_v19 = vadd.f32 %v12646_v52, %v12894_v50  ;;  %v2571_v52 = vadd.f32 %v12659_v0, %v12894_v50 }
 0x26b   :  { %v12920_v40 = vadd.f32 %v2751_v38, %v2559_v57  ;;  %v12922_v9 = vpop.f32.mrf.mxu0  ;;  %v17939_v57 = vld [vmem:[#allocation117_spill] sm:$0xff] }
 0x26c   :  { %17937 = vst [vmem:[#allocation116_spill] sm:$0xff] %v12922_v9  ;;  %v2753_v2 = vpop.f32.mrf.mxu1 }
 0x26d   :  { %v12926_v62 = vadd.f32 %v2753_v2, %v2561_v53  ;;  %v12928_v44 = vpop.f32.mrf.mxu0  ;;  %v17941_v2 = vld [vmem:[#allocation58_spill] sm:$0xff] }
 0x26e   :  { %v2755_v22 = vpop.f32.mrf.mxu1 }
 0x26f   :  { %v12932_v26 = vadd.f32 %v2755_v22, %v2563_v18  ;;  %v12934_v36 = vpop.f32.mrf.mxu0 }
 0x270   :  { %17938 = vst [vmem:[#allocation158_spill] sm:$0xff] %v12934_v36  ;;  %v2759_v38 = vpop.f32.mrf.mxu1  ;;  %3224 = vmatmul.mubr.bf16.gmra.mxu1 %v17939_v57 }
 0x271   :  { %v12939_v9 = vadd.f32 %v2759_v38, %v2567_v19  ;;  %v12941_v60 = vpop.f32.mrf.mxu0  ;;  %3417 = vmatmul.mubr.bf16.gmra.mxu0 %v17941_v2  ;;  %3233 = vmatprep.mubr.bf16.mxu1 %v17842_v51 }
 0x272   :  { %17940 = vst [vmem:[#allocation159_spill] sm:$0xff] %v12941_v60  ;;  %v2761_v53 = vpop.f32.mrf.mxu1  ;;  %3426 = vmatprep.mubr.bf16.mxu0 %v12270_v54  ;;  %v2577_v60 = vadd.f32 %v12668_v3, %v12894_v50  ;;  %v2581_v3 = vadd.f32 %v12681_v13, %v12894_v50 }
 0x273   :  { %v12948_v18 = vadd.f32 %v2761_v53, %v2569_v32  ;;  %v12950_v22 = vpop.f32.mrf.mxu0  ;;  %v2579_v32 = vadd.f32 %v12679_v48, %v12900_v35  ;;  %v2583_v48 = vadd.f32 %v12687_v63, %v12900_v35  ;;  %v17949_v63 = vld [vmem:[#allocation68_spill] sm:$0xff] }
 0x274   :  { %v2763_v57 = vpop.f32.mrf.mxu1 }
 0x275   :  { %v12954_v19 = vadd.f32 %v2763_v57, %v2571_v52  ;;  %v12956_v38 = vpop.f32.mrf.mxu0  ;;  %v17944_v57 = vld [vmem:[#allocation63_spill] sm:$0xff] }
 0x276   :  { %v2765_v2 = vpop.f32.mrf.mxu1 }
 0x277   :  { %v12960_v54 = vadd.f32 %v2765_v2, %v2573_v55  ;;  %v12962_v36 = vpop.f32.mrf.mxu0 }
 0x278   :  { %17942 = vst [vmem:[#allocation58_spill] sm:$0xff] %v12962_v36  ;;  %v2769_v0 = vpop.f32.mrf.mxu1  ;;  %3234 = vmatmul.mubr.bf16.gmra.mxu1 %v12663_v31 }
 0x279   :  { %v12967_v53 = vadd.f32 %v2769_v0, %v2577_v60  ;;  %v12969_v6 = vpop.f32.mrf.mxu0  ;;  %3427 = vmatmul.mubr.bf16.gmra.mxu0 %v17944_v57  ;;  %3243 = vmatprep.mubr.bf16.mxu1 %v17842_v51 }
 0x27a   :  { %17943 = vst [vmem:[#allocation160_spill] sm:$0xff] %v12969_v6  ;;  %v2771_v52 = vpop.f32.mrf.mxu1  ;;  %3436 = vmatprep.mubr.bf16.mxu0 %v12292_v33  ;;  %v2587_v6 = vadd.f32 %v12690_v34, %v12894_v50  ;;  %v2591_v34 = vadd.f32 %v12703_v24, %v12894_v50 }
 0x27b   :  { %v12976_v55 = vadd.f32 %v2771_v52, %v2579_v32  ;;  %v12978_v2 = vpop.f32.mrf.mxu0  ;;  %v17947_v32 = vld [vmem:[#allocation123_spill] sm:$0xff]  ;;  %v2589_v52 = vadd.f32 %v12701_v49, %v12900_v35  ;;  %v2593_v49 = vadd.f32 %v12709_v28, %v12900_v35 }
 0x27c   :  { %17945 = vst [vmem:[#allocation63_spill] sm:$0xff] %v12978_v2  ;;  %v2773_v31 = vpop.f32.mrf.mxu1 }
 0x27d   :  { %v12982_v60 = vadd.f32 %v2773_v31, %v2581_v3  ;;  %v12984_v0 = vpop.f32.mrf.mxu0 }
 0x27e   :  { %v2775_v57 = vpop.f32.mrf.mxu1 }
 0x27f   :  { %v12988_v33 = vadd.f32 %v2775_v57, %v2583_v48  ;;  %v12990_v36 = vpop.f32.mrf.mxu0 }
 0x280   :  { %17946 = vst [vmem:[#allocation161_spill] sm:$0xff] %v12990_v36  ;;  %v2779_v13 = vpop.f32.mrf.mxu1  ;;  %3244 = vmatmul.mubr.bf16.gmra.mxu1 %v17947_v32 }
 0x281   :  { %v12995_v2 = vadd.f32 %v2779_v13, %v2587_v6  ;;  %v12997_v31 = vpop.f32.mrf.mxu0  ;;  %3437 = vmatmul.mubr.bf16.gmra.mxu0 %v17949_v63  ;;  %3253 = vmatprep.mubr.bf16.mxu1 %v17842_v51 }
 0x282   :  { %17948 = vst [vmem:[#allocation162_spill] sm:$0xff] %v12997_v31  ;;  %v2781_v3 = vpop.f32.mrf.mxu1  ;;  %3446 = vmatprep.mubr.bf16.mxu0 %v12311_v30  ;;  %v2597_v31 = vadd.f32 %v12712_v37, %v12894_v50  ;;  %v2601_v37 = vadd.f32 %v12725_v11, %v12894_v50 }
 0x283   :  { %v13004_v48 = vadd.f32 %v2781_v3, %v2589_v52  ;;  %v13006_v57 = vpop.f32.mrf.mxu0  ;;  %v2599_v52 = vadd.f32 %v12723_v27, %v12900_v35  ;;  %v2603_v27 = vadd.f32 %v12731_v15, %v12900_v35 }
 0x284   :  { %17950 = vst [vmem:[#allocation68_spill] sm:$0xff] %v13006_v57  ;;  %v2783_v32 = vpop.f32.mrf.mxu1  ;;  %v17988_v57 = vld [vmem:[#allocation142_spill] sm:$0xff] }
 0x285   :  { %v13010_v6 = vadd.f32 %v2783_v32, %v2591_v34  ;;  %v13012_v13 = vpop.f32.mrf.mxu0  ;;  %v17954_v32 = vld [vmem:[#allocation73_spill] sm:$0xff] }
 0x286   :  { %17951 = vst [vmem:[#allocation163_spill] sm:$0xff] %v13012_v13  ;;  %v2785_v63 = vpop.f32.mrf.mxu1 }
 0x287   :  { %v13016_v30 = vadd.f32 %v2785_v63, %v2593_v49  ;;  %v13018_v36 = vpop.f32.mrf.mxu0 }
 0x288   :  { %17952 = vst [vmem:[#allocation164_spill] sm:$0xff] %v13018_v36  ;;  %v2789_v24 = vpop.f32.mrf.mxu1  ;;  %3254 = vmatmul.mubr.bf16.gmra.mxu1 %v12707_v45 }
 0x289   :  { %v13023_v3 = vadd.f32 %v2789_v24, %v2597_v31  ;;  %v13025_v28 = vpop.f32.mrf.mxu0  ;;  %3447 = vmatmul.mubr.bf16.gmra.mxu0 %v17954_v32  ;;  %3263 = vmatprep.mubr.bf16.mxu1 %v17842_v51 }
 0x28a   :  { %17953 = vst [vmem:[#allocation165_spill] sm:$0xff] %v13025_v28  ;;  %v2791_v34 = vpop.f32.mrf.mxu1  ;;  %3456 = vmatprep.mubr.bf16.mxu0 %v12330_v29  ;;  %v2607_v28 = vadd.f32 %v12734_v61, %v12894_v50  ;;  %v2611_v61 = vadd.f32 %v12747_v41, %v12894_v50 }
 0x28b   :  { %v13032_v49 = vadd.f32 %v2791_v34, %v2599_v52  ;;  %v13034_v63 = vpop.f32.mrf.mxu0  ;;  %v2609_v52 = vadd.f32 %v12745_v39, %v12900_v35  ;;  %v2613_v39 = vadd.f32 %v12753_v46, %v12900_v35 }
 0x28c   :  { %17955 = vst [vmem:[#allocation73_spill] sm:$0xff] %v13034_v63  ;;  %v2793_v45 = vpop.f32.mrf.mxu1 }
 0x28d   :  { %v13038_v31 = vadd.f32 %v2793_v45, %v2601_v37  ;;  %v13040_v24 = vpop.f32.mrf.mxu0 }
 0x28e   :  { %17956 = vst [vmem:[#allocation166_spill] sm:$0xff] %v13040_v24  ;;  %v2795_v32 = vpop.f32.mrf.mxu1 }
 0x28f   :  { %v13044_v29 = vadd.f32 %v2795_v32, %v2603_v27  ;;  %v13046_v36 = vpop.f32.mrf.mxu0 }
 0x290   :  { %17957 = vst [vmem:[#allocation167_spill] sm:$0xff] %v13046_v36  ;;  %v2799_v11 = vpop.f32.mrf.mxu1  ;;  %3264 = vmatmul.mubr.bf16.gmra.mxu1 %v12729_v16  ;;  %v2617_v36 = vadd.f32 %v12756_v14, %v12894_v50  ;;  %v2621_v14 = vadd.f32 %v12769_v17, %v12894_v50 }
 0x291   :  { %v13051_v34 = vadd.f32 %v2799_v11, %v2607_v28  ;;  %v13053_v15 = vpop.f32.mrf.mxu0  ;;  %3457 = vmatmul.mubr.bf16.gmra.mxu0 %v12334_v25  ;;  %3273 = vmatprep.mubr.bf16.mxu1 %v17842_v51 }
 0x292   :  { %17958 = vst [vmem:[#allocation168_spill] sm:$0xff] %v13053_v15  ;;  %v2801_v45 = vpop.f32.mrf.mxu1  ;;  %3466 = vmatprep.mubr.bf16.mxu0 %v12351_v56 }
 0x293   :  { %v13060_v37 = vadd.f32 %v2801_v45, %v2609_v52  ;;  %v13062_v27 = vpop.f32.mrf.mxu0  ;;  %v2619_v52 = vadd.f32 %v12767_v43, %v12900_v35  ;;  %v17964_v43 = vld [vmem:[#allocation136_spill] sm:$0xff] }
 0x294   :  { %17959 = vst [vmem:[#allocation169_spill] sm:$0xff] %v13062_v27  ;;  %v2803_v32 = vpop.f32.mrf.mxu1 }
 0x295   :  { %v13066_v28 = vadd.f32 %v2803_v32, %v2611_v61  ;;  %v13068_v11 = vpop.f32.mrf.mxu0 }
 0x296   :  { %17960 = vst [vmem:[#allocation170_spill] sm:$0xff] %v13068_v11  ;;  %v2805_v25 = vpop.f32.mrf.mxu1 }
 0x297   :  { %v13072_v56 = vadd.f32 %v2805_v25, %v2613_v39  ;;  %v13074_v16 = vpop.f32.mrf.mxu0 }
 0x298   :  { %17961 = vst [vmem:[#allocation171_spill] sm:$0xff] %v13074_v16  ;;  %v2809_v41 = vpop.f32.mrf.mxu1  ;;  %3274 = vmatmul.mubr.bf16.gmra.mxu1 %v12751_v4  ;;  %v17966_v4 = vld [vmem:[#allocation137_spill] sm:$0xff] }
 0x299   :  { %v13079_v45 = vadd.f32 %v2809_v41, %v2617_v36  ;;  %v13081_v46 = vpop.f32.mrf.mxu0  ;;  %3467 = vmatmul.mubr.bf16.gmra.mxu0 %v12355_v58  ;;  %3283 = vmatprep.mubr.bf16.mxu1 %v17842_v51  ;;  %v2623_v36 = vadd.f32 %v17964_v43, %v12900_v35 }
 0x29a   :  { %17962 = vst [vmem:[#allocation172_spill] sm:$0xff] %v13081_v46  ;;  %v2811_v61 = vpop.f32.mrf.mxu1  ;;  %3476 = vmatprep.mubr.bf16.mxu0 %v12372_v7  ;;  %v2627_v46 = vadd.f32 %v17966_v4, %v12894_v50  ;;  %v17972_v4 = vld [vmem:[#allocation139_spill] sm:$0xff] }
 0x29b   :  { %v13088_v32 = vadd.f32 %v2811_v61, %v2619_v52  ;;  %v13090_v39 = vpop.f32.mrf.mxu0  ;;  %v17968_v52 = vld [vmem:[#allocation135_spill] sm:$0xff]  ;;  %v17969_v61 = vld [vmem:[#allocation138_spill] sm:$0xff] }
 0x29c   :  { %17963 = vst [vmem:[#allocation173_spill] sm:$0xff] %v13090_v39  ;;  %v2813_v25 = vpop.f32.mrf.mxu1  ;;  %v2629_v39 = vadd.f32 %v17969_v61, %v12900_v35 }
 0x29d   :  { %v13094_v41 = vadd.f32 %v2813_v25, %v2621_v14  ;;  %v13096_v16 = vpop.f32.mrf.mxu0  ;;  %v17971_v25 = vld [vmem:[#allocation86_spill] sm:$0xff] }
 0x29e   :  { %17965 = vst [vmem:[#allocation136_spill] sm:$0xff] %v13096_v16  ;;  %v2815_v58 = vpop.f32.mrf.mxu1  ;;  %v17974_v16 = vld [vmem:[#allocation140_spill] sm:$0xff] }
 0x29f   :  { %v13100_v7 = vadd.f32 %v2815_v58, %v2623_v36  ;;  %v13102_v11 = vpop.f32.mrf.mxu0  ;;  %v2631_v36 = vadd.f32 %v17972_v4, %v12894_v50  ;;  %v2633_v61 = vadd.f32 %v17974_v16, %v12900_v35  ;;  %v2639_v4 = vadd.f32 %v12795_v10, %v12900_v35  ;;  %v17985_v10 = vld [vmem:[#allocation17_spill] sm:$0xff] }
 0x2a0   :  { %17967 = vst [vmem:[#allocation137_spill] sm:$0xff] %v13102_v11  ;;  %v2819_v17 = vpop.f32.mrf.mxu1  ;;  %3284 = vmatmul.mubr.bf16.gmra.mxu1 %v17968_v52 }
 0x2a1   :  { %v13107_v27 = vadd.f32 %v2819_v17, %v2627_v46  ;;  %v13109_v14 = vpop.f32.mrf.mxu0  ;;  %3477 = vmatmul.mubr.bf16.gmra.mxu0 %v17971_v25  ;;  %3519 = vmatprep.mubr.bf16.mxu1 %v17842_v51  ;;  %v17976_v25 = vld [vmem:[#allocation141_spill] sm:$0xff] }
 0x2a2   :  { %17970 = vst [vmem:[#allocation138_spill] sm:$0xff] %v13109_v14  ;;  %v2821_v43 = vpop.f32.mrf.mxu1  ;;  %v2637_v15 = vadd.f32 %v17976_v25, %v12894_v50 }
 0x2a3   :  { %v13115_v58 = vadd.f32 %v2821_v43, %v2629_v39  ;;  %v13117_v11 = vpop.f32.mrf.mxu0  ;;  %v17979_v43 = vld [vmem:[#allocation89_spill] sm:$0xff] }
 0x2a4   :  { %17973 = vst [vmem:[#allocation86_spill] sm:$0xff] %v13117_v11  ;;  %v2823_v52 = vpop.f32.mrf.mxu1 }
 0x2a5   :  { %v13121_v46 = vadd.f32 %v2823_v52, %v2631_v36  ;;  %v13123_v17 = vpop.f32.mrf.mxu0  ;;  %v10225_v52 = vld [vmem:[#allocation4 + $0x150] ss:$24 sps:$4 sm:$0xff]  }
 0x2a6   :  { %17975 = vst [vmem:[#allocation139_spill] sm:$0xff] %v13123_v17  ;;  %v2825_v14 = vpop.f32.mrf.mxu1  ;;  %v10227_v17 = vld [vmem:[#allocation4 + $0x154] ss:$24 sps:$4 sm:$0xff]  }
 0x2a7   :  { %v13127_v24 = vadd.f32 %v2825_v14, %v2633_v61  ;;  %v13129_v63 = vpop.f32.mrf.mxu0  ;;  %v17982_v14 = vld [vmem:[#allocation12_spill] sm:$0xff]  ;;  %5584 = vmatprep.subr.bf16.mxu0 %v10227_v17  ;;  %v17992_v17 = vld [vmem:[#allocation18_spill] sm:$0xff] }
 0x2a8   :  { %17978 = vst [vmem:[#allocation141_spill] sm:$0xff] %v13129_v63  ;;  %v2829_v39 = vpop.f32.mrf.mxu1  ;;  %3520 = vmatmul.mubr.bf16.vlgmr.msra.gmra.mxu1 %v17979_v43  ;;  %v2641_v61 = vadd.f32 %v17982_v14, %v12894_v50  ;;  %5585 = vmatpush1.bf16.msra.mxu0 %v10225_v52  ;;  %v17991_v14 = vld [vmem:[#allocation92_spill] sm:$0xff] }
 0x2a9   :  { %17977 = vst [vmem:[#allocation140_spill] sm:$0xff] %v13127_v24  ;;  %v13134_v11 = vadd.f32 %v2829_v39, %v2637_v15  ;;  %v13136_v16 = vpop.f32.mrf.mxu0  ;;  %3529 = vmatprep.mubr.bf16.mxu1 %v17842_v51  ;;  %v2643_v15 = vadd.f32 %v17985_v10, %v12900_v35 }
 0x2aa   :  { %17981 = vst [vmem:[#allocation174_spill] sm:$0xff] %v13136_v16  ;;  %v2831_v36 = vpop.f32.mrf.mxu1 }
 0x2ab   :  { %17980 = vst [vmem:[#allocation89_spill] sm:$0xff] %v13134_v11  ;;  %v13141_v25 = vadd.f32 %v2831_v36, %v2639_v4  ;;  %v13143_v63 = vpop.f32.mrf.mxu0  ;;  %v2647_v11 = vadd.f32 %v17988_v57, %v12894_v50  ;;  %v17995_v57 = vld [vmem:[#allocation143_spill] sm:$0xff] }
 0x2ac   :  { %17984 = vst [vmem:[#allocation175_spill] sm:$0xff] %v13143_v63  ;;  %v2833_v43 = vpop.f32.mrf.mxu1  ;;  %v2649_v63 = vadd.f32 %v17992_v17, %v12900_v35  ;;  %v17997_v17 = vld [vmem:[#allocation144_spill] sm:$0xff] }
 0x2ad   :  { %17983 = vst [vmem:[#allocation12_spill] sm:$0xff] %v13141_v25  ;;  %v13147_v39 = vadd.f32 %v2833_v43, %v2641_v61  ;;  %v13149_v16 = vpop.f32.mrf.mxu0  ;;  %v10228_v43 = vld [vmem:[#allocation4 + $0x120] ss:$24 sps:$4 sm:$0xff]  }
 0x2ae   :  { %17987 = vst [vmem:[#allocation176_spill] sm:$0xff] %v13149_v16  ;;  %v2835_v13 = vpop.f32.mrf.mxu1  ;;  %v10230_v16 = vld [vmem:[#allocation4 + $0x124] ss:$24 sps:$4 sm:$0xff]  }
 0x2af   :  { %17986 = vst [vmem:[#allocation17_spill] sm:$0xff] %v13147_v39  ;;  %v13153_v24 = vadd.f32 %v2835_v13, %v2643_v15  ;;  %v13155_v4 = vpop.f32.mrf.mxu0  ;;  %v2651_v13 = vadd.f32 %v17995_v57, %v12894_v50  ;;  %5586 = vmatprep.subr.bf16.mxu0 %v10230_v16  ;;  %v18001_v16 = vld [vmem:[#allocation95_spill] sm:$0xff] }
 0x2b0   :  { %17990 = vst [vmem:[#allocation177_spill] sm:$0xff] %v13155_v4  ;;  %v2839_v36 = vpop.f32.mrf.mxu1  ;;  %3530 = vmatmul.mubr.bf16.gmra.mxu1 %v17991_v14  ;;  %5587 = vmatpush1.bf16.msra.mxu0 %v10228_v43 }
 0x2b1   :  { %17989 = vst [vmem:[#allocation142_spill] sm:$0xff] %v13153_v24  ;;  %v13160_v10 = vadd.f32 %v2839_v36, %v2647_v11  ;;  %v13162_v61 = vpop.f32.mrf.mxu0  ;;  %3539 = vmatprep.mubr.bf16.mxu1 %v17842_v51  ;;  %v2653_v11 = vadd.f32 %v17997_v17, %v12900_v35  ;;  %v17999_v24 = vld [vmem:[#allocation145_spill] sm:$0xff] }
 0x2b2   :  { %17994 = vst [vmem:[#allocation18_spill] sm:$0xff] %v13162_v61  ;;  %v2841_v52 = vpop.f32.mrf.mxu1  ;;  %v2657_v39 = vadd.f32 %v17999_v24, %v12894_v50 }
 0x2b3   :  { %17993 = vst [vmem:[#allocation92_spill] sm:$0xff] %v13160_v10  ;;  %v13167_v15 = vadd.f32 %v2841_v52, %v2649_v63  ;;  %v13169_v4 = vpop.f32.mrf.mxu0  ;;  %v9143_v52 = vmul.f32 -1.442695, %v12911_v23  ;;  %v2661_v23 = vadd.f32 %v12821_v20, %v12894_v50  ;;  %v9147_v20 = vmul.f32 -1.442695, %v12932_v26 }
 0x2b4   :  { %17996 = vst [vmem:[#allocation143_spill] sm:$0xff] %v13169_v4  ;;  %v2843_v14 = vpop.f32.mrf.mxu1 }
 0x2b5   :  { %v13173_v36 = vadd.f32 %v2843_v14, %v2651_v13  ;;  %v13175_v61 = vpop.f32.mrf.mxu0  ;;  %v2659_v13 = vadd.f32 %v12819_v12, %v12900_v35  ;;  %v9144_v14 = vmul.f32 -1.442695, %v12920_v40  ;;  %10477 = vpow2.f32 %v9143_v52 }
 0x2b6   :  { %17998 = vst [vmem:[#allocation144_spill] sm:$0xff] %v13175_v61  ;;  %v2845_v10 = vpop.f32.mrf.mxu1  ;;  %v2663_v40 = vadd.f32 %v12823_v59, %v12900_v35  ;;  %v2669_v59 = vadd.f32 %v12831_v21, %v12900_v35 }
 0x2b7   :  { %v13179_v25 = vadd.f32 %v2845_v10, %v2653_v11  ;;  %v13181_v63 = vpop.f32.mrf.mxu0  ;;  %v10231_v10 = vld [vmem:[#allocation4 + $0xf0] ss:$24 sps:$4 sm:$0xff]   ;;  %v10233_v11 = vld [vmem:[#allocation4 + $0xf4] ss:$24 sps:$4 sm:$0xff]   ;;  %10479 = vpow2.f32 %v9144_v14  ;;  %v9149_v14 = vmul.f32 -1.442695, %v12939_v9 }
 0x2b8   :  { %18000 = vst [vmem:[#allocation145_spill] sm:$0xff] %v13181_v63  ;;  %v2849_v57 = vpop.f32.mrf.mxu1  ;;  %3540 = vmatmul.mubr.bf16.gmra.mxu1 %v18001_v16  ;;  %v9146_v63 = vmul.f32 -1.442695, %v12926_v62  ;;  %5588 = vmatprep.subr.bf16.mxu0 %v10233_v11  ;;  %v2667_v62 = vadd.f32 %v12826_v5, %v12894_v50  ;;  %v18006_v11 = vld [vmem:[#allocation98_spill] sm:$0xff]  ;;  %v10234_v5 = vld [vmem:[#allocation4 + $0xc0] ss:$24 sps:$4 sm:$0xff]  }
 0x2b9   :  { %v13188_v17 = vadd.f32 %v2849_v57, %v2657_v39  ;;  %v13190_v43 = vpop.f32.mrf.mxu0  ;;  %3549 = vmatprep.mubr.bf16.mxu1 %v17842_v51  ;;  %5589 = vmatpush1.bf16.msra.mxu0 %v10231_v10 }
 0x2ba   :  { %18002 = vst [vmem:[#allocation95_spill] sm:$0xff] %v13190_v43  ;;  %v2851_v24 = vpop.f32.mrf.mxu1  ;;  %10481 = vpow2.f32 %v9146_v63 }
 0x2bb   :  { %v13196_v16 = vadd.f32 %v2851_v24, %v2659_v13  ;;  %v13198_v61 = vpop.f32.mrf.mxu0  ;;  %10483 = vpow2.f32 %v9147_v20 }
 0x2bc   :  { %18003 = vst [vmem:[#allocation178_spill] sm:$0xff] %v13198_v61  ;;  %v2853_v12 = vpop.f32.mrf.mxu1  ;;  %10485 = vpow2.f32 %v9149_v14  ;;  %v18012_v14 = vld [vmem:[#allocation101_spill] sm:$0xff] }
 0x2bd   :  { %v13202_v39 = vadd.f32 %v2853_v12, %v2661_v23  ;;  %v13204_v57 = vpop.f32.mrf.mxu0  ;;  %v2671_v23 = vadd.f32 %v12833_v1, %v12894_v50  ;;  %v9150_v12 = vmul.f32 -1.442695, %v12948_v18  ;;  %v2677_v18 = vadd.f32 %v12838_v47, %v12894_v50 }
 0x2be   :  { %18004 = vst [vmem:[#allocation179_spill] sm:$0xff] %v13204_v57  ;;  %v2855_v43 = vpop.f32.mrf.mxu1 }
 0x2bf   :  { %v13209_v13 = vadd.f32 %v2855_v43, %v2663_v40  ;;  %v13211_v52 = vpop.f32.mrf.mxu0  ;;  %v10236_v43 = vld [vmem:[#allocation4 + $0xc4] ss:$24 sps:$4 sm:$0xff]   ;;  %10487 = vpow2.f32 %v9150_v12 }
 0x2c0   :  { %18005 = vst [vmem:[#allocation180_spill] sm:$0xff] %v13211_v52  ;;  %v2859_v24 = vpop.f32.mrf.mxu1  ;;  %3550 = vmatmul.mubr.bf16.gmra.mxu1 %v18006_v11  ;;  %5590 = vmatprep.subr.bf16.mxu0 %v10236_v43  ;;  %v9152_v11 = vmul.f32 -1.442695, %v12954_v19 }
 0x2c1   :  { %v13217_v10 = vadd.f32 %v2859_v24, %v2667_v62  ;;  %v13219_v26 = vpop.f32.mrf.mxu0  ;;  %3559 = vmatprep.mubr.bf16.mxu1 %v17842_v51  ;;  %v18009_v62 = vld [vmem:[#allocation23_spill] sm:$0xff]  ;;  %5591 = vmatpush1.bf16.msra.mxu0 %v10234_v5  ;;  %v9155_v5 = vmul.f32 -1.442695, %v12967_v53 }
 0x2c2   :  { %18007 = vst [vmem:[#allocation98_spill] sm:$0xff] %v13219_v26  ;;  %v2861_v63 = vpop.f32.mrf.mxu1  ;;  %v2673_v24 = vadd.f32 %v18009_v62, %v12900_v35  ;;  %v10478_v19 = vpop.eup %10477  ;;  %10489 = vpow2.f32 %v9152_v11 }
 0x2c3   :  { %v13225_v40 = vadd.f32 %v2861_v63, %v2669_v59  ;;  %v13227_v21 = vpop.f32.mrf.mxu0  ;;  %v9153_v59 = vmul.f32 -1.442695, %v12960_v54  ;;  %v10237_v54 = vld [vmem:[#allocation4 + $0x90] ss:$24 sps:$4 sm:$0xff]  }
 0x2c4   :  { %18008 = vst [vmem:[#allocation181_spill] sm:$0xff] %v13227_v21  ;;  %v2863_v9 = vpop.f32.mrf.mxu1  ;;  %v10480_v12 = vpop.eup %10479 }
 0x2c5   :  { %v13232_v20 = vadd.f32 %v2863_v9, %v2671_v23  ;;  %v13234_v26 = vpop.f32.mrf.mxu0  ;;  %v18013_v23 = vld [vmem:[#allocation28_spill] sm:$0xff]  ;;  %10491 = vpow2.f32 %v9153_v59  ;;  %v3969_v57 = vadd.f32 1.0, %v10480_v12  ;;  %v9158_v59 = vmul.f32 -1.442695, %v12982_v60  ;;  %v18021_v60 = vld [vmem:[#allocation39_spill] sm:$0xff] }
 0x2c6   :  { %18010 = vst [vmem:[#allocation23_spill] sm:$0xff] %v13234_v26  ;;  %v2865_v1 = vpop.f32.mrf.mxu1  ;;  %v2679_v9 = vadd.f32 %v18013_v23, %v12900_v35  ;;  %10493 = vpow2.f32 %v9155_v5 }
 0x2c7   :  { %v13239_v63 = vadd.f32 %v2865_v1, %v2673_v24  ;;  %v13241_v43 = vpop.f32.mrf.mxu0  ;;  %v9156_v24 = vmul.f32 -1.442695, %v12976_v55  ;;  %v10482_v53 = vpop.eup %10481 }
 0x2c8   :  { %18011 = vst [vmem:[#allocation182_spill] sm:$0xff] %v13241_v43  ;;  %v2869_v62 = vpop.f32.mrf.mxu1  ;;  %3560 = vmatmul.mubr.bf16.gmra.mxu1 %v18012_v14  ;;  %v10239_v43 = vld [vmem:[#allocation4 + $0x94] ss:$24 sps:$4 sm:$0xff]   ;;  %v3971_v4 = vadd.f32 1.0, %v10482_v53 }
 0x2c9   :  { %v13247_v26 = vadd.f32 %v2869_v62, %v2677_v18  ;;  %v13249_v47 = vpop.f32.mrf.mxu0  ;;  %3569 = vmatprep.mubr.bf16.mxu1 %v17842_v51  ;;  %v18015_v14 = vld [vmem:[#allocation29_spill] sm:$0xff]  ;;  %v3968_v18 = vadd.f32 1.0, %v10478_v19  ;;  %5592 = vmatprep.subr.bf16.mxu0 %v10239_v43  ;;  %10495 = vpow2.f32 %v9156_v24  ;;  %v10484_v19 = vpop.eup %10483  ;;  %v2687_v43 = vadd.f32 %v12850_v42, %v12894_v50  ;;  %v18020_v24 = vld [vmem:[#allocation104_spill] sm:$0xff] }
 0x2ca   :  { %18014 = vst [vmem:[#allocation101_spill] sm:$0xff] %v13249_v47  ;;  %v2871_v1 = vpop.f32.mrf.mxu1  ;;  %v2681_v21 = vadd.f32 %v18015_v14, %v12894_v50  ;;  %v18017_v47 = vld [vmem:[#allocation34_spill] sm:$0xff]  ;;  %5593 = vmatpush1.bf16.msra.mxu0 %v10237_v54  ;;  %v10245_v14 = vld [vmem:[#allocation4 + $0x64] ss:$24 sps:$4 sm:$0xff]   ;;  %v9159_v54 = vmul.f32 -1.442695, %v12988_v33 }
 0x2cb   :  { %v13255_v23 = vadd.f32 %v2871_v1, %v2679_v9  ;;  %v13257_v11 = vpop.f32.mrf.mxu0  ;;  %v2683_v52 = vadd.f32 %v18017_v47, %v12900_v35  ;;  %v10240_v1 = vld [vmem:[#allocation4 + $0x450] ss:$24 sps:$4 sm:$0xff]   ;;  %5594 = vmatprep.subr.bf16.mxu0 %v10245_v14  ;;  %10497 = vrcp.f32 %v3968_v18  ;;  %v9161_v42 = vmul.f32 -1.442695, %v12995_v2  ;;  %v10248_v18 = vld [vmem:[#allocation4 + $0x34] ss:$24 sps:$4 sm:$0xff]   ;;  %v10486_v14 = vpop.eup %10485 }
 0x2cc   :  { %18016 = vst [vmem:[#allocation28_spill] sm:$0xff] %v13257_v11  ;;  %v2873_v62 = vpop.f32.mrf.mxu1  ;;  %v10242_v11 = vld [vmem:[#allocation4 + $0x454] ss:$24 sps:$4 sm:$0xff]   ;;  %10499 = vrcp.f32 %v3969_v57  ;;  %v3972_v33 = vadd.f32 1.0, %v10484_v19  ;;  %v9162_v2 = vmul.f32 -1.442695, %v13004_v48 }
 0x2cd   :  { %v13261_v55 = vadd.f32 %v2873_v62, %v2681_v21  ;;  %v13263_v61 = vpop.f32.mrf.mxu0  ;;  %v10243_v21 = vld [vmem:[#allocation4 + $0x60] ss:$24 sps:$4 sm:$0xff]   ;;  %5777 = vmatprep.subr.bf16.mxu1 %v10242_v11  ;;  %v2689_v62 = vadd.f32 %v18021_v60, %v12900_v35  ;;  %10501 = vpow2.f32 %v9158_v59  ;;  %v10246_v11 = vld [vmem:[#allocation4 + $0x30] ss:$24 sps:$4 sm:$0xff]   ;;  %v10254_v48 = vld [vmem:[#allocation4 + $0x4] ss:$24 sps:$4 sm:$0xff]  }
 0x2ce   :  { %18018 = vst [vmem:[#allocation29_spill] sm:$0xff] %v13263_v61  ;;  %v2875_v9 = vpop.f32.mrf.mxu1  ;;  %5778 = vmatpush1.bf16.msra.mxu1 %v10240_v1  ;;  %5595 = vmatpush1.bf16.msra.mxu0 %v10243_v21  ;;  %10503 = vrcp.f32 %v3971_v4  ;;  %v9164_v1 = vmul.f32 -1.442695, %v13010_v6  ;;  %v18025_v59 = vld [vmem:[#allocation146_spill] sm:$0xff]  ;;  %v2697_v6 = vadd.f32 %v12862_v8, %v12894_v50 }
 0x2cf   :  { %v13268_v47 = vadd.f32 %v2875_v9, %v2683_v52  ;;  %v13270_v5 = vpop.f32.mrf.mxu0  ;;  %5596 = vmatprep.subr.bf16.mxu0 %v10248_v18  ;;  %10505 = vpow2.f32 %v9159_v54  ;;  %v2693_v21 = vadd.f32 %v18025_v59, %v12900_v35  ;;  %v10252_v54 = vld [vmem:[#allocation4] ss:$24 sps:$4 sm:$0xff]  }
 0x2d0   :  { %18019 = vst [vmem:[#allocation34_spill] sm:$0xff] %v13270_v5  ;;  %v2879_v12 = vpop.f32.mrf.mxu1  ;;  %3570 = vmatmul.mubr.bf16.gmra.mxu1 %v18020_v24  ;;  %v18023_v24 = vld [vmem:[#allocation40_spill] sm:$0xff]  ;;  %10507 = vpow2.f32 %v9161_v42 }
 0x2d1   :  { %v13277_v53 = vadd.f32 %v2879_v12, %v2687_v43  ;;  %v13279_v52 = vpop.f32.mrf.mxu0  ;;  %3579 = vmatprep.mubr.bf16.mxu1 %v17842_v51  ;;  %v2691_v60 = vadd.f32 %v18023_v24, %v12894_v50  ;;  %v10488_v12 = vpop.eup %10487  ;;  %10509 = vrcp.f32 %v3972_v33 }
 0x2d2   :  { %18022 = vst [vmem:[#allocation104_spill] sm:$0xff] %v13279_v52  ;;  %v2881_v9 = vpop.f32.mrf.mxu1  ;;  %v3974_v52 = vadd.f32 1.0, %v10486_v14  ;;  %5597 = vmatpush1.bf16.msra.mxu0 %v10246_v11  ;;  %v3975_v24 = vadd.f32 1.0, %v10488_v12  ;;  %10511 = vpow2.f32 %v9162_v2  ;;  %v10257_v12 = vld [vmem:[#allocation4 + $0x2d4] ss:$24 sps:$4 sm:$0xff]  }
 0x2d3   :  { %v13285_v57 = vadd.f32 %v2881_v9, %v2689_v62  ;;  %v13287_v43 = vpop.f32.mrf.mxu0  ;;  %v10490_v62 = vpop.eup %10489  ;;  %v9165_v9 = vmul.f32 -1.442695, %v13016_v30  ;;  %5598 = vmatprep.subr.bf16.mxu0 %v10254_v48  ;;  %10513 = vpow2.f32 %v9164_v1  ;;  %v18029_v30 = vld [vmem:[#allocation147_spill] sm:$0xff]  ;;  %v9168_v1 = vmul.f32 -1.442695, %v13032_v49  ;;  %v18034_v49 = vld [vmem:[#allocation150_spill] sm:$0xff] }
 0x2d4   :  { %18024 = vst [vmem:[#allocation39_spill] sm:$0xff] %v13287_v43  ;;  %v2883_v19 = vpop.f32.mrf.mxu1  ;;  %v10492_v14 = vpop.eup %10491  ;;  %v2699_v11 = vadd.f32 %v18029_v30, %v12900_v35  ;;  %10515 = vrcp.f32 %v3974_v52  ;;  %v10255_v48 = vld [vmem:[#allocation4 + $0x2d0] ss:$24 sps:$4 sm:$0xff]  }
 0x2d5   :  { %v13292_v5 = vadd.f32 %v2883_v19, %v2691_v60  ;;  %v13294_v4 = vpop.f32.mrf.mxu0  ;;  %v9167_v60 = vmul.f32 -1.442695, %v13023_v3  ;;  %v18028_v19 = vld [vmem:[#allocation107_spill] sm:$0xff]  ;;  %10517 = vpow2.f32 %v9165_v9  ;;  %v3978_v52 = vadd.f32 1.0, %v10492_v14 }
 0x2d6   :  { %18026 = vst [vmem:[#allocation40_spill] sm:$0xff] %v13294_v4  ;;  %v2885_v18 = vpop.f32.mrf.mxu1  ;;  %v3977_v4 = vadd.f32 1.0, %v10490_v62  ;;  %5599 = vmatpush1.bf16.msra.mxu0 %v10252_v54  ;;  %10519 = vrcp.f32 %v3975_v24  ;;  %v2703_v54 = vadd.f32 %v18034_v49, %v12900_v35  ;;  %v10249_v14 = vld [vmem:[#allocation4 + $0x420] ss:$24 sps:$4 sm:$0xff]  }
 0x2d7   :  { %v13299_v59 = vadd.f32 %v2885_v18, %v2693_v21  ;;  %v13301_v42 = vpop.f32.mrf.mxu0  ;;  %v10494_v21 = vpop.eup %10493  ;;  %5600 = vmatprep.subr.bf16.mxu0 %v10257_v12  ;;  %10521 = vpow2.f32 %v9167_v60 }
 0x2d8   :  { %18027 = vst [vmem:[#allocation146_spill] sm:$0xff] %v13301_v42  ;;  %v2889_v33 = vpop.f32.mrf.mxu1  ;;  %3580 = vmatmul.mubr.bf16.gmra.mxu1 %v18028_v19  ;;  %v10496_v18 = vpop.eup %10495  ;;  %v18031_v19 = vld [vmem:[#allocation148_spill] sm:$0xff]  ;;  %10523 = vrcp.f32 %v3977_v4  ;;  %v3980_v42 = vadd.f32 1.0, %v10494_v21  ;;  %v18040_v4 = vld [vmem:[#allocation153_spill] sm:$0xff] }
 0x2d9   :  { %v13307_v8 = vadd.f32 %v2889_v33, %v2697_v6  ;;  %v13309_v2 = vpop.f32.mrf.mxu0  ;;  %3589 = vmatprep.mubr.bf16.mxu1 %v17842_v51  ;;  %v2701_v30 = vadd.f32 %v18031_v19, %v12894_v50  ;;  %v9170_v33 = vmul.f32 -1.442695, %v13038_v31  ;;  %v3981_v60 = vadd.f32 1.0, %v10496_v18  ;;  %v10251_v19 = vld [vmem:[#allocation4 + $0x424] ss:$24 sps:$4 sm:$0xff]  }
 0x2da   :  { %18030 = vst [vmem:[#allocation107_spill] sm:$0xff] %v13309_v2  ;;  %v2891_v3 = vpop.f32.mrf.mxu1  ;;  %v13320_v2 = vpop.eup %10497  ;;  %10525 = vpow2.f32 %v9168_v1  ;;  %5601 = vmatpush2.bf16.msra.mxu0 %v10255_v48  ;;  %v2707_v21 = vadd.f32 %v18040_v4, %v12894_v50  ;;  %v9173_v48 = vmul.f32 -1.442695, %v13051_v34  ;;  %5779 = vmatprep.subr.bf16.mxu1 %v10251_v19  ;;  %v18047_v1 = vld [vmem:[#allocation151_spill] sm:$0xff] }
 0x2db   :  { %v13315_v62 = vadd.f32 %v2891_v3, %v2699_v11  ;;  %v13317_v6 = vpop.f32.mrf.mxu0  ;;  %v13328_v11 = vpop.eup %10499  ;;  %v18038_v3 = vld [vmem:[#allocation45_spill] sm:$0xff]  ;;  %10527 = vrcp.f32 %v3978_v52  ;;  %v18044_v52 = vld [vmem:[#allocation154_spill] sm:$0xff]  ;;  %5780 = vmatpush1.bf16.msra.mxu1 %v10249_v14 }
 0x2dc   :  { %18033 = vst [vmem:[#allocation148_spill] sm:$0xff] %v13317_v6  ;;  %v2893_v9 = vpop.f32.mrf.mxu1  ;;  %18037 = vst [vmem:[#allocation184_spill] sm:$0xff] %v13328_v11  ;;  %v13331_v12 = vsub.s32 2, %v18038_v3  ;;  %v10263_v6 = vld [vmem:[#allocation4 + $0x2a4] ss:$24 sps:$4 sm:$0xff]   ;;  %v10502_v61 = vpop.eup %10501  ;;  %10529 = vpow2.f32 %v9170_v33 }
 0x2dd   :  { %18032 = vst [vmem:[#allocation147_spill] sm:$0xff] %v13315_v62  ;;  %v13324_v43 = vadd.f32 %v2893_v9, %v2701_v30  ;;  %v13326_v24 = vpop.f32.mrf.mxu0  ;;  %v9171_v30 = vmul.f32 -1.442695, %v13044_v29  ;;  %v10261_v11 = vld [vmem:[#allocation4 + $0x2a0] ss:$24 sps:$4 sm:$0xff]   ;;  %v2709_v29 = vadd.f32 %v18044_v52, %v12900_v35  ;;  %10531 = vrcp.f32 %v3980_v42  ;;  %5602 = vmatprep.subr.bf16.mxu0 %v10263_v6 }
 0x2de   :  { %18036 = vst [vmem:[#allocation183_spill] sm:$0xff] %v13326_v24  ;;  %18039 = vst [vmem:[#allocation185_spill] sm:$0xff] %v13331_v12  ;;  %v2895_v31 = vpop.f32.mrf.mxu1  ;;  %v13340_v24 = vpop.eup %10503  ;;  %v10266_v33 = vld [vmem:[#allocation4 + $0x274] ss:$24 sps:$4 sm:$0xff]   ;;  %10533 = vrcp.f32 %v3981_v60  ;;  %v3983_v19 = vadd.f32 1.0, %v10502_v61  ;;  %5603 = vmatpush2.bf16.msra.mxu0 %v10261_v11  ;;  %v18051_v61 = vsub.s32 3, %v18038_v3 }
 0x2df   :  { %18035 = vst [vmem:[#allocation150_spill] sm:$0xff] %v13324_v43  ;;  %v13336_v9 = vadd.f32 %v2895_v31, %v2703_v54  ;;  %v13338_v49 = vpop.f32.mrf.mxu0  ;;  %v18043_v43 = vld [vmem:[#allocation110_spill] sm:$0xff]  ;;  %v10506_v4 = vpop.eup %10505  ;;  %v9174_v54 = vmul.f32 -1.442695, %v13060_v37  ;;  %v18049_v37 = vld [vmem:[#allocation155_spill] sm:$0xff]  ;;  %10535 = vpow2.f32 %v9171_v30  ;;  %5604 = vmatprep.subr.bf16.mxu0 %v10266_v33 }
 0x2e0   :  { %18042 = vst [vmem:[#allocation186_spill] sm:$0xff] %v13338_v49  ;;  %v2899_v18 = vpop.f32.mrf.mxu1  ;;  %3590 = vmatmul.mubr.bf16.gmra.mxu1 %v18043_v43  ;;  %v10508_v34 = vpop.eup %10507  ;;  %v13355_v43 = vrot.slane %v18047_v1, %v13331_v12  ;;  %v10260_v52 = vld [vmem:[#allocation4 + $0x3f4] ss:$24 sps:$4 sm:$0xff]   ;;  %v10264_v12 = vld [vmem:[#allocation4 + $0x270] ss:$24 sps:$4 sm:$0xff]   ;;  %v13369_v6 = vrot.slane %v18047_v1, %v18051_v61  ;;  %10537 = vpow2.f32 %v9173_v48 }
 0x2e1   :  { %18041 = vst [vmem:[#allocation153_spill] sm:$0xff] %v13336_v9  ;;  %v13348_v31 = vadd.f32 %v2899_v18, %v2707_v21  ;;  %v13350_v49 = vpop.f32.mrf.mxu0  ;;  %3599 = vmatprep.mubr.bf16.mxu1 %v17842_v51  ;;  %v13357_v42 = vpop.eup %10509  ;;  %v2711_v21 = vadd.f32 %v18049_v37, %v12894_v50  ;;  %v9176_v18 = vmul.f32 -1.442695, %v13066_v28  ;;  %5781 = vmatprep.subr.bf16.mxu1 %v10260_v52  ;;  %v18052_v28 = vld [vmem:[#allocation156_spill] sm:$0xff]  ;;  %10539 = vpow2.f32 %v9174_v54  ;;  %v18054_v52 = vld [vmem:[#allocation157_spill] sm:$0xff] }
 0x2e2   :  { %18046 = vst [vmem:[#allocation154_spill] sm:$0xff] %v13350_v49  ;;  %v2901_v9 = vpop.f32.mrf.mxu1  ;;  %18048 = vst [vmem:[#allocation151_spill] sm:$0xff] %v13357_v42  ;;  %v10512_v60 = vpop.eup %10511  ;;  %v3984_v42 = vadd.f32 1.0, %v10506_v4  ;;  %v2713_v30 = vadd.f32 %v18052_v28, %v12900_v35  ;;  %v10269_v37 = vld [vmem:[#allocation4 + $0x244] ss:$24 sps:$4 sm:$0xff]   ;;  %10541 = vrcp.f32 %v3983_v19  ;;  %v2943_v61 = vadd.f32 %v18054_v52, %v13355_v43  ;;  %5605 = vmatpush2.bf16.msra.mxu0 %v10264_v12  ;;  %v18057_v28 = vld [vmem:[#allocation113_spill] sm:$0xff] }
 0x2e3   :  { %18045 = vst [vmem:[#allocation110_spill] sm:$0xff] %v13348_v31  ;;  %v13362_v14 = vadd.f32 %v2901_v9, %v2709_v29  ;;  %v13364_v49 = vpop.f32.mrf.mxu0  ;;  %v10258_v31 = vld [vmem:[#allocation4 + $0x3f0] ss:$24 sps:$4 sm:$0xff]   ;;  %v10514_v50 = vpop.eup %10513  ;;  %v3986_v9 = vadd.f32 1.0, %v10508_v34  ;;  %v9177_v1 = vmul.f32 -1.442695, %v13072_v56  ;;  %10543 = vpow2.f32 %v9176_v18  ;;  %5606 = vmatprep.subr.bf16.mxu0 %v10269_v37 }
 0x2e4   :  { %18050 = vst [vmem:[#allocation155_spill] sm:$0xff] %v13364_v49  ;;  %v2903_v62 = vpop.f32.mrf.mxu1  ;;  %5782 = vmatpush1.bf16.msra.mxu1 %v10258_v31  ;;  %v13377_v49 = vpop.eup %10515  ;;  %v10272_v4 = vld [vmem:[#allocation4 + $0x3c4] ss:$24 sps:$4 sm:$0xff]   ;;  %v3987_v35 = vadd.f32 1.0, %v10512_v60  ;;  %v10267_v31 = vld [vmem:[#allocation4 + $0x240] ss:$24 sps:$4 sm:$0xff]   ;;  %10545 = vrcp.f32 %v3984_v42 }
 0x2e5   :  { %v13373_v29 = vadd.f32 %v2903_v62, %v2711_v21  ;;  %v13375_v11 = vpop.f32.mrf.mxu0  ;;  %v10518_v33 = vpop.eup %10517  ;;  %v10270_v34 = vld [vmem:[#allocation4 + $0x3c0] ss:$24 sps:$4 sm:$0xff]   ;;  %v3989_v19 = vadd.f32 1.0, %v10514_v50  ;;  %10547 = vrcp.f32 %v3986_v9  ;;  %v9179_v18 = vmul.f32 -1.442695, %v13079_v45  ;;  %5783 = vmatprep.subr.bf16.mxu1 %v10272_v4 }
 0x2e6   :  { %18053 = vst [vmem:[#allocation156_spill] sm:$0xff] %v13375_v11  ;;  %v2905_v48 = vpop.f32.mrf.mxu1  ;;  %v13386_v21 = vpop.eup %10519  ;;  %v18058_v52 = vld [vmem:[#allocation116_spill] sm:$0xff]  ;;  %v10275_v42 = vld [vmem:[#allocation4 + $0x214] ss:$24 sps:$4 sm:$0xff]   ;;  %10549 = vpow2.f32 %v9177_v1  ;;  %v2947_v9 = vadd.f32 %v12928_v44, %v13355_v43  ;;  %v9180_v45 = vmul.f32 -1.442695, %v13088_v32  ;;  %5607 = vmatpush2.bf16.msra.mxu0 %v10267_v31 }
 0x2e7   :  { %v13382_v54 = vadd.f32 %v2905_v48, %v2713_v30  ;;  %v13384_v62 = vpop.f32.mrf.mxu0  ;;  %18056 = vst [vmem:[#allocation187_spill] sm:$0xff] %v13386_v21  ;;  %v10522_v11 = vpop.eup %10521  ;;  %v2945_v60 = vadd.f32 %v18058_v52, %v13369_v6  ;;  %v3990_v48 = vadd.f32 1.0, %v10518_v33  ;;  %10551 = vrcp.f32 %v3987_v35  ;;  %v10273_v4 = vld [vmem:[#allocation4 + $0x210] ss:$24 sps:$4 sm:$0xff]   ;;  %5608 = vmatprep.subr.bf16.mxu0 %v10275_v42  ;;  %v10284_v42 = vld [vmem:[#allocation4 + $0x364] ss:$24 sps:$4 sm:$0xff]  }
 0x2e8   :  { %18055 = vst [vmem:[#allocation157_spill] sm:$0xff] %v13384_v62  ;;  %v3135_v56 = vpop.f32.mrf.mxu1  ;;  %3600 = vmatmul.mubr.bf16.gmra.mxu1 %v18057_v28  ;;  %v13397_v50 = vpop.eup %10523  ;;  %v10278_v28 = vld [vmem:[#allocation4 + $0x394] ss:$24 sps:$4 sm:$0xff]   ;;  %v10276_v52 = vld [vmem:[#allocation4 + $0x390] ss:$24 sps:$4 sm:$0xff]   ;;  %10553 = vrcp.f32 %v3989_v19 }
 0x2e9   :  { %v13392_v30 = vadd.f32 %v3135_v56, %v2943_v61  ;;  %v13394_v12 = vpop.f32.mrf.mxu0  ;;  %3609 = vmatprep.mubr.bf16.mxu1 %v17842_v51  ;;  %5784 = vmatpush1.bf16.msra.mxu1 %v10270_v34  ;;  %v10526_v21 = vpop.eup %10525  ;;  %v18063_v1 = vld [vmem:[#allocation158_spill] sm:$0xff]  ;;  %v3992_v34 = vadd.f32 1.0, %v10522_v11  ;;  %10555 = vpow2.f32 %v9179_v18  ;;  %v9182_v32 = vmul.f32 -1.442695, %v13094_v41 }
 0x2ea   :  { %18060 = vst [vmem:[#allocation116_spill] sm:$0xff] %v13394_v12  ;;  %v3137_v37 = vpop.f32.mrf.mxu1  ;;  %v13404_v12 = vpop.eup %10527  ;;  %v2949_v33 = vadd.f32 %v18063_v1, %v13369_v6  ;;  %5785 = vmatprep.subr.bf16.mxu1 %v10278_v28  ;;  %10557 = vrcp.f32 %v3990_v48  ;;  %v3993_v11 = vadd.f32 1.0, %v10526_v21  ;;  %v9183_v41 = vmul.f32 -1.442695, %v13100_v7  ;;  %5609 = vmatpush2.bf16.msra.mxu0 %v10273_v4 }
 0x2eb   :  { %18059 = vst [vmem:[#allocation113_spill] sm:$0xff] %v13392_v30  ;;  %v3138_v61 = vadd.f32 %v3137_v37, %v2945_v60  ;;  %v13402_v56 = vpop.f32.mrf.mxu0  ;;  %18062 = vst [vmem:[#allocation189_spill] sm:$0xff] %v13404_v12  ;;  %v10530_v44 = vpop.eup %10529  ;;  %v10281_v37 = vld [vmem:[#allocation4 + $0x1e4] ss:$24 sps:$4 sm:$0xff]   ;;  %10559 = vpow2.f32 %v9180_v45  ;;  %v2955_v21 = vadd.f32 %v12950_v22, %v13369_v6  ;;  %v10287_v22 = vld [vmem:[#allocation4 + $0x1b4] ss:$24 sps:$4 sm:$0xff]  }
 0x2ec   :  { %18061 = vst [vmem:[#allocation188_spill] sm:$0xff] %v13402_v56  ;;  %v3139_v62 = vpop.f32.mrf.mxu1  ;;  %v13413_v56 = vpop.eup %10531  ;;  %v18066_v12 = vld [vmem:[#allocation159_spill] sm:$0xff]  ;;  %10561 = vrcp.f32 %v3992_v34  ;;  %5610 = vmatprep.subr.bf16.mxu0 %v10281_v37  ;;  %v9185_v37 = vmul.f32 -1.442695, %v13107_v27 }
 0x2ed   :  { %v4256_v35 = vmax.f32 %v3138_v61, 0.0  ;;  %v13409_v60 = vadd.f32 %v3139_v62, %v2947_v9  ;;  %v13411_v31 = vpop.f32.mrf.mxu0  ;;  %v2953_v1 = vadd.f32 %v18066_v12, %v13355_v43  ;;  %5786 = vmatpush1.bf16.msra.mxu1 %v10276_v52  ;;  %v13417_v28 = vpop.eup %10533  ;;  %v18068_v62 = vld [vmem:[#allocation11_spill] sm:$0xff]  ;;  %v3995_v12 = vadd.f32 1.0, %v10530_v44  ;;  %v18069_v52 = vld [vmem:[#allocation117_spill] sm:$0xff] }
 0x2ee   :  { %18065 = vst [vmem:[#allocation190_spill] sm:$0xff] %v13411_v31  ;;  %v3141_v19 = vpop.f32.mrf.mxu1  ;;  %18067 = vst [vmem:[#allocation159_spill] sm:$0xff] %v13417_v28  ;;  %v10279_v31 = vld [vmem:[#allocation4 + $0x1e0] ss:$24 sps:$4 sm:$0xff]   ;;  %v10536_v30 = vpop.eup %10535  ;;  %10563 = vpow2.f32 %v9182_v32  ;;  %5787 = vmatprep.subr.bf16.mxu1 %v10284_v42  ;;  %v2957_v44 = vadd.f32 %v12956_v38, %v13355_v43  ;;  %v10285_v42 = vld [vmem:[#allocation4 + $0x1b0] ss:$24 sps:$4 sm:$0xff]  }
 0x2ef   :  { %18064 = vst [vmem:[#allocation158_spill] sm:$0xff] %v13409_v60  ;;  %v4352_v18 = vsub.f32 %v4256_v35, %v18068_v62  ;;  %v3142_v9 = vadd.f32 %v3141_v19, %v2949_v33  ;;  %v13421_v61 = vpop.f32.mrf.mxu0  ;;  %v10282_v60 = vld [vmem:[#allocation4 + $0x360] ss:$24 sps:$4 sm:$0xff]   ;;  %v10538_v45 = vpop.eup %10537  ;;  %10565 = vrcp.f32 %v3993_v11  ;;  %5611 = vmatpush2.bf16.msra.mxu0 %v10279_v31  ;;  %v10288_v28 = vld [vmem:[#allocation4 + $0x330] ss:$24 sps:$4 sm:$0xff]  }
 0x2f0   :  { %v3145_v48 = vpop.f32.mrf.mxu1  ;;  %3610 = vmatmul.mubr.bf16.gmra.mxu1 %v18069_v52  ;;  %v10540_v34 = vpop.eup %10539  ;;  %10567 = vpow2.f32 %v9183_v41  ;;  %v18073_v38 = vld [vmem:[#allocation58_spill] sm:$0xff]  ;;  %v3998_v27 = vadd.f32 1.0, %v10538_v45  ;;  %5612 = vmatprep.subr.bf16.mxu0 %v10287_v22  ;;  %v10293_v31 = vld [vmem:[#allocation4 + $0x184] ss:$24 sps:$4 sm:$0xff]  }
 0x2f1   :  { %v13427_v7 = vmul.f32 %v13320_v2, %v4352_v18  ;;  %v4259_v33 = vmax.f32 %v3142_v9, 0.0  ;;  %v13429_v35 = vadd.f32 %v3145_v48, %v2953_v1  ;;  %v13431_v4 = vpop.f32.mrf.mxu0  ;;  %3619 = vmatprep.mubr.bf16.mxu1 %v17842_v51  ;;  %5788 = vmatpush1.bf16.msra.mxu1 %v10282_v60  ;;  %v10290_v2 = vld [vmem:[#allocation4 + $0x334] ss:$24 sps:$4 sm:$0xff]   ;;  %v13437_v19 = vpop.eup %10541  ;;  %v3996_v1 = vadd.f32 1.0, %v10536_v30  ;;  %v18071_v18 = vld [vmem:[#allocation8_spill] sm:$0xff] }
 0x2f2   :  { %v3147_v32 = vpop.f32.mrf.mxu1  ;;  %v2959_v11 = vadd.f32 %v18073_v38, %v13369_v6  ;;  %10569 = vrcp.f32 %v3995_v12  ;;  %5789 = vmatprep.subr.bf16.mxu1 %v10290_v2  ;;  %v3999_v30 = vadd.f32 1.0, %v10540_v34  ;;  %v9186_v38 = vmul.f32 -1.442695, %v13115_v58  ;;  %v10296_v22 = vld [vmem:[#allocation4 + $0x304] ss:$24 sps:$4 sm:$0xff]  }
 0x2f3   :  { %18070 = vst [vmem:[#allocation117_spill] sm:$0xff] %v13427_v7  ;;  %v4355_v9 = vsub.f32 %v4259_v33, %v18071_v18  ;;  %v3148_v48 = vadd.f32 %v3147_v32, %v2955_v21  ;;  %v13440_v52 = vpop.f32.mrf.mxu0  ;;  %v10544_v7 = vpop.eup %10543  ;;  %10571 = vpow2.f32 %v9185_v37  ;;  %5613 = vmatpush2.bf16.msra.mxu0 %v10285_v42  ;;  %v18078_v37 = vld [vmem:[#allocation160_spill] sm:$0xff]  ;;  %v9188_v58 = vmul.f32 -1.442695, %v13121_v46 }
 0x2f4   :  { %18072 = vst [vmem:[#allocation8_spill] sm:$0xff] %v13440_v52  ;;  %v3149_v60 = vpop.f32.mrf.mxu1  ;;  %v13444_v62 = vpop.eup %10545  ;;  %10573 = vrcp.f32 %v3996_v1  ;;  %v4001_v34 = vadd.f32 1.0, %v10544_v7  ;;  %v2963_v52 = vadd.f32 %v18078_v37, %v13355_v43  ;;  %5614 = vmatprep.subr.bf16.mxu0 %v10293_v31  ;;  %v18080_v7 = vld [vmem:[#allocation63_spill] sm:$0xff]  ;;  %v2967_v46 = vadd.f32 %v12984_v0, %v13355_v43  ;;  %v18086_v0 = vld [vmem:[#allocation89_spill] sm:$0xff] }
 0x2f5   :  { %18074 = vst [vmem:[#allocation58_spill] sm:$0xff] %v13444_v62  ;;  %v13447_v41 = vmul.f32 %v13340_v24, %v4355_v9  ;;  %v4262_v21 = vmax.f32 %v3148_v48, 0.0  ;;  %v13449_v33 = vadd.f32 %v3149_v60, %v2957_v44  ;;  %v13451_v32 = vpop.eup %10547  ;;  %v13454_v12 = vpop.f32.mrf.mxu0  ;;  %5790 = vmatpush1.bf16.msra.mxu1 %v10288_v28  ;;  %v18076_v62 = vld [vmem:[#allocation16_spill] sm:$0xff]  ;;  %10575 = vrcp.f32 %v3998_v27 }
 0x2f6   :  { %18075 = vst [vmem:[#allocation191_spill] sm:$0xff] %v13454_v12  ;;  %v3151_v45 = vpop.f32.mrf.mxu1  ;;  %v10550_v2 = vpop.eup %10549  ;;  %v10291_v44 = vld [vmem:[#allocation4 + $0x180] ss:$24 sps:$4 sm:$0xff]   ;;  %10577 = vrcp.f32 %v3999_v30  ;;  %5791 = vmatprep.subr.bf16.mxu1 %v10296_v22 }
 0x2f7   :  { %v4358_v24 = vsub.f32 %v4262_v21, %v18076_v62  ;;  %v3152_v9 = vadd.f32 %v3151_v45, %v2959_v11  ;;  %v10294_v48 = vld [vmem:[#allocation4 + $0x300] ss:$24 sps:$4 sm:$0xff]   ;;  %v13457_v60 = vpop.eup %10551  ;;  %v2965_v11 = vadd.f32 %v18080_v7, %v13369_v6  ;;  %v4002_v45 = vadd.f32 1.0, %v10550_v2  ;;  %v13473_v31 = vpop.f32.mrf.mxu0  ;;  %5615 = vmatpush2.bf16.msra.mxu0 %v10291_v44 }
 0x2f8   :  { %18077 = vst [vmem:[#allocation192_spill] sm:$0xff] %v13457_v60  ;;  %v3155_v12 = vpop.f32.mrf.mxu1  ;;  %v18079_v28 = vld [vmem:[#allocation120_spill] sm:$0xff]  ;;  %v13463_v1 = vpop.eup %10553  ;;  %10579 = vpow2.f32 %v9186_v38  ;;  %v9191_v2 = vmul.f32 -1.442695, %v18086_v0 }
 0x2f9   :  { %3620 = vmatmul.mubr.bf16.gmra.mxu1 %v18079_v28  ;;  %v13468_v42 = vmul.f32 %v13377_v49, %v4358_v24  ;;  %v4265_v21 = vmax.f32 %v3152_v9, 0.0  ;;  %v10556_v27 = vpop.eup %10555  ;;  %18082 = vst [vmem:[#allocation120_spill] sm:$0xff] %v13473_v31  ;;  %v13475_v37 = vadd.f32 %v3155_v12, %v2963_v52  ;;  %10581 = vrcp.f32 %v4001_v34  ;;  %v18084_v49 = vld [vmem:[#allocation140_spill] sm:$0xff]  ;;  %v18085_v9 = vld [vmem:[#allocation13_spill] sm:$0xff] }
 0x2fa   :  { %3629 = vmatprep.mubr.bf16.mxu1 %v17842_v51  ;;  %v3157_v28 = vpop.f32.mrf.mxu1  ;;  %5792 = vmatpush1.bf16.msra.mxu1 %v10294_v48  ;;  %v13477_v30 = vpop.eup %10557  ;;  %v9189_v24 = vmul.f32 -1.442695, %v18084_v49  ;;  %10583 = vpow2.f32 %v9188_v58  ;;  %v4004_v52 = vadd.f32 1.0, %v10556_v27  ;;  %v18088_v49 = vld [vmem:[#allocation161_spill] sm:$0xff]  ;;  %v18089_v44 = vld [vmem:[#allocation12_spill] sm:$0xff]  ;;  %v18092_v27 = vld [vmem:[#allocation162_spill] sm:$0xff] }
 0x2fb   :  { %18081 = vst [vmem:[#allocation160_spill] sm:$0xff] %v13468_v42  ;;  %18083 = vst [vmem:[#allocation63_spill] sm:$0xff] %v13477_v30  ;;  %v4361_v7 = vsub.f32 %v4265_v21, %v18085_v9  ;;  %v3158_v22 = vadd.f32 %v3157_v28, %v2965_v11  ;;  %v10560_v60 = vpop.eup %10559  ;;  %v2969_v21 = vadd.f32 %v18088_v49, %v13369_v6  ;;  %10585 = vrcp.f32 %v4002_v45  ;;  %v13492_v58 = vpop.f32.mrf.mxu0  ;;  %v18095_v45 = vld [vmem:[#allocation17_spill] sm:$0xff] }
 0x2fc   :  { %v3159_v38 = vpop.f32.mrf.mxu1  ;;  %v13482_v42 = vpop.eup %10561  ;;  %v9192_v11 = vmul.f32 -1.442695, %v18089_v44  ;;  %18090 = vst [vmem:[#allocation89_spill] sm:$0xff] %v13492_v58  ;;  %v2973_v9 = vadd.f32 %v18092_v27, %v13355_v43  ;;  %10587 = vpow2.f32 %v9189_v24  ;;  %v9194_v49 = vmul.f32 -1.442695, %v18095_v45  ;;  %v18096_v58 = vld [vmem:[#allocation123_spill] sm:$0xff] }
 0x2fd   :  { %v13485_v12 = vmul.f32 %v13397_v50, %v4361_v7  ;;  %v4268_v48 = vmax.f32 %v3158_v22, 0.0  ;;  %v13487_v30 = vadd.f32 %v3159_v38, %v2967_v46  ;;  %v10564_v34 = vpop.eup %10563  ;;  %v4005_v50 = vadd.f32 1.0, %v10560_v60  ;;  %v18093_v7 = vld [vmem:[#allocation22_spill] sm:$0xff]  ;;  %v18094_v38 = vld [vmem:[#allocation68_spill] sm:$0xff]  ;;  %v13512_v27 = vpop.f32.mrf.mxu0 }
 0x2fe   :  { %v3161_v28 = vpop.f32.mrf.mxu1  ;;  %v13494_v0 = vpop.eup %10565  ;;  %10589 = vpow2.f32 %v9191_v2 }
 0x2ff   :  { %18087 = vst [vmem:[#allocation140_spill] sm:$0xff] %v13485_v12  ;;  %18091 = vst [vmem:[#allocation161_spill] sm:$0xff] %v13494_v0  ;;  %v4364_v46 = vsub.f32 %v4268_v48, %v18093_v7  ;;  %v10568_v22 = vpop.eup %10567  ;;  %v2975_v12 = vadd.f32 %v18094_v38, %v13369_v6  ;;  %v3162_v44 = vadd.f32 %v3161_v28, %v2969_v21  ;;  %10591 = vrcp.f32 %v4004_v52  ;;  %v18099_v48 = vld [vmem:[#allocation142_spill] sm:$0xff] }
 0x300   :  { %v3165_v62 = vpop.f32.mrf.mxu1  ;;  %v13503_v31 = vpop.eup %10569  ;;  %v4007_v0 = vadd.f32 1.0, %v10564_v34  ;;  %10593 = vpow2.f32 %v9192_v11  ;;  %v9195_v2 = vmul.f32 -1.442695, %v18099_v48  ;;  %v4008_v52 = vadd.f32 1.0, %v10568_v22  ;;  %v18103_v11 = vld [vmem:[#allocation92_spill] sm:$0xff]  ;;  %v18104_v48 = vld [vmem:[#allocation19_spill] sm:$0xff] }
 0x301   :  { %3630 = vmatmul.mubr.bf16.gmra.mxu1 %v18096_v58  ;;  %18097 = vst [vmem:[#allocation12_spill] sm:$0xff] %v13503_v31  ;;  %v13506_v60 = vmul.f32 %v13413_v56, %v4364_v46  ;;  %v13508_v24 = vadd.f32 %v3165_v62, %v2973_v9  ;;  %v4271_v21 = vmax.f32 %v3162_v44, 0.0  ;;  %v10572_v38 = vpop.eup %10571  ;;  %v18100_v58 = vld [vmem:[#allocation163_spill] sm:$0xff]  ;;  %10595 = vrcp.f32 %v4005_v50  ;;  %v18102_v62 = vld [vmem:[#allocation164_spill] sm:$0xff]  ;;  %v18106_v22 = vld [vmem:[#allocation165_spill] sm:$0xff] }
 0x302   :  { %3639 = vmatprep.mubr.bf16.mxu1 %v17842_v51  ;;  %v3167_v28 = vpop.f32.mrf.mxu1  ;;  %v2977_v45 = vadd.f32 %v18100_v58, %v13355_v43  ;;  %v13516_v56 = vpop.eup %10573  ;;  %v2979_v9 = vadd.f32 %v18102_v62, %v13369_v6  ;;  %10597 = vpow2.f32 %v9194_v49  ;;  %v9197_v46 = vmul.f32 -1.442695, %v18103_v11 }
 0x303   :  { %18098 = vst [vmem:[#allocation162_spill] sm:$0xff] %v13506_v60  ;;  %v3168_v34 = vadd.f32 %v3167_v28, %v2975_v12  ;;  %18101 = vst [vmem:[#allocation68_spill] sm:$0xff] %v13516_v56  ;;  %v4367_v31 = vsub.f32 %v4271_v21, %v18104_v48  ;;  %v13522_v44 = vpop.eup %10575  ;;  %10599 = vrcp.f32 %v4007_v0  ;;  %v9198_v7 = vmul.f32 -1.442695, %v13167_v15  ;;  %v13531_v49 = vpop.f32.mrf.mxu0  ;;  %v18107_v0 = vld [vmem:[#allocation27_spill] sm:$0xff]  ;;  %v18110_v48 = vld [vmem:[#allocation126_spill] sm:$0xff] }
 0x304   :  { %v3169_v60 = vpop.f32.mrf.mxu1  ;;  %v13527_v12 = vpop.eup %10577  ;;  %v2983_v28 = vadd.f32 %v18106_v22, %v13355_v43  ;;  %v4010_v62 = vadd.f32 1.0, %v10572_v38  ;;  %10601 = vpow2.f32 %v9195_v2  ;;  %v9200_v15 = vmul.f32 -1.442695, %v13173_v36 }
 0x305   :  { %v4274_v58 = vmax.f32 %v3168_v34, 0.0  ;;  %v13525_v50 = vadd.f32 %v3169_v60, %v2977_v45  ;;  %18105 = vst [vmem:[#allocation17_spill] sm:$0xff] %v13527_v12  ;;  %v13534_v21 = vmul.f32 %v13437_v19, %v4367_v31  ;;  %v10580_v56 = vpop.eup %10579  ;;  %10603 = vrcp.f32 %v4008_v52  ;;  %v18109_v12 = vld [vmem:[#allocation73_spill] sm:$0xff] }
 0x306   :  { %v3171_v11 = vpop.f32.mrf.mxu1  ;;  %v13538_v34 = vpop.eup %10581  ;;  %v2985_v22 = vadd.f32 %v18109_v12, %v13369_v6  ;;  %10605 = vpow2.f32 %v9197_v46  ;;  %v9201_v2 = vmul.f32 -1.442695, %v13179_v25  ;;  %v4011_v46 = vadd.f32 1.0, %v10580_v56 }
 0x307   :  { %v4370_v60 = vsub.f32 %v4274_v58, %v18107_v0  ;;  %v3172_v45 = vadd.f32 %v3171_v11, %v2979_v9  ;;  %18108 = vst [vmem:[#allocation123_spill] sm:$0xff] %v13538_v34  ;;  %v10584_v19 = vpop.eup %10583  ;;  %10607 = vpow2.f32 %v9198_v7  ;;  %v18112_v9 = vld [vmem:[#allocation166_spill] sm:$0xff]  ;;  %v13552_v12 = vpop.f32.mrf.mxu0  ;;  %v9203_v7 = vmul.f32 -1.442695, %v13188_v17 }
 0x308   :  { %v3175_v38 = vpop.f32.mrf.mxu1  ;;  %v2987_v58 = vadd.f32 %v18112_v9, %v13355_v43  ;;  %10609 = vrcp.f32 %v4010_v62  ;;  %v13554_v11 = vpop.eup %10585  ;;  %v4013_v9 = vadd.f32 1.0, %v10584_v19  ;;  %v9206_v17 = vmul.f32 -1.442695, %v13202_v39 }
 0x309   :  { %3640 = vmatmul.mubr.bf16.gmra.mxu1 %v18110_v48  ;;  %v13545_v31 = vmul.f32 %v13451_v32, %v4370_v60  ;;  %v4277_v36 = vmax.f32 %v3172_v45, 0.0  ;;  %v13547_v52 = vadd.f32 %v3175_v38, %v2983_v28  ;;  %18113 = vst [vmem:[#allocation163_spill] sm:$0xff] %v13554_v11  ;;  %10611 = vpow2.f32 %v9200_v15  ;;  %v18114_v32 = vld [vmem:[#allocation24_spill] sm:$0xff]  ;;  %v10588_v28 = vpop.eup %10587  ;;  %v13567_v15 = vpop.f32.mrf.mxu0 }
 0x30a   :  { %3649 = vmatprep.mubr.bf16.mxu1 %v17842_v51  ;;  %v3177_v25 = vpop.f32.mrf.mxu1  ;;  %10613 = vpow2.f32 %v9201_v2  ;;  %v9204_v45 = vmul.f32 -1.442695, %v13196_v16  ;;  %v18116_v16 = vld [vmem:[#allocation168_spill] sm:$0xff]  ;;  %v4014_v19 = vadd.f32 1.0, %v10588_v28  ;;  %v9207_v39 = vmul.f32 -1.442695, %v13209_v13 }
 0x30b   :  { %18111 = vst [vmem:[#allocation142_spill] sm:$0xff] %v13545_v31  ;;  %v4373_v48 = vsub.f32 %v4277_v36, %v18114_v32  ;;  %v3178_v60 = vadd.f32 %v3177_v25, %v2985_v22  ;;  %v10590_v34 = vpop.eup %10589  ;;  %10615 = vrcp.f32 %v4011_v46  ;;  %v2993_v36 = vadd.f32 %v18116_v16, %v13355_v43 }
 0x30c   :  { %v3179_v38 = vpop.f32.mrf.mxu1  ;;  %v13564_v11 = vpop.eup %10591  ;;  %10617 = vpow2.f32 %v9203_v7  ;;  %v4016_v32 = vadd.f32 1.0, %v10590_v34 }
 0x30d   :  { %v13560_v56 = vmul.f32 %v13463_v1, %v4373_v48  ;;  %v4280_v62 = vmax.f32 %v3178_v60, 0.0  ;;  %v13562_v31 = vadd.f32 %v3179_v38, %v2987_v58  ;;  %v10594_v2 = vpop.eup %10593  ;;  %v18117_v1 = vld [vmem:[#allocation33_spill] sm:$0xff]  ;;  %10619 = vpow2.f32 %v9204_v45 }
 0x30e   :  { %v13569_v22 = vpop.f32.mrf.mxu1  ;;  %v13574_v48 = vpop.eup %10595  ;;  %v18119_v58 = vld [vmem:[#allocation169_spill] sm:$0xff]  ;;  %10621 = vrcp.f32 %v4013_v9  ;;  %v9209_v45 = vmul.f32 -1.442695, %v13217_v10  ;;  %v4017_v34 = vadd.f32 1.0, %v10594_v2 }
 0x30f   :  { %18115 = vst [vmem:[#allocation164_spill] sm:$0xff] %v13560_v56  ;;  %v4376_v25 = vsub.f32 %v4280_v62, %v18117_v1  ;;  %18118 = vst [vmem:[#allocation92_spill] sm:$0xff] %v13574_v48  ;;  %v2995_v60 = vadd.f32 %v18119_v58, %v13369_v6  ;;  %v18120_v38 = vld [vmem:[#allocation129_spill] sm:$0xff]  ;;  %v10598_v56 = vpop.eup %10597  ;;  %10623 = vpow2.f32 %v9206_v17  ;;  %v13589_v62 = vpop.f32.mrf.mxu0 }
 0x310   :  { %v3185_v46 = vpop.f32.mrf.mxu1  ;;  %v13586_v28 = vpop.eup %10599  ;;  %10625 = vrcp.f32 %v4014_v19  ;;  %v4019_v17 = vadd.f32 1.0, %v10598_v56 }
 0x311   :  { %3650 = vmatmul.mubr.bf16.gmra.mxu1 %v18120_v38  ;;  %v13581_v16 = vmul.f32 %v13482_v42, %v4376_v25  ;;  %v13583_v7 = vadd.f32 %v3185_v46, %v2993_v36  ;;  %18122 = vst [vmem:[#allocation73_spill] sm:$0xff] %v13586_v28  ;;  %v10602_v58 = vpop.eup %10601  ;;  %v18123_v38 = vld [vmem:[#allocation170_spill] sm:$0xff]  ;;  %10627 = vpow2.f32 %v9207_v39  ;;  %v9210_v36 = vmul.f32 -1.442695, %v13225_v40  ;;  %v13598_v0 = vpop.f32.mrf.mxu0 }
 0x312   :  { %3659 = vmatprep.mubr.bf16.mxu1 %v17842_v51  ;;  %v3187_v13 = vpop.f32.mrf.mxu1  ;;  %v2997_v9 = vadd.f32 %v18123_v38, %v13355_v43  ;;  %v13593_v25 = vpop.eup %10603  ;;  %10629 = vrcp.f32 %v4016_v32  ;;  %v4020_v1 = vadd.f32 1.0, %v10602_v58  ;;  %v9212_v40 = vmul.f32 -1.442695, %v13232_v20  ;;  %v18126_v32 = vld [vmem:[#allocation38_spill] sm:$0xff]  ;;  %v18127_v58 = vld [vmem:[#allocation132_spill] sm:$0xff]  ;;  %v18129_v20 = vld [vmem:[#allocation173_spill] sm:$0xff] }
 0x313   :  { %18121 = vst [vmem:[#allocation165_spill] sm:$0xff] %v13581_v16  ;;  %v3188_v42 = vadd.f32 %v3187_v13, %v2995_v60  ;;  %18124 = vst [vmem:[#allocation126_spill] sm:$0xff] %v13593_v25  ;;  %v10606_v48 = vpop.eup %10605  ;;  %10631 = vpow2.f32 %v9209_v45  ;;  %v18125_v60 = vld [vmem:[#allocation172_spill] sm:$0xff] }
 0x314   :  { %v3189_v46 = vpop.f32.mrf.mxu1  ;;  %v10608_v16 = vpop.eup %10607  ;;  %v3003_v39 = vadd.f32 %v18125_v60, %v13355_v43  ;;  %10633 = vrcp.f32 %v4017_v34  ;;  %v4022_v38 = vadd.f32 1.0, %v10606_v48  ;;  %v3005_v34 = vadd.f32 %v18129_v20, %v13369_v6  ;;  %v10299_v20 = vld [vmem:[#allocation4 + $0x15c] ss:$24 sps:$4 sm:$0xff]  }
 0x315   :  { %v4286_v10 = vmax.f32 %v3188_v42, 0.0  ;;  %v13596_v28 = vadd.f32 %v3189_v46, %v2997_v9  ;;  %v13602_v2 = vpop.eup %10609  ;;  %10635 = vpow2.f32 %v9210_v36  ;;  %v4023_v42 = vadd.f32 1.0, %v10608_v16  ;;  %v13618_v36 = vpop.f32.mrf.mxu0  ;;  %v18131_v16 = vld [vmem:[#allocation136_spill] sm:$0xff]  ;;  %5970 = vmatprep.subr.bf16.mxu0 %v10299_v20 }
 0x316   :  { %v13600_v19 = vpop.f32.mrf.mxu1  ;;  %v10612_v13 = vpop.eup %10611  ;;  %10637 = vrcp.f32 %v4019_v17  ;;  %v9213_v48 = vmul.f32 -1.442695, %v13239_v63  ;;  %v3007_v17 = vadd.f32 %v18131_v16, %v13355_v43 }
 0x317   :  { %v4382_v56 = vsub.f32 %v4286_v10, %v18126_v32  ;;  %v10614_v45 = vpop.eup %10613  ;;  %10639 = vrcp.f32 %v4020_v1  ;;  %v9215_v1 = vmul.f32 -1.442695, %v13247_v26  ;;  %v13630_v16 = vpop.f32.mrf.mxu0 }
 0x318   :  { %v3195_v9 = vpop.f32.mrf.mxu1  ;;  %v13620_v60 = vpop.eup %10615  ;;  %10641 = vpow2.f32 %v9212_v40  ;;  %18134 = vst [vmem:[#allocation170_spill] sm:$0xff] %v13630_v16  ;;  %v9218_v16 = vmul.f32 -1.442695, %v13261_v55  ;;  %v9219_v55 = vmul.f32 -1.442695, %v13268_v47 }
 0x319   :  { %3660 = vmatmul.mubr.bf16.gmra.mxu1 %v18127_v58  ;;  %v13610_v46 = vmul.f32 %v13522_v44, %v4382_v56  ;;  %v13612_v25 = vadd.f32 %v3195_v9, %v3003_v39  ;;  %18130 = vst [vmem:[#allocation168_spill] sm:$0xff] %v13620_v60  ;;  %v4025_v44 = vadd.f32 1.0, %v10612_v13  ;;  %v10618_v39 = vpop.eup %10617  ;;  %10643 = vrcp.f32 %v4022_v38  ;;  %v11257_v47 = vld [vmem:[%s17230_s5] sm:$0x3f] }
 0x31a   :  { %3669 = vmatprep.mubr.bf16.mxu1 %v17842_v51  ;;  %v3197_v10 = vpop.f32.mrf.mxu1  ;;  %v4026_v56 = vadd.f32 1.0, %v10614_v45  ;;  %10645 = vrcp.f32 %v4023_v42  ;;  %v9216_v60 = vmul.f32 -1.442695, %v13255_v23  ;;  %v18136_v45 = vld [vmem:[#allocation138_spill] sm:$0xff]  ;;  %v4028_v42 = vadd.f32 1.0, %v10618_v39  ;;  %v18139_v23 = vld [vmem:[#allocation135_spill] sm:$0xff] }
 0x31b   :  { %18128 = vst [vmem:[#allocation166_spill] sm:$0xff] %v13610_v46  ;;  %v3198_v9 = vadd.f32 %v3197_v10, %v3005_v34  ;;  %v10620_v46 = vpop.eup %10619  ;;  %10647 = vpow2.f32 %v9213_v48  ;;  %v3013_v34 = vadd.f32 %v18136_v45, %v13355_v43 }
 0x31c   :  { %v3199_v58 = vpop.f32.mrf.mxu1  ;;  %v13627_v32 = vpop.eup %10621  ;;  %10649 = vrcp.f32 %v4025_v44  ;;  %v4029_v10 = vadd.f32 1.0, %v10620_v46 }
 0x31d   :  { %v13625_v63 = vadd.f32 %v3199_v58, %v3007_v17  ;;  %18133 = vst [vmem:[#allocation129_spill] sm:$0xff] %v13627_v32  ;;  %v4292_v40 = vmax.f32 %v3198_v9, 0.0  ;;  %v10624_v38 = vpop.eup %10623  ;;  %10651 = vrcp.f32 %v4026_v56  ;;  %v18138_v17 = vld [vmem:[#allocation44_spill] sm:$0xff]  ;;  %v18140_v9 = vld [vmem:[#allocation86_spill] sm:$0xff]  ;;  %v13648_v46 = vpop.f32.mrf.mxu0 }
 0x31e   :  { %v13632_v13 = vpop.f32.mrf.mxu1  ;;  %v13636_v26 = vpop.eup %10625  ;;  %10653 = vpow2.f32 %v9215_v1  ;;  %v4031_v39 = vadd.f32 1.0, %v10624_v38  ;;  %18142 = vst [vmem:[#allocation136_spill] sm:$0xff] %v13648_v46 }
 0x31f   :  { %18132 = vst [vmem:[#allocation169_spill] sm:$0xff] %v13625_v63  ;;  %18135 = vst [vmem:[#allocation172_spill] sm:$0xff] %v13632_v13  ;;  %v4388_v48 = vsub.f32 %v4292_v40, %v18138_v17  ;;  %v10628_v32 = vpop.eup %10627  ;;  %v3015_v63 = vadd.f32 %v18140_v9, %v13369_v6  ;;  %10655 = vpow2.f32 %v9216_v60  ;;  %v17482_v60 = vsub.s32 4, %v18038_v3 }
 0x320   :  { %18137 = vst [vmem:[#allocation132_spill] sm:$0xff] %v13636_v26  ;;  %v3205_v58 = vpop.f32.mrf.mxu1  ;;  %v13646_v44 = vpop.eup %10629  ;;  %10657 = vrcp.f32 %v4028_v42  ;;  %v4032_v9 = vadd.f32 1.0, %v10628_v32 }
 0x321   :  { %3670 = vmatmul.mubr.bf16.gmra.mxu1 %v18139_v23  ;;  %v13643_v45 = vadd.f32 %v3205_v58, %v3013_v34  ;;  %v13651_v56 = vmul.f32 %v13564_v11, %v4388_v48  ;;  %v10632_v40 = vpop.eup %10631  ;;  %v18144_v23 = vld [vmem:[#allocation139_spill] sm:$0xff]  ;;  %10659 = vrcp.f32 %v4029_v10  ;;  %v9221_v11 = vmul.f32 -1.442695, %v13277_v53 }
 0x322   :  { %5809 = vmatprep.mubr.bf16.mxu1 %v17842_v51  ;;  %v3207_v20 = vpop.f32.mrf.mxu1  ;;  %v3017_v1 = vadd.f32 %v18144_v23, %v13355_v43  ;;  %v13656_v58 = vpop.eup %10633  ;;  %10661 = vpow2.f32 %v9218_v16  ;;  %v4034_v42 = vadd.f32 1.0, %v10632_v40  ;;  %v9222_v53 = vmul.f32 -1.442695, %v13285_v57  ;;  %v18152_v23 = vld [vmem:[#allocation49_spill] sm:$0xff] }
 0x323   :  { %18141 = vst [vmem:[#allocation173_spill] sm:$0xff] %v13643_v45  ;;  %18143 = vst [vmem:[#allocation138_spill] sm:$0xff] %v13651_v56  ;;  %v3208_v34 = vadd.f32 %v3207_v20, %v3015_v63  ;;  %v10636_v26 = vpop.eup %10635  ;;  %10663 = vrcp.f32 %v4031_v39  ;;  %v13665_v63 = vpop.f32.mrf.mxu0  ;;  %v18151_v20 = vld [vmem:[#allocation174_spill] sm:$0xff]  ;;  %v18153_v39 = vld [vmem:[#allocation175_spill] sm:$0xff]  ;;  %v9224_v57 = vmul.f32 -1.442695, %v13292_v5 }
 0x324   :  { %18145 = vst [vmem:[#allocation135_spill] sm:$0xff] %v13656_v58  ;;  %v3209_v38 = vpop.f32.mrf.mxu1  ;;  %v13662_v56 = vpop.eup %10637  ;;  %18148 = vst [vmem:[#allocation193_spill] sm:$0xff] %v13665_v63  ;;  %v3023_v16 = vadd.f32 %v18151_v20, %v13355_v43  ;;  %10665 = vpow2.f32 %v9219_v55  ;;  %v3025_v40 = vadd.f32 %v18153_v39, %v13369_v6  ;;  %v18178_v45 = vld [vmem:[#allocation153_spill] sm:$0xff] }
 0x325   :  { %v4298_v48 = vmax.f32 %v3208_v34, 0.0  ;;  %v13660_v51 = vadd.f32 %v3209_v38, %v3017_v1  ;;  %18147 = vst [vmem:[#allocation139_spill] sm:$0xff] %v13662_v56  ;;  %v13669_v32 = vpop.eup %10639  ;;  %10667 = vrcp.f32 %v4032_v9  ;;  %v4035_v38 = vadd.f32 1.0, %v10636_v26  ;;  %v18157_v9 = vld [vmem:[#allocation167_spill] sm:$0xff] }
 0x326   :  { %v13667_v10 = vpop.f32.mrf.mxu1  ;;  %18150 = vst [vmem:[#allocation195_spill] sm:$0xff] %v13669_v32  ;;  %v10642_v34 = vpop.eup %10641  ;;  %v13682_v32 = vrot.slane %v11257_v47, %v17482_v60  ;;  %10669 = vpow2.f32 %v9221_v11  ;;  %v13696_v58 = vadd.f32 %v18157_v9, %v13369_v6  ;;  %v9225_v60 = vmul.f32 -1.442695, %v13299_v59  ;;  %v18163_v59 = vld [vmem:[#allocation137_spill] sm:$0xff] }
 0x327   :  { %18146 = vst [vmem:[#allocation86_spill] sm:$0xff] %v13660_v51  ;;  %18149 = vst [vmem:[#allocation194_spill] sm:$0xff] %v13667_v10  ;;  %v4394_v1 = vsub.f32 %v4298_v48, %v18152_v23  ;;  %v13684_v55 = vpop.eup %10643  ;;  %10671 = vrcp.f32 %v4034_v42  ;;  %v18158_v56 = vsub.s32 5, %v18038_v3  ;;  %v13703_v11 = vpop.f32.mrf.mxu0  ;;  %v18162_v42 = vld [vmem:[#allocation171_spill] sm:$0xff] }
 0x328   :  { %v3215_v20 = vpop.f32.mrf.mxu1  ;;  %v13692_v26 = vpop.eup %10645  ;;  %18159 = vst [vmem:[#allocation167_spill] sm:$0xff] %v13703_v11  ;;  %10673 = vpow2.f32 %v9222_v53  ;;  %v13711_v9 = vadd.f32 %v18162_v42, %v13369_v6  ;;  %v18167_v42 = vld [vmem:[#allocation141_spill] sm:$0xff] }
 0x329   :  { %v13688_v48 = vmul.f32 %v13602_v2, %v4394_v1  ;;  %v13690_v39 = vadd.f32 %v3215_v20, %v3023_v16  ;;  %18156 = vst [vmem:[#allocation196_spill] sm:$0xff] %v13692_v26  ;;  %v13701_v23 = vrot.slane %v11257_v47, %v18158_v56  ;;  %v10648_v2 = vpop.eup %10647  ;;  %v18160_v16 = vld [vmem:[#allocation176_spill] sm:$0xff]  ;;  %v4037_v20 = vadd.f32 1.0, %v10642_v34  ;;  %v18165_v34 = vld [vmem:[#allocation147_spill] sm:$0xff] }
 0x32a   :  { %v3217_v5 = vpop.f32.mrf.mxu1  ;;  %v3027_v1 = vadd.f32 %v18160_v16, %v13355_v43  ;;  %v13715_v56 = vadd.f32 %v18163_v59, %v13369_v6  ;;  %10675 = vrcp.f32 %v4035_v38  ;;  %v9227_v47 = vmul.f32 -1.442695, %v13307_v8  ;;  %v18169_v59 = vld [vmem:[#allocation177_spill] sm:$0xff]  ;;  %v13731_v8 = vpop.f32.mrf.mxu0 }
 0x32b   :  { %18154 = vst [vmem:[#allocation174_spill] sm:$0xff] %v13688_v48  ;;  %18155 = vst [vmem:[#allocation175_spill] sm:$0xff] %v13690_v39  ;;  %v3218_v26 = vadd.f32 %v3217_v5, %v3025_v40  ;;  %v13707_v48 = vpop.eup %10649  ;;  %10677 = vpow2.f32 %v9224_v57  ;;  %v9228_v53 = vmul.f32 -1.442695, %v18165_v34  ;;  %v13729_v17 = vadd.f32 %v18169_v59, %v13369_v6  ;;  %v18176_v59 = vld [vmem:[#allocation143_spill] sm:$0xff] }
 0x32c   :  { %18161 = vst [vmem:[#allocation176_spill] sm:$0xff] %v13707_v48  ;;  %v3219_v3 = vpop.f32.mrf.mxu1  ;;  %v13718_v39 = vpop.eup %10651  ;;  %v13725_v48 = vadd.f32 %v18167_v42, %v13369_v6  ;;  %v4038_v38 = vadd.f32 1.0, %v10648_v2  ;;  %10679 = vpow2.f32 %v9225_v60  ;;  %18171 = vst [vmem:[#allocation177_spill] sm:$0xff] %v13731_v8  ;;  %v18177_v60 = vld [vmem:[#allocation144_spill] sm:$0xff] }
 0x32d   :  { %18164 = vst [vmem:[#allocation171_spill] sm:$0xff] %v13718_v39  ;;  %v4304_v40 = vmax.f32 %v3218_v26, 0.0  ;;  %v13721_v5 = vadd.f32 %v3219_v3, %v3027_v1  ;;  %v10654_v16 = vpop.eup %10653  ;;  %18170 = vst [vmem:[#allocation141_spill] sm:$0xff] %v13729_v17  ;;  %v18173_v26 = vld [vmem:[#allocation18_spill] sm:$0xff]  ;;  %10681 = vrcp.f32 %v4037_v20  ;;  %v3035_v17 = vadd.f32 %v18176_v59, %v13369_v6  ;;  %v13759_v8 = vpop.f32.mrf.mxu0 }
 0x32e   :  { %18168 = vst [vmem:[#allocation147_spill] sm:$0xff] %v13725_v48  ;;  %v13733_v39 = vpop.f32.mrf.mxu1  ;;  %v10656_v57 = vpop.eup %10655  ;;  %v3033_v3 = vadd.f32 %v18173_v26, %v13355_v43  ;;  %v18174_v1 = vld [vmem:[#allocation150_spill] sm:$0xff]  ;;  %v3037_v2 = vadd.f32 %v18177_v60, %v13355_v43  ;;  %10683 = vpow2.f32 %v9227_v47  ;;  %v4040_v26 = vadd.f32 1.0, %v10654_v16  ;;  %v18184_v60 = vld [vmem:[#allocation95_spill] sm:$0xff]  ;;  %18185 = vst [vmem:[#allocation153_spill] sm:$0xff] %v13759_v8 }
 0x32f   :  { %18166 = vst [vmem:[#allocation137_spill] sm:$0xff] %v13721_v5  ;;  %18172 = vst [vmem:[#allocation197_spill] sm:$0xff] %v13733_v39  ;;  %v9230_v34 = vmul.f32 -1.442695, %v18174_v1  ;;  %v18175_v5 = vld [vmem:[#allocation53_spill] sm:$0xff]  ;;  %v13739_v51 = vpop.eup %10657  ;;  %10685 = vpow2.f32 %v9228_v53  ;;  %v3043_v47 = vadd.f32 %v18184_v60, %v13355_v43  ;;  %v18190_v60 = vld [vmem:[#allocation180_spill] sm:$0xff] }
 0x330   :  { %v4400_v42 = vsub.f32 %v4304_v40, %v18175_v5  ;;  %v9231_v39 = vmul.f32 -1.442695, %v18178_v45  ;;  %v3225_v10 = vpop.f32.mrf.mxu1  ;;  %v13746_v48 = vpop.eup %10659  ;;  %v18182_v5 = vld [vmem:[#allocation145_spill] sm:$0xff]  ;;  %10687 = vrcp.f32 %v4038_v38  ;;  %v4041_v45 = vadd.f32 1.0, %v10656_v57 }
 0x331   :  { %18179 = vst [vmem:[#allocation18_spill] sm:$0xff] %v13746_v48  ;;  %v13751_v40 = vadd.f32 %v3225_v10, %v3033_v3  ;;  %v10662_v1 = vpop.eup %10661  ;;  %v13755_v59 = vadd.f32 %v18182_v5, %v13369_v6  ;;  %10689 = vpow2.f32 %v9230_v34  ;;  %v18188_v10 = vld [vmem:[#allocation110_spill] sm:$0xff]  ;;  %v18189_v5 = vld [vmem:[#allocation179_spill] sm:$0xff]  ;;  %v13770_v38 = vadd.f32 %v18190_v60, %v13369_v6  ;;  %v18195_v60 = vld [vmem:[#allocation181_spill] sm:$0xff] }
 0x332   :  { %v13749_v20 = vmul.f32 %v13646_v44, %v4400_v42  ;;  %v3227_v48 = vpop.f32.mrf.mxu1  ;;  %v13761_v16 = vpop.eup %10663  ;;  %v18187_v44 = vld [vmem:[#allocation178_spill] sm:$0xff]  ;;  %v9233_v3 = vmul.f32 -1.442695, %v18188_v10  ;;  %10691 = vpow2.f32 %v9231_v39  ;;  %v9234_v57 = vmul.f32 -1.442695, %v13362_v14 }
 0x333   :  { %18181 = vst [vmem:[#allocation143_spill] sm:$0xff] %v13751_v40  ;;  %18183 = vst [vmem:[#allocation144_spill] sm:$0xff] %v13755_v59  ;;  %v3045_v53 = vadd.f32 %v18187_v44, %v13369_v6  ;;  %v3228_v42 = vadd.f32 %v3227_v48, %v3035_v17  ;;  %v3047_v59 = vadd.f32 %v18189_v5, %v13355_v43  ;;  %10693 = vrcp.f32 %v4040_v26  ;;  %v18194_v48 = vld [vmem:[#allocation98_spill] sm:$0xff]  ;;  %v13786_v39 = vpop.f32.mrf.mxu0 }
 0x334   :  { %18180 = vst [vmem:[#allocation150_spill] sm:$0xff] %v13749_v20  ;;  %18186 = vst [vmem:[#allocation145_spill] sm:$0xff] %v13761_v16  ;;  %v10666_v20 = vpop.eup %10665  ;;  %v3229_v40 = vpop.f32.mrf.mxu1  ;;  %v9236_v34 = vmul.f32 -1.442695, %v13373_v29  ;;  %v13780_v5 = vadd.f32 %v18194_v48, %v13355_v43  ;;  %10695 = vrcp.f32 %v4041_v45  ;;  %v4043_v14 = vadd.f32 1.0, %v10662_v1  ;;  %v18198_v29 = vld [vmem:[#allocation23_spill] sm:$0xff] }
 0x335   :  { %18191 = vst [vmem:[#allocation95_spill] sm:$0xff] %v13770_v38  ;;  %v13773_v16 = vpop.eup %10667  ;;  %v4310_v44 = vmax.f32 %v3228_v42, 0.0  ;;  %v13776_v10 = vadd.f32 %v3229_v40, %v3037_v2  ;;  %v13784_v38 = vadd.f32 %v18195_v60, %v13369_v6  ;;  %18196 = vst [vmem:[#allocation179_spill] sm:$0xff] %v13786_v39  ;;  %v13794_v2 = vadd.f32 %v18198_v29, %v13355_v43  ;;  %v18199_v42 = vld [vmem:[#allocation57_spill] sm:$0xff]  ;;  %v18200_v60 = vld [vmem:[#allocation182_spill] sm:$0xff] }
 0x336   :  { %18192 = vst [vmem:[#allocation178_spill] sm:$0xff] %v13773_v16  ;;  %v10670_v17 = vpop.eup %10669  ;;  %v13788_v16 = vpop.f32.mrf.mxu1  ;;  %v4044_v40 = vadd.f32 1.0, %v10666_v20  ;;  %10697 = vpow2.f32 %v9233_v3  ;;  %v13799_v8 = vadd.f32 %v18200_v60, %v13369_v6  ;;  %v18202_v1 = vld [vmem:[#allocation101_spill] sm:$0xff] }
 0x337   :  { %18193 = vst [vmem:[#allocation110_spill] sm:$0xff] %v13776_v10  ;;  %18197 = vst [vmem:[#allocation180_spill] sm:$0xff] %v13788_v16  ;;  %v13790_v26 = vpop.eup %10671  ;;  %v4406_v48 = vsub.f32 %v4310_v44, %v18199_v42  ;;  %v13803_v45 = vadd.f32 %v18202_v1, %v13355_v43  ;;  %10699 = vpow2.f32 %v9234_v57  ;;  %v9237_v16 = vmul.f32 -1.442695, %v13382_v54  ;;  %v18204_v20 = vld [vmem:[#allocation113_spill] sm:$0xff] }
 0x338   :  { %v10674_v10 = vpop.eup %10673  ;;  %18201 = vst [vmem:[#allocation98_spill] sm:$0xff] %v13799_v8  ;;  %v3235_v39 = vpop.f32.mrf.mxu1  ;;  %10701 = vpow2.f32 %v9236_v34  ;;  %v9145_v3 = vmul.f32 -1.442695, %v18204_v20  ;;  %v18207_v8 = vld [vmem:[#allocation28_spill] sm:$0xff]  ;;  %v18208_v57 = vld [vmem:[#allocation29_spill] sm:$0xff]  ;;  %v4046_v1 = vadd.f32 1.0, %v10670_v17 }
 0x339   :  { %v13806_v11 = vpop.eup %10675  ;;  %v13810_v44 = vmul.f32 %v13684_v55, %v4406_v48  ;;  %v13812_v29 = vadd.f32 %v3235_v39, %v3043_v47  ;;  %v13816_v42 = vadd.f32 %v18207_v8, %v13369_v6  ;;  %10703 = vrcp.f32 %v4043_v14  ;;  %v18210_v55 = vld [vmem:[#allocation34_spill] sm:$0xff]  ;;  %v18212_v39 = vld [vmem:[#allocation104_spill] sm:$0xff] }
 0x33a   :  { %18203 = vst [vmem:[#allocation181_spill] sm:$0xff] %v13806_v11  ;;  %v10678_v60 = vpop.eup %10677  ;;  %v13820_v54 = vadd.f32 %v18208_v57, %v13355_v43  ;;  %v13822_v11 = vpop.f32.mrf.mxu0  ;;  %10705 = vrcp.f32 %v4044_v40  ;;  %v13826_v47 = vadd.f32 %v18210_v55, %v13369_v6  ;;  %v13830_v48 = vadd.f32 %v18212_v39, %v13355_v43  ;;  %v18214_v57 = vld [vmem:[#allocation39_spill] sm:$0xff]  ;;  %v18215_v17 = vld [vmem:[#allocation158_spill] sm:$0xff]  ;;  %v18216_v55 = vld [vmem:[#allocation40_spill] sm:$0xff] }
 0x33b   :  { %18205 = vst [vmem:[#allocation23_spill] sm:$0xff] %v13810_v44  ;;  %18206 = vst [vmem:[#allocation182_spill] sm:$0xff] %v13812_v29  ;;  %v3237_v34 = vpop.f32.mrf.mxu1  ;;  %v10680_v20 = vpop.eup %10679  ;;  %v4047_v8 = vadd.f32 1.0, %v10674_v10  ;;  %v13836_v44 = vadd.f32 %v18214_v57, %v13369_v6  ;;  %10707 = vpow2.f32 %v9237_v16  ;;  %v9148_v29 = vmul.f32 -1.442695, %v18215_v17  ;;  %v18218_v57 = vld [vmem:[#allocation146_spill] sm:$0xff] }
 0x33c   :  { %18209 = vst [vmem:[#allocation101_spill] sm:$0xff] %v13822_v11  ;;  %18211 = vst [vmem:[#allocation113_spill] sm:$0xff] %v13826_v47  ;;  %v13832_v14 = vpop.eup %10681  ;;  %v3238_v11 = vadd.f32 %v3237_v34, %v3045_v53  ;;  %v4049_v46 = vadd.f32 1.0, %v10678_v60  ;;  %v13841_v47 = vadd.f32 %v18216_v55, %v13355_v43  ;;  %10709 = vpow2.f32 %v9145_v3  ;;  %v13849_v16 = vpop.f32.mrf.mxu0  ;;  %v18223_v17 = vld [vmem:[#allocation107_spill] sm:$0xff] }
 0x33d   :  { %18213 = vst [vmem:[#allocation28_spill] sm:$0xff] %v13832_v14  ;;  %v3239_v40 = vpop.f32.mrf.mxu1  ;;  %v10684_v63 = vpop.eup %10683  ;;  %10711 = vrcp.f32 %v4046_v1  ;;  %v4050_v14 = vadd.f32 1.0, %v10680_v20  ;;  %v13847_v13 = vadd.f32 %v18218_v57, %v13369_v6  ;;  %18220 = vst [vmem:[#allocation104_spill] sm:$0xff] %v13849_v16  ;;  %v13857_v3 = vadd.f32 %v18223_v17, %v13355_v43  ;;  %v18225_v57 = vld [vmem:[#allocation183_spill] sm:$0xff] }
 0x33e   :  { %v13843_v39 = vadd.f32 %v3239_v40, %v3047_v59  ;;  %v10686_v10 = vpop.eup %10685  ;;  %v4316_v53 = vmax.f32 %v3238_v11, 0.0  ;;  %10713 = vrcp.f32 %v4047_v8  ;;  %v18224_v59 = vld [vmem:[#allocation148_spill] sm:$0xff]  ;;  %v9151_v20 = vmul.f32 -1.442695, %v13429_v35 }
 0x33f   :  { %18219 = vst [vmem:[#allocation34_spill] sm:$0xff] %v13847_v13  ;;  %v13851_v34 = vpop.f32.mrf.mxu1  ;;  %v13853_v60 = vpop.eup %10687  ;;  %v13861_v1 = vadd.f32 %v18224_v59, %v13369_v6  ;;  %v4052_v55 = vadd.f32 1.0, %v10684_v63  ;;  %v13866_v11 = vadd.f32 %v18225_v57, %v13355_v43  ;;  %10715 = vpow2.f32 %v9148_v29  ;;  %v18226_v13 = vld [vmem:[#allocation62_spill] sm:$0xff] }
 0x340   :  { %18217 = vst [vmem:[#allocation29_spill] sm:$0xff] %v13843_v39  ;;  %18221 = vst [vmem:[#allocation39_spill] sm:$0xff] %v13851_v34  ;;  %v10690_v40 = vpop.eup %10689  ;;  %10717 = vrcp.f32 %v4049_v46  ;;  %v4053_v17 = vadd.f32 1.0, %v10686_v10  ;;  %v18227_v34 = vld [vmem:[#allocation186_spill] sm:$0xff]  ;;  %v9154_v29 = vmul.f32 -1.442695, %v13449_v33 }
 0x341   :  { %18222 = vst [vmem:[#allocation158_spill] sm:$0xff] %v13853_v60  ;;  %v4412_v60 = vsub.f32 %v4316_v53, %v18226_v13  ;;  %v3245_v8 = vpop.f32.mrf.mxu1  ;;  %v10692_v39 = vpop.eup %10691  ;;  %v13871_v16 = vadd.f32 %v18227_v34, %v13369_v6  ;;  %10719 = vrcp.f32 %v4050_v14  ;;  %v18230_v63 = vld [vmem:[#allocation154_spill] sm:$0xff]  ;;  %v18234_v33 = vld [vmem:[#allocation156_spill] sm:$0xff] }
 0x342   :  { %v13874_v59 = vadd.f32 %v3245_v8, %v13780_v5  ;;  %v13876_v35 = vpop.eup %10693  ;;  %v13880_v57 = vadd.f32 %v18230_v63, %v13355_v43  ;;  %v13883_v53 = vpop.f32.mrf.mxu0  ;;  %v18233_v5 = vld [vmem:[#allocation155_spill] sm:$0xff]  ;;  %10721 = vpow2.f32 %v9151_v20  ;;  %v4056_v13 = vadd.f32 1.0, %v10692_v39  ;;  %v18238_v39 = vld [vmem:[#allocation116_spill] sm:$0xff] }
 0x343   :  { %18228 = vst [vmem:[#allocation40_spill] sm:$0xff] %v13871_v16  ;;  %v13886_v46 = vmul.f32 %v13739_v51, %v4412_v60  ;;  %v3247_v10 = vpop.f32.mrf.mxu1  ;;  %v13888_v34 = vpop.eup %10695  ;;  %v4055_v16 = vadd.f32 1.0, %v10690_v40  ;;  %v13892_v8 = vadd.f32 %v18233_v5, %v13369_v6  ;;  %10723 = vrcp.f32 %v4052_v55  ;;  %v18235_v51 = vld [vmem:[#allocation157_spill] sm:$0xff]  ;;  %v10314_v40 = vld [vmem:[#allocation4 + $0x45c] ss:$24 sps:$4 sm:$0xff]  }
 0x344   :  { %18229 = vst [vmem:[#allocation146_spill] sm:$0xff] %v13874_v59  ;;  %18232 = vst [vmem:[#allocation148_spill] sm:$0xff] %v13888_v34  ;;  %v3248_v14 = vadd.f32 %v3247_v10, %v13784_v38  ;;  %v10698_v63 = vpop.eup %10697  ;;  %v13897_v59 = vadd.f32 %v18234_v33, %v13355_v43  ;;  %v13901_v60 = vadd.f32 %v18235_v51, %v13369_v6  ;;  %10725 = vrcp.f32 %v4053_v17  ;;  %v18239_v43 = vld [vmem:[#allocation188_spill] sm:$0xff]  ;;  %v13916_v51 = vpop.f32.mrf.mxu0 }
 0x345   :  { %18231 = vst [vmem:[#allocation107_spill] sm:$0xff] %v13886_v46  ;;  %v3249_v34 = vpop.f32.mrf.mxu1  ;;  %v10700_v46 = vpop.eup %10699  ;;  %v9157_v5 = vmul.f32 -1.442695, %v13475_v37  ;;  %v13909_v10 = vadd.f32 %v18238_v39, %v13682_v32  ;;  %v13913_v33 = vadd.f32 %v18239_v43, %v13701_v23  ;;  %10727 = vpow2.f32 %v9154_v29  ;;  %6163 = vmatprep.subr.bf16.mxu1 %v10314_v40  ;;  %v18243_v39 = vld [vmem:[#allocation67_spill] sm:$0xff] }
 0x346   :  { %18236 = vst [vmem:[#allocation183_spill] sm:$0xff] %v13901_v60  ;;  %v4322_v20 = vmax.f32 %v3248_v14, 0.0  ;;  %v13905_v38 = vadd.f32 %v3249_v34, %v13794_v2  ;;  %v10702_v55 = vpop.eup %10701  ;;  %v9160_v6 = vmul.f32 -1.442695, %v13487_v30  ;;  %10729 = vrcp.f32 %v4055_v16  ;;  %v18242_v34 = vld [vmem:[#allocation190_spill] sm:$0xff] }
 0x347   :  { %v13918_v17 = vpop.f32.mrf.mxu1  ;;  %v13920_v37 = vpop.eup %10703  ;;  %v4058_v2 = vadd.f32 1.0, %v10698_v63  ;;  %v13924_v14 = vadd.f32 %v18242_v34, %v13682_v32  ;;  %10731 = vrcp.f32 %v4056_v13  ;;  %v4059_v29 = vadd.f32 1.0, %v10700_v46  ;;  %v18247_v46 = vld [vmem:[#allocation11_spill] sm:$0xff] }
 0x348   :  { %18237 = vst [vmem:[#allocation186_spill] sm:$0xff] %v13905_v38  ;;  %18240 = vst [vmem:[#allocation154_spill] sm:$0xff] %v13918_v17  ;;  %v4418_v60 = vsub.f32 %v4322_v20, %v18243_v39  ;;  %v13927_v43 = vpop.eup %10705  ;;  %v13931_v30 = vadd.f32 %v13421_v61, %v13701_v23  ;;  %v13935_v40 = vadd.f32 %v13431_v4, %v13682_v32  ;;  %10733 = vpow2.f32 %v9157_v5 }
 0x349   :  { %18241 = vst [vmem:[#allocation155_spill] sm:$0xff] %v13920_v37  ;;  %18244 = vst [vmem:[#allocation156_spill] sm:$0xff] %v13927_v43  ;;  %v3255_v16 = vpop.f32.mrf.mxu1  ;;  %v10708_v63 = vpop.eup %10707  ;;  %v4061_v37 = vadd.f32 1.0, %v10702_v55  ;;  %v18248_v43 = vld [vmem:[#allocation117_spill] sm:$0xff]  ;;  %v13949_v61 = vadd.f32 %v13447_v41, %v18071_v18  ;;  %10735 = vpow2.f32 %v9160_v6  ;;  %v9163_v4 = vmul.f32 -1.442695, %v13508_v24 }
 0x34a   :  { %v13938_v34 = vmul.f32 %v13790_v26, %v4418_v60  ;;  %v13941_v20 = vadd.f32 %v3255_v16, %v13803_v45  ;;  %v10710_v13 = vpop.eup %10709  ;;  %v13945_v39 = vadd.f32 %v18248_v43, %v18247_v46  ;;  %v13952_v55 = vpop.f32.mrf.mxu0  ;;  %10737 = vrcp.f32 %v4058_v2  ;;  %v18251_v45 = vld [vmem:[#allocation8_spill] sm:$0xff]  ;;  %v18253_v41 = vld [vmem:[#allocation191_spill] sm:$0xff] }
 0x34b   :  { %18250 = vst [vmem:[#allocation190_spill] sm:$0xff] %v13949_v61  ;;  %v3257_v5 = vpop.f32.mrf.mxu1  ;;  %v13954_v26 = vpop.eup %10711  ;;  %v13958_v60 = vadd.f32 %v18251_v45, %v13701_v23  ;;  %v9166_v43 = vmul.f32 -1.442695, %v13525_v50  ;;  %10739 = vrcp.f32 %v4059_v29  ;;  %v4062_v18 = vadd.f32 1.0, %v10708_v63  ;;  %v18254_v6 = vld [vmem:[#allocation120_spill] sm:$0xff]  ;;  %v18258_v63 = vld [vmem:[#allocation89_spill] sm:$0xff] }
 0x34c   :  { %18245 = vst [vmem:[#allocation157_spill] sm:$0xff] %v13938_v34  ;;  %18246 = vst [vmem:[#allocation116_spill] sm:$0xff] %v13941_v20  ;;  %v3258_v16 = vadd.f32 %v3257_v5, %v13816_v42  ;;  %v13962_v46 = vpop.eup %10713  ;;  %v13966_v24 = vadd.f32 %v18253_v41, %v13682_v32  ;;  %v13970_v34 = vadd.f32 %v18254_v6, %v13701_v23  ;;  %10741 = vrcp.f32 %v4061_v37  ;;  %v13986_v6 = vpop.f32.mrf.mxu0 }
 0x34d   :  { %18249 = vst [vmem:[#allocation188_spill] sm:$0xff] %v13945_v39  ;;  %18252 = vst [vmem:[#allocation11_spill] sm:$0xff] %v13962_v46  ;;  %v3259_v2 = vpop.f32.mrf.mxu1  ;;  %v10716_v20 = vpop.eup %10715  ;;  %v3970_v45 = vadd.f32 1.0, %v10710_v13  ;;  %v13979_v29 = vpack.c.bf16 %v13949_v61, %v13945_v39  ;;  %v13983_v5 = vadd.f32 %v18258_v63, %v13682_v32  ;;  %10743 = vpow2.f32 %v9163_v4  ;;  %v18264_v39 = vld [vmem:[#allocation72_spill] sm:$0xff] }
 0x34e   :  { %v4328_v38 = vmax.f32 %v3258_v16, 0.0  ;;  %v13973_v50 = vadd.f32 %v3259_v2, %v13820_v54  ;;  %v13975_v42 = vpop.eup %10717  ;;  %v9169_v41 = vmul.f32 -1.442695, %v13547_v52  ;;  %v18261_v54 = vld [vmem:[#allocation16_spill] sm:$0xff]  ;;  %10745 = vpow2.f32 %v9166_v43 }
 0x34f   :  { %18256 = vst [vmem:[#allocation8_spill] sm:$0xff] %v13975_v42  ;;  %18257 = vst [vmem:[#allocation191_spill] sm:$0xff] %v13979_v29  ;;  %v13988_v37 = vpop.f32.mrf.mxu1  ;;  %v13990_v13 = vpop.eup %10719  ;;  %v18262_v16 = vld [vmem:[#allocation160_spill] sm:$0xff]  ;;  %v9172_v61 = vmul.f32 -1.442695, %v13562_v31  ;;  %10747 = vrcp.f32 %v4062_v18  ;;  %v3973_v4 = vadd.f32 1.0, %v10716_v20  ;;  %v3182_v31 = vadd.f32 %v13569_v22, %v13696_v58 }
 0x350   :  { %18255 = vst [vmem:[#allocation117_spill] sm:$0xff] %v13973_v50  ;;  %18259 = vst [vmem:[#allocation120_spill] sm:$0xff] %v13988_v37  ;;  %v13994_v2 = vadd.f32 %v18262_v16, %v18261_v54  ;;  %v4424_v46 = vsub.f32 %v4328_v38, %v18264_v39  ;;  %v10722_v63 = vpop.eup %10721  ;;  %v18265_v42 = vld [vmem:[#allocation13_spill] sm:$0xff]  ;;  %v18266_v52 = vld [vmem:[#allocation140_spill] sm:$0xff]  ;;  %v14004_v37 = vadd.f32 %v13512_v27, %v13701_v23  ;;  %10749 = vrcp.f32 %v3970_v45  ;;  %v14027_v22 = vpop.f32.mrf.mxu0 }
 0x351   :  { %18260 = vst [vmem:[#allocation89_spill] sm:$0xff] %v13990_v13  ;;  %v14000_v50 = vadd.f32 %v18266_v52, %v18265_v42  ;;  %v3265_v13 = vpop.f32.mrf.mxu1  ;;  %v14006_v17 = vpop.eup %10723  ;;  %v14020_v18 = vadd.f32 %v13531_v49, %v13682_v32  ;;  %v14024_v27 = vadd.f32 %v13552_v12, %v13701_v23  ;;  %10751 = vpow2.f32 %v9169_v41  ;;  %v18273_v54 = vld [vmem:[#allocation22_spill] sm:$0xff]  ;;  %v18277_v52 = vld [vmem:[#allocation19_spill] sm:$0xff]  ;;  %v18306_v39 = vld [vmem:[#allocation33_spill] sm:$0xff] }
 0x352   :  { %18263 = vst [vmem:[#allocation16_spill] sm:$0xff] %v13994_v2  ;;  %v14011_v38 = vmul.f32 %v13876_v35, %v4424_v46  ;;  %v14014_v20 = vadd.f32 %v3265_v13, %v13830_v48  ;;  %v14016_v43 = vpop.eup %10725  ;;  %v9175_v45 = vmul.f32 -1.442695, %v13583_v7  ;;  %v3976_v46 = vadd.f32 1.0, %v10722_v63 }
 0x353   :  { %18267 = vst [vmem:[#allocation160_spill] sm:$0xff] %v14000_v50  ;;  %18270 = vst [vmem:[#allocation198_spill] sm:$0xff] %v14016_v43  ;;  %v3267_v58 = vpop.f32.mrf.mxu1  ;;  %v10728_v35 = vpop.eup %10727  ;;  %10753 = vpow2.f32 %v9172_v61  ;;  %v3192_v48 = vadd.f32 %v13600_v19, %v13711_v9  ;;  %v14036_v12 = vadd.f32 %v13567_v15, %v13682_v32  ;;  %v9178_v7 = vmul.f32 -1.442695, %v13596_v28  ;;  %v18274_v19 = vld [vmem:[#allocation162_spill] sm:$0xff] }
 0x354   :  { %18268 = vst [vmem:[#allocation13_spill] sm:$0xff] %v14011_v38  ;;  %18269 = vst [vmem:[#allocation140_spill] sm:$0xff] %v14014_v20  ;;  %v3268_v42 = vadd.f32 %v3267_v58, %v13836_v44  ;;  %v14032_v49 = vpop.eup %10729  ;;  %10755 = vrcp.f32 %v3973_v4  ;;  %v14041_v13 = vpack.c.bf16 %v14000_v50, %v13994_v2  ;;  %v14047_v9 = vadd.f32 %v18274_v19, %v18273_v54  ;;  %v14060_v50 = vpop.f32.mrf.mxu0  ;;  %v18281_v19 = vld [vmem:[#allocation172_spill] sm:$0xff]  ;;  %v18313_v20 = vld [vmem:[#allocation81_spill] sm:$0xff] }
 0x355   :  { %18271 = vst [vmem:[#allocation199_spill] sm:$0xff] %v14032_v49  ;;  %v3269_v41 = vpop.f32.mrf.mxu1  ;;  %v14043_v61 = vpop.eup %10731  ;;  %v4283_v44 = vmax.f32 %v3182_v31, 0.0  ;;  %v3979_v4 = vadd.f32 1.0, %v10728_v35  ;;  %v14054_v28 = vadd.f32 %v13534_v21, %v18277_v52  ;;  %v14058_v58 = vadd.f32 %v13589_v62, %v13701_v23 }
 0x356   :  { %18272 = vst [vmem:[#allocation200_spill] sm:$0xff] %v14043_v61  ;;  %18275 = vst [vmem:[#allocation22_spill] sm:$0xff] %v14047_v9  ;;  %v4334_v16 = vmax.f32 %v3268_v42, 0.0  ;;  %v14050_v63 = vadd.f32 %v3269_v41, %v13841_v47  ;;  %v10734_v15 = vpop.eup %10733  ;;  %10757 = vpow2.f32 %v9175_v45  ;;  %v14066_v47 = vadd.f32 %v13598_v0, %v13682_v32  ;;  %v18280_v42 = vld [vmem:[#allocation77_spill] sm:$0xff]  ;;  %v18283_v61 = vld [vmem:[#allocation30_spill] sm:$0xff] }
 0x357   :  { %18278 = vst [vmem:[#allocation19_spill] sm:$0xff] %v14054_v28  ;;  %v14062_v54 = vpop.f32.mrf.mxu1  ;;  %v10736_v31 = vpop.eup %10735  ;;  %10759 = vrcp.f32 %v3976_v46  ;;  %v4289_v35 = vmax.f32 %v3192_v48, 0.0  ;;  %v14073_v62 = vadd.f32 %v13618_v36, %v13701_v23  ;;  %v9181_v45 = vmul.f32 -1.442695, %v13612_v25  ;;  %v18287_v25 = vld [vmem:[#allocation170_spill] sm:$0xff] }
 0x358   :  { %18276 = vst [vmem:[#allocation162_spill] sm:$0xff] %v14050_v63  ;;  %18279 = vst [vmem:[#allocation201_spill] sm:$0xff] %v14062_v54  ;;  %v4430_v41 = vsub.f32 %v4334_v16, %v18280_v42  ;;  %v14069_v21 = vpop.eup %10737  ;;  %10761 = vpow2.f32 %v9178_v7  ;;  %v3202_v52 = vadd.f32 %v18281_v19, %v13715_v56  ;;  %v3982_v0 = vadd.f32 1.0, %v10734_v15  ;;  %v14093_v56 = vpop.f32.mrf.mxu0  ;;  %v18289_v15 = vld [vmem:[#allocation27_spill] sm:$0xff]  ;;  %v18297_v54 = vld [vmem:[#allocation169_spill] sm:$0xff] }
 0x359   :  { %v3275_v46 = vpop.f32.mrf.mxu1  ;;  %v14078_v2 = vpop.eup %10739  ;;  %v4379_v48 = vsub.f32 %v4283_v44, %v18283_v61  ;;  %10763 = vrcp.f32 %v3979_v4  ;;  %v3985_v7 = vadd.f32 1.0, %v10736_v31  ;;  %v14091_v49 = vadd.f32 %v18287_v25, %v13682_v32  ;;  %v18295_v31 = vld [vmem:[#allocation136_spill] sm:$0xff] }
 0x35a   :  { %18282 = vst [vmem:[#allocation172_spill] sm:$0xff] %v14078_v2  ;;  %v14082_v16 = vmul.f32 %v13954_v26, %v4430_v41  ;;  %v14085_v43 = vadd.f32 %v3275_v46, %v13857_v3  ;;  %v14087_v36 = vpop.eup %10741  ;;  %v14097_v44 = vpack.c.bf16 %v14054_v28, %v14047_v9  ;;  %v18290_v41 = vld [vmem:[#allocation142_spill] sm:$0xff]  ;;  %v18292_v46 = vld [vmem:[#allocation24_spill] sm:$0xff]  ;;  %v14109_v25 = vadd.f32 %v18295_v31, %v13701_v23 }
 0x35b   :  { %18286 = vst [vmem:[#allocation203_spill] sm:$0xff] %v14087_v36  ;;  %v3277_v19 = vpop.f32.mrf.mxu1  ;;  %v10744_v26 = vpop.eup %10743  ;;  %v14101_v3 = vadd.f32 %v18290_v41, %v18289_v15  ;;  %v18293_v2 = vld [vmem:[#allocation164_spill] sm:$0xff]  ;;  %v18296_v36 = vld [vmem:[#allocation35_spill] sm:$0xff]  ;;  %10765 = vpow2.f32 %v9181_v45  ;;  %v9184_v28 = vmul.f32 -1.442695, %v18297_v54  ;;  %v4295_v9 = vmax.f32 %v3202_v52, 0.0 }
 0x35c   :  { %18284 = vst [vmem:[#allocation30_spill] sm:$0xff] %v14082_v16  ;;  %18285 = vst [vmem:[#allocation202_spill] sm:$0xff] %v14085_v43  ;;  %v14105_v4 = vadd.f32 %v18293_v2, %v18292_v46  ;;  %v4385_v16 = vsub.f32 %v4289_v35, %v18296_v36  ;;  %v10746_v42 = vpop.eup %10745  ;;  %v3278_v43 = vadd.f32 %v3277_v19, %v13861_v1  ;;  %10767 = vrcp.f32 %v3982_v0  ;;  %v18299_v2 = vld [vmem:[#allocation193_spill] sm:$0xff]  ;;  %v18301_v46 = vld [vmem:[#allocation12_spill] sm:$0xff]  ;;  %v14130_v52 = vpop.f32.mrf.mxu0 }
 0x35d   :  { %18288 = vst [vmem:[#allocation170_spill] sm:$0xff] %v14097_v44  ;;  %18291 = vst [vmem:[#allocation27_spill] sm:$0xff] %v14101_v3  ;;  %v3279_v63 = vpop.f32.mrf.mxu1  ;;  %v14114_v15 = vpop.eup %10747  ;;  %v14118_v41 = vadd.f32 %v18299_v2, %v13682_v32  ;;  %v4475_v31 = vmul.f32 %v18301_v46, %v4379_v48  ;;  %10769 = vrcp.f32 %v3985_v7  ;;  %v3988_v54 = vadd.f32 1.0, %v10744_v26  ;;  %v18303_v45 = vld [vmem:[#allocation167_spill] sm:$0xff]  ;;  %v18307_v48 = vld [vmem:[#allocation165_spill] sm:$0xff] }
 0x35e   :  { %18294 = vst [vmem:[#allocation142_spill] sm:$0xff] %v14105_v4  ;;  %18298 = vst [vmem:[#allocation24_spill] sm:$0xff] %v14114_v15  ;;  %v14122_v38 = vadd.f32 %v3279_v63, %v13866_v11  ;;  %v14124_v35 = vpop.eup %10749  ;;  %v14128_v1 = vadd.f32 %v18303_v45, %v13701_v23  ;;  %v4340_v0 = vmax.f32 %v3278_v43, 0.0  ;;  %v3991_v15 = vadd.f32 1.0, %v10746_v42  ;;  %v18309_v11 = vld [vmem:[#allocation177_spill] sm:$0xff]  ;;  %v18311_v45 = vld [vmem:[#allocation123_spill] sm:$0xff] }
 0x35f   :  { %18300 = vst [vmem:[#allocation164_spill] sm:$0xff] %v14118_v41  ;;  %v14132_v19 = vpop.f32.mrf.mxu1  ;;  %v10752_v2 = vpop.eup %10751  ;;  %v14136_v46 = vadd.f32 %v18307_v48, %v18306_v39  ;;  %v14140_v63 = vadd.f32 %v18309_v11, %v13682_v32  ;;  %v14144_v7 = vpack.c.bf16 %v14105_v4, %v14101_v3  ;;  %10771 = vpow2.f32 %v9184_v28  ;;  %v18312_v43 = vld [vmem:[#allocation41_spill] sm:$0xff]  ;;  %v18316_v4 = vld [vmem:[#allocation147_spill] sm:$0xff]  ;;  %v18317_v3 = vld [vmem:[#allocation194_spill] sm:$0xff] }
 0x360   :  { %18302 = vst [vmem:[#allocation136_spill] sm:$0xff] %v14122_v38  ;;  %18304 = vst [vmem:[#allocation35_spill] sm:$0xff] %v14128_v1  ;;  %v10754_v26 = vpop.eup %10753  ;;  %v4481_v38 = vmul.f32 %v18311_v45, %v4385_v16  ;;  %v4436_v42 = vsub.f32 %v4340_v0, %v18313_v20  ;;  %v14152_v39 = vadd.f32 %v4475_v31, %v18283_v61  ;;  %v18315_v48 = vld [vmem:[#allocation153_spill] sm:$0xff]  ;;  %10773 = vrcp.f32 %v3988_v54  ;;  %v18319_v28 = vld [vmem:[#allocation179_spill] sm:$0xff]  ;;  %v14167_v45 = vpop.f32.mrf.mxu0 }
 0x361   :  { %18305 = vst [vmem:[#allocation169_spill] sm:$0xff] %v14132_v19  ;;  %18308 = vst [vmem:[#allocation193_spill] sm:$0xff] %v14136_v46  ;;  %v4391_v19 = vsub.f32 %v4295_v9, %v18312_v43  ;;  %v3285_v1 = vpop.f32.mrf.mxu1  ;;  %v14149_v41 = vpop.eup %10755  ;;  %v14156_v11 = vadd.f32 %v18315_v48, %v13701_v23  ;;  %v3994_v9 = vadd.f32 1.0, %v10752_v2  ;;  %v14165_v0 = vadd.f32 %v18319_v28, %v13682_v32  ;;  %v18325_v2 = vld [vmem:[#allocation104_spill] sm:$0xff] }
 0x362   :  { %18310 = vst [vmem:[#allocation12_spill] sm:$0xff] %v14144_v7  ;;  %18314 = vst [vmem:[#allocation167_spill] sm:$0xff] %v14152_v39  ;;  %v3212_v7 = vadd.f32 %v18317_v3, %v18316_v4  ;;  %v14161_v16 = vadd.f32 %v3285_v1, %v13880_v57  ;;  %v14170_v61 = vmul.f32 %v14006_v17, %v4436_v42  ;;  %10775 = vrcp.f32 %v3991_v15  ;;  %v18322_v3 = vld [vmem:[#allocation101_spill] sm:$0xff] }
 0x363   :  { %18320 = vst [vmem:[#allocation165_spill] sm:$0xff] %v14165_v0  ;;  %v3287_v31 = vpop.f32.mrf.mxu1  ;;  %v10758_v48 = vpop.eup %10757  ;;  %v3997_v20 = vadd.f32 1.0, %v10754_v26  ;;  %v14174_v4 = vadd.f32 %v18322_v3, %v13701_v23  ;;  %v14180_v1 = vadd.f32 %v4481_v38, %v18296_v36  ;;  %v14184_v28 = vadd.f32 %v18325_v2, %v13682_v32  ;;  %v18326_v17 = vld [vmem:[#allocation73_spill] sm:$0xff]  ;;  %v18330_v36 = vld [vmem:[#allocation38_spill] sm:$0xff] }
 0x364   :  { %18318 = vst [vmem:[#allocation33_spill] sm:$0xff] %v14161_v16  ;;  %18321 = vst [vmem:[#allocation177_spill] sm:$0xff] %v14170_v61  ;;  %v3288_v57 = vadd.f32 %v3287_v31, %v13892_v8  ;;  %v14177_v54 = vpop.eup %10759  ;;  %v4487_v42 = vmul.f32 %v18326_v17, %v4391_v19  ;;  %v18327_v61 = vld [vmem:[#allocation173_spill] sm:$0xff]  ;;  %v4301_v0 = vmax.f32 %v3212_v7, 0.0  ;;  %v14193_v8 = vpack.c.bf16 %v14152_v39, %v14136_v46  ;;  %v18331_v31 = vld [vmem:[#allocation166_spill] sm:$0xff] }
 0x365   :  { %18323 = vst [vmem:[#allocation123_spill] sm:$0xff] %v14174_v4  ;;  %18324 = vst [vmem:[#allocation41_spill] sm:$0xff] %v14180_v1  ;;  %v9187_v15 = vmul.f32 -1.442695, %v18327_v61  ;;  %v3289_v26 = vpop.f32.mrf.mxu1  ;;  %v10762_v16 = vpop.eup %10761  ;;  %10777 = vrcp.f32 %v3994_v9  ;;  %v4000_v38 = vadd.f32 1.0, %v10758_v48  ;;  %v14197_v2 = vadd.f32 %v18331_v31, %v18330_v36  ;;  %v18335_v48 = vld [vmem:[#allocation85_spill] sm:$0xff] }
 0x366   :  { %v4346_v3 = vmax.f32 %v3288_v57, 0.0  ;;  %v14189_v4 = vadd.f32 %v3289_v26, %v13897_v59  ;;  %18329 = vst [vmem:[#allocation147_spill] sm:$0xff] %v14193_v8  ;;  %v14201_v19 = vadd.f32 %v13883_v53, %v13701_v23  ;;  %v3412_v61 = vpop.f32.mrf.mxu0  ;;  %v14205_v57 = vpop.eup %10763  ;;  %10779 = vrcp.f32 %v3997_v20  ;;  %v18338_v39 = vld [vmem:[#allocation86_spill] sm:$0xff] }
 0x367   :  { %18332 = vst [vmem:[#allocation194_spill] sm:$0xff] %v14197_v2  ;;  %v14203_v7 = vpop.f32.mrf.mxu1  ;;  %v14209_v59 = vadd.f32 %v13916_v51, %v13682_v32  ;;  %v14213_v9 = vadd.f32 %v13952_v55, %v13701_v23  ;;  %v4003_v26 = vadd.f32 1.0, %v10762_v16  ;;  %v14217_v53 = vadd.f32 %v4487_v42, %v18312_v43  ;;  %v18339_v46 = vld [vmem:[#allocation46_spill] sm:$0xff]  ;;  %v18341_v43 = vld [vmem:[#allocation44_spill] sm:$0xff] }
 0x368   :  { %18328 = vst [vmem:[#allocation153_spill] sm:$0xff] %v14189_v4  ;;  %18333 = vst [vmem:[#allocation179_spill] sm:$0xff] %v14203_v7  ;;  %v4442_v17 = vsub.f32 %v4346_v3, %v18335_v48  ;;  %10781 = vpow2.f32 %v9187_v15  ;;  %v14221_v31 = vpack.c.bf16 %v14180_v1, %v14197_v2  ;;  %v10766_v20 = vpop.eup %10765  ;;  %v9190_v51 = vmul.f32 -1.442695, %v18338_v39  ;;  %v18342_v42 = vld [vmem:[#allocation138_spill] sm:$0xff] }
 0x369   :  { %18334 = vst [vmem:[#allocation101_spill] sm:$0xff] %v14213_v9  ;;  %18336 = vst [vmem:[#allocation104_spill] sm:$0xff] %v14217_v53  ;;  %v3521_v36 = vpop.f32.mrf.mxu1  ;;  %v4397_v7 = vsub.f32 %v4301_v0, %v18339_v46  ;;  %v14229_v16 = vpop.eup %10767  ;;  %10783 = vrcp.f32 %v4000_v38  ;;  %v14233_v15 = vadd.f32 %v18342_v42, %v18341_v43  ;;  %v14237_v1 = vadd.f32 %v13986_v6, %v13682_v32  ;;  %v18347_v38 = vld [vmem:[#allocation175_spill] sm:$0xff] }
 0x36a   :  { %18337 = vst [vmem:[#allocation73_spill] sm:$0xff] %v14221_v31  ;;  %v14226_v55 = vmul.f32 %v14069_v21, %v4442_v17  ;;  %v3522_v3 = vadd.f32 %v3521_v36, %v13909_v10  ;;  %v14241_v39 = vadd.f32 %v14027_v22, %v13701_v23  ;;  %v3414_v0 = vpop.f32.mrf.mxu0  ;;  %v14243_v17 = vpop.eup %10769  ;;  %v14247_v10 = vadd.f32 %v14060_v50, %v13682_v32  ;;  %v18350_v50 = vld [vmem:[#allocation129_spill] sm:$0xff] }
 0x36b   :  { %18343 = vst [vmem:[#allocation38_spill] sm:$0xff] %v14233_v15  ;;  %18344 = vst [vmem:[#allocation166_spill] sm:$0xff] %v14237_v1  ;;  %v3523_v21 = vpop.f32.mrf.mxu1  ;;  %v9193_v36 = vmul.f32 -1.442695, %v18347_v38  ;;  %10785 = vrcp.f32 %v4003_v26  ;;  %v4006_v6 = vadd.f32 1.0, %v10766_v20  ;;  %v14253_v2 = vadd.f32 %v14093_v56, %v13701_v23  ;;  %v18352_v26 = vld [vmem:[#allocation137_spill] sm:$0xff] }
 0x36c   :  { %18340 = vst [vmem:[#allocation173_spill] sm:$0xff] %v14226_v55  ;;  %18345 = vst [vmem:[#allocation86_spill] sm:$0xff] %v14241_v39  ;;  %v4257_v43 = vmax.f32 %v3522_v3, 0.0  ;;  %v3524_v42 = vadd.f32 %v3523_v21, %v13913_v33  ;;  %v14257_v55 = vpack.c.bf16 %v14217_v53, %v14233_v15  ;;  %v10772_v48 = vpop.eup %10771  ;;  %10787 = vpow2.f32 %v9190_v51  ;;  %v18353_v56 = vld [vmem:[#allocation141_spill] sm:$0xff]  ;;  %v18366_v1 = vld [vmem:[#allocation88_spill] sm:$0xff] }
 0x36d   :  { %18346 = vst [vmem:[#allocation46_spill] sm:$0xff] %v14247_v10  ;;  %18348 = vst [vmem:[#allocation44_spill] sm:$0xff] %v14253_v2  ;;  %v3525_v22 = vpop.f32.mrf.mxu1  ;;  %v4493_v4 = vmul.f32 %v18350_v50, %v4397_v7  ;;  %v14263_v33 = vadd.f32 %v14130_v52, %v13682_v32  ;;  %v9196_v20 = vmul.f32 -1.442695, %v18352_v26  ;;  %v18354_v21 = vld [vmem:[#allocation197_spill] sm:$0xff]  ;;  %v3418_v2 = vpop.f32.mrf.mxu0  ;;  %10789 = vpow2.f32 %v9193_v36  ;;  %v18356_v7 = vld [vmem:[#allocation87_spill] sm:$0xff] }
 0x36e   :  { %18349 = vst [vmem:[#allocation138_spill] sm:$0xff] %v14257_v55  ;;  %v4258_v10 = vmax.f32 %v3524_v42, 0.0  ;;  %v3526_v3 = vadd.f32 %v3525_v22, %v13924_v14  ;;  %v3222_v38 = vadd.f32 %v18354_v21, %v18353_v56  ;;  %v18355_v31 = vld [vmem:[#allocation9_spill] sm:$0xff]  ;;  %v14269_v55 = vpop.eup %10773  ;;  %10791 = vrcp.f32 %v4006_v6  ;;  %v18358_v26 = vld [vmem:[#allocation174_spill] sm:$0xff]  ;;  %v18364_v21 = vld [vmem:[#allocation184_spill] sm:$0xff] }
 0x36f   :  { %18351 = vst [vmem:[#allocation175_spill] sm:$0xff] %v14263_v33  ;;  %v4353_v53 = vsub.f32 %v4257_v43, %v18355_v31  ;;  %v3527_v15 = vpop.f32.mrf.mxu1  ;;  %v14273_v22 = vpop.eup %10775  ;;  %v4009_v52 = vadd.f32 1.0, %v10772_v48  ;;  %v18357_v50 = vld [vmem:[#allocation49_spill] sm:$0xff]  ;;  %v14281_v43 = vadd.f32 %v14167_v45, %v13701_v23  ;;  %v14284_v36 = vadd.f32 %v4493_v4, %v18339_v46  ;;  %v18365_v46 = vld [vmem:[#allocation151_spill] sm:$0xff] }
 0x370   :  { %v4354_v51 = vsub.f32 %v4258_v10, %v18356_v7  ;;  %v4260_v42 = vmax.f32 %v3526_v3, 0.0  ;;  %v3528_v14 = vadd.f32 %v3527_v15, %v13931_v30  ;;  %v14277_v33 = vadd.f32 %v18358_v26, %v18357_v50  ;;  %v18363_v30 = vld [vmem:[#allocation10_spill] sm:$0xff]  ;;  %v3420_v6 = vpop.f32.mrf.mxu0 }
 0x371   :  { %18360 = vst [vmem:[#allocation137_spill] sm:$0xff] %v14281_v43  ;;  %v3531_v56 = vpop.f32.mrf.mxu1  ;;  %18361 = vst [vmem:[#allocation141_spill] sm:$0xff] %v14284_v36  ;;  %v14287_v10 = vadd.f32 %v3412_v61, %v13682_v32  ;;  %10793 = vpow2.f32 %v9196_v20  ;;  %v4307_v48 = vmax.f32 %v3222_v38, 0.0  ;;  %v4449_v50 = vmul.f32 %v18364_v21, %v4353_v53 }
 0x372   :  { %18359 = vst [vmem:[#allocation129_spill] sm:$0xff] %v14277_v33  ;;  %v4356_v15 = vsub.f32 %v4260_v42, %v18363_v30  ;;  %v4261_v3 = vmax.f32 %v3528_v14, 0.0  ;;  %v3532_v26 = vadd.f32 %v3531_v56, %v13935_v40  ;;  %v14292_v45 = vpop.eup %10777  ;;  %v4450_v43 = vmul.f32 %v14124_v35, %v4354_v51 }
 0x373   :  { %18362 = vst [vmem:[#allocation197_spill] sm:$0xff] %v14287_v10  ;;  %v3533_v39 = vpop.f32.mrf.mxu1  ;;  %v14298_v42 = vpop.eup %10779  ;;  %10795 = vrcp.f32 %v4009_v52  ;;  %v14301_v20 = vadd.f32 %v3414_v0, %v13701_v23  ;;  %v14304_v53 = vadd.f32 %v3418_v2, %v13682_v32  ;;  %v18371_v52 = vld [vmem:[#allocation143_spill] sm:$0xff]  ;;  %v14314_v21 = vadd.f32 %v4449_v50, %v18355_v31  ;;  %v18373_v2 = vld [vmem:[#allocation14_spill] sm:$0xff] }
 0x374   :  { %v4452_v4 = vmul.f32 %v18365_v46, %v4356_v15  ;;  %v4357_v61 = vsub.f32 %v4261_v3, %v18366_v1  ;;  %v3534_v10 = vadd.f32 %v3533_v39, %v13958_v60  ;;  %v4263_v40 = vmax.f32 %v3532_v26, 0.0  ;;  %v18370_v39 = vld [vmem:[#allocation50_spill] sm:$0xff]  ;;  %v3422_v0 = vpop.f32.mrf.mxu0 }
 0x375   :  { %18367 = vst [vmem:[#allocation9_spill] sm:$0xff] %v14301_v20  ;;  %18368 = vst [vmem:[#allocation87_spill] sm:$0xff] %v14304_v53  ;;  %v3535_v38 = vpop.f32.mrf.mxu1  ;;  %v10782_v14 = vpop.eup %10781  ;;  %v4403_v15 = vsub.f32 %v4307_v48, %v18370_v39  ;;  %v9199_v3 = vmul.f32 -1.442695, %v18371_v52  ;;  %v10297_v50 = vld [vmem:[#allocation4 + $0x158] ss:$24 sps:$4 sm:$0xff]  }
 0x376   :  { %v14307_v35 = vadd.f32 %v4452_v4, %v18363_v30  ;;  %v4453_v51 = vmul.f32 %v14149_v41, %v4357_v61  ;;  %v4264_v56 = vmax.f32 %v3534_v10, 0.0  ;;  %v3536_v60 = vadd.f32 %v3535_v38, %v13966_v24  ;;  %18372 = vst [vmem:[#allocation174_spill] sm:$0xff] %v14314_v21  ;;  %v14317_v53 = vpop.eup %10783  ;;  %v18376_v4 = vld [vmem:[#allocation91_spill] sm:$0xff]  ;;  %v10302_v52 = vld [vmem:[#allocation4 + $0x12c] ss:$24 sps:$4 sm:$0xff]  }
 0x377   :  { %v4359_v26 = vsub.f32 %v4263_v40, %v18373_v2  ;;  %v3537_v46 = vpop.f32.mrf.mxu1  ;;  %v14320_v30 = vadd.f32 %v4450_v43, %v18356_v7  ;;  %v4012_v48 = vadd.f32 1.0, %v10782_v14  ;;  %v14333_v40 = vpack.c.bf16 %v14284_v36, %v14277_v33  ;;  %v18381_v43 = vld [vmem:[#allocation150_spill] sm:$0xff]  ;;  %v18384_v14 = vld [vmem:[#allocation15_spill] sm:$0xff]  ;;  %v3424_v33 = vpop.f32.mrf.mxu0 }
 0x378   :  { %18369 = vst [vmem:[#allocation49_spill] sm:$0xff] %v14307_v35  ;;  %v14323_v41 = vadd.f32 %v4453_v51, %v18366_v1  ;;  %v4266_v24 = vmax.f32 %v3536_v60, 0.0  ;;  %v3538_v10 = vadd.f32 %v3537_v46, %v13970_v34  ;;  %v4360_v61 = vsub.f32 %v4264_v56, %v18376_v4  ;;  %v14335_v7 = vpop.eup %10785  ;;  %v18380_v1 = vld [vmem:[#allocation53_spill] sm:$0xff] }
 0x379   :  { %18374 = vst [vmem:[#allocation10_spill] sm:$0xff] %v14320_v30  ;;  %v3541_v38 = vpop.f32.mrf.mxu1  ;;  %v14329_v31 = vpack.c.bf16 %v14307_v35, %v14314_v21  ;;  %18378 = vst [vmem:[#allocation88_spill] sm:$0xff] %v14333_v40  ;;  %v14339_v51 = vadd.f32 %v18381_v43, %v18380_v1  ;;  %v10788_v46 = vpop.eup %10787  ;;  %v18385_v35 = vld [vmem:[#allocation139_spill] sm:$0xff]  ;;  %v14348_v36 = vadd.f32 %v3420_v6, %v13701_v23  ;;  %10797 = vpow2.f32 %v9199_v3  ;;  %v10323_v6 = vld [vmem:[#allocation4 + $0x42c] ss:$24 sps:$4 sm:$0xff]  }
 0x37a   :  { %18375 = vst [vmem:[#allocation184_spill] sm:$0xff] %v14323_v41  ;;  %18379 = vst [vmem:[#allocation50_spill] sm:$0xff] %v14335_v7  ;;  %v14343_v34 = vpack.c.bf16 %v14323_v41, %v14320_v30  ;;  %v4362_v56 = vsub.f32 %v4266_v24, %v18384_v14  ;;  %v4267_v60 = vmax.f32 %v3538_v10, 0.0  ;;  %v4499_v21 = vmul.f32 %v18385_v35, %v4403_v15  ;;  %v18386_v40 = vld [vmem:[#allocation187_spill] sm:$0xff]  ;;  %v18387_v30 = vld [vmem:[#allocation189_spill] sm:$0xff]  ;;  %v14357_v35 = vpop.eup %10789 }
 0x37b   :  { %18377 = vst [vmem:[#allocation151_spill] sm:$0xff] %v14329_v31  ;;  %18382 = vst [vmem:[#allocation143_spill] sm:$0xff] %v14339_v51  ;;  %v4455_v20 = vmul.f32 %v18386_v40, %v4359_v26  ;;  %v3542_v1 = vadd.f32 %v3541_v38, %v13983_v5  ;;  %5616 = vmatprep.mubr.bf16.mxu0 %v14329_v31  ;;  %v3543_v43 = vpop.f32.mrf.mxu1  ;;  %v10312_v41 = vld [vmem:[#allocation4 + $0x458] ss:$24 sps:$4 sm:$0xff]   ;;  %10799 = vrcp.f32 %v4012_v48  ;;  %v18389_v15 = vld [vmem:[#allocation144_spill] sm:$0xff] }
 0x37c   :  { %18383 = vst [vmem:[#allocation14_spill] sm:$0xff] %v14343_v34  ;;  %v4458_v24 = vmul.f32 %v18387_v30, %v4362_v56  ;;  %v18388_v10 = vld [vmem:[#allocation90_spill] sm:$0xff]  ;;  %v3544_v7 = vadd.f32 %v3543_v43, %v14004_v37  ;;  %5617 = vmatmul.mubr.bf16.vlgmr.msra.gmra.mxu0 %v13979_v29  ;;  %v18390_v26 = vld [vmem:[#allocation180_spill] sm:$0xff]  ;;  %v4456_v38 = vmul.f32 %v14177_v54, %v4360_v61  ;;  %v14363_v56 = vpop.eup %10791  ;;  %v18392_v29 = vmov 0  }
 0x37d   :  { %v4363_v9 = vsub.f32 %v4267_v60, %v18388_v10  ;;  %v3232_v5 = vadd.f32 %v18390_v26, %v18389_v15  ;;  %v4269_v40 = vmax.f32 %v3542_v1, 0.0  ;;  %5810 = vmatmul.mubr.bf16.vlgmr.msra.gmra.mxu1 %v14343_v34  ;;  %v3545_v3 = vpop.f32.mrf.mxu1  ;;  %5971 = vmatpush1.bf16.msra.mxu0 %v10297_v50  ;;  %v10300_v30 = vld [vmem:[#allocation4 + $0x128] ss:$24 sps:$4 sm:$0xff]   ;;  %v10305_v54 = vld [vmem:[#allocation4 + $0xfc] ss:$24 sps:$4 sm:$0xff]   ;;  %v14373_v15 = vadd.f32 %v3422_v0, %v13682_v32  ;;  %v3428_v50 = vpop.f32.mrf.mxu0 }
 0x37e   :  { %v14366_v37 = vadd.f32 %v4458_v24, %v18384_v14  ;;  %v4270_v43 = vmax.f32 %v3544_v7, 0.0  ;;  %v3546_v48 = vadd.f32 %v3545_v3, %v14020_v18  ;;  %5819 = vmatprep.mubr.bf16.mxu1 %v18392_v29  ;;  %5972 = vmatprep.subr.bf16.mxu0 %v10302_v52  ;;  %v18393_v61 = vld [vmem:[#allocation110_spill] sm:$0xff]  ;;  %v14376_v26 = vadd.f32 %v4455_v20, %v18373_v2  ;;  %v18395_v14 = vld [vmem:[#allocation20_spill] sm:$0xff]  ;;  %v18398_v2 = vld [vmem:[#allocation93_spill] sm:$0xff] }
 0x37f   :  { %v4459_v60 = vmul.f32 %v14205_v57, %v4363_v9  ;;  %v9202_v1 = vmul.f32 -1.442695, %v18393_v61  ;;  %v4365_v24 = vsub.f32 %v4269_v40, %v18395_v14  ;;  %v3547_v34 = vpop.f32.mrf.mxu1  ;;  %6164 = vmatpush1.bf16.msra.mxu1 %v10312_v41  ;;  %v10321_v57 = vld [vmem:[#allocation4 + $0x428] ss:$24 sps:$4 sm:$0xff]   ;;  %v14379_v9 = vpop.eup %10793  ;;  %v4015_v18 = vadd.f32 1.0, %v10788_v46 }
 0x380   :  { %18391 = vst [vmem:[#allocation91_spill] sm:$0xff] %v14366_v37  ;;  %18394 = vst [vmem:[#allocation53_spill] sm:$0xff] %v14376_v26  ;;  %v4272_v52 = vmax.f32 %v3546_v48, 0.0  ;;  %v3548_v3 = vadd.f32 %v3547_v34, %v14024_v27  ;;  %6165 = vmatprep.subr.bf16.mxu1 %v10323_v6  ;;  %v10332_v0 = vld [vmem:[#allocation4 + $0x3fc] ss:$24 sps:$4 sm:$0xff]   ;;  %v4313_v61 = vmax.f32 %v3232_v5, 0.0  ;;  %v14386_v20 = vadd.f32 %v4456_v38, %v18376_v4  ;;  %v3430_v38 = vpop.f32.mrf.mxu0 }
 0x381   :  { %v14382_v7 = vadd.f32 %v4459_v60, %v18388_v10  ;;  %v4366_v40 = vsub.f32 %v4270_v43, %v18398_v2  ;;  %v3551_v31 = vpop.f32.mrf.mxu1  ;;  %v14391_v41 = vpack.c.bf16 %v14366_v37, %v14376_v26  ;;  %5973 = vmatpush1.bf16.msra.mxu0 %v10300_v30  ;;  %v10303_v46 = vld [vmem:[#allocation4 + $0xf8] ss:$24 sps:$4 sm:$0xff]   ;;  %v14393_v10 = vpop.eup %10795  ;;  %v14396_v60 = vadd.f32 %v4499_v21, %v18370_v39  ;;  %v18400_v27 = vld [vmem:[#allocation21_spill] sm:$0xff] }
 0x382   :  { %18397 = vst [vmem:[#allocation15_spill] sm:$0xff] %v14386_v20  ;;  %v4368_v34 = vsub.f32 %v4272_v52, %v18400_v27  ;;  %v4273_v6 = vmax.f32 %v3548_v3, 0.0  ;;  %v3552_v4 = vadd.f32 %v3551_v31, %v14036_v12  ;;  %5974 = vmatprep.subr.bf16.mxu0 %v10305_v54  ;;  %10801 = vpow2.f32 %v9202_v1  ;;  %v18401_v43 = vld [vmem:[#allocation159_spill] sm:$0xff]  ;;  %v10308_v21 = vld [vmem:[#allocation4 + $0xcc] ss:$24 sps:$4 sm:$0xff]   ;;  %v18402_v31 = vld [vmem:[#allocation58_spill] sm:$0xff] }
 0x383   :  { %18396 = vst [vmem:[#allocation150_spill] sm:$0xff] %v14382_v7  ;;  %18399 = vst [vmem:[#allocation139_spill] sm:$0xff] %v14396_v60  ;;  %v14401_v5 = vadd.f32 %v3424_v33, %v13701_v23  ;;  %v4461_v48 = vmul.f32 %v18401_v43, %v4365_v24  ;;  %5626 = vmatprep.mubr.bf16.mxu0 %v14391_v41  ;;  %v3553_v30 = vpop.f32.mrf.mxu1  ;;  %v14407_v39 = vpack.c.bf16 %v14382_v7, %v14386_v20  ;;  %v10330_v52 = vld [vmem:[#allocation4 + $0x3f8] ss:$24 sps:$4 sm:$0xff]   ;;  %v10344_v24 = vld [vmem:[#allocation4 + $0x3cc] ss:$24 sps:$4 sm:$0xff]  }
 0x384   :  { %6166 = vmatpush1.bf16.msra.mxu1 %v10321_v57  ;;  %v14410_v12 = vadd.f32 %v3428_v50, %v13682_v32  ;;  %v4464_v54 = vmul.f32 %v18402_v31, %v4368_v34  ;;  %v18403_v33 = vld [vmem:[#allocation94_spill] sm:$0xff]  ;;  %v4275_v3 = vmax.f32 %v3552_v4, 0.0  ;;  %5627 = vmatmul.mubr.bf16.gmra.mxu0 %v14041_v13  ;;  %10803 = vrcp.f32 %v4015_v18  ;;  %v10306_v20 = vld [vmem:[#allocation4 + $0xc8] ss:$24 sps:$4 sm:$0xff]  }
 0x385   :  { %v4369_v1 = vsub.f32 %v4273_v6, %v18403_v33  ;;  %6167 = vmatprep.subr.bf16.mxu1 %v10332_v0  ;;  %v18404_v43 = vld [vmem:[#allocation54_spill] sm:$0xff]  ;;  %v4462_v7 = vmul.f32 %v14229_v16, %v4366_v40  ;;  %v3554_v57 = vadd.f32 %v3553_v30, %v14058_v58  ;;  %5820 = vmatmul.mubr.bf16.gmra.mxu1 %v14407_v39  ;;  %v3555_v50 = vpop.f32.mrf.mxu1  ;;  %v4018_v58 = vadd.f32 1.0, %v14357_v35 }
 0x386   :  { %v4409_v37 = vsub.f32 %v4313_v61, %v18404_v43  ;;  %5975 = vmatpush1.bf16.msra.mxu0 %v10303_v46  ;;  %v14420_v34 = vadd.f32 %v4464_v54, %v18400_v27  ;;  %v3556_v0 = vadd.f32 %v3555_v50, %v14066_v47  ;;  %5829 = vmatprep.mubr.bf16.mxu1 %v18392_v29  ;;  %v10311_v18 = vld [vmem:[#allocation4 + $0x9c] ss:$24 sps:$4 sm:$0xff]   ;;  %v3432_v61 = vpop.f32.mrf.mxu0  ;;  %v18408_v46 = vld [vmem:[#allocation25_spill] sm:$0xff]  ;;  %v14439_v26 = vpop.eup %10797 }
 0x387   :  { %v4465_v6 = vmul.f32 %v14243_v17, %v4369_v1  ;;  %v14427_v16 = vpack.c.bf16 %v14396_v60, %v14339_v51  ;;  %v14431_v40 = vadd.f32 %v4461_v48, %v18395_v14  ;;  %v4371_v27 = vsub.f32 %v4275_v3, %v18408_v46  ;;  %v3557_v30 = vpop.f32.mrf.mxu1  ;;  %5976 = vmatprep.subr.bf16.mxu0 %v10308_v21  ;;  %v10342_v47 = vld [vmem:[#allocation4 + $0x3c8] ss:$24 sps:$4 sm:$0xff]   ;;  %v18409_v17 = vld [vmem:[#allocation182_spill] sm:$0xff] }
 0x388   :  { %18405 = vst [vmem:[#allocation187_spill] sm:$0xff] %v14420_v34  ;;  %v4276_v4 = vmax.f32 %v3554_v57, 0.0  ;;  %6168 = vmatpush1.bf16.msra.mxu1 %v10330_v52  ;;  %v9205_v31 = vmul.f32 -1.442695, %v18409_v17  ;;  %v4278_v1 = vmax.f32 %v3556_v0, 0.0  ;;  %v3558_v50 = vadd.f32 %v3557_v30, %v14073_v62  ;;  %v18411_v14 = vld [vmem:[#allocation176_spill] sm:$0xff] }
 0x389   :  { %18406 = vst [vmem:[#allocation189_spill] sm:$0xff] %v14427_v16  ;;  %18407 = vst [vmem:[#allocation90_spill] sm:$0xff] %v14431_v40  ;;  %v14436_v54 = vadd.f32 %v4465_v6, %v18403_v33  ;;  %6169 = vmatprep.subr.bf16.mxu1 %v10344_v24  ;;  %v10350_v35 = vld [vmem:[#allocation4 + $0x39c] ss:$24 sps:$4 sm:$0xff]   ;;  %v4505_v48 = vmul.f32 %v18411_v14, %v4409_v37  ;;  %v14443_v3 = vadd.f32 %v4462_v7, %v18398_v2  ;;  %v18413_v21 = vld [vmem:[#allocation96_spill] sm:$0xff]  ;;  %v3561_v57 = vpop.f32.mrf.mxu1  ;;  %v14450_v6 = vpop.eup %10799 }
 0x38a   :  { %v4372_v52 = vsub.f32 %v4276_v4, %v18413_v21  ;;  %v14448_v17 = vpack.c.bf16 %v14420_v34, %v14431_v40  ;;  %5977 = vmatpush1.bf16.msra.mxu0 %v10306_v20  ;;  %v10309_v33 = vld [vmem:[#allocation4 + $0x98] ss:$24 sps:$4 sm:$0xff]   ;;  %v18414_v62 = vld [vmem:[#allocation57_spill] sm:$0xff]  ;;  %v4279_v14 = vmax.f32 %v3558_v50, 0.0  ;;  %v3562_v7 = vadd.f32 %v3561_v57, %v14091_v49  ;;  %v3434_v34 = vpop.f32.mrf.mxu0  ;;  %v18418_v20 = vld [vmem:[#allocation192_spill] sm:$0xff] }
 0x38b   :  { %18410 = vst [vmem:[#allocation144_spill] sm:$0xff] %v14436_v54  ;;  %18412 = vst [vmem:[#allocation180_spill] sm:$0xff] %v14443_v3  ;;  %v18415_v24 = vld [vmem:[#allocation23_spill] sm:$0xff]  ;;  %v18417_v30 = vld [vmem:[#allocation26_spill] sm:$0xff]  ;;  %5978 = vmatprep.subr.bf16.mxu0 %v10311_v18  ;;  %10805 = vrcp.f32 %v4018_v58  ;;  %v14459_v4 = vadd.f32 %v3430_v38, %v13701_v23  ;;  %v4467_v40 = vmul.f32 %v18418_v20, %v4371_v27  ;;  %v3563_v60 = vpop.f32.mrf.mxu1 }
 0x38c   :  { %v14454_v0 = vadd.f32 %v18415_v24, %v18414_v62  ;;  %v4374_v37 = vsub.f32 %v4278_v1, %v18417_v30  ;;  %v10317_v2 = vld [vmem:[#allocation4 + $0x6c] ss:$24 sps:$4 sm:$0xff]   ;;  %5636 = vmatprep.mubr.bf16.mxu0 %v14448_v17  ;;  %v14465_v62 = vpack.c.bf16 %v14436_v54, %v14443_v3  ;;  %6170 = vmatpush1.bf16.msra.mxu1 %v10342_v47  ;;  %v10348_v1 = vld [vmem:[#allocation4 + $0x398] ss:$24 sps:$4 sm:$0xff]   ;;  %v4281_v58 = vmax.f32 %v3562_v7, 0.0 }
 0x38d   :  { %v18420_v50 = vld [vmem:[#allocation63_spill] sm:$0xff]  ;;  %v18421_v18 = vld [vmem:[#allocation97_spill] sm:$0xff]  ;;  %v3564_v38 = vadd.f32 %v3563_v60, %v14109_v25  ;;  %5637 = vmatmul.mubr.bf16.gmra.mxu0 %v14097_v44  ;;  %6171 = vmatprep.subr.bf16.mxu1 %v10350_v35  ;;  %v14472_v24 = vadd.f32 %v4505_v48, %v18404_v43  ;;  %10807 = vpow2.f32 %v9205_v31  ;;  %v14475_v20 = vadd.f32 %v3432_v61, %v13682_v32  ;;  %v3438_v31 = vpop.f32.mrf.mxu0  ;;  %v18428_v54 = vld [vmem:[#allocation164_spill] sm:$0xff] }
 0x38e   :  { %18416 = vst [vmem:[#allocation110_spill] sm:$0xff] %v14454_v0  ;;  %18419 = vst [vmem:[#allocation20_spill] sm:$0xff] %v14465_v62  ;;  %v4470_v49 = vmul.f32 %v18420_v50, %v4374_v37  ;;  %v4375_v57 = vsub.f32 %v4279_v14, %v18421_v18  ;;  %v10356_v27 = vld [vmem:[#allocation4 + $0x36c] ss:$24 sps:$4 sm:$0xff]   ;;  %v4468_v47 = vmul.f32 %v14269_v55, %v4372_v52  ;;  %5830 = vmatmul.mubr.bf16.gmra.mxu1 %v14465_v62  ;;  %v3565_v37 = vpop.f32.mrf.mxu1  ;;  %v10315_v14 = vld [vmem:[#allocation4 + $0x68] ss:$24 sps:$4 sm:$0xff]  }
 0x38f   :  { %18422 = vst [vmem:[#allocation93_spill] sm:$0xff] %v14472_v24  ;;  %5979 = vmatpush1.bf16.msra.mxu0 %v10309_v33  ;;  %v18423_v7 = vld [vmem:[#allocation95_spill] sm:$0xff]  ;;  %v4282_v48 = vmax.f32 %v3564_v38, 0.0  ;;  %5839 = vmatprep.mubr.bf16.mxu1 %v18392_v29  ;;  %v4021_v55 = vadd.f32 1.0, %v14379_v9  ;;  %v14488_v52 = vadd.f32 %v4467_v40, %v18408_v46 }
 0x390   :  { %v18424_v25 = vld [vmem:[#allocation39_spill] sm:$0xff]  ;;  %v14482_v35 = vadd.f32 %v4470_v49, %v18417_v30  ;;  %v4471_v43 = vmul.f32 %v14273_v22, %v4375_v57  ;;  %5980 = vmatprep.subr.bf16.mxu0 %v10317_v2  ;;  %6172 = vmatpush1.bf16.msra.mxu1 %v10348_v1  ;;  %v10354_v30 = vld [vmem:[#allocation4 + $0x368] ss:$24 sps:$4 sm:$0xff]   ;;  %v14492_v49 = vpop.eup %10801  ;;  %v14496_v2 = vadd.f32 %v3434_v34, %v13701_v23 }
 0x391   :  { %v3242_v60 = vadd.f32 %v18424_v25, %v18423_v7  ;;  %v10320_v61 = vld [vmem:[#allocation4 + $0x3c] ss:$24 sps:$4 sm:$0xff]   ;;  %18426 = vst [vmem:[#allocation159_spill] sm:$0xff] %v14488_v52  ;;  %v3566_v7 = vadd.f32 %v3565_v37, %v18428_v54  ;;  %v3567_v25 = vpop.f32.mrf.mxu1  ;;  %v18429_v22 = vld [vmem:[#allocation29_spill] sm:$0xff]  ;;  %6173 = vmatprep.subr.bf16.mxu1 %v10356_v27  ;;  %v10318_v34 = vld [vmem:[#allocation4 + $0x38] ss:$24 sps:$4 sm:$0xff]   ;;  %v14510_v51 = vpop.eup %10803  ;;  %10809 = vrcp.f32 %v4021_v55 }
 0x392   :  { %18425 = vst [vmem:[#allocation21_spill] sm:$0xff] %v14482_v35  ;;  %v18427_v33 = vld [vmem:[#allocation31_spill] sm:$0xff]  ;;  %v9208_v57 = vmul.f32 -1.442695, %v18429_v22  ;;  %v14499_v9 = vadd.f32 %v4471_v43, %v18421_v18  ;;  %v14508_v22 = vpack.c.bf16 %v14482_v35, %v14488_v52  ;;  %v18440_v52 = vld [vmem:[#allocation12_spill] sm:$0xff] }
 0x393   :  { %v4377_v50 = vsub.f32 %v4281_v58, %v18427_v33  ;;  %v18431_v38 = vld [vmem:[#allocation35_spill] sm:$0xff]  ;;  %v14503_v58 = vadd.f32 %v4468_v47, %v18413_v21  ;;  %v4284_v37 = vmax.f32 %v3566_v7, 0.0  ;;  %v3571_v3 = vpop.f32.mrf.mxu1  ;;  %5981 = vmatpush1.bf16.msra.mxu0 %v10315_v14  ;;  %v4319_v18 = vmax.f32 %v3242_v60, 0.0  ;;  %v10326_v47 = vld [vmem:[#allocation4 + $0xc] ss:$24 sps:$4 sm:$0xff]  }
 0x394   :  { %18430 = vst [vmem:[#allocation58_spill] sm:$0xff] %v14499_v9  ;;  %v3568_v40 = vadd.f32 %v3567_v25, %v18431_v38  ;;  %v10362_v46 = vld [vmem:[#allocation4 + $0x33c] ss:$24 sps:$4 sm:$0xff]   ;;  %18434 = vst [vmem:[#allocation54_spill] sm:$0xff] %v14508_v22  ;;  %v3572_v27 = vadd.f32 %v3571_v3, %v14140_v63  ;;  %v14515_v21 = vpack.c.bf16 %v14472_v24, %v14454_v0  ;;  %5982 = vmatprep.subr.bf16.mxu0 %v10320_v61  ;;  %v18436_v7 = vld [vmem:[#allocation161_spill] sm:$0xff] }
 0x395   :  { %18432 = vst [vmem:[#allocation94_spill] sm:$0xff] %v14503_v58  ;;  %v18433_v54 = vld [vmem:[#allocation99_spill] sm:$0xff]  ;;  %v4473_v25 = vmul.f32 %v18436_v7, %v4377_v50  ;;  %v18437_v38 = vld [vmem:[#allocation32_spill] sm:$0xff]  ;;  %5646 = vmatprep.mubr.bf16.mxu0 %v14508_v22  ;;  %v3573_v14 = vpop.f32.mrf.mxu1  ;;  %v14522_v60 = vpack.c.bf16 %v14499_v9, %v14503_v58  ;;  %6174 = vmatpush1.bf16.msra.mxu1 %v10354_v30  ;;  %10811 = vpow2.f32 %v9208_v57  ;;  %v18443_v24 = vld [vmem:[#allocation165_spill] sm:$0xff] }
 0x396   :  { %v4378_v1 = vsub.f32 %v4282_v48, %v18433_v54  ;;  %v4285_v43 = vmax.f32 %v3568_v40, 0.0  ;;  %18435 = vst [vmem:[#allocation25_spill] sm:$0xff] %v14515_v21  ;;  %v3440_v48 = vpop.f32.mrf.mxu0  ;;  %v4380_v35 = vsub.f32 %v4284_v37, %v18437_v38  ;;  %v10360_v63 = vld [vmem:[#allocation4 + $0x338] ss:$24 sps:$4 sm:$0xff]   ;;  %v18439_v3 = vld [vmem:[#allocation100_spill] sm:$0xff]  ;;  %v4287_v61 = vmax.f32 %v3572_v27, 0.0  ;;  %5647 = vmatmul.mubr.bf16.gmra.mxu0 %v18440_v52  ;;  %6175 = vmatprep.subr.bf16.mxu1 %v10362_v46 }
 0x397   :  { %18438 = vst [vmem:[#allocation182_spill] sm:$0xff] %v14522_v60  ;;  %v3574_v55 = vadd.f32 %v3573_v14, %v14156_v11  ;;  %v10368_v50 = vld [vmem:[#allocation4 + $0x30c] ss:$24 sps:$4 sm:$0xff]   ;;  %v4024_v37 = vadd.f32 1.0, %v14439_v26  ;;  %v14529_v7 = vadd.f32 %v3438_v31, %v13682_v32  ;;  %5840 = vmatmul.mubr.bf16.gmra.mxu1 %v14522_v60  ;;  %v3575_v57 = vpop.f32.mrf.mxu1  ;;  %5983 = vmatpush1.bf16.msra.mxu0 %v10318_v34  ;;  %v18442_v27 = vld [vmem:[#allocation59_spill] sm:$0xff]  ;;  %v18444_v31 = vld [vmem:[#allocation146_spill] sm:$0xff] }
 0x398   :  { %v4381_v40 = vsub.f32 %v4285_v43, %v18439_v3  ;;  %v4474_v9 = vmul.f32 %v14292_v45, %v4378_v1  ;;  %v18441_v58 = vld [vmem:[#allocation68_spill] sm:$0xff]  ;;  %v4415_v11 = vsub.f32 %v4319_v18, %v18442_v27  ;;  %v3576_v0 = vadd.f32 %v3575_v57, %v18443_v24  ;;  %5849 = vmatprep.mubr.bf16.mxu1 %v18392_v29  ;;  %v10329_v26 = vld [vmem:[#allocation4 + $0x2dc] ss:$24 sps:$4 sm:$0xff]   ;;  %v3442_v1 = vpop.f32.mrf.mxu0 }
 0x399   :  { %v4476_v30 = vmul.f32 %v18441_v58, %v4380_v35  ;;  %v10324_v43 = vld [vmem:[#allocation4 + $0x8] ss:$24 sps:$4 sm:$0xff]   ;;  %v4288_v46 = vmax.f32 %v3574_v55, 0.0  ;;  %5984 = vmatprep.subr.bf16.mxu0 %v10326_v47  ;;  %v9211_v45 = vmul.f32 -1.442695, %v18444_v31  ;;  %v14540_v35 = vadd.f32 %v4473_v25, %v18427_v33  ;;  %v3577_v60 = vpop.f32.mrf.mxu1  ;;  %6176 = vmatpush1.bf16.msra.mxu1 %v10360_v63  ;;  %v18448_v24 = vld [vmem:[#allocation62_spill] sm:$0xff] }
 0x39a   :  { %v4477_v14 = vmul.f32 %v14298_v42, %v4381_v40  ;;  %v18447_v34 = vld [vmem:[#allocation36_spill] sm:$0xff]  ;;  %v14546_v40 = vpop.eup %10805  ;;  %v18449_v55 = vld [vmem:[#allocation107_spill] sm:$0xff]  ;;  %v14553_v57 = vadd.f32 %v3440_v48, %v13701_v23  ;;  %v4290_v25 = vmax.f32 %v3576_v0, 0.0  ;;  %6177 = vmatprep.subr.bf16.mxu1 %v10368_v50  ;;  %10813 = vrcp.f32 %v4024_v37  ;;  %v18457_v50 = vld [vmem:[#allocation37_spill] sm:$0xff] }
 0x39b   :  { %18445 = vst [vmem:[#allocation176_spill] sm:$0xff] %v14540_v35  ;;  %v14543_v58 = vadd.f32 %v4476_v30, %v18437_v38  ;;  %v4383_v18 = vsub.f32 %v4287_v61, %v18447_v34  ;;  %v10366_v42 = vld [vmem:[#allocation4 + $0x308] ss:$24 sps:$4 sm:$0xff]   ;;  %v14550_v47 = vadd.f32 %v18449_v55, %v18448_v24  ;;  %v14559_v38 = vadd.f32 %v4474_v9, %v18433_v54  ;;  %v18453_v61 = vld [vmem:[#allocation102_spill] sm:$0xff]  ;;  %v18454_v30 = vld [vmem:[#allocation123_spill] sm:$0xff]  ;;  %v3581_v52 = vpop.f32.mrf.mxu1  ;;  %v14567_v55 = vpop.eup %10807 }
 0x39c   :  { %v14556_v33 = vadd.f32 %v4477_v14, %v18439_v3  ;;  %v4384_v63 = vsub.f32 %v4288_v46, %v18453_v61  ;;  %v3578_v31 = vadd.f32 %v3577_v60, %v18454_v30  ;;  %5985 = vmatpush1.bf16.msra.mxu0 %v10324_v43  ;;  %v10327_v48 = vld [vmem:[#allocation4 + $0x2d8] ss:$24 sps:$4 sm:$0xff]   ;;  %v18456_v3 = vld [vmem:[#allocation145_spill] sm:$0xff]  ;;  %v4386_v14 = vsub.f32 %v4290_v25, %v18457_v50  ;;  %v3444_v60 = vpop.f32.mrf.mxu0 }
 0x39d   :  { %18446 = vst [vmem:[#allocation96_spill] sm:$0xff] %v14543_v58  ;;  %18450 = vst [vmem:[#allocation57_spill] sm:$0xff] %v14550_v47  ;;  %v14565_v24 = vpack.c.bf16 %v14543_v58, %v14540_v35  ;;  %v4511_v0 = vmul.f32 %v18456_v3, %v4415_v11  ;;  %v3582_v9 = vadd.f32 %v3581_v52, %v14184_v28  ;;  %5986 = vmatprep.subr.bf16.mxu0 %v10329_v26  ;;  %v10335_v54 = vld [vmem:[#allocation4 + $0x2ac] ss:$24 sps:$4 sm:$0xff]   ;;  %v3583_v43 = vpop.f32.mrf.mxu1  ;;  %v18460_v37 = vld [vmem:[#allocation98_spill] sm:$0xff] }
 0x39e   :  { %18451 = vst [vmem:[#allocation23_spill] sm:$0xff] %v14556_v33  ;;  %18452 = vst [vmem:[#allocation26_spill] sm:$0xff] %v14559_v38  ;;  %10815 = vpow2.f32 %v9211_v45  ;;  %v18458_v46 = vld [vmem:[#allocation17_spill] sm:$0xff]  ;;  %v4291_v62 = vmax.f32 %v3578_v31, 0.0  ;;  %v14576_v58 = vpack.c.bf16 %v14556_v33, %v14559_v38  ;;  %6178 = vmatpush1.bf16.msra.mxu1 %v10366_v42  ;;  %v18461_v11 = vld [vmem:[#allocation154_spill] sm:$0xff]  ;;  %v3584_v26 = vadd.f32 %v3583_v43, %v14201_v19 }
 0x39f   :  { %18455 = vst [vmem:[#allocation192_spill] sm:$0xff] %v14565_v24  ;;  %v4479_v30 = vmul.f32 %v18458_v46, %v4383_v18  ;;  %5656 = vmatprep.mubr.bf16.mxu0 %v14565_v24  ;;  %v3252_v25 = vadd.f32 %v18461_v11, %v18460_v37  ;;  %v18462_v3 = vld [vmem:[#allocation163_spill] sm:$0xff]  ;;  %v4293_v52 = vmax.f32 %v3582_v9, 0.0  ;;  %v4027_v45 = vadd.f32 1.0, %v14492_v49  ;;  %v3585_v42 = vpop.f32.mrf.mxu1  ;;  %v10333_v37 = vld [vmem:[#allocation4 + $0x2a8] ss:$24 sps:$4 sm:$0xff]  }
 0x3a0   :  { %18459 = vst [vmem:[#allocation63_spill] sm:$0xff] %v14576_v58  ;;  %v4482_v28 = vmul.f32 %v18462_v3, %v4386_v14  ;;  %5657 = vmatmul.mubr.bf16.gmra.mxu0 %v14193_v8  ;;  %v14585_v18 = vadd.f32 %v3442_v1, %v13682_v32  ;;  %v4480_v31 = vmul.f32 %v14317_v53, %v4384_v63  ;;  %v18463_v46 = vld [vmem:[#allocation103_spill] sm:$0xff]  ;;  %v4294_v9 = vmax.f32 %v3584_v26, 0.0  ;;  %v18466_v1 = vld [vmem:[#allocation186_spill] sm:$0xff]  ;;  %v3448_v63 = vpop.f32.mrf.mxu0 }
 0x3a1   :  { %v4387_v33 = vsub.f32 %v4291_v62, %v18463_v46  ;;  %5850 = vmatmul.mubr.bf16.gmra.mxu1 %v14576_v58  ;;  %5987 = vmatpush2.bf16.msra.mxu0 %v10327_v48  ;;  %v14591_v14 = vadd.f32 %v4511_v0, %v18442_v27  ;;  %v3586_v49 = vadd.f32 %v3585_v42, %v14209_v59  ;;  %v10338_v53 = vld [vmem:[#allocation4 + $0x27c] ss:$24 sps:$4 sm:$0xff]   ;;  %v9214_v62 = vmul.f32 -1.442695, %v18466_v1  ;;  %v3587_v3 = vpop.f32.mrf.mxu1 }
 0x3a2   :  { %v14594_v19 = vadd.f32 %v4482_v28, %v18457_v50  ;;  %5859 = vmatprep.mubr.bf16.mxu1 %v18392_v29  ;;  %5988 = vmatprep.subr.bf16.mxu0 %v10335_v54  ;;  %v14600_v43 = vadd.f32 %v4479_v30, %v18447_v34  ;;  %v18468_v48 = vld [vmem:[#allocation50_spill] sm:$0xff]  ;;  %v14604_v50 = vpop.eup %10809  ;;  %v4325_v28 = vmax.f32 %v3252_v25, 0.0  ;;  %v14607_v59 = vadd.f32 %v3444_v60, %v13701_v23  ;;  %v18470_v54 = vld [vmem:[#allocation101_spill] sm:$0xff]  ;;  %v18500_v24 = vld [vmem:[#allocation175_spill] sm:$0xff] }
 0x3a3   :  { %18464 = vst [vmem:[#allocation97_spill] sm:$0xff] %v14591_v14  ;;  %v4483_v11 = vmul.f32 %v18468_v48, %v4387_v33  ;;  %v18469_v27 = vld [vmem:[#allocation42_spill] sm:$0xff]  ;;  %v4296_v26 = vmax.f32 %v3586_v49, 0.0  ;;  %v3588_v42 = vadd.f32 %v3587_v3, %v18470_v54  ;;  %v14610_v38 = vpop.eup %10811  ;;  %v14613_v1 = vadd.f32 %v4480_v31, %v18453_v61  ;;  %v18473_v33 = vld [vmem:[#allocation105_spill] sm:$0xff]  ;;  %v18475_v49 = vld [vmem:[#allocation43_spill] sm:$0xff] }
 0x3a4   :  { %18465 = vst [vmem:[#allocation95_spill] sm:$0xff] %v14594_v19  ;;  %18467 = vst [vmem:[#allocation39_spill] sm:$0xff] %v14600_v43  ;;  %v4389_v0 = vsub.f32 %v4293_v52, %v18469_v27  ;;  %v4390_v30 = vsub.f32 %v4294_v9, %v18473_v33  ;;  %v3591_v52 = vpop.f32.mrf.mxu1  ;;  %v14621_v25 = vpack.c.bf16 %v14594_v19, %v14600_v43  ;;  %v10336_v60 = vld [vmem:[#allocation4 + $0x278] ss:$24 sps:$4 sm:$0xff]   ;;  %10817 = vrcp.f32 %v4027_v45  ;;  %v10341_v31 = vld [vmem:[#allocation4 + $0x24c] ss:$24 sps:$4 sm:$0xff]  }
 0x3a5   :  { %18471 = vst [vmem:[#allocation31_spill] sm:$0xff] %v14613_v1  ;;  %v14616_v34 = vadd.f32 %v4483_v11, %v18463_v46  ;;  %5989 = vmatpush2.bf16.msra.mxu0 %v10333_v37  ;;  %v4392_v48 = vsub.f32 %v4296_v26, %v18475_v49  ;;  %v4297_v3 = vmax.f32 %v3588_v42, 0.0  ;;  %v14626_v61 = vpack.c.bf16 %v14591_v14, %v14550_v47  ;;  %v3450_v46 = vpop.f32.mrf.mxu0  ;;  %v18477_v9 = vld [vmem:[#allocation92_spill] sm:$0xff]  ;;  %v18478_v54 = vld [vmem:[#allocation166_spill] sm:$0xff]  ;;  %v18483_v47 = vld [vmem:[#allocation73_spill] sm:$0xff] }
 0x3a6   :  { %18474 = vst [vmem:[#allocation29_spill] sm:$0xff] %v14621_v25  ;;  %5990 = vmatprep.subr.bf16.mxu0 %v10338_v53  ;;  %10819 = vpow2.f32 %v9214_v62  ;;  %v4485_v11 = vmul.f32 %v18477_v9, %v4389_v0  ;;  %v3592_v35 = vadd.f32 %v3591_v52, %v18478_v54  ;;  %5666 = vmatprep.mubr.bf16.mxu0 %v14621_v25  ;;  %v3593_v37 = vpop.f32.mrf.mxu1  ;;  %v18480_v42 = vld [vmem:[#allocation126_spill] sm:$0xff]  ;;  %v18484_v0 = vld [vmem:[#allocation64_spill] sm:$0xff] }
 0x3a7   :  { %18472 = vst [vmem:[#allocation164_spill] sm:$0xff] %v14616_v34  ;;  %18476 = vst [vmem:[#allocation35_spill] sm:$0xff] %v14626_v61  ;;  %v14633_v45 = vpack.c.bf16 %v14616_v34, %v14613_v1  ;;  %v14636_v26 = vadd.f32 %v3448_v63, %v13682_v32  ;;  %v4488_v19 = vmul.f32 %v18480_v42, %v4392_v48  ;;  %v18481_v53 = vld [vmem:[#allocation106_spill] sm:$0xff]  ;;  %v18485_v9 = vld [vmem:[#allocation116_spill] sm:$0xff]  ;;  %v3452_v1 = vpop.f32.mrf.mxu0 }
 0x3a8   :  { %v4393_v43 = vsub.f32 %v4297_v3, %v18481_v53  ;;  %v18482_v62 = vld [vmem:[#allocation86_spill] sm:$0xff]  ;;  %5667 = vmatmul.mubr.bf16.gmra.mxu0 %v18483_v47  ;;  %v4421_v52 = vsub.f32 %v4325_v28, %v18484_v0  ;;  %v9217_v54 = vmul.f32 -1.442695, %v18485_v9  ;;  %v4486_v58 = vmul.f32 %v14363_v56, %v4390_v30  ;;  %v3595_v34 = vpop.f32.mrf.mxu1  ;;  %v10339_v63 = vld [vmem:[#allocation4 + $0x248] ss:$24 sps:$4 sm:$0xff]   ;;  %v14652_v9 = vpop.eup %10813 }
 0x3a9   :  { %18479 = vst [vmem:[#allocation99_spill] sm:$0xff] %v14633_v45  ;;  %v3594_v14 = vadd.f32 %v3593_v37, %v18482_v62  ;;  %v4299_v25 = vmax.f32 %v3592_v35, 0.0  ;;  %5860 = vmatmul.mubr.bf16.gmra.mxu1 %v14633_v45  ;;  %5991 = vmatpush2.bf16.msra.mxu0 %v10336_v60  ;;  %v14647_v48 = vadd.f32 %v4488_v19, %v18475_v49  ;;  %v18487_v42 = vld [vmem:[#allocation46_spill] sm:$0xff]  ;;  %v4030_v56 = vadd.f32 1.0, %v14567_v55  ;;  %v18488_v35 = vld [vmem:[#allocation67_spill] sm:$0xff]  ;;  %v18489_v30 = vld [vmem:[#allocation157_spill] sm:$0xff] }
 0x3aa   :  { %v4489_v3 = vmul.f32 %v14393_v10, %v4393_v43  ;;  %v3596_v62 = vadd.f32 %v3595_v34, %v18487_v42  ;;  %5869 = vmatprep.mubr.bf16.mxu1 %v18392_v29  ;;  %5992 = vmatprep.subr.bf16.mxu0 %v10341_v31  ;;  %v10347_v28 = vld [vmem:[#allocation4 + $0x21c] ss:$24 sps:$4 sm:$0xff]   ;;  %v14657_v60 = vadd.f32 %v18489_v30, %v18488_v35  ;;  %v3597_v43 = vpop.f32.mrf.mxu1  ;;  %v18494_v42 = vld [vmem:[#allocation44_spill] sm:$0xff]  ;;  %10821 = vpow2.f32 %v9217_v54 }
 0x3ab   :  { %18486 = vst [vmem:[#allocation161_spill] sm:$0xff] %v14647_v48  ;;  %v4300_v37 = vmax.f32 %v3594_v14, 0.0  ;;  %v14660_v19 = vadd.f32 %v4485_v11, %v18469_v27  ;;  %v18492_v10 = vld [vmem:[#allocation47_spill] sm:$0xff]  ;;  %v14663_v34 = vpop.eup %10815  ;;  %v14666_v49 = vadd.f32 %v3450_v46, %v13701_v23  ;;  %v3598_v45 = vadd.f32 %v3597_v43, %v18494_v42  ;;  %v18496_v27 = vld [vmem:[#allocation108_spill] sm:$0xff] }
 0x3ac   :  { %18490 = vst [vmem:[#allocation32_spill] sm:$0xff] %v14657_v60  ;;  %v4395_v14 = vsub.f32 %v4299_v25, %v18492_v10  ;;  %v14669_v31 = vadd.f32 %v4489_v3, %v18481_v53  ;;  %v4302_v55 = vmax.f32 %v3596_v62, 0.0  ;;  %v14673_v35 = vadd.f32 %v4486_v58, %v18473_v33  ;;  %v3601_v30 = vpop.f32.mrf.mxu1  ;;  %v10345_v46 = vld [vmem:[#allocation4 + $0x218] ss:$24 sps:$4 sm:$0xff]   ;;  %v18498_v47 = vld [vmem:[#allocation28_spill] sm:$0xff]  ;;  %v18501_v58 = vld [vmem:[#allocation113_spill] sm:$0xff] }
 0x3ad   :  { %18491 = vst [vmem:[#allocation100_spill] sm:$0xff] %v14660_v19  ;;  %v4396_v11 = vsub.f32 %v4300_v37, %v18496_v27  ;;  %v14678_v25 = vpack.c.bf16 %v14647_v48, %v14660_v19  ;;  %5993 = vmatpush2.bf16.msra.mxu0 %v10339_v63  ;;  %v4517_v8 = vmul.f32 %v18498_v47, %v4421_v52  ;;  %v18499_v53 = vld [vmem:[#allocation48_spill] sm:$0xff]  ;;  %v4303_v62 = vmax.f32 %v3598_v45, 0.0  ;;  %v3454_v37 = vpop.f32.mrf.mxu0  ;;  %v18509_v19 = vld [vmem:[#allocation137_spill] sm:$0xff] }
 0x3ae   :  { %18493 = vst [vmem:[#allocation68_spill] sm:$0xff] %v14669_v31  ;;  %18495 = vst [vmem:[#allocation59_spill] sm:$0xff] %v14673_v35  ;;  %v4398_v3 = vsub.f32 %v4302_v55, %v18499_v53  ;;  %v3602_v43 = vadd.f32 %v3601_v30, %v18500_v24  ;;  %5994 = vmatprep.subr.bf16.mxu0 %v10347_v28  ;;  %10823 = vrcp.f32 %v4030_v56  ;;  %v18502_v33 = vld [vmem:[#allocation120_spill] sm:$0xff]  ;;  %v3603_v48 = vpop.f32.mrf.mxu1  ;;  %v18506_v28 = vld [vmem:[#allocation109_spill] sm:$0xff] }
 0x3af   :  { %18497 = vst [vmem:[#allocation165_spill] sm:$0xff] %v14678_v25  ;;  %v3262_v54 = vadd.f32 %v18502_v33, %v18501_v58  ;;  %v18503_v42 = vld [vmem:[#allocation168_spill] sm:$0xff]  ;;  %5676 = vmatprep.mubr.bf16.mxu0 %v14678_v25  ;;  %v14689_v63 = vpack.c.bf16 %v14669_v31, %v14673_v35  ;;  %v14692_v45 = vadd.f32 %v3452_v1, %v13682_v32  ;;  %v18507_v30 = vld [vmem:[#allocation138_spill] sm:$0xff]  ;;  %v18508_v58 = vld [vmem:[#allocation117_spill] sm:$0xff] }
 0x3b0   :  { %v4491_v22 = vmul.f32 %v18503_v42, %v4395_v14  ;;  %v10353_v47 = vld [vmem:[#allocation4 + $0x1ec] ss:$24 sps:$4 sm:$0xff]   ;;  %v4399_v56 = vsub.f32 %v4303_v62, %v18506_v28  ;;  %v4305_v55 = vmax.f32 %v3602_v43, 0.0  ;;  %5677 = vmatmul.mubr.bf16.gmra.mxu0 %v18507_v30  ;;  %v4033_v14 = vadd.f32 1.0, %v14610_v38  ;;  %v3605_v35 = vpop.f32.mrf.mxu1  ;;  %v10351_v1 = vld [vmem:[#allocation4 + $0x1e8] ss:$24 sps:$4 sm:$0xff]  }
 0x3b1   :  { %18504 = vst [vmem:[#allocation146_spill] sm:$0xff] %v14689_v63  ;;  %v18505_v24 = vld [vmem:[#allocation132_spill] sm:$0xff]  ;;  %v9220_v33 = vmul.f32 -1.442695, %v18508_v58  ;;  %v4492_v42 = vmul.f32 %v14450_v6, %v4396_v11  ;;  %v3604_v31 = vadd.f32 %v3603_v48, %v18509_v19  ;;  %5870 = vmatmul.mubr.bf16.gmra.mxu1 %v14689_v63  ;;  %5995 = vmatpush2.bf16.msra.mxu0 %v10345_v46  ;;  %v18512_v38 = vld [vmem:[#allocation197_spill] sm:$0xff]  ;;  %v14711_v11 = vpop.eup %10817  ;;  %v4331_v48 = vmax.f32 %v3262_v54, 0.0  ;;  %v3458_v19 = vpop.f32.mrf.mxu0 }
 0x3b2   :  { %v4494_v52 = vmul.f32 %v18505_v24, %v4398_v3  ;;  %v14703_v3 = vadd.f32 %v4517_v8, %v18484_v0  ;;  %v4495_v43 = vmul.f32 %v14510_v51, %v4399_v56  ;;  %v3606_v24 = vadd.f32 %v3605_v35, %v18512_v38  ;;  %5879 = vmatprep.mubr.bf16.mxu1 %v18392_v29  ;;  %v10359_v6 = vld [vmem:[#allocation4 + $0x1bc] ss:$24 sps:$4 sm:$0xff]   ;;  %v3607_v63 = vpop.f32.mrf.mxu1  ;;  %v18516_v56 = vld [vmem:[#allocation9_spill] sm:$0xff] }
 0x3b3   :  { %v14714_v46 = vadd.f32 %v4491_v22, %v18492_v10  ;;  %v18514_v58 = vld [vmem:[#allocation51_spill] sm:$0xff]  ;;  %v4306_v0 = vmax.f32 %v3604_v31, 0.0  ;;  %5996 = vmatprep.subr.bf16.mxu0 %v10353_v47  ;;  %v14720_v51 = vadd.f32 %v3454_v37, %v13701_v23  ;;  %v3608_v54 = vadd.f32 %v3607_v63, %v18516_v56 }
 0x3b4   :  { %18510 = vst [vmem:[#allocation36_spill] sm:$0xff] %v14703_v3  ;;  %v14706_v62 = vadd.f32 %v4494_v52, %v18499_v53  ;;  %v4401_v8 = vsub.f32 %v4305_v55, %v18514_v58  ;;  %v14717_v53 = vpop.eup %10819  ;;  %v14723_v35 = vadd.f32 %v4495_v43, %v18506_v28  ;;  %v4308_v52 = vmax.f32 %v3606_v24, 0.0  ;;  %v18518_v10 = vld [vmem:[#allocation111_spill] sm:$0xff]  ;;  %v3611_v31 = vpop.f32.mrf.mxu1  ;;  %v18519_v28 = vld [vmem:[#allocation52_spill] sm:$0xff] }
 0x3b5   :  { %18513 = vst [vmem:[#allocation107_spill] sm:$0xff] %v14714_v46  ;;  %10825 = vpow2.f32 %v9220_v33  ;;  %v14727_v22 = vadd.f32 %v4492_v42, %v18496_v27  ;;  %v4402_v55 = vsub.f32 %v4306_v0, %v18518_v10  ;;  %5997 = vmatpush2.bf16.msra.mxu0 %v10351_v1  ;;  %v10357_v37 = vld [vmem:[#allocation4 + $0x1b8] ss:$24 sps:$4 sm:$0xff]   ;;  %v14735_v38 = vadd.f32 %v3458_v19, %v13682_v32  ;;  %v10365_v27 = vld [vmem:[#allocation4 + $0x18c] ss:$24 sps:$4 sm:$0xff]  }
 0x3b6   :  { %18511 = vst [vmem:[#allocation62_spill] sm:$0xff] %v14706_v62  ;;  %18515 = vst [vmem:[#allocation102_spill] sm:$0xff] %v14723_v35  ;;  %v14732_v47 = vpack.c.bf16 %v14706_v62, %v14714_v46  ;;  %v4404_v43 = vsub.f32 %v4308_v52, %v18519_v28  ;;  %v4309_v24 = vmax.f32 %v3608_v54, 0.0  ;;  %v18520_v63 = vld [vmem:[#allocation87_spill] sm:$0xff]  ;;  %5998 = vmatprep.subr.bf16.mxu0 %v10359_v6  ;;  %v18521_v42 = vld [vmem:[#allocation69_spill] sm:$0xff]  ;;  %v3613_v1 = vpop.f32.mrf.mxu1  ;;  %10827 = vrcp.f32 %v4033_v14  ;;  %v3460_v14 = vpop.f32.mrf.mxu0 }
 0x3b7   :  { %18517 = vst [vmem:[#allocation123_spill] sm:$0xff] %v14727_v22  ;;  %v3612_v33 = vadd.f32 %v3611_v31, %v18520_v63  ;;  %v4427_v56 = vsub.f32 %v4331_v48, %v18521_v42  ;;  %v18522_v0 = vld [vmem:[#allocation140_spill] sm:$0xff]  ;;  %v18523_v25 = vld [vmem:[#allocation135_spill] sm:$0xff]  ;;  %v14745_v19 = vpack.c.bf16 %v14723_v35, %v14727_v22  ;;  %v3614_v6 = vadd.f32 %v3613_v1, %v14348_v36 }
 0x3b8   :  { %v9223_v30 = vmul.f32 -1.442695, %v18522_v0  ;;  %v4497_v44 = vmul.f32 %v18523_v25, %v4401_v8  ;;  %5686 = vmatprep.mubr.bf16.mxu0 %v14732_v47  ;;  %v18525_v62 = vld [vmem:[#allocation195_spill] sm:$0xff]  ;;  %v18526_v54 = vld [vmem:[#allocation112_spill] sm:$0xff]  ;;  %v18529_v0 = vld [vmem:[#allocation13_spill] sm:$0xff]  ;;  %v4498_v8 = vmul.f32 %v14546_v40, %v4402_v55  ;;  %v3615_v35 = vpop.f32.mrf.mxu1  ;;  %v4036_v36 = vadd.f32 1.0, %v14663_v34 }
 0x3b9   :  { %18524 = vst [vmem:[#allocation145_spill] sm:$0xff] %v14745_v19  ;;  %v4500_v52 = vmul.f32 %v18525_v62, %v4404_v43  ;;  %v4405_v46 = vsub.f32 %v4309_v24, %v18526_v54  ;;  %v4311_v31 = vmax.f32 %v3612_v33, 0.0  ;;  %v18527_v63 = vld [vmem:[#allocation88_spill] sm:$0xff]  ;;  %5880 = vmatmul.mubr.bf16.gmra.mxu1 %v14745_v19  ;;  %v14759_v62 = vpack.c.bf16 %v14703_v3, %v14657_v60  ;;  %v14761_v24 = vpop.eup %10821  ;;  %v18535_v22 = vld [vmem:[#allocation55_spill] sm:$0xff] }
 0x3ba   :  { %5687 = vmatmul.mubr.bf16.gmra.mxu0 %v18527_v63  ;;  %v18528_v48 = vld [vmem:[#allocation72_spill] sm:$0xff]  ;;  %v4312_v40 = vmax.f32 %v3614_v6, 0.0  ;;  %5889 = vmatprep.mubr.bf16.mxu1 %v18392_v29  ;;  %v3616_v34 = vadd.f32 %v3615_v35, %v14373_v15  ;;  %v3617_v60 = vpop.f32.mrf.mxu1  ;;  %10829 = vpow2.f32 %v9223_v30  ;;  %v14791_v30 = vadd.f32 %v3460_v14, %v13701_v23  ;;  %v3462_v35 = vpop.f32.mrf.mxu0 }
 0x3bb   :  { %v14753_v25 = vadd.f32 %v18529_v0, %v18528_v48  ;;  %18531 = vst [vmem:[#allocation17_spill] sm:$0xff] %v14759_v62  ;;  %5999 = vmatpush2.bf16.msra.mxu0 %v10357_v37  ;;  %v10363_v43 = vld [vmem:[#allocation4 + $0x188] ss:$24 sps:$4 sm:$0xff]   ;;  %v14765_v33 = vadd.f32 %v4500_v52, %v18519_v28  ;;  %v4501_v1 = vmul.f32 %v14604_v50, %v4405_v46  ;;  %v10371_v55 = vld [vmem:[#allocation4 + $0x164] ss:$24 sps:$4 sm:$0xff]   ;;  %v14775_v19 = vpop.eup %10823  ;;  %v18536_v28 = vld [vmem:[#allocation162_spill] sm:$0xff]  ;;  %10831 = vrcp.f32 %v4036_v36 }
 0x3bc   :  { %6000 = vmatprep.subr.bf16.mxu0 %v10365_v27  ;;  %v18533_v48 = vld [vmem:[#allocation155_spill] sm:$0xff]  ;;  %v14771_v37 = vadd.f32 %v4497_v44, %v18514_v58  ;;  %v4407_v3 = vsub.f32 %v4311_v31, %v18535_v22  ;;  %v9226_v50 = vmul.f32 -1.442695, %v18536_v28  ;;  %v3618_v27 = vadd.f32 %v3617_v60, %v14401_v5  ;;  %v18539_v44 = vld [vmem:[#allocation114_spill] sm:$0xff]  ;;  %v3621_v31 = vpop.f32.mrf.mxu1 }
 0x3bd   :  { %18530 = vst [vmem:[#allocation37_spill] sm:$0xff] %v14753_v25  ;;  %18532 = vst [vmem:[#allocation98_spill] sm:$0xff] %v14765_v33  ;;  %v4523_v0 = vmul.f32 %v18533_v48, %v4427_v56  ;;  %v14779_v46 = vadd.f32 %v4501_v1, %v18526_v54  ;;  %v14783_v56 = vadd.f32 %v4498_v8, %v18518_v10  ;;  %v4314_v52 = vmax.f32 %v3616_v34, 0.0  ;;  %v18541_v10 = vld [vmem:[#allocation196_spill] sm:$0xff]  ;;  %v18544_v36 = vld [vmem:[#allocation115_spill] sm:$0xff] }
 0x3be   :  { %18534 = vst [vmem:[#allocation154_spill] sm:$0xff] %v14771_v37  ;;  %v4408_v58 = vsub.f32 %v4312_v40, %v18539_v44  ;;  %v14788_v15 = vpack.c.bf16 %v14765_v33, %v14771_v37  ;;  %v4315_v54 = vmax.f32 %v3618_v27, 0.0  ;;  %v3622_v5 = vadd.f32 %v3621_v31, %v14410_v12  ;;  %v18542_v8 = vld [vmem:[#allocation56_spill] sm:$0xff]  ;;  %v3623_v40 = vpop.f32.mrf.mxu1  ;;  %v18546_v34 = vld [vmem:[#allocation171_spill] sm:$0xff]  ;;  %v18547_v31 = vld [vmem:[#allocation202_spill] sm:$0xff] }
 0x3bf   :  { %18537 = vst [vmem:[#allocation163_spill] sm:$0xff] %v14779_v46  ;;  %18538 = vst [vmem:[#allocation103_spill] sm:$0xff] %v14783_v56  ;;  %6001 = vmatpush2.bf16.msra.mxu0 %v10363_v43  ;;  %v4039_v60 = vadd.f32 1.0, %v14717_v53  ;;  %v4503_v6 = vmul.f32 %v18541_v10, %v4407_v3  ;;  %v4410_v1 = vsub.f32 %v4314_v52, %v18542_v8  ;;  %10833 = vpow2.f32 %v9226_v50  ;;  %v10386_v27 = vld [vmem:[#allocation4 + $0x464] ss:$24 sps:$4 sm:$0xff]  }
 0x3c0   :  { %18540 = vst [vmem:[#allocation186_spill] sm:$0xff] %v14788_v15  ;;  %6356 = vmatprep.subr.bf16.mxu0 %v10371_v55  ;;  %5696 = vmatprep.mubr.bf16.mxu0 %v14788_v15  ;;  %v14800_v43 = vpack.c.bf16 %v14779_v46, %v14783_v56  ;;  %v4411_v14 = vsub.f32 %v4315_v54, %v18544_v36  ;;  %v4317_v48 = vmax.f32 %v3622_v5, 0.0  ;;  %v3625_v50 = vpop.f32.mrf.mxu1  ;;  %v9229_v54 = vmul.f32 -1.442695, %v18547_v31  ;;  %v18556_v31 = vld [vmem:[#allocation118_spill] sm:$0xff] }
 0x3c1   :  { %v3624_v12 = vadd.f32 %v3623_v40, %v14459_v4  ;;  %v14806_v53 = vadd.f32 %v4523_v0, %v18521_v42  ;;  %v14809_v3 = vadd.f32 %v3462_v35, %v13682_v32  ;;  %v4504_v55 = vmul.f32 %v14652_v9, %v4408_v58  ;;  %v18548_v0 = vld [vmem:[#allocation34_spill] sm:$0xff]  ;;  %v18549_v35 = vld [vmem:[#allocation201_spill] sm:$0xff]  ;;  %6549 = vmatprep.subr.bf16.mxu1 %v10386_v27  ;;  %v3464_v27 = vpop.f32.mrf.mxu0  ;;  %v10431_v37 = vld [vmem:[#allocation4 + $0x1c4] ss:$24 sps:$4 sm:$0xff]  }
 0x3c2   :  { %18543 = vst [vmem:[#allocation50_spill] sm:$0xff] %v14800_v43  ;;  %5697 = vmatmul.mubr.bf16.gmra.mxu0 %v14427_v16  ;;  %v4506_v28 = vmul.f32 %v18546_v34, %v4410_v1  ;;  %5890 = vmatmul.mubr.bf16.gmra.mxu1 %v14800_v43  ;;  %v10826_v52 = vpop.eup %10825  ;;  %v4507_v4 = vmul.f32 %v14711_v11, %v4411_v14  ;;  %v18552_v1 = vld [vmem:[#allocation60_spill] sm:$0xff]  ;;  %v3627_v34 = vpop.f32.mrf.mxu1  ;;  %10835 = vrcp.f32 %v4039_v60  ;;  %v4042_v60 = vadd.f32 1.0, %v14761_v24  ;;  %v10423_v56 = vld [vmem:[#allocation4 + $0x1f0] ss:$24 sps:$4 sm:$0xff]  }
 0x3c3   :  { %18545 = vst [vmem:[#allocation42_spill] sm:$0xff] %v14806_v53  ;;  %v4318_v5 = vmax.f32 %v3624_v12, 0.0  ;;  %v3626_v42 = vadd.f32 %v3625_v50, %v14475_v20  ;;  %5899 = vmatprep.mubr.bf16.mxu1 %v18392_v29  ;;  %v14820_v10 = vadd.f32 %v18549_v35, %v18548_v0  ;;  %v14823_v9 = vadd.f32 %v4503_v6, %v18535_v22  ;;  %v18553_v11 = vld [vmem:[#allocation136_spill] sm:$0xff] }
 0x3c4   :  { %v14826_v58 = vadd.f32 %v4506_v28, %v18542_v8  ;;  %v4413_v40 = vsub.f32 %v4317_v48, %v18552_v1  ;;  %v9232_v14 = vmul.f32 -1.442695, %v18553_v11  ;;  %v14831_v20 = vadd.f32 %v4507_v4, %v18544_v36  ;;  %v3631_v8 = vpop.f32.mrf.mxu1  ;;  %v10828_v28 = vpop.eup %10827  ;;  %v18558_v36 = vld [vmem:[#allocation61_spill] sm:$0xff] }
 0x3c5   :  { %18550 = vst [vmem:[#allocation101_spill] sm:$0xff] %v14823_v9  ;;  %v4320_v12 = vmax.f32 %v3626_v42, 0.0  ;;  %v14834_v50 = vadd.f32 %v4504_v55, %v18539_v44  ;;  %v4414_v22 = vsub.f32 %v4318_v5, %v18556_v31  ;;  %v3628_v6 = vadd.f32 %v3627_v34, %v14496_v2  ;;  %v18559_v55 = vld [vmem:[#allocation18_spill] sm:$0xff] }
 0x3c6   :  { %18551 = vst [vmem:[#allocation105_spill] sm:$0xff] %v14826_v58  ;;  %18554 = vst [vmem:[#allocation43_spill] sm:$0xff] %v14831_v20  ;;  %v14840_v48 = vpack.c.bf16 %v14826_v58, %v14823_v9  ;;  %10837 = vpow2.f32 %v9229_v54  ;;  %v3632_v42 = vadd.f32 %v3631_v8, %v14529_v7  ;;  %v4045_v44 = vadd.f32 1.0, %v10826_v52  ;;  %v3633_v2 = vpop.f32.mrf.mxu1  ;;  %v18561_v34 = vld [vmem:[#allocation178_spill] sm:$0xff] }
 0x3c7   :  { %18555 = vst [vmem:[#allocation92_spill] sm:$0xff] %v14834_v50  ;;  %v4416_v4 = vsub.f32 %v4320_v12, %v18558_v36  ;;  %v4509_v0 = vmul.f32 %v18559_v55, %v4413_v40  ;;  %v4321_v5 = vmax.f32 %v3628_v6, 0.0  ;;  %v14849_v35 = vpack.c.bf16 %v14831_v20, %v14834_v50  ;;  %v10830_v7 = vpop.eup %10829  ;;  %v18562_v6 = vld [vmem:[#allocation119_spill] sm:$0xff]  ;;  %v3468_v55 = vpop.f32.mrf.mxu0  ;;  %v18590_v50 = vld [vmem:[#allocation30_spill] sm:$0xff] }
 0x3c8   :  { %18557 = vst [vmem:[#allocation166_spill] sm:$0xff] %v14840_v48  ;;  %5706 = vmatprep.mubr.bf16.mxu0 %v14840_v48  ;;  %10839 = vpow2.f32 %v9232_v14  ;;  %v4323_v11 = vmax.f32 %v3632_v42, 0.0  ;;  %v3634_v54 = vadd.f32 %v3633_v2, %v14553_v57  ;;  %v4337_v52 = vmax.f32 %v14820_v10, 0.0  ;;  %v3635_v14 = vpop.f32.mrf.mxu1  ;;  %v10832_v10 = vpop.eup %10831 }
 0x3c9   :  { %18560 = vst [vmem:[#allocation126_spill] sm:$0xff] %v14849_v35  ;;  %v4512_v24 = vmul.f32 %v18561_v34, %v4416_v4  ;;  %v14856_v40 = vadd.f32 %v3464_v27, %v13701_v23  ;;  %v4510_v12 = vmul.f32 %v14775_v19, %v4414_v22  ;;  %v4417_v8 = vsub.f32 %v4321_v5, %v18562_v6  ;;  %v18564_v27 = vld [vmem:[#allocation33_spill] sm:$0xff] }
 0x3ca   :  { %5707 = vmatmul.mubr.bf16.gmra.mxu0 %v14515_v21  ;;  %5900 = vmatmul.mubr.bf16.gmra.mxu1 %v14849_v35  ;;  %10841 = vrcp.f32 %v4042_v60  ;;  %v4324_v57 = vmax.f32 %v3634_v54, 0.0  ;;  %v3636_v42 = vadd.f32 %v3635_v14, %v14585_v18  ;;  %v9235_v2 = vmul.f32 -1.442695, %v18564_v27  ;;  %v18566_v5 = vld [vmem:[#allocation65_spill] sm:$0xff]  ;;  %v3637_v20 = vpop.f32.mrf.mxu1 }
 0x3cb   :  { %v14862_v4 = vadd.f32 %v4512_v24, %v18558_v36  ;;  %5909 = vmatprep.mubr.bf16.mxu1 %v18392_v29  ;;  %v14868_v19 = vadd.f32 %v4509_v0, %v18552_v1  ;;  %v4513_v22 = vmul.f32 %v10828_v28, %v4417_v8  ;;  %v4419_v34 = vsub.f32 %v4323_v11, %v18566_v5  ;;  %v18567_v60 = vld [vmem:[#allocation153_spill] sm:$0xff]  ;;  %v18572_v8 = vld [vmem:[#allocation66_spill] sm:$0xff] }
 0x3cc   :  { %10843 = vrcp.f32 %v4045_v44  ;;  %v9238_v36 = vmul.f32 -1.442695, %v18567_v60  ;;  %v4326_v24 = vmax.f32 %v3636_v42, 0.0  ;;  %v3638_v54 = vadd.f32 %v3637_v20, %v14607_v59  ;;  %v10834_v18 = vpop.eup %10833  ;;  %v18570_v27 = vld [vmem:[#allocation121_spill] sm:$0xff]  ;;  %v3641_v0 = vpop.f32.mrf.mxu1  ;;  %v18575_v60 = vld [vmem:[#allocation158_spill] sm:$0xff] }
 0x3cd   :  { %18563 = vst [vmem:[#allocation106_spill] sm:$0xff] %v14862_v4  ;;  %18565 = vst [vmem:[#allocation86_spill] sm:$0xff] %v14868_v19  ;;  %v14874_v14 = vadd.f32 %v4510_v12, %v18556_v31  ;;  %v14877_v58 = vadd.f32 %v4513_v22, %v18562_v6  ;;  %v4420_v1 = vsub.f32 %v4324_v57, %v18570_v27  ;;  %v4048_v44 = vadd.f32 1.0, %v10830_v7  ;;  %v18573_v31 = vld [vmem:[#allocation181_spill] sm:$0xff]  ;;  %v3470_v7 = vpop.f32.mrf.mxu0 }
 0x3ce   :  { %v14882_v28 = vpack.c.bf16 %v14862_v4, %v14868_v19  ;;  %v14885_v11 = vadd.f32 %v3468_v55, %v13682_v32  ;;  %v4422_v59 = vsub.f32 %v4326_v24, %v18572_v8  ;;  %v4327_v20 = vmax.f32 %v3638_v54, 0.0  ;;  %v3643_v57 = vpop.f32.mrf.mxu1  ;;  %v18576_v4 = vld [vmem:[#allocation122_spill] sm:$0xff] }
 0x3cf   :  { %18568 = vst [vmem:[#allocation64_spill] sm:$0xff] %v14874_v14  ;;  %18569 = vst [vmem:[#allocation116_spill] sm:$0xff] %v14877_v58  ;;  %10845 = vpow2.f32 %v9235_v2  ;;  %v4515_v12 = vmul.f32 %v18573_v31, %v4419_v34  ;;  %v3642_v6 = vadd.f32 %v3641_v0, %v14636_v26  ;;  %v14893_v42 = vpack.c.bf16 %v14877_v58, %v14874_v14  ;;  %v10836_v2 = vpop.eup %10835  ;;  %v3472_v58 = vpop.f32.mrf.mxu0  ;;  %v18589_v14 = vld [vmem:[#allocation77_spill] sm:$0xff] }
 0x3d0   :  { %18571 = vst [vmem:[#allocation46_spill] sm:$0xff] %v14882_v28  ;;  %5716 = vmatprep.mubr.bf16.mxu0 %v14882_v28  ;;  %v4051_v22 = vadd.f32 1.0, %v10834_v18  ;;  %v4518_v55 = vmul.f32 %v18575_v60, %v4422_v59  ;;  %v4423_v19 = vsub.f32 %v4327_v20, %v18576_v4  ;;  %v3644_v24 = vadd.f32 %v3643_v57, %v14666_v49  ;;  %v3645_v54 = vpop.f32.mrf.mxu1 }
 0x3d1   :  { %18574 = vst [vmem:[#allocation67_spill] sm:$0xff] %v14893_v42  ;;  %10847 = vpow2.f32 %v9238_v36  ;;  %v4516_v26 = vmul.f32 %v10832_v10, %v4420_v1  ;;  %v4329_v34 = vmax.f32 %v3642_v6, 0.0  ;;  %v14902_v0 = vpack.c.bf16 %v14806_v53, %v14753_v25  ;;  %v18579_v10 = vld [vmem:[#allocation74_spill] sm:$0xff] }
 0x3d2   :  { %5717 = vmatmul.mubr.bf16.gmra.mxu0 %v14626_v61  ;;  %5910 = vmatmul.mubr.bf16.gmra.mxu1 %v14893_v42  ;;  %v14905_v18 = vadd.f32 %v4518_v55, %v18572_v8  ;;  %v4519_v59 = vmul.f32 %v10836_v2, %v4423_v19  ;;  %v4330_v20 = vmax.f32 %v3644_v24, 0.0  ;;  %v3646_v49 = vadd.f32 %v3645_v54, %v14692_v45  ;;  %v18581_v6 = vld [vmem:[#allocation70_spill] sm:$0xff]  ;;  %v3647_v60 = vpop.f32.mrf.mxu1  ;;  %v18583_v24 = vld [vmem:[#allocation40_spill] sm:$0xff]  ;;  %v18584_v2 = vld [vmem:[#allocation169_spill] sm:$0xff] }
 0x3d3   :  { %18577 = vst [vmem:[#allocation157_spill] sm:$0xff] %v14902_v0  ;;  %5919 = vmatprep.mubr.bf16.mxu1 %v18392_v29  ;;  %v10838_v31 = vpop.eup %10837  ;;  %10849 = vrcp.f32 %v4048_v44  ;;  %v4433_v36 = vsub.f32 %v4337_v52, %v18579_v10  ;;  %v14911_v1 = vadd.f32 %v4515_v12, %v18566_v5  ;;  %v4425_v57 = vsub.f32 %v4329_v34, %v18581_v6  ;;  %v18586_v5 = vld [vmem:[#allocation124_spill] sm:$0xff] }
 0x3d4   :  { %18578 = vst [vmem:[#allocation47_spill] sm:$0xff] %v14905_v18  ;;  %10851 = vrcp.f32 %v4051_v22  ;;  %v14915_v8 = vadd.f32 %v4519_v59, %v18576_v4  ;;  %v4332_v19 = vmax.f32 %v3646_v49, 0.0  ;;  %v3648_v45 = vadd.f32 %v3647_v60, %v14720_v51  ;;  %v3651_v54 = vpop.f32.mrf.mxu1  ;;  %v18588_v4 = vld [vmem:[#allocation71_spill] sm:$0xff] }
 0x3d5   :  { %18580 = vst [vmem:[#allocation44_spill] sm:$0xff] %v14911_v1  ;;  %v10840_v55 = vpop.eup %10839  ;;  %v3282_v44 = vadd.f32 %v18584_v2, %v18583_v24  ;;  %v14921_v52 = vadd.f32 %v4516_v26, %v18570_v27  ;;  %v4426_v12 = vsub.f32 %v4330_v20, %v18586_v5  ;;  %v14926_v22 = vpack.c.bf16 %v14905_v18, %v14911_v1  ;;  %v18592_v26 = vld [vmem:[#allocation148_spill] sm:$0xff] }
 0x3d6   :  { %18582 = vst [vmem:[#allocation108_spill] sm:$0xff] %v14915_v8  ;;  %v4054_v34 = vadd.f32 1.0, %v10838_v31  ;;  %v4428_v59 = vsub.f32 %v4332_v19, %v18588_v4  ;;  %v4333_v49 = vmax.f32 %v3648_v45, 0.0  ;;  %v3652_v51 = vadd.f32 %v3651_v54, %v14735_v38  ;;  %v3653_v2 = vpop.f32.mrf.mxu1  ;;  %v3474_v45 = vpop.f32.mrf.mxu0  ;;  %v18594_v18 = vld [vmem:[#allocation156_spill] sm:$0xff]  ;;  %v18595_v54 = vld [vmem:[#allocation125_spill] sm:$0xff] }
 0x3d7   :  { %18585 = vst [vmem:[#allocation28_spill] sm:$0xff] %v14921_v52  ;;  %18587 = vst [vmem:[#allocation48_spill] sm:$0xff] %v14926_v22  ;;  %v10842_v60 = vpop.eup %10841  ;;  %v14932_v24 = vadd.f32 %v18590_v50, %v18589_v14  ;;  %v3471_v27 = vadd.f32 %v3470_v7, %v13701_v23  ;;  %v4521_v20 = vmul.f32 %v18592_v26, %v4425_v57  ;;  %5726 = vmatprep.mubr.bf16.mxu0 %v14926_v22  ;;  %v18596_v14 = vld [vmem:[#allocation8_spill] sm:$0xff] }
 0x3d8   :  { %v14939_v31 = vpack.c.bf16 %v14915_v8, %v14921_v52  ;;  %v4057_v19 = vadd.f32 1.0, %v10840_v55  ;;  %v4524_v38 = vmul.f32 %v18594_v18, %v4428_v59  ;;  %v4429_v1 = vsub.f32 %v4333_v49, %v18595_v54  ;;  %v3655_v8 = vpop.f32.mrf.mxu1 }
 0x3d9   :  { %18591 = vst [vmem:[#allocation175_spill] sm:$0xff] %v14932_v24  ;;  %v4335_v9 = vmax.f32 %v3652_v51, 0.0  ;;  %v10844_v50 = vpop.eup %10843  ;;  %v4529_v7 = vmul.f32 %v18596_v14, %v4433_v36  ;;  %v4343_v57 = vmax.f32 %v3282_v44, 0.0  ;;  %v4522_v26 = vmul.f32 %v10842_v60, %v4426_v12  ;;  %v18599_v44 = vld [vmem:[#allocation75_spill] sm:$0xff] }
 0x3da   :  { %18593 = vst [vmem:[#allocation113_spill] sm:$0xff] %v14939_v31  ;;  %5727 = vmatmul.mubr.bf16.gmra.mxu0 %v14759_v62  ;;  %v3654_v46 = vadd.f32 %v3653_v2, %v14791_v30  ;;  %5920 = vmatmul.mubr.bf16.gmra.mxu1 %v14939_v31  ;;  %10853 = vrcp.f32 %v4054_v34  ;;  %v14948_v55 = vadd.f32 %v4524_v38, %v18588_v4  ;;  %v3657_v51 = vpop.f32.mrf.mxu1  ;;  %v3478_v34 = vpop.f32.mrf.mxu0 }
 0x3db   :  { %v4525_v18 = vmul.f32 %v10844_v50, %v4429_v1  ;;  %v3656_v59 = vadd.f32 %v3655_v8, %v14809_v3  ;;  %5929 = vmatprep.mubr.bf16.mxu1 %v18392_v29  ;;  %v3473_v49 = vadd.f32 %v3472_v58, %v13682_v32  ;;  %v14954_v36 = vadd.f32 %v4521_v20, %v18581_v6  ;;  %v18603_v6 = vld [vmem:[#allocation127_spill] sm:$0xff] }
 0x3dc   :  { %18597 = vst [vmem:[#allocation120_spill] sm:$0xff] %v14948_v55  ;;  %v4431_v12 = vsub.f32 %v4335_v9, %v18599_v44  ;;  %v4336_v30 = vmax.f32 %v3654_v46, 0.0  ;;  %v10846_v60 = vpop.eup %10845  ;;  %10855 = vrcp.f32 %v4057_v19  ;;  %v3658_v3 = vadd.f32 %v3657_v51, %v14856_v40  ;;  %v3661_v9 = vpop.f32.mrf.mxu1  ;;  %v18605_v19 = vld [vmem:[#allocation78_spill] sm:$0xff] }
 0x3dd   :  { %18598 = vst [vmem:[#allocation168_spill] sm:$0xff] %v14954_v36  ;;  %v14958_v4 = vadd.f32 %v4525_v18, %v18595_v54  ;;  %v4338_v1 = vmax.f32 %v3656_v59, 0.0  ;;  %v14962_v8 = vadd.f32 %v4529_v7, %v18579_v10  ;;  %v14965_v58 = vadd.f32 %v4522_v26, %v18586_v5  ;;  %v18606_v54 = vld [vmem:[#allocation76_spill] sm:$0xff]  ;;  %v18607_v7 = vld [vmem:[#allocation183_spill] sm:$0xff] }
 0x3de   :  { %v4432_v20 = vsub.f32 %v4336_v30, %v18603_v6  ;;  %v14970_v46 = vpack.c.bf16 %v14948_v55, %v14954_v36  ;;  %v10848_v2 = vpop.eup %10847  ;;  %v4439_v38 = vsub.f32 %v4343_v57, %v18605_v19  ;;  %v4339_v14 = vmax.f32 %v3658_v3, 0.0  ;;  %v18608_v18 = vld [vmem:[#allocation179_spill] sm:$0xff]  ;;  %v3663_v30 = vpop.f32.mrf.mxu1  ;;  %v18611_v36 = vld [vmem:[#allocation89_spill] sm:$0xff]  ;;  %v18612_v3 = vld [vmem:[#allocation128_spill] sm:$0xff] }
 0x3df   :  { %18600 = vst [vmem:[#allocation132_spill] sm:$0xff] %v14958_v4  ;;  %18601 = vst [vmem:[#allocation109_spill] sm:$0xff] %v14962_v8  ;;  %v4434_v50 = vsub.f32 %v4338_v1, %v18606_v54  ;;  %v3662_v40 = vadd.f32 %v3661_v9, %v14885_v11  ;;  %v4060_v10 = vadd.f32 1.0, %v10846_v60  ;;  %v3292_v5 = vadd.f32 %v18608_v18, %v18607_v7  ;;  %v18609_v26 = vld [vmem:[#allocation11_spill] sm:$0xff]  ;;  %v3480_v57 = vpop.f32.mrf.mxu0 }
 0x3e0   :  { %18602 = vst [vmem:[#allocation117_spill] sm:$0xff] %v14965_v58  ;;  %18604 = vst [vmem:[#allocation137_spill] sm:$0xff] %v14970_v46  ;;  %v4527_v59 = vmul.f32 %v18609_v26, %v4431_v12  ;;  %5736 = vmatprep.mubr.bf16.mxu0 %v14970_v46  ;;  %v14981_v51 = vpack.c.bf16 %v14958_v4, %v14965_v58  ;;  %v10850_v55 = vpop.eup %10849  ;;  %v4435_v52 = vsub.f32 %v4339_v14, %v18612_v3  ;;  %v3665_v4 = vpop.f32.mrf.mxu1  ;;  %v18613_v58 = vld [vmem:[#allocation199_spill] sm:$0xff] }
 0x3e1   :  { %v4530_v1 = vmul.f32 %v18611_v36, %v4434_v50  ;;  %v4341_v11 = vmax.f32 %v3662_v40, 0.0  ;;  %v3664_v60 = vadd.f32 %v3663_v30, %v3471_v27  ;;  %v10852_v9 = vpop.eup %10851  ;;  %v3475_v12 = vadd.f32 %v3474_v45, %v13701_v23  ;;  %v18616_v45 = vld [vmem:[#allocation79_spill] sm:$0xff] }
 0x3e2   :  { %18610 = vst [vmem:[#allocation197_spill] sm:$0xff] %v14981_v51  ;;  %5737 = vmatmul.mubr.bf16.gmra.mxu0 %v14902_v0  ;;  %v3479_v7 = vadd.f32 %v3478_v34, %v13682_v32  ;;  %v4063_v18 = vadd.f32 1.0, %v10848_v2  ;;  %v4528_v26 = vmul.f32 %v10850_v55, %v4432_v20  ;;  %5930 = vmatmul.mubr.bf16.gmra.mxu1 %v14981_v51  ;;  %10857 = vrcp.f32 %v4060_v10  ;;  %v3667_v55 = vpop.f32.mrf.mxu1  ;;  %v3482_v20 = vpop.f32.mrf.mxu0 }
 0x3e3   :  { %v4535_v33 = vmul.f32 %v18613_v58, %v4439_v38  ;;  %v14991_v36 = vadd.f32 %v4530_v1, %v18606_v54  ;;  %v4531_v50 = vmul.f32 %v10852_v9, %v4435_v52  ;;  %v4342_v14 = vmax.f32 %v3664_v60, 0.0  ;;  %5939 = vmatprep.mubr.bf16.mxu1 %v18392_v29  ;;  %v18618_v58 = vld [vmem:[#allocation130_spill] sm:$0xff]  ;;  %v18623_v9 = vld [vmem:[#allocation80_spill] sm:$0xff] }
 0x3e4   :  { %v14995_v27 = vadd.f32 %v4527_v59, %v18599_v44  ;;  %v4437_v34 = vsub.f32 %v4341_v11, %v18616_v45  ;;  %v3666_v2 = vadd.f32 %v3665_v4, %v3473_v49  ;;  %v4349_v40 = vmax.f32 %v3292_v5, 0.0  ;;  %v3671_v1 = vpop.f32.mrf.mxu1  ;;  %v18622_v60 = vld [vmem:[#allocation198_spill] sm:$0xff] }
 0x3e5   :  { %18614 = vst [vmem:[#allocation51_spill] sm:$0xff] %v14991_v36  ;;  %v14999_v30 = vadd.f32 %v4531_v50, %v18612_v3  ;;  %v4438_v38 = vsub.f32 %v4342_v14, %v18618_v58  ;;  %v3668_v54 = vadd.f32 %v3667_v55, %v3475_v12  ;;  %10859 = vrcp.f32 %v4063_v18  ;;  %v18625_v50 = vld [vmem:[#allocation131_spill] sm:$0xff] }
 0x3e6   :  { %18615 = vst [vmem:[#allocation9_spill] sm:$0xff] %v14995_v27  ;;  %v15003_v52 = vadd.f32 %v4528_v26, %v18603_v6  ;;  %v4344_v10 = vmax.f32 %v3666_v2, 0.0  ;;  %v15007_v44 = vpack.c.bf16 %v14991_v36, %v14995_v27  ;;  %v3481_v49 = vadd.f32 %v3480_v57, %v13701_v23  ;;  %v3673_v18 = vpop.f32.mrf.mxu1  ;;  %v3484_v57 = vpop.f32.mrf.mxu0  ;;  %v18629_v36 = vld [vmem:[#allocation83_spill] sm:$0xff] }
 0x3e7   :  { %18617 = vst [vmem:[#allocation111_spill] sm:$0xff] %v14999_v30  ;;  %v4345_v4 = vmax.f32 %v3668_v54, 0.0  ;;  %v3672_v5 = vadd.f32 %v3671_v1, %v3479_v7  ;;  %v15012_v59 = vpack.c.bf16 %v14962_v8, %v14932_v24  ;;  %v10854_v3 = vpop.eup %10853  ;;  %v3483_v11 = vadd.f32 %v3482_v20, %v13682_v32  ;;  %v18627_v20 = vld [vmem:[#allocation82_spill] sm:$0xff]  ;;  %v10419_v27 = vld [vmem:[#allocation4 + $0x224] ss:$24 sps:$4 sm:$0xff]  }
 0x3e8   :  { %18619 = vst [vmem:[#allocation52_spill] sm:$0xff] %v15003_v52  ;;  %18620 = vst [vmem:[#allocation87_spill] sm:$0xff] %v15007_v44  ;;  %v4533_v6 = vmul.f32 %v18622_v60, %v4437_v34  ;;  %v4440_v12 = vsub.f32 %v4344_v10, %v18623_v9  ;;  %5746 = vmatprep.mubr.bf16.mxu0 %v15007_v44  ;;  %v15020_v26 = vpack.c.bf16 %v14999_v30, %v15003_v52  ;;  %v18628_v10 = vld [vmem:[#allocation200_spill] sm:$0xff]  ;;  %v3675_v60 = vpop.f32.mrf.mxu1  ;;  %v10411_v52 = vld [vmem:[#allocation4 + $0x250] ss:$24 sps:$4 sm:$0xff]  }
 0x3e9   :  { %18621 = vst [vmem:[#allocation69_spill] sm:$0xff] %v15012_v59  ;;  %v4534_v7 = vmul.f32 %v10854_v3, %v4438_v38  ;;  %v4441_v14 = vsub.f32 %v4345_v4, %v18625_v50  ;;  %v4347_v2 = vmax.f32 %v3672_v5, 0.0  ;;  %v3674_v55 = vadd.f32 %v3673_v18, %v3481_v49  ;;  %v10856_v32 = vpop.eup %10855  ;;  %v18630_v49 = vld [vmem:[#allocation81_spill] sm:$0xff] }
 0x3ea   :  { %18624 = vst [vmem:[#allocation140_spill] sm:$0xff] %v15020_v26  ;;  %5747 = vmatmul.mubr.bf16.gmra.mxu0 %v15012_v59  ;;  %v15025_v34 = vadd.f32 %v4535_v33, %v18605_v19  ;;  %v4445_v54 = vsub.f32 %v4349_v40, %v18627_v20  ;;  %v4536_v1 = vmul.f32 %v18628_v10, %v4440_v12  ;;  %v18631_v5 = vld [vmem:[#allocation177_spill] sm:$0xff]  ;;  %v3677_v12 = vpop.f32.mrf.mxu1 }
 0x3eb   :  { %5940 = vmatmul.mubr.bf16.gmra.mxu1 %v15020_v26  ;;  %v4537_v30 = vmul.f32 %v10856_v32, %v4441_v14  ;;  %v4443_v38 = vsub.f32 %v4347_v2, %v18629_v36  ;;  %v4348_v3 = vmax.f32 %v3674_v55, 0.0  ;;  %v3676_v4 = vadd.f32 %v3675_v60, %v3483_v11  ;;  %v18637_v55 = vld [vmem:[#allocation133_spill] sm:$0xff] }
 0x3ec   :  { %18626 = vst [vmem:[#allocation135_spill] sm:$0xff] %v15025_v34  ;;  %5949 = vmatprep.mubr.bf16.mxu1 %v18392_v29  ;;  %v15034_v18 = vadd.f32 %v18631_v5, %v18630_v49  ;;  %v3485_v33 = vadd.f32 %v3484_v57, %v13701_v23  ;;  %v15038_v19 = vadd.f32 %v4533_v6, %v18616_v45  ;;  %v18640_v6 = vld [vmem:[#allocation203_spill] sm:$0xff]  ;;  %v18641_v57 = vld [vmem:[#allocation172_spill] sm:$0xff]  ;;  %v18645_v5 = vld [vmem:[#allocation134_spill] sm:$0xff] }
 0x3ed   :  { %v15041_v40 = vadd.f32 %v4536_v1, %v18623_v9  ;;  %v15044_v14 = vadd.f32 %v4534_v7, %v18618_v58  ;;  %v15047_v11 = vadd.f32 %v4537_v30, %v18625_v50  ;;  %v4350_v2 = vmax.f32 %v3676_v4, 0.0  ;;  %v18642_v7 = vld [vmem:[#allocation84_spill] sm:$0xff] }
 0x3ee   :  { %18632 = vst [vmem:[#allocation195_spill] sm:$0xff] %v15034_v18  ;;  %18633 = vst [vmem:[#allocation112_spill] sm:$0xff] %v15038_v19  ;;  %v4444_v32 = vsub.f32 %v4348_v3, %v18637_v55  ;;  %v3678_v10 = vadd.f32 %v3677_v12, %v3485_v33  ;;  %v15056_v45 = vpack.c.bf16 %v15025_v34, %v15034_v18  ;;  %v18644_v3 = vld [vmem:[#allocation24_spill] sm:$0xff] }
 0x3ef   :  { %18634 = vst [vmem:[#allocation72_spill] sm:$0xff] %v15041_v40  ;;  %18635 = vst [vmem:[#allocation13_spill] sm:$0xff] %v15044_v14  ;;  %v15052_v23 = vpack.c.bf16 %v15041_v40, %v15038_v19  ;;  %v4541_v9 = vmul.f32 %v18640_v6, %v4445_v54  ;;  %v4539_v58 = vmul.f32 %v18641_v57, %v4443_v38  ;;  %v10858_v60 = vpop.eup %10857  ;;  %v18649_v6 = vld [vmem:[#allocation85_spill] sm:$0xff]  ;;  %v18668_v19 = vld [vmem:[#allocation63_spill] sm:$0xff] }
 0x3f0   :  { %18636 = vst [vmem:[#allocation155_spill] sm:$0xff] %v15047_v11  ;;  %18639 = vst [vmem:[#allocation162_spill] sm:$0xff] %v15056_v45  ;;  %v4446_v1 = vsub.f32 %v4350_v2, %v18642_v7  ;;  %v15063_v30 = vpack.c.bf16 %v15047_v11, %v15044_v14  ;;  %v4351_v50 = vmax.f32 %v3678_v10, 0.0  ;;  %v4540_v49 = vmul.f32 %v10858_v60, %v4444_v32  ;;  %v18650_v57 = vld [vmem:[#allocation173_spill] sm:$0xff]  ;;  %v10384_v60 = vld [vmem:[#allocation4 + $0x460] ss:$24 sps:$4 sm:$0xff]  }
 0x3f1   :  { %18638 = vst [vmem:[#allocation55_spill] sm:$0xff] %v15052_v23  ;;  %5756 = vmatprep.mubr.bf16.mxu0 %v15052_v23  ;;  %v15071_v38 = vadd.f32 %v4541_v9, %v18627_v20  ;;  %v15074_v12 = vadd.f32 %v4539_v58, %v18629_v36  ;;  %v15082_v32 = vadd.f32 %v18650_v57, %v18649_v6  ;;  %v10375_v6 = vld [vmem:[#allocation4 + $0x100] ss:$24 sps:$4 sm:$0xff]   ;;  %v10380_v57 = vld [vmem:[#allocation4 + $0xd4] ss:$24 sps:$4 sm:$0xff]  }
 0x3f2   :  { %18643 = vst [vmem:[#allocation114_spill] sm:$0xff] %v15063_v30  ;;  %v4542_v4 = vmul.f32 %v18644_v3, %v4446_v1  ;;  %5757 = vmatmul.mubr.bf16.gmra.mxu0 %v15056_v45  ;;  %v4447_v33 = vsub.f32 %v4351_v50, %v18645_v5  ;;  %v10860_v54 = vpop.eup %10859  ;;  %v15089_v20 = vadd.f32 %v4540_v49, %v18637_v55  ;;  %v10369_v55 = vld [vmem:[#allocation4 + $0x160] ss:$24 sps:$4 sm:$0xff]   ;;  %v10374_v50 = vld [vmem:[#allocation4 + $0x134] ss:$24 sps:$4 sm:$0xff]  }
 0x3f3   :  { %5950 = vmatmul.mubr.bf16.gmra.mxu1 %v15063_v30  ;;  %18646 = vst [vmem:[#allocation196_spill] sm:$0xff] %v15071_v38  ;;  %18647 = vst [vmem:[#allocation56_spill] sm:$0xff] %v15074_v12  ;;  %v15097_v9 = vpack.c.bf16 %v15071_v38, %v15082_v32  ;;  %v18658_v3 = vld [vmem:[#allocation191_spill] sm:$0xff]  ;;  %v18659_v49 = vld [vmem:[#allocation14_spill] sm:$0xff] }
 0x3f4   :  { %v15077_v2 = vadd.f32 %v4542_v4, %v18642_v7  ;;  %5959 = vmatprep.mubr.bf16.mxu1 %v18392_v29  ;;  %v4543_v10 = vmul.f32 %v10860_v54, %v4447_v33  ;;  %18651 = vst [vmem:[#allocation171_spill] sm:$0xff] %v15082_v32  ;;  %18653 = vst [vmem:[#allocation34_spill] sm:$0xff] %v15089_v20  ;;  %v18657_v7 = vld [vmem:[#allocation151_spill] sm:$0xff]  ;;  %v10395_v4 = vld [vmem:[#allocation4 + $0x434] ss:$24 sps:$4 sm:$0xff]  }
 0x3f5   :  { %18655 = vst [vmem:[#allocation60_spill] sm:$0xff] %v15097_v9  ;;  %v10377_v33 = vld [vmem:[#allocation4 + $0x104] ss:$24 sps:$4 sm:$0xff]   ;;  %v10393_v54 = vld [vmem:[#allocation4 + $0x430] ss:$24 sps:$4 sm:$0xff]  }
 0x3f6   :  { %18648 = vst [vmem:[#allocation115_spill] sm:$0xff] %v15077_v2  ;;  %v15086_v1 = vpack.c.bf16 %v15077_v2, %v15074_v12  ;;  %v15092_v36 = vadd.f32 %v4543_v10, %v18645_v5  ;;  %v10372_v5 = vld [vmem:[#allocation4 + $0x130] ss:$24 sps:$4 sm:$0xff]   ;;  %v10404_v10 = vld [vmem:[#allocation4 + $0x404] ss:$24 sps:$4 sm:$0xff]  }
 0x3f7   :  { %v10416_v2 = vld [vmem:[#allocation4 + $0x3d4] ss:$24 sps:$4 sm:$0xff]   ;;  %v18663_v11 = vld [vmem:[#allocation12_spill] sm:$0xff] }
 0x3f8   :  { %18652 = vst [vmem:[#allocation202_spill] sm:$0xff] %v15086_v1  ;;  %18654 = vst [vmem:[#allocation201_spill] sm:$0xff] %v15092_v36  ;;  %5766 = vmatprep.mubr.bf16.mxu0 %v15086_v1  ;;  %v15101_v58 = vpack.c.bf16 %v15092_v36, %v15089_v20  ;;  %v10402_v36 = vld [vmem:[#allocation4 + $0x400] ss:$24 sps:$4 sm:$0xff]   ;;  %v10428_v20 = vld [vmem:[#allocation4 + $0x374] ss:$24 sps:$4 sm:$0xff]  }
 0x3f9   :  { %v18661_v12 = vld [vmem:[#allocation54_spill] sm:$0xff]  ;;  %v18664_v14 = vld [vmem:[#allocation192_spill] sm:$0xff] }
 0x3fa   :  { %18656 = vst [vmem:[#allocation136_spill] sm:$0xff] %v15101_v58  ;;  %5767 = vmatmul.mubr.bf16.gmra.mxu0 %v15097_v9  ;;  %v10440_v40 = vld [vmem:[#allocation4 + $0x314] ss:$24 sps:$4 sm:$0xff]   ;;  %v18677_v38 = vld [vmem:[#allocation152_spill] sm:$0xff] }
 0x3fb   :  { %5960 = vmatmul.mubr.bf16.gmra.mxu1 %v15101_v58  ;;  %6002 = vmatprep.mubr.bf16.mxu0 %v18657_v7 }
 0x3fc   :  { %6195 = vmatprep.mubr.bf16.mxu1 %v18392_v29 }
 0x402   :  { %6003 = vmatmul.mubr.bf16.vlgmr.msra.gmra.mxu0 %v18658_v3 }
 0x403   :  { %6012 = vmatprep.mubr.bf16.mxu0 %v14391_v41  ;;  %6196 = vmatmul.mubr.bf16.vlgmr.msra.gmra.mxu1 %v18659_v49 }
 0x404   :  { %6205 = vmatprep.mubr.bf16.mxu1 %v18392_v29  ;;  %6357 = vmatpush1.bf16.msra.mxu0 %v10369_v55  ;;  %v10378_v55 = vld [vmem:[#allocation4 + $0xd0] ss:$24 sps:$4 sm:$0xff]  }
 0x405   :  { %6358 = vmatprep.subr.bf16.mxu0 %v10374_v50  ;;  %6550 = vmatpush1.bf16.msra.mxu1 %v10384_v60  ;;  %v10383_v50 = vld [vmem:[#allocation4 + $0xa4] ss:$24 sps:$4 sm:$0xff]   ;;  %v10414_v60 = vld [vmem:[#allocation4 + $0x3d0] ss:$24 sps:$4 sm:$0xff]  }
 0x406   :  { %6551 = vmatprep.subr.bf16.mxu1 %v10395_v4  ;;  %v10422_v4 = vld [vmem:[#allocation4 + $0x3a4] ss:$24 sps:$4 sm:$0xff]  }
 0x408   :  { %6359 = vmatpush1.bf16.msra.mxu0 %v10372_v5  ;;  %v10381_v5 = vld [vmem:[#allocation4 + $0xa0] ss:$24 sps:$4 sm:$0xff]  }
 0x409   :  { %6360 = vmatprep.subr.bf16.mxu0 %v10377_v33  ;;  %6552 = vmatpush1.bf16.msra.mxu1 %v10393_v54  ;;  %v10389_v33 = vld [vmem:[#allocation4 + $0x74] ss:$24 sps:$4 sm:$0xff]   ;;  %v10420_v54 = vld [vmem:[#allocation4 + $0x3a0] ss:$24 sps:$4 sm:$0xff]  }
 0x40a   :  { %6013 = vmatmul.mubr.bf16.gmra.mxu0 %v14041_v13  ;;  %6553 = vmatprep.subr.bf16.mxu1 %v10404_v10  ;;  %v18660_v10 = vld [vmem:[#allocation170_spill] sm:$0xff] }
 0x40b   :  { %6022 = vmatprep.mubr.bf16.mxu0 %v14448_v17  ;;  %6206 = vmatmul.mubr.bf16.gmra.mxu1 %v14407_v39 }
 0x40c   :  { %6215 = vmatprep.mubr.bf16.mxu1 %v18392_v29  ;;  %6361 = vmatpush1.bf16.msra.mxu0 %v10375_v6  ;;  %v18662_v6 = vld [vmem:[#allocation20_spill] sm:$0xff] }
 0x40d   :  { %6362 = vmatprep.subr.bf16.mxu0 %v10380_v57  ;;  %6554 = vmatpush1.bf16.msra.mxu1 %v10402_v36  ;;  %v10387_v36 = vld [vmem:[#allocation4 + $0x70] ss:$24 sps:$4 sm:$0xff]  }
 0x40e   :  { %6555 = vmatprep.subr.bf16.mxu1 %v10416_v2  ;;  %v10392_v2 = vld [vmem:[#allocation4 + $0x44] ss:$24 sps:$4 sm:$0xff]   ;;  %v10426_v57 = vld [vmem:[#allocation4 + $0x370] ss:$24 sps:$4 sm:$0xff]  }
 0x410   :  { %6363 = vmatpush1.bf16.msra.mxu0 %v10378_v55  ;;  %v10434_v55 = vld [vmem:[#allocation4 + $0x344] ss:$24 sps:$4 sm:$0xff]  }
 0x411   :  { %6364 = vmatprep.subr.bf16.mxu0 %v10383_v50  ;;  %6556 = vmatpush1.bf16.msra.mxu1 %v10414_v60  ;;  %v10390_v50 = vld [vmem:[#allocation4 + $0x40] ss:$24 sps:$4 sm:$0xff]   ;;  %v10398_v60 = vld [vmem:[#allocation4 + $0x14] ss:$24 sps:$4 sm:$0xff]  }
 0x412   :  { %6023 = vmatmul.mubr.bf16.gmra.mxu0 %v18660_v10  ;;  %6557 = vmatprep.subr.bf16.mxu1 %v10422_v4  ;;  %v10432_v4 = vld [vmem:[#allocation4 + $0x340] ss:$24 sps:$4 sm:$0xff]  }
 0x413   :  { %6032 = vmatprep.mubr.bf16.mxu0 %v18661_v12  ;;  %6216 = vmatmul.mubr.bf16.gmra.mxu1 %v18662_v6 }
 0x414   :  { %6225 = vmatprep.mubr.bf16.mxu1 %v18392_v29  ;;  %6365 = vmatpush1.bf16.msra.mxu0 %v10381_v5  ;;  %v18665_v5 = vld [vmem:[#allocation182_spill] sm:$0xff] }
 0x415   :  { %6366 = vmatprep.subr.bf16.mxu0 %v10389_v33  ;;  %6558 = vmatpush1.bf16.msra.mxu1 %v10420_v54  ;;  %v10396_v33 = vld [vmem:[#allocation4 + $0x10] ss:$24 sps:$4 sm:$0xff]  }
 0x416   :  { %6559 = vmatprep.subr.bf16.mxu1 %v10428_v20  ;;  %v10401_v20 = vld [vmem:[#allocation4 + $0x2e4] ss:$24 sps:$4 sm:$0xff]   ;;  %v10438_v54 = vld [vmem:[#allocation4 + $0x310] ss:$24 sps:$4 sm:$0xff]  }
 0x418   :  { %6367 = vmatpush1.bf16.msra.mxu0 %v10387_v36  ;;  %v10399_v36 = vld [vmem:[#allocation4 + $0x2e0] ss:$24 sps:$4 sm:$0xff]  }
 0x419   :  { %6368 = vmatprep.subr.bf16.mxu0 %v10392_v2  ;;  %6560 = vmatpush1.bf16.msra.mxu1 %v10426_v57  ;;  %v10407_v2 = vld [vmem:[#allocation4 + $0x2b4] ss:$24 sps:$4 sm:$0xff]   ;;  %v18666_v57 = vld [vmem:[#allocation147_spill] sm:$0xff] }
 0x41a   :  { %6033 = vmatmul.mubr.bf16.gmra.mxu0 %v18663_v11  ;;  %6561 = vmatprep.subr.bf16.mxu1 %v10434_v55  ;;  %v18667_v55 = vld [vmem:[#allocation29_spill] sm:$0xff] }
 0x41b   :  { %6042 = vmatprep.mubr.bf16.mxu0 %v18664_v14  ;;  %6226 = vmatmul.mubr.bf16.gmra.mxu1 %v18665_v5 }
 0x41c   :  { %6235 = vmatprep.mubr.bf16.mxu1 %v18392_v29  ;;  %6369 = vmatpush1.bf16.msra.mxu0 %v10390_v50  ;;  %v10405_v50 = vld [vmem:[#allocation4 + $0x2b0] ss:$24 sps:$4 sm:$0xff]  }
 0x41d   :  { %6370 = vmatprep.subr.bf16.mxu0 %v10398_v60  ;;  %6562 = vmatpush1.bf16.msra.mxu1 %v10432_v4  ;;  %v10410_v60 = vld [vmem:[#allocation4 + $0x284] ss:$24 sps:$4 sm:$0xff]   ;;  %v10408_v4 = vld [vmem:[#allocation4 + $0x280] ss:$24 sps:$4 sm:$0xff]  }
 0x41e   :  { %6563 = vmatprep.subr.bf16.mxu1 %v10440_v40  ;;  %v10413_v40 = vld [vmem:[#allocation4 + $0x254] ss:$24 sps:$4 sm:$0xff]  }
 0x420   :  { %6371 = vmatpush1.bf16.msra.mxu0 %v10396_v33  ;;  %v18669_v33 = vld [vmem:[#allocation73_spill] sm:$0xff] }
 0x421   :  { %6372 = vmatprep.subr.bf16.mxu0 %v10401_v20  ;;  %6564 = vmatpush1.bf16.msra.mxu1 %v10438_v54  ;;  %v18670_v20 = vld [vmem:[#allocation165_spill] sm:$0xff]  ;;  %v18671_v54 = vld [vmem:[#allocation99_spill] sm:$0xff] }
 0x422   :  { %6043 = vmatmul.mubr.bf16.gmra.mxu0 %v18666_v57 }
 0x423   :  { %6052 = vmatprep.mubr.bf16.mxu0 %v18667_v55  ;;  %6236 = vmatmul.mubr.bf16.gmra.mxu1 %v18668_v19 }
 0x424   :  { %6245 = vmatprep.mubr.bf16.mxu1 %v18392_v29  ;;  %6373 = vmatpush2.bf16.msra.mxu0 %v10399_v36  ;;  %v10417_v36 = vld [vmem:[#allocation4 + $0x220] ss:$24 sps:$4 sm:$0xff]  }
 0x425   :  { %6374 = vmatprep.subr.bf16.mxu0 %v10407_v2  ;;  %v10425_v2 = vld [vmem:[#allocation4 + $0x1f4] ss:$24 sps:$4 sm:$0xff]  }
 0x428   :  { %6375 = vmatpush2.bf16.msra.mxu0 %v10405_v50  ;;  %v18672_v50 = vld [vmem:[#allocation138_spill] sm:$0xff] }
 0x429   :  { %6376 = vmatprep.subr.bf16.mxu0 %v10410_v60  ;;  %v18673_v60 = vld [vmem:[#allocation146_spill] sm:$0xff] }
 0x42a   :  { %6053 = vmatmul.mubr.bf16.gmra.mxu0 %v18669_v33 }
 0x42b   :  { %6062 = vmatprep.mubr.bf16.mxu0 %v18670_v20  ;;  %6246 = vmatmul.mubr.bf16.gmra.mxu1 %v18671_v54 }
 0x42c   :  { %6255 = vmatprep.mubr.bf16.mxu1 %v18392_v29  ;;  %6377 = vmatpush2.bf16.msra.mxu0 %v10408_v4  ;;  %v10429_v4 = vld [vmem:[#allocation4 + $0x1c0] ss:$24 sps:$4 sm:$0xff]  }
 0x42d   :  { %6378 = vmatprep.subr.bf16.mxu0 %v10413_v40  ;;  %v10437_v40 = vld [vmem:[#allocation4 + $0x194] ss:$24 sps:$4 sm:$0xff]  }
 0x430   :  { %6379 = vmatpush2.bf16.msra.mxu0 %v10411_v52  ;;  %v15141_v52 = vld [vmem:[%s17232_s7] sm:$0x3f] }
 0x431   :  { %6380 = vmatprep.subr.bf16.mxu0 %v10419_v27  ;;  %v18674_v27 = vld [vmem:[#allocation145_spill] sm:$0xff]  ;;  %18675 = vst [vmem:[#allocation118_spill] sm:$0xff] %v15141_v52  ;;  %v15153_v32 = vrot.slane %v15141_v52, %v18677_v38 }
 0x432   :  { %6063 = vmatmul.mubr.bf16.gmra.mxu0 %v18672_v50 }
 0x433   :  { %6072 = vmatprep.mubr.bf16.mxu0 %v14732_v47  ;;  %6256 = vmatmul.mubr.bf16.gmra.mxu1 %v18673_v60 }
 0x434   :  { %6265 = vmatprep.mubr.bf16.mxu1 %v18392_v29  ;;  %6381 = vmatpush2.bf16.msra.mxu0 %v10417_v36  ;;  %v10435_v36 = vld [vmem:[#allocation4 + $0x190] ss:$24 sps:$4 sm:$0xff]  }
 0x435   :  { %6382 = vmatprep.subr.bf16.mxu0 %v10425_v2 }
 0x438   :  { %6383 = vmatpush2.bf16.msra.mxu0 %v10423_v56  ;;  %v18676_v56 = vld [vmem:[#allocation149_spill] sm:$0xff] }
 0x439   :  { %6384 = vmatprep.subr.bf16.mxu0 %v10431_v37  ;;  %v10443_v37 = vld [vmem:[%s17233_s8 + $0xac] ss:$12 sps:$4 sm:$0xff]   ;;  %v15149_v2 = vrot.slane %v15141_v52, %v18676_v56 }
 0x43a   :  { %6073 = vmatmul.mubr.bf16.gmra.mxu0 %v18527_v63 }
 0x43b   :  { %6082 = vmatprep.mubr.bf16.mxu0 %v14788_v15  ;;  %6266 = vmatmul.mubr.bf16.gmra.mxu1 %v18674_v27 }
 0x43c   :  { %6275 = vmatprep.mubr.bf16.mxu1 %v18392_v29  ;;  %6385 = vmatpush2.bf16.msra.mxu0 %v10429_v4  ;;  %v5618_v34 = vpop.f32.mrf.mxu0 }
 0x43d   :  { %6386 = vmatprep.subr.bf16.mxu0 %v10437_v40  ;;  %v5619_v4 = vadd.f32 %v5618_v34, %v15149_v2  ;;  %v5811_v40 = vpop.f32.mrf.mxu1 }
 0x43e   :  { %v5620_v18 = vpop.f32.mrf.mxu0 }
 0x43f   :  { %v15160_v56 = vadd.f32 %v5811_v40, %v5619_v4  ;;  %v5813_v38 = vpop.f32.mrf.mxu1 }
 0x440   :  { %6387 = vmatpush2.bf16.msra.mxu0 %v10435_v36  ;;  %v5621_v36 = vadd.f32 %v5620_v18, %v15153_v32  ;;  %v5622_v8 = vpop.f32.mrf.mxu0 }
 0x441   :  { %8039 = vmatprep.subr.bf16.mxu0 %v10443_v37  ;;  %v5623_v24 = vadd.f32 %v5622_v8, %v15149_v2  ;;  %v5815_v53 = vpop.f32.mrf.mxu1 }
 0x442   :  { %6083 = vmatmul.mubr.bf16.gmra.mxu0 %v14427_v16  ;;  %v15163_v37 = vadd.f32 %v5813_v38, %v5621_v36  ;;  %v5624_v34 = vpop.f32.mrf.mxu0 }
 0x443   :  { %6092 = vmatprep.mubr.bf16.mxu0 %v14840_v48  ;;  %6276 = vmatmul.mubr.bf16.gmra.mxu1 %v14800_v43  ;;  %v15166_v25 = vadd.f32 %v5815_v53, %v5623_v24  ;;  %v5625_v48 = vadd.f32 %v5624_v34, %v15153_v32  ;;  %v5817_v43 = vpop.f32.mrf.mxu1 }
 0x444   :  { %6285 = vmatprep.mubr.bf16.mxu1 %v18392_v29  ;;  %v5628_v16 = vpop.f32.mrf.mxu0 }
 0x445   :  { %v15170_v4 = vadd.f32 %v5817_v43, %v5625_v48  ;;  %v5629_v18 = vadd.f32 %v5628_v16, %v15149_v2  ;;  %v5821_v40 = vpop.f32.mrf.mxu1 }
 0x446   :  { %v5630_v8 = vpop.f32.mrf.mxu0 }
 0x447   :  { %v15176_v53 = vadd.f32 %v5821_v40, %v5629_v18  ;;  %v5631_v24 = vadd.f32 %v5630_v8, %v15153_v32  ;;  %v5823_v38 = vpop.f32.mrf.mxu1 }
 0x448   :  { %v5632_v36 = vpop.f32.mrf.mxu0 }
 0x449   :  { %v15179_v34 = vadd.f32 %v5823_v38, %v5631_v24  ;;  %v5633_v43 = vadd.f32 %v5632_v36, %v15149_v2  ;;  %v5825_v48 = vpop.f32.mrf.mxu1 }
 0x44a   :  { %6093 = vmatmul.mubr.bf16.gmra.mxu0 %v14515_v21  ;;  %v5634_v16 = vpop.f32.mrf.mxu0 }
 0x44b   :  { %6102 = vmatprep.mubr.bf16.mxu0 %v14882_v28  ;;  %6286 = vmatmul.mubr.bf16.gmra.mxu1 %v14849_v35  ;;  %v15182_v21 = vadd.f32 %v5825_v48, %v5633_v43  ;;  %v5635_v28 = vadd.f32 %v5634_v16, %v15153_v32  ;;  %v5827_v35 = vpop.f32.mrf.mxu1 }
 0x44c   :  { %6295 = vmatprep.mubr.bf16.mxu1 %v18392_v29 }
 0x44d   :  { %v5638_v52 = vpop.f32.mrf.mxu0  ;;  %v15186_v18 = vadd.f32 %v5827_v35, %v5635_v28 }
 0x44e   :  { %v5639_v40 = vadd.f32 %v5638_v52, %v15149_v2  ;;  %v5831_v8 = vpop.f32.mrf.mxu1 }
 0x44f   :  { %v5640_v24 = vpop.f32.mrf.mxu0 }
 0x450   :  { %v15192_v38 = vadd.f32 %v5831_v8, %v5639_v40  ;;  %v5641_v36 = vadd.f32 %v5640_v24, %v15153_v32  ;;  %v5833_v43 = vpop.f32.mrf.mxu1 }
 0x451   :  { %v5642_v48 = vpop.f32.mrf.mxu0 }
 0x452   :  { %6103 = vmatmul.mubr.bf16.gmra.mxu0 %v14626_v61  ;;  %v15195_v16 = vadd.f32 %v5833_v43, %v5641_v36  ;;  %v5835_v35 = vpop.f32.mrf.mxu1  ;;  %v5643_v28 = vadd.f32 %v5642_v48, %v15149_v2 }
 0x453   :  { %6112 = vmatprep.mubr.bf16.mxu0 %v14926_v22  ;;  %6296 = vmatmul.mubr.bf16.gmra.mxu1 %v14893_v42  ;;  %v5644_v52 = vpop.f32.mrf.mxu0  ;;  %v15201_v22 = vld [vmem:[%s17233_s8 + $0xb0] ss:$12 sps:$4 sm:$0xff]  }
 0x454   :  { %6305 = vmatprep.mubr.bf16.mxu1 %v18392_v29  ;;  %v5645_v42 = vadd.f32 %v5644_v52, %v15153_v32  ;;  %v5837_v61 = vpop.f32.mrf.mxu1  ;;  %v15204_v40 = vadd.f32 %v5835_v35, %v5643_v28  ;;  %9753 = vmatprep.subr.bf16.mxu1 %v15201_v22 }
 0x456   :  { %v5648_v8 = vpop.f32.mrf.mxu0  ;;  %v15208_v24 = vadd.f32 %v5837_v61, %v5645_v42 }
 0x457   :  { %v5649_v36 = vadd.f32 %v5648_v8, %v15149_v2  ;;  %v5841_v43 = vpop.f32.mrf.mxu1 }
 0x458   :  { %v5650_v48 = vpop.f32.mrf.mxu0 }
 0x459   :  { %v15214_v52 = vadd.f32 %v5841_v43, %v5649_v36  ;;  %v5843_v35 = vpop.f32.mrf.mxu1  ;;  %v5651_v28 = vadd.f32 %v5650_v48, %v15153_v32 }
 0x45a   :  { %6113 = vmatmul.mubr.bf16.gmra.mxu0 %v14759_v62  ;;  %v5652_v62 = vpop.f32.mrf.mxu0 }
 0x45b   :  { %6122 = vmatprep.mubr.bf16.mxu0 %v14970_v46  ;;  %6306 = vmatmul.mubr.bf16.gmra.mxu1 %v14939_v31  ;;  %v5653_v27 = vadd.f32 %v5652_v62, %v15149_v2  ;;  %v5845_v61 = vpop.f32.mrf.mxu1  ;;  %v15218_v42 = vadd.f32 %v5843_v35, %v5651_v28 }
 0x45c   :  { %6315 = vmatprep.mubr.bf16.mxu1 %v18392_v29  ;;  %v5654_v8 = vpop.f32.mrf.mxu0 }
 0x45d   :  { %v15220_v15 = vadd.f32 %v5845_v61, %v5653_v27  ;;  %v5655_v46 = vadd.f32 %v5654_v8, %v15153_v32  ;;  %v5847_v31 = vpop.f32.mrf.mxu1 }
 0x45f   :  { %18678 = vst [vmem:[#allocation61_spill] sm:$0xff] %v15220_v15  ;;  %v15224_v36 = vadd.f32 %v5847_v31, %v5655_v46 }
 0x460   :  { %v5658_v63 = vpop.f32.mrf.mxu0 }
 0x461   :  { %18679 = vst [vmem:[#allocation18_spill] sm:$0xff] %v15224_v36  ;;  %v5851_v43 = vpop.f32.mrf.mxu1  ;;  %v5659_v62 = vadd.f32 %v5658_v63, %v15149_v2 }
 0x462   :  { %6123 = vmatmul.mubr.bf16.gmra.mxu0 %v14902_v0  ;;  %v5660_v48 = vpop.f32.mrf.mxu0 }
 0x463   :  { %6132 = vmatprep.mubr.bf16.mxu0 %v15007_v44  ;;  %6316 = vmatmul.mubr.bf16.gmra.mxu1 %v14981_v51  ;;  %v5661_v27 = vadd.f32 %v5660_v48, %v15153_v32  ;;  %v5853_v35 = vpop.f32.mrf.mxu1  ;;  %v15231_v28 = vadd.f32 %v5851_v43, %v5659_v62 }
 0x464   :  { %6325 = vmatprep.mubr.bf16.mxu1 %v18392_v29  ;;  %v5662_v61 = vpop.f32.mrf.mxu0 }
 0x465   :  { %v15233_v8 = vadd.f32 %v5853_v35, %v5661_v27  ;;  %v5663_v31 = vadd.f32 %v5662_v61, %v15149_v2  ;;  %v5855_v46 = vpop.f32.mrf.mxu1 }
 0x466   :  { %v5664_v0 = vpop.f32.mrf.mxu0 }
 0x467   :  { %v15236_v44 = vadd.f32 %v5855_v46, %v5663_v31  ;;  %v5665_v51 = vadd.f32 %v5664_v0, %v15153_v32  ;;  %v5857_v63 = vpop.f32.mrf.mxu1 }
 0x468   :  { %v5668_v36 = vpop.f32.mrf.mxu0 }
 0x469   :  { %v15240_v15 = vadd.f32 %v5857_v63, %v5665_v51  ;;  %v5669_v43 = vadd.f32 %v5668_v36, %v15149_v2  ;;  %v5861_v62 = vpop.f32.mrf.mxu1 }
 0x46a   :  { %6133 = vmatmul.mubr.bf16.gmra.mxu0 %v15012_v59  ;;  %v5670_v48 = vpop.f32.mrf.mxu0 }
 0x46b   :  { %6142 = vmatprep.mubr.bf16.mxu0 %v15052_v23  ;;  %6326 = vmatmul.mubr.bf16.gmra.mxu1 %v15020_v26  ;;  %v15246_v27 = vadd.f32 %v5861_v62, %v5669_v43  ;;  %v5671_v0 = vadd.f32 %v5670_v48, %v15153_v32  ;;  %v5863_v35 = vpop.f32.mrf.mxu1 }
 0x46c   :  { %6335 = vmatprep.mubr.bf16.mxu1 %v18392_v29  ;;  %v5672_v61 = vpop.f32.mrf.mxu0 }
 0x46d   :  { %v15249_v31 = vadd.f32 %v5863_v35, %v5671_v0  ;;  %v5673_v51 = vadd.f32 %v5672_v61, %v15149_v2  ;;  %v5865_v46 = vpop.f32.mrf.mxu1 }
 0x46e   :  { %v5674_v36 = vpop.f32.mrf.mxu0 }
 0x46f   :  { %v15252_v63 = vadd.f32 %v5865_v46, %v5673_v51  ;;  %v5675_v23 = vadd.f32 %v5674_v36, %v15153_v32  ;;  %v5867_v26 = vpop.f32.mrf.mxu1 }
 0x470   :  { %v5678_v59 = vpop.f32.mrf.mxu0 }
 0x471   :  { %v15256_v43 = vadd.f32 %v5867_v26, %v5675_v23  ;;  %v5679_v62 = vadd.f32 %v5678_v59, %v15149_v2  ;;  %v5871_v48 = vpop.f32.mrf.mxu1 }
 0x472   :  { %6143 = vmatmul.mubr.bf16.gmra.mxu0 %v15056_v45  ;;  %v5680_v0 = vpop.f32.mrf.mxu0 }
 0x473   :  { %18680 = vst [vmem:[#allocation178_spill] sm:$0xff] %v15256_v43  ;;  %6152 = vmatprep.mubr.bf16.mxu0 %v15086_v1  ;;  %6336 = vmatmul.mubr.bf16.gmra.mxu1 %v15063_v30  ;;  %v15262_v35 = vadd.f32 %v5871_v48, %v5679_v62  ;;  %v5681_v61 = vadd.f32 %v5680_v0, %v15153_v32  ;;  %v5873_v51 = vpop.f32.mrf.mxu1 }
 0x474   :  { %6345 = vmatprep.mubr.bf16.mxu1 %v18392_v29  ;;  %v5682_v46 = vpop.f32.mrf.mxu0 }
 0x475   :  { %v15265_v36 = vadd.f32 %v5873_v51, %v5681_v61  ;;  %v5683_v26 = vadd.f32 %v5682_v46, %v15149_v2  ;;  %v5875_v23 = vpop.f32.mrf.mxu1 }
 0x476   :  { %v5684_v59 = vpop.f32.mrf.mxu0 }
 0x477   :  { %v15268_v45 = vadd.f32 %v5875_v23, %v5683_v26  ;;  %v5877_v1 = vpop.f32.mrf.mxu1  ;;  %v5685_v30 = vadd.f32 %v5684_v59, %v15153_v32 }
 0x479   :  { %18681 = vst [vmem:[#allocation119_spill] sm:$0xff] %v15268_v45  ;;  %v5881_v48 = vpop.f32.mrf.mxu1  ;;  %v15275_v0 = vadd.f32 %v5877_v1, %v5685_v30  ;;  %v10441_v30 = vld [vmem:[%s17233_s8 + $0xa8] ss:$12 sps:$4 sm:$0xff]  }
 0x47a   :  { %v5688_v43 = vpop.f32.mrf.mxu0  ;;  %6153 = vmatmul.mubr.bf16.gmra.mxu0 %v15097_v9 }
 0x47b   :  { %v5689_v62 = vadd.f32 %v5688_v43, %v15149_v2  ;;  %6346 = vmatmul.mubr.bf16.gmra.mxu1 %v15101_v58  ;;  %6388 = vmatprep.mubr.bf16.mxu0 %v18657_v7  ;;  %v5883_v26 = vpop.f32.mrf.mxu1 }
 0x47c   :  { %v5690_v61 = vpop.f32.mrf.mxu0  ;;  %6581 = vmatprep.mubr.bf16.mxu1 %v18392_v29 }
 0x47d   :  { %v15278_v51 = vadd.f32 %v5881_v48, %v5689_v62  ;;  %v5691_v46 = vadd.f32 %v5690_v61, %v15153_v32  ;;  %v5885_v9 = vpop.f32.mrf.mxu1  ;;  %v10446_v62 = vld [vmem:[%s17233_s8 + $0x94] ss:$12 sps:$4 sm:$0xff]  }
 0x47e   :  { %v5692_v23 = vpop.f32.mrf.mxu0 }
 0x47f   :  { %v15281_v59 = vadd.f32 %v5883_v26, %v5691_v46  ;;  %v5693_v43 = vadd.f32 %v5692_v23, %v15149_v2  ;;  %v5887_v7 = vpop.f32.mrf.mxu1  ;;  %v10454_v46 = vld [vmem:[%s17233_s8 + $0x98] ss:$12 sps:$4 sm:$0xff]  }
 0x480   :  { %v5694_v45 = vpop.f32.mrf.mxu0 }
 0x481   :  { %v5695_v1 = vadd.f32 %v5694_v45, %v15153_v32  ;;  %v15291_v48 = vadd.f32 %v5885_v9, %v5693_v43  ;;  %v10444_v9 = vld [vmem:[%s17233_s8 + $0x90] ss:$12 sps:$4 sm:$0xff]  }
 0x482   :  { %v5698_v61 = vpop.f32.mrf.mxu0  ;;  %6389 = vmatmul.mubr.bf16.vlgmr.msra.gmra.mxu0 %v18658_v3  ;;  %v5891_v58 = vpop.f32.mrf.mxu1 }
 0x483   :  { %v15297_v26 = vadd.f32 %v5887_v7, %v5695_v1  ;;  %v5699_v23 = vadd.f32 %v5698_v61, %v15149_v2  ;;  %6398 = vmatprep.mubr.bf16.mxu0 %v14391_v41  ;;  %6582 = vmatmul.mubr.bf16.vlgmr.msra.gmra.mxu1 %v18659_v49  ;;  %v10449_v1 = vld [vmem:[%s17233_s8 + $0x7c] ss:$12 sps:$4 sm:$0xff]  }
 0x484   :  { %v5700_v45 = vpop.f32.mrf.mxu0  ;;  %6591 = vmatprep.mubr.bf16.mxu1 %v18392_v29  ;;  %8040 = vmatpush1.bf16.msra.mxu0 %v10441_v30  ;;  %v5893_v43 = vpop.f32.mrf.mxu1  ;;  %v10458_v30 = vld [vmem:[%s17233_s8 + $0x80] ss:$12 sps:$4 sm:$0xff]  }
 0x485   :  { %18682 = vst [vmem:[#allocation33_spill] sm:$0xff] %v15297_v26  ;;  %v15306_v3 = vadd.f32 %v5891_v58, %v5699_v23  ;;  %8041 = vmatprep.subr.bf16.mxu0 %v10446_v62  ;;  %9754 = vmatpush3.bf16.msra.mxu1 %v15201_v22  ;;  %v5701_v41 = vadd.f32 %v5700_v45, %v15153_v32  ;;  %v10447_v23 = vld [vmem:[%s17233_s8 + $0x78] ss:$12 sps:$4 sm:$0xff]  }
 0x486   :  { %v5702_v49 = vpop.f32.mrf.mxu0  ;;  %9755 = vmatprep.subr.bf16.mxu1 %v10454_v46  ;;  %v5895_v58 = vpop.f32.mrf.mxu1  ;;  %v10453_v26 = vld [vmem:[%s17233_s8 + $0x64] ss:$12 sps:$4 sm:$0xff]  }
 0x487   :  { %18683 = vst [vmem:[#allocation65_spill] sm:$0xff] %v15306_v3  ;;  %v5703_v7 = vadd.f32 %v5702_v49, %v15149_v2  ;;  %v15317_v61 = vadd.f32 %v5893_v43, %v5701_v41 }
 0x488   :  { %v5704_v62 = vpop.f32.mrf.mxu0  ;;  %8042 = vmatpush1.bf16.msra.mxu0 %v10444_v9  ;;  %v5897_v3 = vpop.f32.mrf.mxu1  ;;  %v10462_v9 = vld [vmem:[%s17233_s8 + $0x68] ss:$12 sps:$4 sm:$0xff]  }
 0x489   :  { %v15322_v22 = vadd.f32 %v5895_v58, %v5703_v7  ;;  %v5705_v45 = vadd.f32 %v5704_v62, %v15153_v32  ;;  %8043 = vmatprep.subr.bf16.mxu0 %v10449_v1  ;;  %9756 = vmatpush3.bf16.msra.mxu1 %v10454_v46  ;;  %v10463_v62 = vld [vmem:[%s17233_s8 + $0x50] ss:$12 sps:$4 sm:$0xff]  }
 0x48a   :  { %v5708_v49 = vpop.f32.mrf.mxu0  ;;  %6399 = vmatmul.mubr.bf16.gmra.mxu0 %v14041_v13  ;;  %9757 = vmatprep.subr.bf16.mxu1 %v10458_v30  ;;  %v5901_v7 = vpop.f32.mrf.mxu1  ;;  %v10451_v13 = vld [vmem:[%s17233_s8 + $0x60] ss:$12 sps:$4 sm:$0xff]  }
 0x48b   :  { %v15332_v43 = vadd.f32 %v5897_v3, %v5705_v45  ;;  %v5709_v41 = vadd.f32 %v5708_v49, %v15149_v2  ;;  %6408 = vmatprep.mubr.bf16.mxu0 %v14448_v17  ;;  %6592 = vmatmul.mubr.bf16.gmra.mxu1 %v14407_v39  ;;  %v10457_v17 = vld [vmem:[%s17233_s8 + $0x4c] ss:$12 sps:$4 sm:$0xff]  }
 0x48c   :  { %v5710_v1 = vpop.f32.mrf.mxu0  ;;  %6601 = vmatprep.mubr.bf16.mxu1 %v18392_v29  ;;  %8044 = vmatpush1.bf16.msra.mxu0 %v10447_v23  ;;  %v5903_v58 = vpop.f32.mrf.mxu1 }
 0x48d   :  { %v15341_v46 = vadd.f32 %v5901_v7, %v5709_v41  ;;  %v5711_v3 = vadd.f32 %v5710_v1, %v15153_v32  ;;  %8045 = vmatprep.subr.bf16.mxu0 %v10453_v26  ;;  %9758 = vmatpush3.bf16.msra.mxu1 %v10458_v30  ;;  %v10455_v26 = vld [vmem:[%s17233_s8 + $0x48] ss:$12 sps:$4 sm:$0xff]  }
 0x48e   :  { %v5712_v39 = vpop.f32.mrf.mxu0  ;;  %9759 = vmatprep.subr.bf16.mxu1 %v10462_v9  ;;  %v5905_v49 = vpop.f32.mrf.mxu1 }
 0x48f   :  { %v15350_v23 = vadd.f32 %v5903_v58, %v5711_v3  ;;  %v5713_v45 = vadd.f32 %v5712_v39, %v15149_v2  ;;  %v10461_v3 = vld [vmem:[%s17233_s8 + $0x34] ss:$12 sps:$4 sm:$0xff]  }
 0x490   :  { %v5714_v41 = vpop.f32.mrf.mxu0  ;;  %8046 = vmatpush1.bf16.msra.mxu0 %v10451_v13  ;;  %v5907_v1 = vpop.f32.mrf.mxu1  ;;  %v10464_v13 = vld [vmem:[%s17233_s8 + $0x38] ss:$12 sps:$4 sm:$0xff]  }
 0x491   :  { %v15356_v7 = vadd.f32 %v5905_v49, %v5713_v45  ;;  %v5715_v30 = vadd.f32 %v5714_v41, %v15153_v32  ;;  %8047 = vmatprep.subr.bf16.mxu0 %v10457_v17  ;;  %9760 = vmatpush3.bf16.msra.mxu1 %v10462_v9 }
 0x492   :  { %v5718_v58 = vpop.f32.mrf.mxu0  ;;  %6409 = vmatmul.mubr.bf16.gmra.mxu0 %v18660_v10  ;;  %9761 = vmatprep.subr.bf16.mxu1 %v10463_v62  ;;  %v5911_v49 = vpop.f32.mrf.mxu1  ;;  %v10459_v10 = vld [vmem:[%s17233_s8 + $0x30] ss:$12 sps:$4 sm:$0xff]  }
 0x493   :  { %v15366_v39 = vadd.f32 %v5907_v1, %v5715_v30  ;;  %v5719_v45 = vadd.f32 %v5718_v58, %v15149_v2  ;;  %6418 = vmatprep.mubr.bf16.mxu0 %v18661_v12  ;;  %6602 = vmatmul.mubr.bf16.gmra.mxu1 %v18662_v6  ;;  %v10467_v12 = vld [vmem:[%s17233_s8 + $0x1c] ss:$12 sps:$4 sm:$0xff]  }
 0x494   :  { %v5720_v17 = vpop.f32.mrf.mxu0  ;;  %6611 = vmatprep.mubr.bf16.mxu1 %v18392_v29  ;;  %8048 = vmatpush1.bf16.msra.mxu0 %v10455_v26  ;;  %v5913_v30 = vpop.f32.mrf.mxu1  ;;  %v10468_v26 = vld [vmem:[%s17233_s8 + $0x20] ss:$12 sps:$4 sm:$0xff]  }
 0x495   :  { %18684 = vst [vmem:[#allocation153_spill] sm:$0xff] %v15366_v39  ;;  %v15375_v9 = vadd.f32 %v5911_v49, %v5719_v45  ;;  %v5721_v41 = vadd.f32 %v5720_v17, %v15153_v32  ;;  %8049 = vmatprep.subr.bf16.mxu0 %v10461_v3  ;;  %9762 = vmatpush3.bf16.msra.mxu1 %v10463_v62  ;;  %v10465_v62 = vld [vmem:[%s17233_s8 + $0x18] ss:$12 sps:$4 sm:$0xff]  }
 0x496   :  { %v5722_v6 = vpop.f32.mrf.mxu0  ;;  %9763 = vmatprep.subr.bf16.mxu1 %v10464_v13  ;;  %v5915_v45 = vpop.f32.mrf.mxu1  ;;  %v10471_v39 = vld [vmem:[%s17233_s8 + $0x4] ss:$12 sps:$4 sm:$0xff]  }
 0x497   :  { %v15384_v1 = vadd.f32 %v5913_v30, %v5721_v41  ;;  %v5723_v58 = vadd.f32 %v5722_v6, %v15149_v2 }
 0x498   :  { %v5724_v49 = vpop.f32.mrf.mxu0  ;;  %8050 = vmatpush1.bf16.msra.mxu0 %v10459_v10  ;;  %v5917_v17 = vpop.f32.mrf.mxu1  ;;  %v10472_v10 = vld [vmem:[%s17233_s8 + $0x8] ss:$12 sps:$4 sm:$0xff]  }
 0x499   :  { %v15390_v3 = vadd.f32 %v5915_v45, %v5723_v58  ;;  %9764 = vmatpush3.bf16.msra.mxu1 %v10464_v13  ;;  %8051 = vmatprep.subr.bf16.mxu0 %v10467_v12  ;;  %v5725_v41 = vadd.f32 %v5724_v49, %v15153_v32 }
 0x49a   :  { %v5728_v30 = vpop.f32.mrf.mxu0  ;;  %6419 = vmatmul.mubr.bf16.gmra.mxu0 %v18663_v11  ;;  %9765 = vmatprep.subr.bf16.mxu1 %v10468_v26  ;;  %v5921_v58 = vpop.f32.mrf.mxu1  ;;  %v10469_v11 = vld [vmem:[%s17233_s8] ss:$12 sps:$4 sm:$0xff]  }
 0x49b   :  { %18685 = vst [vmem:[#allocation121_spill] sm:$0xff] %v15390_v3  ;;  %v5729_v6 = vadd.f32 %v5728_v30, %v15149_v2  ;;  %6428 = vmatprep.mubr.bf16.mxu0 %v18664_v14  ;;  %6612 = vmatmul.mubr.bf16.gmra.mxu1 %v18665_v5  ;;  %v15403_v13 = vadd.f32 %v5917_v17, %v5725_v41  ;;  %v9383_v5 = vmul.f32 -1.442695, %v15160_v56  ;;  %v9386_v56 = vmul.f32 -1.442695, %v15166_v25 }
 0x49c   :  { %v5730_v12 = vpop.f32.mrf.mxu0  ;;  %6621 = vmatprep.mubr.bf16.mxu1 %v18392_v29  ;;  %8052 = vmatpush1.bf16.msra.mxu0 %v10465_v62  ;;  %v5923_v30 = vpop.f32.mrf.mxu1  ;;  %v9389_v25 = vmul.f32 -1.442695, %v15176_v53 }
 0x49d   :  { %18686 = vst [vmem:[#allocation66_spill] sm:$0xff] %v15403_v13  ;;  %v15409_v45 = vadd.f32 %v5921_v58, %v5729_v6  ;;  %v5731_v49 = vadd.f32 %v5730_v12, %v15153_v32  ;;  %9766 = vmatpush3.bf16.msra.mxu1 %v10468_v26  ;;  %8053 = vmatprep.subr.bf16.mxu0 %v10471_v39  ;;  %v9384_v58 = vmul.f32 -1.442695, %v15163_v37  ;;  %10861 = vpow2.f32 %v9383_v5 }
 0x49e   :  { %v5732_v14 = vpop.f32.mrf.mxu0  ;;  %9767 = vmatprep.subr.bf16.mxu1 %v10472_v10  ;;  %v5925_v41 = vpop.f32.mrf.mxu1  ;;  %v9387_v37 = vmul.f32 -1.442695, %v15170_v4  ;;  %v9392_v4 = vmul.f32 -1.442695, %v15182_v21  ;;  %v9395_v21 = vmul.f32 -1.442695, %v15192_v38 }
 0x49f   :  { %v15413_v17 = vadd.f32 %v5923_v30, %v5731_v49  ;;  %v5733_v62 = vadd.f32 %v5732_v14, %v15149_v2  ;;  %10863 = vpow2.f32 %v9384_v58  ;;  %v9393_v58 = vmul.f32 -1.442695, %v15186_v18 }
 0x4a0   :  { %v5734_v13 = vpop.f32.mrf.mxu0  ;;  %8054 = vmatpush1.bf16.msra.mxu0 %v10469_v11  ;;  %v5927_v6 = vpop.f32.mrf.mxu1  ;;  %10865 = vpow2.f32 %v9386_v56 }
 0x4a1   :  { %v5735_v3 = vadd.f32 %v5734_v13, %v15153_v32  ;;  %9768 = vmatpush3.bf16.msra.mxu1 %v10472_v10  ;;  %v15418_v12 = vadd.f32 %v5925_v41, %v5733_v62  ;;  %10867 = vpow2.f32 %v9387_v37 }
 0x4a2   :  { %v5738_v39 = vpop.f32.mrf.mxu0  ;;  %6429 = vmatmul.mubr.bf16.gmra.mxu0 %v18666_v57  ;;  %v5931_v30 = vpop.f32.mrf.mxu1  ;;  %10869 = vpow2.f32 %v9389_v25 }
 0x4a3   :  { %v15422_v26 = vadd.f32 %v5927_v6, %v5735_v3  ;;  %v5739_v49 = vadd.f32 %v5738_v39, %v15149_v2  ;;  %6438 = vmatprep.mubr.bf16.mxu0 %v18667_v55  ;;  %6622 = vmatmul.mubr.bf16.gmra.mxu1 %v18668_v19  ;;  %v9390_v19 = vmul.f32 -1.442695, %v15179_v34 }
 0x4a4   :  { %v5740_v10 = vpop.f32.mrf.mxu0  ;;  %6631 = vmatprep.mubr.bf16.mxu1 %v18392_v29  ;;  %v5933_v57 = vpop.f32.mrf.mxu1 }
 0x4a5   :  { %v15429_v13 = vadd.f32 %v5931_v30, %v5739_v49  ;;  %v5741_v3 = vadd.f32 %v5740_v10, %v15153_v32  ;;  %10871 = vpow2.f32 %v9390_v19 }
 0x4a6   :  { %v5742_v11 = vpop.f32.mrf.mxu0  ;;  %v5935_v55 = vpop.f32.mrf.mxu1  ;;  %10873 = vpow2.f32 %v9392_v4 }
 0x4a7   :  { %v5743_v14 = vadd.f32 %v5742_v11, %v15149_v2  ;;  %v15435_v5 = vadd.f32 %v5933_v57, %v5741_v3  ;;  %10875 = vpow2.f32 %v9393_v58  ;;  %v9396_v57 = vmul.f32 -1.442695, %v15195_v16 }
 0x4a8   :  { %v5744_v41 = vpop.f32.mrf.mxu0  ;;  %v5937_v53 = vpop.f32.mrf.mxu1  ;;  %10877 = vpow2.f32 %v9395_v21  ;;  %v9398_v11 = vmul.f32 -1.442695, %v15204_v40 }
 0x4a9   :  { %v15438_v62 = vadd.f32 %v5935_v55, %v5743_v14  ;;  %v5745_v6 = vadd.f32 %v5744_v41, %v15153_v32  ;;  %v9399_v41 = vmul.f32 -1.442695, %v15208_v24  ;;  %10879 = vpow2.f32 %v9396_v57 }
 0x4aa   :  { %v5748_v39 = vpop.f32.mrf.mxu0  ;;  %6439 = vmatmul.mubr.bf16.gmra.mxu0 %v18669_v33  ;;  %v10862_v3 = vpop.eup %10861  ;;  %10881 = vpow2.f32 %v9398_v11 }
 0x4ab   :  { %v15443_v56 = vadd.f32 %v5937_v53, %v5745_v6  ;;  %v5749_v34 = vadd.f32 %v5748_v39, %v15149_v2  ;;  %v5941_v49 = vpop.f32.mrf.mxu1  ;;  %6448 = vmatprep.mubr.bf16.mxu0 %v18670_v20  ;;  %6632 = vmatmul.mubr.bf16.gmra.mxu1 %v18671_v54  ;;  %v7030_v6 = vadd.f32 1.0, %v10862_v3  ;;  %10883 = vpow2.f32 %v9399_v41 }
 0x4ac   :  { %v5750_v30 = vpop.f32.mrf.mxu0  ;;  %6641 = vmatprep.mubr.bf16.mxu1 %v18392_v29  ;;  %v10864_v16 = vpop.eup %10863 }
 0x4ad   :  { %v15450_v18 = vadd.f32 %v5941_v49, %v5749_v34  ;;  %v5751_v33 = vadd.f32 %v5750_v30, %v15153_v32  ;;  %v5943_v10 = vpop.f32.mrf.mxu1  ;;  %v10866_v40 = vpop.eup %10865  ;;  %v9401_v34 = vmul.f32 -1.442695, %v15214_v52  ;;  %10885 = vrcp.f32 %v7030_v6 }
 0x4ae   :  { %v5752_v37 = vpop.f32.mrf.mxu0 }
 0x4af   :  { %v15454_v25 = vadd.f32 %v5943_v10, %v5751_v33  ;;  %v5753_v20 = vadd.f32 %v5752_v37, %v15149_v2  ;;  %v5945_v54 = vpop.f32.mrf.mxu1  ;;  %v10868_v33 = vpop.eup %10867  ;;  %v7031_v10 = vadd.f32 1.0, %v10864_v16  ;;  %10887 = vpow2.f32 %v9401_v34 }
 0x4b0   :  { %v5754_v38 = vpop.f32.mrf.mxu0  ;;  %v10870_v37 = vpop.eup %10869  ;;  %v7034_v11 = vadd.f32 1.0, %v10868_v33 }
 0x4b1   :  { %v15458_v14 = vadd.f32 %v5945_v54, %v5753_v20  ;;  %v5755_v55 = vadd.f32 %v5754_v38, %v15153_v32  ;;  %v5947_v19 = vpop.f32.mrf.mxu1  ;;  %v18687_v54 = vld [vmem:[#allocation61_spill] sm:$0xff] }
 0x4b2   :  { %v5758_v4 = vpop.f32.mrf.mxu0  ;;  %6449 = vmatmul.mubr.bf16.gmra.mxu0 %v18672_v50  ;;  %v9402_v50 = vmul.f32 -1.442695, %v15218_v42  ;;  %v9404_v42 = vmul.f32 -1.442695, %v18687_v54  ;;  %v10872_v38 = vpop.eup %10871 }
 0x4b3   :  { %v15463_v53 = vadd.f32 %v5947_v19, %v5755_v55  ;;  %v5759_v58 = vadd.f32 %v5758_v4, %v15149_v2  ;;  %v5951_v39 = vpop.f32.mrf.mxu1  ;;  %6458 = vmatprep.mubr.bf16.mxu0 %v14732_v47  ;;  %6642 = vmatmul.mubr.bf16.gmra.mxu1 %v18673_v60  ;;  %v7033_v60 = vadd.f32 1.0, %v10866_v40  ;;  %v10874_v41 = vpop.eup %10873  ;;  %v7036_v4 = vadd.f32 1.0, %v10870_v37  ;;  %v18689_v40 = vld [vmem:[#allocation18_spill] sm:$0xff] }
 0x4b4   :  { %v5760_v49 = vpop.f32.mrf.mxu0  ;;  %6651 = vmatprep.mubr.bf16.mxu1 %v18392_v29  ;;  %10889 = vpow2.f32 %v9402_v50  ;;  %v9405_v34 = vmul.f32 -1.442695, %v18689_v40  ;;  %v18691_v50 = vld [vmem:[#allocation145_spill] sm:$0xff]  ;;  %v7037_v33 = vadd.f32 1.0, %v10872_v38  ;;  %v9407_v38 = vmul.f32 -1.442695, %v15231_v28 }
 0x4b5   :  { %v15471_v24 = vadd.f32 %v5951_v39, %v5759_v58  ;;  %v5761_v21 = vadd.f32 %v5760_v49, %v15153_v32  ;;  %v5953_v30 = vpop.f32.mrf.mxu1  ;;  %10891 = vrcp.f32 %v7031_v10  ;;  %v18688_v58 = vld [vmem:[#allocation88_spill] sm:$0xff]  ;;  %v10876_v39 = vpop.eup %10875 }
 0x4b6   :  { %v5762_v47 = vpop.f32.mrf.mxu0  ;;  %10893 = vrcp.f32 %v7033_v60  ;;  %v10878_v37 = vpop.eup %10877 }
 0x4b7   :  { %v15474_v57 = vadd.f32 %v5953_v30, %v5761_v21  ;;  %v5763_v52 = vadd.f32 %v5762_v47, %v15149_v2  ;;  %v5955_v20 = vpop.f32.mrf.mxu1  ;;  %v18690_v30 = vld [vmem:[#allocation186_spill] sm:$0xff]  ;;  %10895 = vpow2.f32 %v9404_v42 }
 0x4b8   :  { %v5764_v3 = vpop.f32.mrf.mxu0  ;;  %10897 = vrcp.f32 %v7034_v11  ;;  %v10880_v11 = vpop.eup %10879 }
 0x4b9   :  { %v15478_v55 = vadd.f32 %v5955_v20, %v5763_v52  ;;  %v5957_v19 = vpop.f32.mrf.mxu1  ;;  %v5765_v16 = vadd.f32 %v5764_v3, %v15153_v32  ;;  %v7039_v52 = vadd.f32 1.0, %v10874_v41  ;;  %10899 = vrcp.f32 %v7036_v4  ;;  %v10882_v28 = vpop.eup %10881 }
 0x4ba   :  { %v5768_v6 = vpop.f32.mrf.mxu0  ;;  %6459 = vmatmul.mubr.bf16.gmra.mxu0 %v18688_v58  ;;  %v7040_v3 = vadd.f32 1.0, %v10876_v39  ;;  %10901 = vpow2.f32 %v9405_v34  ;;  %v18694_v58 = vld [vmem:[#allocation118_spill] sm:$0xff]  ;;  %v7042_v41 = vadd.f32 1.0, %v10878_v37  ;;  %v9408_v4 = vmul.f32 -1.442695, %v15233_v8 }
 0x4bb   :  { %v5769_v49 = vadd.f32 %v5768_v6, %v15149_v2  ;;  %v5961_v21 = vpop.f32.mrf.mxu1  ;;  %6468 = vmatprep.mubr.bf16.mxu0 %v18690_v30  ;;  %6652 = vmatmul.mubr.bf16.gmra.mxu1 %v18691_v50  ;;  %v15486_v10 = vadd.f32 %v5957_v19, %v5765_v16  ;;  %v18693_v16 = vld [vmem:[#allocation185_spill] sm:$0xff]  ;;  %10903 = vrcp.f32 %v7037_v33  ;;  %v9410_v30 = vmul.f32 -1.442695, %v15236_v44  ;;  %v18700_v44 = vld [vmem:[#allocation50_spill] sm:$0xff] }
 0x4bc   :  { %v5770_v47 = vpop.f32.mrf.mxu0  ;;  %6661 = vmatprep.mubr.bf16.mxu1 %v18392_v29  ;;  %v15497_v40 = vrot.slane %v18694_v58, %v18693_v16  ;;  %10905 = vrcp.f32 %v7039_v52  ;;  %v18696_v33 = vld [vmem:[#allocation45_spill] sm:$0xff]  ;;  %v10884_v52 = vpop.eup %10883 }
 0x4bd   :  { %v15489_v60 = vadd.f32 %v5961_v21, %v5769_v49  ;;  %v5771_v20 = vadd.f32 %v5770_v47, %v15153_v32  ;;  %v5963_v54 = vpop.f32.mrf.mxu1  ;;  %10907 = vrcp.f32 %v7040_v3  ;;  %v18697_v37 = vsub.s32 3, %v18696_v33 }
 0x4be   :  { %v5772_v6 = vpop.f32.mrf.mxu0  ;;  %10909 = vpow2.f32 %v9407_v38 }
 0x4bf   :  { %v15493_v42 = vadd.f32 %v5963_v54, %v5771_v20  ;;  %v5965_v19 = vpop.f32.mrf.mxu1  ;;  %v5773_v49 = vadd.f32 %v5772_v6, %v15149_v2  ;;  %v18695_v20 = vld [vmem:[#allocation189_spill] sm:$0xff]  ;;  %v15509_v2 = vrot.slane %v18694_v58, %v18697_v37  ;;  %v7043_v54 = vadd.f32 1.0, %v10880_v11  ;;  %v18699_v6 = vld [vmem:[#allocation166_spill] sm:$0xff] }
 0x4c0   :  { %v5774_v21 = vpop.f32.mrf.mxu0  ;;  %10911 = vrcp.f32 %v7042_v41 }
 0x4c1   :  { %18692 = vst [vmem:[#allocation181_spill] sm:$0xff] %v15493_v42  ;;  %v5775_v39 = vadd.f32 %v5774_v21, %v15153_v32  ;;  %v5967_v34 = vpop.f32.mrf.mxu1  ;;  %v15503_v50 = vadd.f32 %v5965_v19, %v5773_v49  ;;  %v10886_v19 = vpop.eup %10885  ;;  %v9411_v49 = vmul.f32 -1.442695, %v15240_v15  ;;  %10913 = vpow2.f32 %v9408_v4 }
 0x4c2   :  { %v6004_v47 = vpop.f32.mrf.mxu0  ;;  %6469 = vmatmul.mubr.bf16.gmra.mxu0 %v18695_v20  ;;  %v10888_v58 = vpop.eup %10887  ;;  %v7045_v20 = vadd.f32 1.0, %v10882_v28  ;;  %10915 = vpow2.f32 %v9410_v30  ;;  %v9413_v15 = vmul.f32 -1.442695, %v15246_v27  ;;  %v9414_v27 = vmul.f32 -1.442695, %v15249_v31 }
 0x4c3   :  { %v15511_v8 = vadd.f32 %v5967_v34, %v5775_v39  ;;  %v6005_v32 = vadd.f32 %v6004_v47, %v15497_v40  ;;  %v6197_v3 = vpop.f32.mrf.mxu1  ;;  %6478 = vmatprep.mubr.bf16.mxu0 %v18699_v6  ;;  %6662 = vmatmul.mubr.bf16.gmra.mxu1 %v18700_v44  ;;  %v10890_v39 = vpop.eup %10889  ;;  %v7046_v34 = vadd.f32 1.0, %v10884_v52  ;;  %10917 = vrcp.f32 %v7043_v54 }
 0x4c4   :  { %v6006_v21 = vpop.f32.mrf.mxu0  ;;  %6671 = vmatprep.mubr.bf16.mxu1 %v18392_v29  ;;  %v15521_v6 = vpop.eup %10891  ;;  %v7048_v28 = vadd.f32 1.0, %v10888_v58  ;;  %10919 = vpow2.f32 %v9411_v49  ;;  %v7049_v52 = vadd.f32 1.0, %v10890_v39  ;;  %v18704_v39 = vld [vmem:[#allocation46_spill] sm:$0xff]  ;;  %v9416_v31 = vmul.f32 -1.442695, %v15252_v63 }
 0x4c5   :  { %18698 = vst [vmem:[#allocation158_spill] sm:$0xff] %v15511_v8  ;;  %v15518_v38 = vadd.f32 %v6197_v3, %v6005_v32  ;;  %v6199_v11 = vpop.f32.mrf.mxu1  ;;  %v6007_v47 = vadd.f32 %v6006_v21, %v15509_v2  ;;  %18701 = vst [vmem:[#allocation122_spill] sm:$0xff] %v15521_v6  ;;  %v10894_v16 = vpop.eup %10893  ;;  %10921 = vrcp.f32 %v7045_v20  ;;  %v18703_v8 = vld [vmem:[#allocation25_spill] sm:$0xff] }
 0x4c6   :  { %v6008_v37 = vpop.f32.mrf.mxu0  ;;  %v10896_v3 = vpop.eup %10895  ;;  %10923 = vrcp.f32 %v7046_v34 }
 0x4c7   :  { %v6009_v41 = vadd.f32 %v6008_v37, %v15497_v40  ;;  %v6201_v44 = vpop.f32.mrf.mxu1  ;;  %v6200_v4 = vadd.f32 %v6199_v11, %v6007_v47  ;;  %v15528_v6 = vpop.eup %10897  ;;  %10925 = vpow2.f32 %v9413_v15  ;;  %v18705_v47 = vld [vmem:[#allocation126_spill] sm:$0xff]  ;;  %v7051_v34 = vadd.f32 1.0, %v10896_v3 }
 0x4c8   :  { %v6010_v32 = vpop.f32.mrf.mxu0  ;;  %18702 = vst [vmem:[#allocation74_spill] sm:$0xff] %v15528_v6  ;;  %v15532_v49 = vpop.eup %10899  ;;  %10927 = vrcp.f32 %v7048_v28  ;;  %v18708_v28 = vld [vmem:[#allocation178_spill] sm:$0xff] }
 0x4c9   :  { %v15525_v30 = vadd.f32 %v6201_v44, %v6009_v41  ;;  %v6011_v21 = vadd.f32 %v6010_v32, %v15509_v2  ;;  %v6203_v33 = vpop.f32.mrf.mxu1  ;;  %v7318_v54 = vmax.f32 %v6200_v4, 0.0  ;;  %v10902_v41 = vpop.eup %10901  ;;  %v18706_v44 = vld [vmem:[#allocation188_spill] sm:$0xff]  ;;  %10929 = vrcp.f32 %v7049_v52  ;;  %v18711_v6 = vld [vmem:[#allocation190_spill] sm:$0xff] }
 0x4ca   :  { %v6014_v37 = vpop.f32.mrf.mxu0  ;;  %6479 = vmatmul.mubr.bf16.gmra.mxu0 %v18703_v8  ;;  %v15540_v8 = vpop.eup %10903  ;;  %10931 = vpow2.f32 %v9414_v27  ;;  %v9417_v3 = vmul.f32 -1.442695, %v18708_v28 }
 0x4cb   :  { %v6204_v58 = vadd.f32 %v6203_v33, %v6011_v21  ;;  %v6015_v20 = vadd.f32 %v6014_v37, %v15497_v40  ;;  %v6207_v11 = vpop.f32.mrf.mxu1  ;;  %6488 = vmatprep.mubr.bf16.mxu0 %v18704_v39  ;;  %6672 = vmatmul.mubr.bf16.gmra.mxu1 %v18705_v47  ;;  %v7414_v4 = vsub.f32 %v7318_v54, %v18706_v44  ;;  %v15545_v39 = vpop.eup %10905  ;;  %v7052_v44 = vadd.f32 1.0, %v10902_v41 }
 0x4cc   :  { %v6016_v32 = vpop.f32.mrf.mxu0  ;;  %6681 = vmatprep.mubr.bf16.mxu1 %v18392_v29  ;;  %18707 = vst [vmem:[#allocation70_spill] sm:$0xff] %v15540_v8  ;;  %v15550_v47 = vpop.eup %10907  ;;  %10933 = vrcp.f32 %v7051_v34  ;;  %v18713_v34 = vld [vmem:[#allocation35_spill] sm:$0xff] }
 0x4cd   :  { %v7321_v33 = vmax.f32 %v6204_v58, 0.0  ;;  %v15542_v15 = vadd.f32 %v6207_v11, %v6015_v20  ;;  %v6017_v21 = vadd.f32 %v6016_v32, %v15509_v2  ;;  %v6209_v37 = vpop.f32.mrf.mxu1  ;;  %v15548_v63 = vmul.f32 %v10886_v19, %v7414_v4  ;;  %18710 = vst [vmem:[#allocation169_spill] sm:$0xff] %v15550_v47  ;;  %v10910_v11 = vpop.eup %10909 }
 0x4ce   :  { %v6018_v54 = vpop.f32.mrf.mxu0  ;;  %v9419_v32 = vmul.f32 -1.442695, %v15262_v35  ;;  %v15555_v27 = vpop.eup %10911  ;;  %10935 = vpow2.f32 %v9416_v31 }
 0x4cf   :  { %18709 = vst [vmem:[#allocation40_spill] sm:$0xff] %v15548_v63  ;;  %v7417_v8 = vsub.f32 %v7321_v33, %v18711_v6  ;;  %v6210_v52 = vadd.f32 %v6209_v37, %v6017_v21  ;;  %v6019_v58 = vadd.f32 %v6018_v54, %v15497_v40  ;;  %v6211_v20 = vpop.f32.mrf.mxu1  ;;  %v10914_v63 = vpop.eup %10913  ;;  %10937 = vpow2.f32 %v9417_v3  ;;  %v18714_v6 = vld [vmem:[#allocation16_spill] sm:$0xff] }
 0x4d0   :  { %v6020_v42 = vpop.f32.mrf.mxu0  ;;  %v9420_v33 = vmul.f32 -1.442695, %v15265_v36  ;;  %v10916_v35 = vpop.eup %10915  ;;  %10939 = vrcp.f32 %v7052_v44  ;;  %v7054_v54 = vadd.f32 1.0, %v10910_v11  ;;  %v18718_v36 = vld [vmem:[#allocation119_spill] sm:$0xff]  ;;  %v7055_v11 = vadd.f32 1.0, %v10914_v63 }
 0x4d1   :  { %v15557_v19 = vmul.f32 %v10894_v16, %v7417_v8  ;;  %v7324_v4 = vmax.f32 %v6210_v52, 0.0  ;;  %v15559_v28 = vadd.f32 %v6211_v20, %v6019_v58  ;;  %v6213_v41 = vpop.f32.mrf.mxu1  ;;  %v6021_v21 = vadd.f32 %v6020_v42, %v15509_v2  ;;  %v18715_v52 = vld [vmem:[#allocation48_spill] sm:$0xff]  ;;  %v18716_v58 = vld [vmem:[#allocation67_spill] sm:$0xff]  ;;  %v15568_v3 = vpop.eup %10917 }
 0x4d2   :  { %v6024_v37 = vpop.f32.mrf.mxu0  ;;  %6489 = vmatmul.mubr.bf16.gmra.mxu0 %v18713_v34  ;;  %18717 = vst [vmem:[#allocation71_spill] sm:$0xff] %v15568_v3  ;;  %10941 = vpow2.f32 %v9419_v32  ;;  %v9422_v42 = vmul.f32 -1.442695, %v18718_v36  ;;  %v10920_v44 = vpop.eup %10919 }
 0x4d3   :  { %18712 = vst [vmem:[#allocation124_spill] sm:$0xff] %v15557_v19  ;;  %v7420_v31 = vsub.f32 %v7324_v4, %v18714_v6  ;;  %v6025_v16 = vadd.f32 %v6024_v37, %v15497_v40  ;;  %v6217_v8 = vpop.f32.mrf.mxu1  ;;  %6498 = vmatprep.mubr.bf16.mxu0 %v18715_v52  ;;  %6682 = vmatmul.mubr.bf16.gmra.mxu1 %v18716_v58  ;;  %v15578_v58 = vpop.eup %10921  ;;  %v7057_v6 = vadd.f32 1.0, %v10916_v35  ;;  %10943 = vpow2.f32 %v9420_v33 }
 0x4d4   :  { %v6214_v20 = vadd.f32 %v6213_v41, %v6021_v21  ;;  %v6026_v19 = vpop.f32.mrf.mxu0  ;;  %6691 = vmatprep.mubr.bf16.mxu1 %v18392_v29  ;;  %v15580_v41 = vpop.eup %10923  ;;  %10945 = vrcp.f32 %v7054_v54  ;;  %v9423_v21 = vmul.f32 -1.442695, %v15275_v0  ;;  %v9425_v33 = vmul.f32 -1.442695, %v15278_v51 }
 0x4d5   :  { %v15573_v4 = vmul.f32 %v15532_v49, %v7420_v31  ;;  %v15575_v37 = vadd.f32 %v6217_v8, %v6025_v16  ;;  %v6027_v34 = vadd.f32 %v6026_v19, %v15509_v2  ;;  %v6219_v52 = vpop.f32.mrf.mxu1  ;;  %18720 = vst [vmem:[#allocation30_spill] sm:$0xff] %v15580_v41  ;;  %v10926_v16 = vpop.eup %10925  ;;  %v7058_v8 = vadd.f32 1.0, %v10920_v44  ;;  %v18721_v19 = vld [vmem:[#allocation160_spill] sm:$0xff]  ;;  %v18733_v41 = vld [vmem:[#allocation19_spill] sm:$0xff] }
 0x4d6   :  { %v7327_v32 = vmax.f32 %v6214_v20, 0.0  ;;  %v6028_v36 = vpop.f32.mrf.mxu0  ;;  %10947 = vpow2.f32 %v9422_v42  ;;  %v15585_v47 = vpop.eup %10927 }
 0x4d7   :  { %18719 = vst [vmem:[#allocation77_spill] sm:$0xff] %v15573_v4  ;;  %v6220_v63 = vadd.f32 %v6219_v52, %v6027_v34  ;;  %v6029_v49 = vadd.f32 %v6028_v36, %v15497_v40  ;;  %v6221_v31 = vpop.f32.mrf.mxu1  ;;  %10949 = vrcp.f32 %v7055_v11  ;;  %v15590_v0 = vpop.eup %10929  ;;  %v18725_v52 = vld [vmem:[#allocation17_spill] sm:$0xff]  ;;  %v7702_v11 = vld [vmem:[%s17226_s1] sm:$0xf]  ;;  %v18726_v36 = vld [vmem:[#allocation22_spill] sm:$0xff] }
 0x4d8   :  { %v7423_v4 = vsub.f32 %v7327_v32, %v18721_v19  ;;  %v6030_v3 = vpop.f32.mrf.mxu0  ;;  %18723 = vst [vmem:[#allocation156_spill] sm:$0xff] %v15590_v0  ;;  %10951 = vrcp.f32 %v7057_v6  ;;  %v10932_v51 = vpop.eup %10931  ;;  %v7060_v32 = vadd.f32 1.0, %v10926_v16  ;;  %v18728_v6 = vld [vmem:[#allocation113_spill] sm:$0xff] }
 0x4d9   :  { %v7330_v35 = vmax.f32 %v6220_v63, 0.0  ;;  %v15588_v20 = vadd.f32 %v6221_v31, %v6029_v49  ;;  %v6223_v54 = vpop.f32.mrf.mxu1  ;;  %v6031_v42 = vadd.f32 %v6030_v3, %v15509_v2  ;;  %10953 = vpow2.f32 %v9423_v21  ;;  %v18727_v31 = vld [vmem:[#allocation137_spill] sm:$0xff]  ;;  %v15609_v21 = vpop.eup %10933 }
 0x4da   :  { %v15593_v34 = vmul.f32 %v15545_v39, %v7423_v4  ;;  %v6034_v44 = vpop.f32.mrf.mxu0  ;;  %6499 = vmatmul.mubr.bf16.gmra.mxu0 %v18725_v52  ;;  %v7703_v39 = vld [vmem:[%s17226_s1 + $0x4] sm:$0xf]  ;;  %10955 = vrcp.f32 %v7058_v8  ;;  %v9426_v3 = vmul.f32 -1.442695, %v15281_v59  ;;  %v9428_v59 = vmul.f32 -1.442695, %v15291_v48 }
 0x4db   :  { %18722 = vst [vmem:[#allocation148_spill] sm:$0xff] %v15588_v20  ;;  %v7426_v63 = vsub.f32 %v7330_v35, %v18726_v36  ;;  %v6227_v49 = vpop.f32.mrf.mxu1  ;;  %6508 = vmatprep.mubr.bf16.mxu0 %v18727_v31  ;;  %6692 = vmatmul.mubr.bf16.gmra.mxu1 %v18728_v6  ;;  %v6224_v4 = vadd.f32 %v6223_v54, %v6031_v42  ;;  %10957 = vpow2.f32 %v9425_v33  ;;  %v10936_v8 = vpop.eup %10935  ;;  %v7061_v33 = vadd.f32 1.0, %v10932_v51 }
 0x4dc   :  { %18724 = vst [vmem:[#allocation125_spill] sm:$0xff] %v15593_v34  ;;  %v6035_v52 = vadd.f32 %v6034_v44, %v15497_v40  ;;  %v6036_v34 = vpop.f32.mrf.mxu0  ;;  %6701 = vmatprep.mubr.bf16.mxu1 %v18392_v29  ;;  %v7734_v6 = vmax.bf16 %v18392_v29, %v7702_v11  ;;  %v7735_v36 = vmax.bf16 %v18392_v29, %v7703_v39  ;;  %v10938_v19 = vpop.eup %10937  ;;  %10959 = vrcp.f32 %v7060_v32  ;;  %v18732_v11 = vld [vmem:[#allocation33_spill] sm:$0xff] }
 0x4dd   :  { %v15612_v16 = vmul.f32 %v15555_v27, %v7426_v63  ;;  %v6037_v35 = vadd.f32 %v6036_v34, %v15509_v2  ;;  %v6229_v31 = vpop.f32.mrf.mxu1  ;;  %v7333_v54 = vmax.f32 %v6224_v4, 0.0  ;;  %v15621_v34 = vpop.eup %10939  ;;  %10961 = vpow2.f32 %v9426_v3 }
 0x4de   :  { %v15617_v42 = vadd.f32 %v6227_v49, %v6035_v52  ;;  %v6038_v44 = vpop.f32.mrf.mxu0  ;;  %18731 = vst [vmem:[#allocation127_spill] sm:$0xff] %v15621_v34  ;;  %v7704_v49 = vld [vmem:[%s17226_s1 + $0x8] sm:$0xf]  ;;  %v7063_v52 = vadd.f32 1.0, %v10936_v8  ;;  %10963 = vpow2.f32 %v9428_v59 }
 0x4df   :  { %18729 = vst [vmem:[#allocation8_spill] sm:$0xff] %v15612_v16  ;;  %v6230_v0 = vadd.f32 %v6229_v31, %v6037_v35  ;;  %v6039_v27 = vadd.f32 %v6038_v44, %v15497_v40  ;;  %v6231_v63 = vpop.f32.mrf.mxu1  ;;  %v9429_v16 = vmul.f32 -1.442695, %v18732_v11  ;;  %v7429_v48 = vsub.f32 %v7333_v54, %v18733_v41  ;;  %v10942_v39 = vpop.eup %10941  ;;  %v18736_v54 = vld [vmem:[#allocation157_spill] sm:$0xff] }
 0x4e0   :  { %18730 = vst [vmem:[#allocation75_spill] sm:$0xff] %v15617_v42  ;;  %v6040_v4 = vpop.f32.mrf.mxu0  ;;  %v7064_v44 = vadd.f32 1.0, %v10938_v19  ;;  %v15635_v41 = vcombine.low %v7734_v6, %v7735_v36  ;;  %v10944_v34 = vpop.eup %10943  ;;  %10965 = vrcp.f32 %v7061_v33  ;;  %v18737_v42 = vld [vmem:[#allocation27_spill] sm:$0xff]  ;;  %v7736_v19 = vmax.bf16 %v18392_v29, %v7704_v49  ;;  %v18740_v6 = vld [vmem:[#allocation65_spill] sm:$0xff] }
 0x4e1   :  { %v7336_v32 = vmax.f32 %v6230_v0, 0.0  ;;  %v15628_v51 = vadd.f32 %v6231_v63, %v6039_v27  ;;  %v6041_v35 = vadd.f32 %v6040_v4, %v15509_v2  ;;  %v6233_v31 = vpop.f32.mrf.mxu1  ;;  %v15632_v3 = vmul.f32 %v15578_v58, %v7429_v48  ;;  %v18738_v63 = vld [vmem:[#allocation87_spill] sm:$0xff]  ;;  %v18739_v4 = vld [vmem:[#allocation197_spill] sm:$0xff]  ;;  %v15644_v59 = vpop.eup %10945 }
 0x4e2   :  { %v6044_v11 = vpop.f32.mrf.mxu0  ;;  %6509 = vmatmul.mubr.bf16.gmra.mxu0 %v18736_v54  ;;  %v7705_v58 = vld [vmem:[%s17226_s1 + $0xc] sm:$0xf]  ;;  %v7066_v36 = vadd.f32 1.0, %v10942_v39  ;;  %10967 = vpow2.f32 %v9429_v16  ;;  %v9431_v33 = vmul.f32 -1.442695, %v18740_v6 }
 0x4e3   :  { %18734 = vst [vmem:[#allocation78_spill] sm:$0xff] %v15628_v51  ;;  %18735 = vst [vmem:[#allocation76_spill] sm:$0xff] %v15632_v3  ;;  %v7432_v8 = vsub.f32 %v7336_v32, %v18737_v42  ;;  %v6234_v0 = vadd.f32 %v6233_v31, %v6041_v35  ;;  %v6237_v27 = vpop.f32.mrf.mxu1  ;;  %6518 = vmatprep.mubr.bf16.mxu0 %v18738_v63  ;;  %6702 = vmatmul.mubr.bf16.gmra.mxu1 %v18739_v4  ;;  %v10948_v35 = vpop.eup %10947  ;;  %10969 = vrcp.f32 %v7063_v52  ;;  %v7706_v16 = vld [vmem:[%s17226_s1 + $0x10] sm:$0xf]  ;;  %v7707_v39 = vld [vmem:[%s17226_s1 + $0x14] sm:$0xf] }
 0x4e4   :  { %v6045_v48 = vadd.f32 %v6044_v11, %v15497_v40  ;;  %v6046_v32 = vpop.f32.mrf.mxu0  ;;  %6711 = vmatprep.mubr.bf16.mxu1 %v18392_v29  ;;  %v15659_v11 = vpop.eup %10949  ;;  %10971 = vrcp.f32 %v7064_v44  ;;  %v7067_v4 = vadd.f32 1.0, %v10944_v34  ;;  %v9432_v6 = vmul.f32 -1.442695, %v15317_v61 }
 0x4e5   :  { %v15650_v31 = vmul.f32 %v15585_v47, %v7432_v8  ;;  %v7339_v54 = vmax.f32 %v6234_v0, 0.0  ;;  %v6047_v63 = vadd.f32 %v6046_v32, %v15509_v2  ;;  %v6239_v49 = vpop.f32.mrf.mxu1  ;;  %18742 = vst [vmem:[#allocation179_spill] sm:$0xff] %v15659_v11  ;;  %v7737_v8 = vmax.bf16 %v18392_v29, %v7705_v58  ;;  %v15664_v0 = vpop.eup %10951  ;;  %v18743_v32 = vld [vmem:[#allocation142_spill] sm:$0xff] }
 0x4e6   :  { %v15661_v52 = vadd.f32 %v6237_v27, %v6045_v48  ;;  %v6048_v47 = vpop.f32.mrf.mxu0  ;;  %v10954_v20 = vpop.eup %10953  ;;  %10973 = vrcp.f32 %v7066_v36  ;;  %v7069_v11 = vadd.f32 1.0, %v10948_v35  ;;  %v7738_v34 = vmax.bf16 %v18392_v29, %v7706_v16  ;;  %v18746_v16 = vld [vmem:[#allocation69_spill] sm:$0xff] }
 0x4e7   :  { %18741 = vst [vmem:[#allocation183_spill] sm:$0xff] %v15650_v31  ;;  %v7435_v31 = vsub.f32 %v7339_v54, %v18743_v32  ;;  %v6240_v42 = vadd.f32 %v6239_v49, %v6047_v63  ;;  %v6049_v3 = vadd.f32 %v6048_v47, %v15497_v40  ;;  %v6241_v51 = vpop.f32.mrf.mxu1  ;;  %v7739_v27 = vmax.bf16 %v18392_v29, %v7707_v39  ;;  %v15671_v48 = vpop.eup %10955 }
 0x4e8   :  { %v6050_v44 = vpop.f32.mrf.mxu0  ;;  %18744 = vst [vmem:[#allocation11_spill] sm:$0xff] %v15671_v48  ;;  %10975 = vpow2.f32 %v9431_v33  ;;  %v10958_v49 = vpop.eup %10957  ;;  %v9434_v36 = vmul.f32 -1.442695, %v15322_v22  ;;  %v15681_v39 = vcombine.low %v7736_v19, %v7737_v8  ;;  %v7070_v32 = vadd.f32 1.0, %v10954_v20  ;;  %v18747_v33 = vld [vmem:[#allocation193_spill] sm:$0xff] }
 0x4e9   :  { %v15674_v58 = vmul.f32 %v15609_v21, %v7435_v31  ;;  %v7342_v61 = vmax.f32 %v6240_v42, 0.0  ;;  %v15676_v54 = vadd.f32 %v6241_v51, %v6049_v3  ;;  %v6243_v63 = vpop.f32.mrf.mxu1  ;;  %10977 = vrcp.f32 %v7067_v4  ;;  %v18748_v3 = vld [vmem:[#allocation55_spill] sm:$0xff]  ;;  %v18749_v31 = vld [vmem:[#allocation140_spill] sm:$0xff]  ;;  %v15690_v4 = vpop.eup %10959 }
 0x4ea   :  { %v6051_v35 = vadd.f32 %v6050_v44, %v15509_v2  ;;  %v6054_v47 = vpop.f32.mrf.mxu0  ;;  %6519 = vmatmul.mubr.bf16.gmra.mxu0 %v18746_v16  ;;  %10979 = vpow2.f32 %v9432_v6  ;;  %v7708_v22 = vld [vmem:[%s17226_s1 + $0x18] sm:$0xf]  ;;  %v9435_v19 = vmul.f32 -1.442695, %v15332_v43  ;;  %v15694_v6 = vcombine.low %v7738_v34, %v7739_v27  ;;  %v7709_v44 = vld [vmem:[%s17226_s1 + $0x1c] sm:$0xf] }
 0x4eb   :  { %18745 = vst [vmem:[#allocation89_spill] sm:$0xff] %v15674_v58  ;;  %v7438_v21 = vsub.f32 %v7342_v61, %v18747_v33  ;;  %v6055_v42 = vadd.f32 %v6054_v47, %v15497_v40  ;;  %v6247_v51 = vpop.f32.mrf.mxu1  ;;  %6528 = vmatprep.mubr.bf16.mxu0 %v18748_v3  ;;  %6712 = vmatmul.mubr.bf16.gmra.mxu1 %v18749_v31  ;;  %10981 = vrcp.f32 %v7069_v11  ;;  %v10962_v61 = vpop.eup %10961  ;;  %v7072_v47 = vadd.f32 1.0, %v10958_v49 }
 0x4ec   :  { %v6244_v20 = vadd.f32 %v6243_v63, %v6051_v35  ;;  %v6056_v8 = vpop.f32.mrf.mxu0  ;;  %6721 = vmatprep.mubr.bf16.mxu1 %v18392_v29  ;;  %10983 = vpow2.f32 %v9434_v36  ;;  %v9437_v63 = vmul.f32 -1.442695, %v15341_v46  ;;  %v7740_v27 = vmax.bf16 %v18392_v29, %v7708_v22  ;;  %v10964_v31 = vpop.eup %10963 }
 0x4ed   :  { %v15700_v16 = vmul.f32 %v15644_v59, %v7438_v21  ;;  %v15702_v3 = vadd.f32 %v6247_v51, %v6055_v42  ;;  %v6057_v11 = vadd.f32 %v6056_v8, %v15509_v2  ;;  %v6249_v43 = vpop.f32.mrf.mxu1  ;;  %10985 = vrcp.f32 %v7070_v32  ;;  %v7710_v21 = vld [vmem:[%s17226_s1 + $0x20] sm:$0xf]  ;;  %v15712_v42 = vpop.eup %10965  ;;  %v18752_v51 = vld [vmem:[#allocation167_spill] sm:$0xff] }
 0x4ee   :  { %v7345_v35 = vmax.f32 %v6244_v20, 0.0  ;;  %v6058_v34 = vpop.f32.mrf.mxu0  ;;  %v7741_v59 = vmax.bf16 %v18392_v29, %v7709_v44  ;;  %18751 = vst [vmem:[#allocation199_spill] sm:$0xff] %v15712_v42  ;;  %v7073_v36 = vadd.f32 1.0, %v10962_v61  ;;  %10987 = vpow2.f32 %v9435_v19  ;;  %v7712_v19 = vld [vmem:[%s17226_s1 + $0x28] sm:$0xf] }
 0x4ef   :  { %18750 = vst [vmem:[#allocation128_spill] sm:$0xff] %v15700_v16  ;;  %v6250_v33 = vadd.f32 %v6249_v43, %v6057_v11  ;;  %v6059_v49 = vadd.f32 %v6058_v34, %v15497_v40  ;;  %v6251_v58 = vpop.f32.mrf.mxu1  ;;  %v9438_v46 = vmul.f32 -1.442695, %v15350_v23  ;;  %v10968_v32 = vpop.eup %10967  ;;  %10989 = vrcp.f32 %v7072_v47  ;;  %v7711_v34 = vld [vmem:[%s17226_s1 + $0x24] sm:$0xf] }
 0x4f0   :  { %v7441_v22 = vsub.f32 %v7345_v35, %v18752_v51  ;;  %v6060_v20 = vpop.f32.mrf.mxu0  ;;  %v10970_v23 = vpop.eup %10969  ;;  %v7075_v61 = vadd.f32 1.0, %v10964_v31  ;;  %10991 = vpow2.f32 %v9437_v63  ;;  %v7742_v47 = vmax.bf16 %v18392_v29, %v7710_v21  ;;  %v18757_v51 = vld [vmem:[#allocation194_spill] sm:$0xff] }
 0x4f1   :  { %v7348_v8 = vmax.f32 %v6250_v33, 0.0  ;;  %v15716_v11 = vadd.f32 %v6251_v58, %v6059_v49  ;;  %v6061_v44 = vadd.f32 %v6060_v20, %v15509_v2  ;;  %v6253_v43 = vpop.f32.mrf.mxu1  ;;  %v18755_v58 = vld [vmem:[#allocation162_spill] sm:$0xff]  ;;  %v15730_v49 = vpop.eup %10971  ;;  %v9440_v20 = vmul.f32 -1.442695, %v15356_v7 }
 0x4f2   :  { %v15726_v35 = vmul.f32 %v15664_v0, %v7441_v22  ;;  %v6064_v33 = vpop.f32.mrf.mxu0  ;;  %6529 = vmatmul.mubr.bf16.gmra.mxu0 %v18755_v58  ;;  %18756 = vst [vmem:[#allocation198_spill] sm:$0xff] %v15730_v49  ;;  %v18758_v31 = vld [vmem:[#allocation202_spill] sm:$0xff]  ;;  %v7713_v0 = vld [vmem:[%s17226_s1 + $0x2c] sm:$0xf]  ;;  %10993 = vrcp.f32 %v7073_v36  ;;  %v7076_v21 = vadd.f32 1.0, %v10968_v32  ;;  %v7743_v7 = vmax.bf16 %v18392_v29, %v7711_v34 }
 0x4f3   :  { %18753 = vst [vmem:[#allocation79_spill] sm:$0xff] %v15716_v11  ;;  %v7444_v16 = vsub.f32 %v7348_v8, %v18757_v51  ;;  %v6254_v42 = vadd.f32 %v6253_v43, %v6061_v44  ;;  %v6065_v48 = vadd.f32 %v6064_v33, %v15497_v40  ;;  %v6257_v11 = vpop.f32.mrf.mxu1  ;;  %6538 = vmatprep.mubr.bf16.mxu0 %v18758_v31  ;;  %v18759_v63 = vld [vmem:[#allocation114_spill] sm:$0xff]  ;;  %v15743_v44 = vpop.eup %10973  ;;  %10995 = vpow2.f32 %v9438_v46  ;;  %v18763_v46 = vld [vmem:[#allocation41_spill] sm:$0xff] }
 0x4f4   :  { %18754 = vst [vmem:[#allocation130_spill] sm:$0xff] %v15726_v35  ;;  %6722 = vmatmul.mubr.bf16.gmra.mxu1 %v18759_v63  ;;  %v6066_v22 = vpop.f32.mrf.mxu0  ;;  %v7744_v8 = vmax.bf16 %v18392_v29, %v7712_v19  ;;  %10997 = vrcp.f32 %v7075_v61  ;;  %v9443_v36 = vmul.f32 -1.442695, %v15375_v9  ;;  %v7745_v34 = vmax.bf16 %v18392_v29, %v7713_v0  ;;  %v7714_v0 = vld [vmem:[%s17226_s1 + $0x30] sm:$0xf] }
 0x4f5   :  { %6731 = vmatprep.mubr.bf16.mxu1 %v18392_v29  ;;  %v15746_v43 = vmul.f32 %v15690_v4, %v7444_v16  ;;  %v7351_v33 = vmax.f32 %v6254_v42, 0.0  ;;  %v15748_v58 = vadd.f32 %v6257_v11, %v6065_v48  ;;  %v6259_v31 = vpop.f32.mrf.mxu1  ;;  %v10976_v63 = vpop.eup %10975  ;;  %v6067_v32 = vadd.f32 %v6066_v22, %v15509_v2  ;;  %v18764_v11 = vld [vmem:[#allocation153_spill] sm:$0xff] }
 0x4f6   :  { %v6068_v51 = vpop.f32.mrf.mxu0  ;;  %v15753_v19 = vpop.eup %10977  ;;  %10999 = vpow2.f32 %v9440_v20  ;;  %v15757_v48 = vcombine.low %v7740_v27, %v7741_v59  ;;  %v9441_v61 = vmul.f32 -1.442695, %v18764_v11  ;;  %v15760_v22 = vcombine.low %v7742_v47, %v7743_v7  ;;  %v18767_v47 = vld [vmem:[#allocation121_spill] sm:$0xff]  ;;  %v18768_v11 = vld [vmem:[#allocation60_spill] sm:$0xff] }
 0x4f7   :  { %18760 = vst [vmem:[#allocation80_spill] sm:$0xff] %v15746_v43  ;;  %18761 = vst [vmem:[#allocation131_spill] sm:$0xff] %v15748_v58  ;;  %v7447_v35 = vsub.f32 %v7351_v33, %v18763_v46  ;;  %v6069_v4 = vadd.f32 %v6068_v51, %v15497_v40  ;;  %v6261_v16 = vpop.f32.mrf.mxu1  ;;  %v10980_v42 = vpop.eup %10979  ;;  %11001 = vrcp.f32 %v7076_v21  ;;  %v6260_v9 = vadd.f32 %v6259_v31, %v6067_v32  ;;  %v7715_v21 = vld [vmem:[%s17226_s1 + $0x34] sm:$0xf] }
 0x4f8   :  { %18762 = vst [vmem:[#allocation82_spill] sm:$0xff] %v15753_v19  ;;  %v6070_v43 = vpop.f32.mrf.mxu0  ;;  %v10982_v20 = vpop.eup %10981  ;;  %v9444_v33 = vmul.f32 -1.442695, %v15384_v1  ;;  %11003 = vpow2.f32 %v9443_v36  ;;  %v9446_v7 = vmul.f32 -1.442695, %v18767_v47  ;;  %v15776_v19 = vcombine.low %v7744_v8, %v7745_v34  ;;  %v18771_v34 = vld [vmem:[#allocation38_spill] sm:$0xff] }
 0x4f9   :  { %v15766_v46 = vmul.f32 %v10970_v23, %v7447_v35  ;;  %v15768_v51 = vadd.f32 %v6261_v16, %v6069_v4  ;;  %v6071_v27 = vadd.f32 %v6070_v43, %v15509_v2  ;;  %v6263_v59 = vpop.f32.mrf.mxu1  ;;  %v7354_v31 = vmax.f32 %v6260_v9, 0.0  ;;  %v10984_v1 = vpop.eup %10983  ;;  %v18769_v16 = vld [vmem:[#allocation136_spill] sm:$0xff]  ;;  %v7716_v9 = vld [vmem:[%s17226_s1 + $0x38] sm:$0xf] }
 0x4fa   :  { %v6074_v32 = vpop.f32.mrf.mxu0  ;;  %6539 = vmatmul.mubr.bf16.gmra.mxu0 %v18768_v11  ;;  %v7078_v23 = vadd.f32 1.0, %v10976_v63  ;;  %v7746_v36 = vmax.bf16 %v18392_v29, %v7714_v0  ;;  %v15785_v47 = vpop.eup %10985  ;;  %v7079_v8 = vadd.f32 1.0, %v10980_v42  ;;  %11005 = vpow2.f32 %v9441_v61  ;;  %v7717_v42 = vld [vmem:[%s17226_s1 + $0x3c] sm:$0xf] }
 0x4fb   :  { %18765 = vst [vmem:[#allocation200_spill] sm:$0xff] %v15766_v46  ;;  %18766 = vst [vmem:[#allocation83_spill] sm:$0xff] %v15768_v51  ;;  %v6264_v35 = vadd.f32 %v6263_v59, %v6071_v27  ;;  %v6075_v4 = vadd.f32 %v6074_v32, %v15497_v40  ;;  %v6267_v43 = vpop.f32.mrf.mxu1  ;;  %8071 = vmatprep.mubr.bf16.mxu0 %v18392_v29  ;;  %v7450_v63 = vsub.f32 %v7354_v31, %v18771_v34  ;;  %v10988_v32 = vpop.eup %10987 }
 0x4fc   :  { %6732 = vmatmul.mubr.bf16.gmra.mxu1 %v18769_v16  ;;  %18770 = vst [vmem:[#allocation81_spill] sm:$0xff] %v15785_v47  ;;  %v6076_v27 = vpop.f32.mrf.mxu0  ;;  %v7747_v59 = vmax.bf16 %v18392_v29, %v7715_v21  ;;  %11007 = vpow2.f32 %v9444_v33  ;;  %v10990_v61 = vpop.eup %10989  ;;  %v7081_v47 = vadd.f32 1.0, %v10984_v1  ;;  %v7748_v21 = vmax.bf16 %v18392_v29, %v7716_v9 }
 0x4fd   :  { %9769 = vmatprep.mubr.bf16.mxu1 %v15635_v41  ;;  %v7357_v11 = vmax.f32 %v6264_v35, 0.0  ;;  %v15790_v16 = vadd.f32 %v6267_v43, %v6075_v4  ;;  %v6077_v0 = vadd.f32 %v6076_v27, %v15509_v2  ;;  %v6269_v46 = vpop.f32.mrf.mxu1  ;;  %11009 = vpow2.f32 %v9446_v7  ;;  %v10992_v33 = vpop.eup %10991  ;;  %v18774_v4 = vld [vmem:[#allocation104_spill] sm:$0xff] }
 0x4fe   :  { %v15797_v31 = vmul.f32 %v15743_v44, %v7450_v63  ;;  %v6078_v34 = vpop.f32.mrf.mxu0  ;;  %11011 = vrcp.f32 %v7078_v23  ;;  %v9449_v35 = vmul.f32 -1.442695, %v15409_v45  ;;  %v7749_v44 = vmax.bf16 %v18392_v29, %v7717_v42  ;;  %v18777_v42 = vld [vmem:[#allocation129_spill] sm:$0xff] }
 0x4ff   :  { %18772 = vst [vmem:[#allocation177_spill] sm:$0xff] %v15790_v16  ;;  %v7453_v43 = vsub.f32 %v7357_v11, %v18774_v4  ;;  %v6270_v27 = vadd.f32 %v6269_v46, %v6077_v0  ;;  %v6271_v49 = vpop.f32.mrf.mxu1  ;;  %11013 = vrcp.f32 %v7079_v8  ;;  %v18775_v16 = vld [vmem:[#allocation66_spill] sm:$0xff]  ;;  %v6079_v1 = vadd.f32 %v6078_v34, %v15497_v40  ;;  %v15805_v63 = vpop.eup %10993 }
 0x500   :  { %18773 = vst [vmem:[#allocation133_spill] sm:$0xff] %v15797_v31  ;;  %v9447_v51 = vmul.f32 -1.442695, %v18775_v16  ;;  %v6080_v7 = vpop.f32.mrf.mxu0  ;;  %v7082_v31 = vadd.f32 1.0, %v10988_v32  ;;  %v10996_v11 = vpop.eup %10995  ;;  %11015 = vrcp.f32 %v7081_v47  ;;  %v7084_v46 = vadd.f32 1.0, %v10992_v33 }
 0x501   :  { %v15807_v9 = vmul.f32 %v10982_v20, %v7453_v43  ;;  %v7360_v23 = vmax.f32 %v6270_v27, 0.0  ;;  %v6081_v45 = vadd.f32 %v6080_v7, %v15509_v2  ;;  %v6273_v58 = vpop.f32.mrf.mxu1  ;;  %v9450_v8 = vmul.f32 -1.442695, %v15413_v17  ;;  %v10998_v0 = vpop.eup %10997  ;;  %v7718_v17 = vld [vmem:[%s17226_s1 + $0x40] sm:$0xf] }
 0x502   :  { %v15811_v16 = vadd.f32 %v6271_v49, %v6079_v1  ;;  %v6084_v34 = vpop.f32.mrf.mxu0  ;;  %8072 = vmatmul.mubr.bf16.vlgmr.msra.gmra.mxu0 %v15635_v41  ;;  %11017 = vpow2.f32 %v9449_v35  ;;  %v9452_v41 = vmul.f32 -1.442695, %v15418_v12  ;;  %v15823_v33 = vcombine.low %v7746_v36, %v7747_v59  ;;  %v7719_v12 = vld [vmem:[%s17226_s1 + $0x44] sm:$0xf] }
 0x503   :  { %18776 = vst [vmem:[#allocation203_spill] sm:$0xff] %v15807_v9  ;;  %v7456_v32 = vsub.f32 %v7360_v23, %v18777_v42  ;;  %v6274_v20 = vadd.f32 %v6273_v58, %v6081_v45  ;;  %v6085_v43 = vadd.f32 %v6084_v34, %v15497_v40  ;;  %v6277_v27 = vpop.f32.mrf.mxu1  ;;  %8081 = vmatprep.mubr.bf16.mxu0 %v18392_v29  ;;  %v11000_v49 = vpop.eup %10999  ;;  %11019 = vpow2.f32 %v9447_v51  ;;  %v18783_v42 = vld [vmem:[#allocation139_spill] sm:$0xff] }
 0x504   :  { %9770 = vmatmul.mubr.bf16.vlgmr.msra.gmra.mxu1 %v15681_v39  ;;  %v6086_v47 = vpop.f32.mrf.mxu0  ;;  %v15825_v58 = vcombine.low %v7748_v21, %v7749_v44  ;;  %v15827_v35 = vpop.eup %11001  ;;  %11021 = vrcp.f32 %v7082_v31  ;;  %v9455_v51 = vmul.f32 -1.442695, %v15429_v13  ;;  %v15839_v21 = vmax.bf16 %v18392_v29, %v7718_v17  ;;  %v18779_v44 = vld [vmem:[#allocation141_spill] sm:$0xff] }
 0x505   :  { %9773 = vmatprep.mubr.bf16.mxu1 %v15694_v6  ;;  %v15829_v1 = vmul.f32 %v10990_v61, %v7456_v32  ;;  %v7363_v7 = vmax.f32 %v6274_v20, 0.0  ;;  %v15831_v23 = vadd.f32 %v6277_v27, %v6085_v43  ;;  %v6279_v45 = vpop.f32.mrf.mxu1  ;;  %11023 = vrcp.f32 %v7084_v46  ;;  %v11004_v31 = vpop.eup %11003  ;;  %v7720_v46 = vld [vmem:[%s17226_s1 + $0x48] sm:$0xf] }
 0x506   :  { %v6087_v36 = vadd.f32 %v6086_v47, %v15509_v2  ;;  %v6088_v59 = vpop.f32.mrf.mxu0  ;;  %v7085_v61 = vadd.f32 1.0, %v10996_v11  ;;  %11025 = vpow2.f32 %v9450_v8  ;;  %v7087_v43 = vadd.f32 1.0, %v11000_v49 }
 0x507   :  { %18778 = vst [vmem:[#allocation172_spill] sm:$0xff] %v15829_v1  ;;  %v7459_v34 = vsub.f32 %v7363_v7, %v18779_v44  ;;  %v6089_v32 = vadd.f32 %v6088_v59, %v15497_v40  ;;  %v6281_v20 = vpop.f32.mrf.mxu1  ;;  %11027 = vpow2.f32 %v9452_v41  ;;  %v7751_v47 = vmax.bf16 %v18392_v29, %v7719_v12  ;;  %v11006_v17 = vpop.eup %11005  ;;  %v7721_v44 = vld [vmem:[%s17226_s1 + $0x4c] sm:$0xf] }
 0x508   :  { %v6280_v13 = vadd.f32 %v6279_v45, %v6087_v36  ;;  %v6090_v27 = vpop.f32.mrf.mxu0  ;;  %v9453_v1 = vmul.f32 -1.442695, %v15422_v26  ;;  %v7090_v41 = vadd.f32 1.0, %v11004_v31  ;;  %11029 = vpow2.f32 %v9455_v51 }
 0x509   :  { %v15848_v11 = vmul.f32 %v10998_v0, %v7459_v34  ;;  %v15850_v8 = vadd.f32 %v6281_v20, %v6089_v32  ;;  %v6091_v7 = vadd.f32 %v6090_v27, %v15509_v2  ;;  %v6283_v59 = vpop.f32.mrf.mxu1  ;;  %v11008_v49 = vpop.eup %11007  ;;  %v7752_v26 = vmax.bf16 %v18392_v29, %v7720_v46 }
 0x50a   :  { %v7366_v45 = vmax.f32 %v6280_v13, 0.0  ;;  %v6094_v36 = vpop.f32.mrf.mxu0  ;;  %8082 = vmatmul.mubr.bf16.gmra.mxu0 %v15681_v39  ;;  %v11010_v0 = vpop.eup %11009  ;;  %11031 = vrcp.f32 %v7085_v61  ;;  %v9458_v12 = vmul.f32 -1.442695, %v15438_v62  ;;  %v7088_v51 = vadd.f32 1.0, %v11006_v17  ;;  %v18781_v13 = vld [vmem:[#allocation143_spill] sm:$0xff] }
 0x50b   :  { %18780 = vst [vmem:[#allocation84_spill] sm:$0xff] %v15848_v11  ;;  %v6284_v34 = vadd.f32 %v6283_v59, %v6091_v7  ;;  %v6095_v32 = vadd.f32 %v6094_v36, %v15497_v40  ;;  %v6287_v20 = vpop.f32.mrf.mxu1  ;;  %8091 = vmatprep.mubr.bf16.mxu0 %v18392_v29  ;;  %v11012_v31 = vpop.eup %11011  ;;  %11033 = vrcp.f32 %v7087_v43  ;;  %v7753_v61 = vmax.bf16 %v18392_v29, %v7721_v44 }
 0x50c   :  { %9774 = vmatmul.mubr.bf16.gmra.mxu1 %v15757_v48  ;;  %v7462_v27 = vsub.f32 %v7366_v45, %v18781_v13  ;;  %v6096_v39 = vpop.f32.mrf.mxu0  ;;  %v15865_v46 = vpop.eup %11013  ;;  %11035 = vpow2.f32 %v9453_v1  ;;  %v7091_v11 = vadd.f32 1.0, %v11008_v49  ;;  %v7093_v43 = vadd.f32 1.0, %v11010_v0 }
 0x50d   :  { %9777 = vmatprep.mubr.bf16.mxu1 %v15760_v22  ;;  %v7369_v62 = vmax.f32 %v6284_v34, 0.0  ;;  %v15867_v7 = vadd.f32 %v6287_v20, %v6095_v32  ;;  %v6097_v59 = vadd.f32 %v6096_v39, %v15509_v2  ;;  %v6289_v36 = vpop.f32.mrf.mxu1  ;;  %11037 = vrcp.f32 %v7090_v41  ;;  %v11016_v13 = vpop.eup %11015  ;;  %v7722_v34 = vld [vmem:[%s17226_s1 + $0x50] sm:$0xf] }
 0x50e   :  { %v15870_v17 = vmul.f32 %v11012_v31, %v7462_v27  ;;  %v6098_v45 = vpop.f32.mrf.mxu0  ;;  %11039 = vpow2.f32 %v9458_v12  ;;  %v9461_v49 = vmul.f32 -1.442695, %v15450_v18  ;;  %v15879_v0 = vcombine.low %v15839_v21, %v7751_v47 }
 0x50f   :  { %v7465_v9 = vsub.f32 %v7369_v62, %v18783_v42  ;;  %v6290_v44 = vadd.f32 %v6289_v36, %v6097_v59  ;;  %v6099_v4 = vadd.f32 %v6098_v45, %v15497_v40  ;;  %v6291_v1 = vpop.f32.mrf.mxu1  ;;  %v11018_v32 = vpop.eup %11017  ;;  %11041 = vrcp.f32 %v7088_v51  ;;  %v7723_v51 = vld [vmem:[%s17226_s1 + $0x54] sm:$0xf] }
 0x510   :  { %18782 = vst [vmem:[#allocation24_spill] sm:$0xff] %v15870_v17  ;;  %v6100_v41 = vpop.f32.mrf.mxu0  ;;  %v15881_v20 = vcombine.low %v7752_v26, %v7753_v61  ;;  %v11020_v12 = vpop.eup %11019  ;;  %v9456_v31 = vmul.f32 -1.442695, %v15435_v5  ;;  %11043 = vrcp.f32 %v7091_v11  ;;  %v9464_v21 = vmul.f32 -1.442695, %v15458_v14 }
 0x511   :  { %v15884_v27 = vmul.f32 %v11016_v13, %v7465_v9  ;;  %v7372_v39 = vmax.f32 %v6290_v44, 0.0  ;;  %v15886_v62 = vadd.f32 %v6291_v1, %v6099_v4  ;;  %v6293_v59 = vpop.f32.mrf.mxu1  ;;  %v15891_v18 = vpop.eup %11021  ;;  %v6101_v47 = vadd.f32 %v6100_v41, %v15509_v2  ;;  %v18785_v13 = vld [vmem:[#allocation110_spill] sm:$0xff]  ;;  %v7724_v14 = vld [vmem:[%s17226_s1 + $0x58] sm:$0xf] }
 0x512   :  { %v6104_v26 = vpop.f32.mrf.mxu0  ;;  %8092 = vmatmul.mubr.bf16.gmra.mxu0 %v15694_v6  ;;  %v15897_v5 = vmax.bf16 %v18392_v29, %v7722_v34  ;;  %v11024_v4 = vpop.eup %11023  ;;  %11045 = vrcp.f32 %v7093_v43  ;;  %v7096_v9 = vadd.f32 1.0, %v11018_v32  ;;  %v7094_v11 = vadd.f32 1.0, %v11020_v12 }
 0x513   :  { %18784 = vst [vmem:[#allocation134_spill] sm:$0xff] %v15884_v27  ;;  %v7468_v61 = vsub.f32 %v7372_v39, %v18785_v13  ;;  %v6105_v36 = vadd.f32 %v6104_v26, %v15497_v40  ;;  %v6297_v45 = vpop.f32.mrf.mxu1  ;;  %8101 = vmatprep.mubr.bf16.mxu0 %v18392_v29  ;;  %v11026_v6 = vpop.eup %11025  ;;  %11047 = vpow2.f32 %v9461_v49  ;;  %v6294_v44 = vadd.f32 %v6293_v59, %v6101_v47  ;;  %v7725_v49 = vld [vmem:[%s17226_s1 + $0x5c] sm:$0xf] }
 0x514   :  { %9778 = vmatmul.mubr.bf16.gmra.mxu1 %v15776_v19  ;;  %v6106_v1 = vpop.f32.mrf.mxu0  ;;  %v15908_v43 = vmax.bf16 %v18392_v29, %v7723_v51  ;;  %v11028_v34 = vpop.eup %11027  ;;  %11049 = vpow2.f32 %v9456_v31  ;;  %v9467_v12 = vmul.f32 -1.442695, %v15471_v24  ;;  %v15920_v51 = vmax.bf16 %v18392_v29, %v7724_v14 }
 0x515   :  { %9781 = vmatprep.mubr.bf16.mxu1 %v15823_v33  ;;  %v15910_v32 = vmul.f32 %v11024_v4, %v7468_v61  ;;  %v15912_v41 = vadd.f32 %v6297_v45, %v6105_v36  ;;  %v6107_v39 = vadd.f32 %v6106_v1, %v15509_v2  ;;  %v6299_v26 = vpop.f32.mrf.mxu1  ;;  %11051 = vpow2.f32 %v9464_v21  ;;  %v11030_v31 = vpop.eup %11029  ;;  %v7726_v1 = vld [vmem:[%s17226_s1 + $0x60] sm:$0xf] }
 0x516   :  { %v7375_v59 = vmax.f32 %v6294_v44, 0.0  ;;  %v6108_v47 = vpop.f32.mrf.mxu0  ;;  %11053 = vrcp.f32 %v7096_v9  ;;  %v9459_v4 = vmul.f32 -1.442695, %v15443_v56  ;;  %v7099_v24 = vadd.f32 1.0, %v11028_v34  ;;  %v18788_v44 = vld [vmem:[#allocation93_spill] sm:$0xff] }
 0x517   :  { %18786 = vst [vmem:[#allocation85_spill] sm:$0xff] %v15910_v32  ;;  %v6300_v61 = vadd.f32 %v6299_v26, %v6107_v39  ;;  %v6109_v36 = vadd.f32 %v6108_v47, %v15497_v40  ;;  %v6301_v45 = vpop.f32.mrf.mxu1  ;;  %v15927_v21 = vpop.eup %11031  ;;  %11055 = vrcp.f32 %v7094_v11  ;;  %v7757_v13 = vmax.bf16 %v18392_v29, %v7725_v49  ;;  %v7727_v56 = vld [vmem:[%s17226_s1 + $0x64] sm:$0xf] }
 0x518   :  { %18787 = vst [vmem:[#allocation173_spill] sm:$0xff] %v15927_v21  ;;  %v7471_v32 = vsub.f32 %v7375_v59, %v18788_v44  ;;  %v6110_v14 = vpop.f32.mrf.mxu0  ;;  %v11034_v9 = vpop.eup %11033  ;;  %v7097_v39 = vadd.f32 1.0, %v11026_v6  ;;  %v7102_v11 = vadd.f32 1.0, %v11030_v31  ;;  %11057 = vpow2.f32 %v9467_v12  ;;  %v18790_v21 = vld [vmem:[#allocation57_spill] sm:$0xff] }
 0x519   :  { %v7378_v26 = vmax.f32 %v6300_v61, 0.0  ;;  %v15934_v47 = vadd.f32 %v6301_v45, %v6109_v36  ;;  %v6111_v27 = vadd.f32 %v6110_v14, %v15509_v2  ;;  %v6303_v42 = vpop.f32.mrf.mxu1  ;;  %v11036_v17 = vpop.eup %11035  ;;  %v7758_v49 = vmax.bf16 %v18392_v29, %v7726_v1 }
 0x51a   :  { %v15937_v34 = vmul.f32 %v11034_v9, %v7471_v32  ;;  %v6114_v59 = vpop.f32.mrf.mxu0  ;;  %8102 = vmatmul.mubr.bf16.gmra.mxu0 %v15757_v48  ;;  %v11038_v44 = vpop.eup %11037  ;;  %11059 = vpow2.f32 %v9459_v4  ;;  %v7759_v31 = vmax.bf16 %v18392_v29, %v7727_v56  ;;  %v9462_v32 = vmul.f32 -1.442695, %v15454_v25 }
 0x51b   :  { %v7474_v6 = vsub.f32 %v7378_v26, %v18790_v21  ;;  %v6304_v61 = vadd.f32 %v6303_v42, %v6111_v27  ;;  %v6307_v36 = vpop.f32.mrf.mxu1  ;;  %8111 = vmatprep.mubr.bf16.mxu0 %v18392_v29  ;;  %v11040_v12 = vpop.eup %11039  ;;  %11061 = vrcp.f32 %v7099_v24  ;;  %v9470_v48 = vmul.f32 -1.442695, %v15478_v55 }
 0x51c   :  { %18789 = vst [vmem:[#allocation151_spill] sm:$0xff] %v15937_v34  ;;  %9782 = vmatmul.mubr.bf16.gmra.mxu1 %v15825_v58  ;;  %v6115_v45 = vadd.f32 %v6114_v59, %v15497_v40  ;;  %v6116_v1 = vpop.f32.mrf.mxu0  ;;  %v15949_v4 = vpop.eup %11041  ;;  %11063 = vrcp.f32 %v7097_v39  ;;  %v9473_v24 = vmul.f32 -1.442695, %v15489_v60  ;;  %v15959_v9 = vcombine.low %v15897_v5, %v15908_v43  ;;  %v18792_v39 = vld [vmem:[#allocation97_spill] sm:$0xff] }
 0x51d   :  { %9785 = vmatprep.mubr.bf16.mxu1 %v15879_v0  ;;  %v15951_v42 = vmul.f32 %v11038_v44, %v7474_v6  ;;  %v7381_v27 = vmax.f32 %v6304_v61, 0.0  ;;  %v6117_v14 = vadd.f32 %v6116_v1, %v15509_v2  ;;  %v6309_v56 = vpop.f32.mrf.mxu1  ;;  %11065 = vrcp.f32 %v7102_v11  ;;  %v15961_v26 = vpop.eup %11043  ;;  %v7728_v60 = vld [vmem:[%s17226_s1 + $0x68] sm:$0xf] }
 0x51e   :  { %v15955_v25 = vadd.f32 %v6307_v36, %v6115_v45  ;;  %v6118_v55 = vpop.f32.mrf.mxu0  ;;  %v7105_v59 = vadd.f32 1.0, %v11040_v12  ;;  %v7100_v36 = vadd.f32 1.0, %v11036_v17  ;;  %11067 = vpow2.f32 %v9470_v48 }
 0x51f   :  { %18791 = vst [vmem:[#allocation191_spill] sm:$0xff] %v15951_v42  ;;  %v7477_v44 = vsub.f32 %v7381_v27, %v18792_v39  ;;  %v6310_v6 = vadd.f32 %v6309_v56, %v6117_v14  ;;  %v6119_v61 = vadd.f32 %v6118_v55, %v15497_v40  ;;  %v6311_v1 = vpop.f32.mrf.mxu1  ;;  %v11046_v11 = vpop.eup %11045  ;;  %v15969_v5 = vcombine.low %v15920_v51, %v7757_v13  ;;  %v7729_v39 = vld [vmem:[%s17226_s1 + $0x6c] sm:$0xf] }
 0x520   :  { %v6120_v45 = vpop.f32.mrf.mxu0  ;;  %v15971_v43 = vcombine.low %v7758_v49, %v7759_v31  ;;  %v11048_v12 = vpop.eup %11047  ;;  %11069 = vpow2.f32 %v9462_v32  ;;  %v9476_v48 = vmul.f32 -1.442695, %v15503_v50  ;;  %v15984_v49 = vmax.bf16 %v18392_v29, %v7728_v60  ;;  %v7730_v50 = vld [vmem:[%s17226_s1 + $0x70] sm:$0xf] }
 0x521   :  { %v15973_v27 = vmul.f32 %v11046_v11, %v7477_v44  ;;  %v7384_v14 = vmax.f32 %v6310_v6, 0.0  ;;  %v15975_v56 = vadd.f32 %v6311_v1, %v6119_v61  ;;  %v6313_v55 = vpop.f32.mrf.mxu1  ;;  %v11050_v17 = vpop.eup %11049  ;;  %11071 = vpow2.f32 %v9473_v24  ;;  %v18794_v44 = vld [vmem:[#allocation32_spill] sm:$0xff] }
 0x522   :  { %v6121_v13 = vadd.f32 %v6120_v45, %v15509_v2  ;;  %v6124_v51 = vpop.f32.mrf.mxu0  ;;  %8112 = vmatmul.mubr.bf16.gmra.mxu0 %v15760_v22  ;;  %v11052_v31 = vpop.eup %11051  ;;  %11073 = vrcp.f32 %v7105_v59  ;;  %v9465_v32 = vmul.f32 -1.442695, %v15463_v53  ;;  %v7108_v24 = vadd.f32 1.0, %v11048_v12 }
 0x523   :  { %18793 = vst [vmem:[#allocation14_spill] sm:$0xff] %v15973_v27  ;;  %v7480_v6 = vsub.f32 %v7384_v14, %v18794_v44  ;;  %v6125_v61 = vadd.f32 %v6124_v51, %v15497_v40  ;;  %v6317_v1 = vpop.f32.mrf.mxu1  ;;  %8121 = vmatprep.mubr.bf16.mxu0 %v18392_v29  ;;  %v11054_v22 = vpop.eup %11053  ;;  %11075 = vrcp.f32 %v7100_v36  ;;  %v7761_v53 = vmax.bf16 %v18392_v29, %v7729_v39  ;;  %v7731_v36 = vld [vmem:[%s17226_s1 + $0x74] sm:$0xf] }
 0x524   :  { %9786 = vmatmul.mubr.bf16.gmra.mxu1 %v15881_v20  ;;  %v6314_v60 = vadd.f32 %v6313_v55, %v6121_v13  ;;  %v6126_v59 = vpop.f32.mrf.mxu0  ;;  %v15996_v11 = vpop.eup %11055  ;;  %v9468_v45 = vmul.f32 -1.442695, %v15474_v57  ;;  %v7111_v12 = vadd.f32 1.0, %v11052_v31  ;;  %11077 = vpow2.f32 %v9476_v48 }
 0x525   :  { %9789 = vmatprep.mubr.bf16.mxu1 %v15959_v9  ;;  %18795 = vst [vmem:[#allocation170_spill] sm:$0xff] %v15996_v11  ;;  %v15999_v14 = vmul.f32 %v11054_v22, %v7480_v6  ;;  %v16001_v51 = vadd.f32 %v6317_v1, %v6125_v61  ;;  %v6127_v44 = vadd.f32 %v6126_v59, %v15509_v2  ;;  %v6319_v27 = vpop.f32.mrf.mxu1  ;;  %v11058_v42 = vpop.eup %11057  ;;  %11079 = vpow2.f32 %v9465_v32 }
 0x526   :  { %v7387_v55 = vmax.f32 %v6314_v60, 0.0  ;;  %v6128_v13 = vpop.f32.mrf.mxu0  ;;  %v7762_v39 = vmax.bf16 %v18392_v29, %v7730_v50  ;;  %v9385_v57 = vmul.f32 -1.442695, %v15518_v38  ;;  %v7103_v59 = vadd.f32 1.0, %v11050_v17 }
 0x527   :  { %18796 = vst [vmem:[#allocation54_spill] sm:$0xff] %v15999_v14  ;;  %v6320_v6 = vadd.f32 %v6319_v27, %v6127_v44  ;;  %v6129_v61 = vadd.f32 %v6128_v13, %v15497_v40  ;;  %v6321_v1 = vpop.f32.mrf.mxu1  ;;  %v16010_v22 = vpop.eup %11059  ;;  %11081 = vrcp.f32 %v7108_v24  ;;  %v18797_v14 = vld [vmem:[#allocation36_spill] sm:$0xff]  ;;  %v7763_v48 = vmax.bf16 %v18392_v29, %v7731_v36 }
 0x528   :  { %v7483_v21 = vsub.f32 %v7387_v55, %v18797_v14  ;;  %v6130_v31 = vpop.f32.mrf.mxu0  ;;  %v11062_v60 = vpop.eup %11061  ;;  %11083 = vpow2.f32 %v9468_v45  ;;  %v7114_v44 = vadd.f32 1.0, %v11058_v42  ;;  %v9471_v17 = vmul.f32 -1.442695, %v15486_v10  ;;  %v18800_v45 = vld [vmem:[#allocation37_spill] sm:$0xff]  ;;  %v7732_v10 = vld [vmem:[%s17226_s1 + $0x78] sm:$0xf] }
 0x529   :  { %v7390_v50 = vmax.f32 %v6320_v6, 0.0  ;;  %v16014_v34 = vadd.f32 %v6321_v1, %v6129_v61  ;;  %v6131_v38 = vadd.f32 %v6130_v31, %v15509_v2  ;;  %v6323_v27 = vpop.f32.mrf.mxu1  ;;  %v16017_v32 = vpop.eup %11063  ;;  %11085 = vrcp.f32 %v7111_v12 }
 0x52a   :  { %18798 = vst [vmem:[#allocation20_spill] sm:$0xff] %v16017_v32  ;;  %v16020_v24 = vmul.f32 %v11062_v60, %v7483_v21  ;;  %v6134_v55 = vpop.f32.mrf.mxu0  ;;  %8122 = vmatmul.mubr.bf16.gmra.mxu0 %v15776_v19  ;;  %v11066_v36 = vpop.eup %11065  ;;  %11087 = vpow2.f32 %v9385_v57  ;;  %v9388_v21 = vmul.f32 -1.442695, %v15525_v30  ;;  %v16033_v42 = vcombine.low %v15984_v49, %v7761_v53  ;;  %v7733_v30 = vld [vmem:[%s17226_s1 + $0x7c] sm:$0xf]  ;;  %v18802_v49 = vld [vmem:[#allocation181_spill] sm:$0xff] }
 0x52b   :  { %v7486_v13 = vsub.f32 %v7390_v50, %v18800_v45  ;;  %v6324_v6 = vadd.f32 %v6323_v27, %v6131_v38  ;;  %v6135_v61 = vadd.f32 %v6134_v55, %v15497_v40  ;;  %v6327_v1 = vpop.f32.mrf.mxu1  ;;  %8131 = vmatprep.mubr.bf16.mxu0 %v18392_v29  ;;  %11089 = vrcp.f32 %v7103_v59  ;;  %v11068_v57 = vpop.eup %11067 }
 0x52c   :  { %18799 = vst [vmem:[#allocation12_spill] sm:$0xff] %v16020_v24  ;;  %9790 = vmatmul.mubr.bf16.gmra.mxu1 %v15969_v5  ;;  %v6136_v19 = vpop.f32.mrf.mxu0  ;;  %v16035_v12 = vcombine.low %v7762_v39, %v7763_v48  ;;  %v9391_v31 = vmul.f32 -1.442695, %v15542_v15  ;;  %11091 = vpow2.f32 %v9471_v17  ;;  %v9474_v53 = vmul.f32 -1.442695, %v18802_v49 }
 0x52d   :  { %9793 = vmatprep.mubr.bf16.mxu1 %v15971_v43  ;;  %v16038_v60 = vmul.f32 %v11066_v36, %v7486_v13  ;;  %v7393_v50 = vmax.f32 %v6324_v6, 0.0  ;;  %v16040_v38 = vadd.f32 %v6327_v1, %v6135_v61  ;;  %v6329_v27 = vpop.f32.mrf.mxu1  ;;  %v16045_v59 = vpop.eup %11069  ;;  %v6137_v39 = vadd.f32 %v6136_v19, %v15509_v2  ;;  %v18803_v36 = vld [vmem:[#allocation158_spill] sm:$0xff] }
 0x52e   :  { %v6138_v48 = vpop.f32.mrf.mxu0  ;;  %v7764_v15 = vmax.bf16 %v18392_v29, %v7732_v10  ;;  %v11072_v55 = vpop.eup %11071  ;;  %11093 = vrcp.f32 %v7114_v44  ;;  %v9477_v13 = vmul.f32 -1.442695, %v18803_v36  ;;  %v18804_v6 = vld [vmem:[#allocation42_spill] sm:$0xff]  ;;  %v7117_v24 = vadd.f32 1.0, %v11068_v57 }
 0x52f   :  { %18801 = vst [vmem:[#allocation192_spill] sm:$0xff] %v16038_v60  ;;  %v7489_v61 = vsub.f32 %v7393_v50, %v18804_v6  ;;  %v6139_v1 = vadd.f32 %v6138_v48, %v15497_v40  ;;  %v6331_v60 = vpop.f32.mrf.mxu1  ;;  %v11074_v45 = vpop.eup %11073  ;;  %11095 = vpow2.f32 %v9388_v21  ;;  %v6330_v17 = vadd.f32 %v6329_v27, %v6137_v39 }
 0x530   :  { %v6140_v14 = vpop.f32.mrf.mxu0  ;;  %v7765_v49 = vmax.bf16 %v18392_v29, %v7733_v30  ;;  %v16054_v19 = vpop.eup %11075  ;;  %11097 = vpow2.f32 %v9391_v31  ;;  %v7120_v6 = vadd.f32 1.0, %v11072_v55  ;;  %v9394_v57 = vmul.f32 -1.442695, %v15559_v28  ;;  %v18807_v30 = vld [vmem:[#allocation175_spill] sm:$0xff] }
 0x531   :  { %18805 = vst [vmem:[#allocation182_spill] sm:$0xff] %v16054_v19  ;;  %v16056_v10 = vmul.f32 %v11074_v45, %v7489_v61  ;;  %v16058_v44 = vadd.f32 %v6331_v60, %v6139_v1  ;;  %v6141_v36 = vadd.f32 %v6140_v14, %v15509_v2  ;;  %v6333_v50 = vpop.f32.mrf.mxu1  ;;  %11099 = vpow2.f32 %v9474_v53  ;;  %v11078_v21 = vpop.eup %11077 }
 0x532   :  { %v7396_v48 = vmax.f32 %v6330_v17, 0.0  ;;  %v6144_v32 = vpop.f32.mrf.mxu0  ;;  %8132 = vmatmul.mubr.bf16.gmra.mxu0 %v15823_v33  ;;  %11101 = vpow2.f32 %v9477_v13  ;;  %v11080_v14 = vpop.eup %11079  ;;  %v9397_v60 = vmul.f32 -1.442695, %v15575_v37  ;;  %v16072_v61 = vcombine.low %v7764_v15, %v7765_v49  ;;  %v18810_v15 = vld [vmem:[#allocation148_spill] sm:$0xff] }
 0x533   :  { %18806 = vst [vmem:[#allocation147_spill] sm:$0xff] %v16056_v10  ;;  %v6334_v27 = vadd.f32 %v6333_v50, %v6141_v36  ;;  %v6145_v31 = vadd.f32 %v6144_v32, %v15497_v40  ;;  %v6337_v45 = vpop.f32.mrf.mxu1  ;;  %8141 = vmatprep.mubr.bf16.mxu0 %v18392_v29  ;;  %11103 = vrcp.f32 %v7117_v24  ;;  %v7106_v17 = vadd.f32 1.0, %v16010_v22 }
 0x534   :  { %9794 = vmatmul.mubr.bf16.gmra.mxu1 %v16033_v42  ;;  %v7492_v53 = vsub.f32 %v7396_v48, %v18807_v30  ;;  %v6146_v39 = vpop.f32.mrf.mxu0  ;;  %v11082_v33 = vpop.eup %11081  ;;  %11105 = vrcp.f32 %v7120_v6  ;;  %v7123_v24 = vadd.f32 1.0, %v11078_v21  ;;  %v18809_v48 = vld [vmem:[#allocation109_spill] sm:$0xff]  ;;  %v9400_v49 = vmul.f32 -1.442695, %v18810_v15 }
 0x535   :  { %9797 = vmatprep.mubr.bf16.mxu1 %v16035_v12  ;;  %v7399_v55 = vmax.f32 %v6334_v27, 0.0  ;;  %v16069_v28 = vadd.f32 %v6337_v45, %v6145_v31  ;;  %v6147_v32 = vadd.f32 %v6146_v39, %v15509_v2  ;;  %v6339_v13 = vpop.f32.mrf.mxu1  ;;  %v11084_v1 = vpop.eup %11083  ;;  %11107 = vpow2.f32 %v9394_v57 }
 0x536   :  { %v16075_v37 = vmul.f32 %v11082_v33, %v7492_v53  ;;  %v6148_v36 = vpop.f32.mrf.mxu0  ;;  %v11086_v50 = vpop.eup %11085  ;;  %11109 = vpow2.f32 %v9397_v60  ;;  %v7109_v22 = vadd.f32 1.0, %v16045_v59  ;;  %v7112_v33 = vadd.f32 1.0, %v11080_v14 }
 0x537   :  { %v7495_v30 = vsub.f32 %v7399_v55, %v18809_v48  ;;  %v6340_v27 = vadd.f32 %v6339_v13, %v6147_v32  ;;  %v6149_v31 = vadd.f32 %v6148_v36, %v15497_v40  ;;  %v6341_v45 = vpop.f32.mrf.mxu1  ;;  %v11088_v39 = vpop.eup %11087  ;;  %11111 = vrcp.f32 %v7106_v17  ;;  %v18813_v36 = vld [vmem:[#allocation195_spill] sm:$0xff] }
 0x538   :  { %18808 = vst [vmem:[#allocation29_spill] sm:$0xff] %v16075_v37  ;;  %v6150_v10 = vpop.f32.mrf.mxu0  ;;  %v16080_v19 = vpop.eup %11089  ;;  %11113 = vrcp.f32 %v7123_v24  ;;  %v7032_v13 = vadd.f32 1.0, %v11088_v39  ;;  %v7115_v17 = vadd.f32 1.0, %v11084_v1  ;;  %v11258_v1 = vld [vmem:[%s17232_s7] sm:$0x3f] }
 0x539   :  { %18811 = vst [vmem:[#allocation63_spill] sm:$0xff] %v16080_v19  ;;  %v16083_v6 = vmul.f32 %v11086_v50, %v7495_v30  ;;  %v7402_v21 = vmax.f32 %v6340_v27, 0.0  ;;  %v16085_v53 = vadd.f32 %v6341_v45, %v6149_v31  ;;  %v6343_v57 = vpop.f32.mrf.mxu1  ;;  %v6151_v55 = vadd.f32 %v6150_v10, %v15509_v2  ;;  %v11092_v60 = vpop.eup %11091 }
 0x53a   :  { %v6154_v32 = vpop.f32.mrf.mxu0  ;;  %8142 = vmatmul.mubr.bf16.gmra.mxu0 %v15825_v58  ;;  %11115 = vpow2.f32 %v9400_v49  ;;  %v18817_v49 = vld [vmem:[#allocation45_spill] sm:$0xff] }
 0x53b   :  { %18812 = vst [vmem:[#allocation73_spill] sm:$0xff] %v16083_v6  ;;  %v7498_v15 = vsub.f32 %v7402_v21, %v18813_v36  ;;  %v6155_v59 = vadd.f32 %v6154_v32, %v15497_v40  ;;  %v6347_v30 = vpop.f32.mrf.mxu1  ;;  %8151 = vmatprep.mubr.bf16.mxu0 %v18392_v29  ;;  %v11094_v50 = vpop.eup %11093  ;;  %v6344_v14 = vadd.f32 %v6343_v57, %v6151_v55  ;;  %11117 = vrcp.f32 %v7109_v22  ;;  %v18816_v21 = vld [vmem:[#allocation75_spill] sm:$0xff] }
 0x53c   :  { %9798 = vmatmul.mubr.bf16.gmra.mxu1 %v16072_v61  ;;  %v6156_v10 = vpop.f32.mrf.mxu0  ;;  %v11096_v27 = vpop.eup %11095  ;;  %11119 = vrcp.f32 %v7112_v33  ;;  %v9403_v32 = vmul.f32 -1.442695, %v18816_v21  ;;  %v18818_v57 = vsub.s32 4, %v18817_v49  ;;  %v18820_v48 = vsub.s32 5, %v18817_v49 }
 0x53d   :  { %v16093_v58 = vmul.f32 %v11094_v50, %v7498_v15  ;;  %v16095_v24 = vadd.f32 %v6347_v30, %v6155_v59  ;;  %v6157_v31 = vadd.f32 %v6156_v10, %v15509_v2  ;;  %v6349_v45 = vpop.f32.mrf.mxu1  ;;  %v11098_v39 = vpop.eup %11097  ;;  %v7405_v36 = vmax.f32 %v6344_v14, 0.0  ;;  %v18819_v14 = vld [vmem:[#allocation135_spill] sm:$0xff] }
 0x53e   :  { %v6158_v6 = vpop.f32.mrf.mxu0  ;;  %v16104_v22 = vrot.slane %v11258_v1, %v18818_v57  ;;  %v11100_v55 = vpop.eup %11099  ;;  %v7118_v15 = vadd.f32 1.0, %v11092_v60  ;;  %11121 = vrcp.f32 %v7032_v13  ;;  %v7035_v10 = vadd.f32 1.0, %v11096_v27 }
 0x53f   :  { %18814 = vst [vmem:[#allocation165_spill] sm:$0xff] %v16093_v58  ;;  %18815 = vst [vmem:[#allocation99_spill] sm:$0xff] %v16095_v24  ;;  %v6350_v59 = vadd.f32 %v6349_v45, %v6157_v31  ;;  %v6159_v30 = vadd.f32 %v6158_v6, %v15497_v40  ;;  %v6351_v50 = vpop.f32.mrf.mxu1  ;;  %v11102_v33 = vpop.eup %11101  ;;  %11123 = vrcp.f32 %v7115_v17  ;;  %v7501_v21 = vsub.f32 %v7405_v36, %v18819_v14  ;;  %v18821_v40 = vld [vmem:[#allocation78_spill] sm:$0xff] }
 0x540   :  { %v6160_v58 = vpop.f32.mrf.mxu0  ;;  %v16110_v37 = vrot.slane %v11258_v1, %v18820_v48  ;;  %v11104_v19 = vpop.eup %11103  ;;  %v7038_v57 = vadd.f32 1.0, %v11098_v39  ;;  %11125 = vpow2.f32 %v9403_v32  ;;  %v9406_v6 = vmul.f32 -1.442695, %v18821_v40  ;;  %v18823_v48 = vld [vmem:[#allocation171_spill] sm:$0xff] }
 0x541   :  { %v7408_v11 = vmax.f32 %v6350_v59, 0.0  ;;  %v16112_v24 = vadd.f32 %v6351_v50, %v6159_v30  ;;  %v6161_v60 = vadd.f32 %v6160_v58, %v15509_v2  ;;  %v6353_v13 = vpop.f32.mrf.mxu1  ;;  %v16116_v17 = vmul.f32 %v11104_v19, %v7501_v21  ;;  %v11106_v36 = vpop.eup %11105 }
 0x542   :  { %v6390_v27 = vpop.f32.mrf.mxu0  ;;  %8152 = vmatmul.mubr.bf16.gmra.mxu0 %v15879_v0  ;;  %11127 = vrcp.f32 %v7118_v15  ;;  %v11108_v1 = vpop.eup %11107  ;;  %v7121_v49 = vadd.f32 1.0, %v11100_v55  ;;  %v7124_v2 = vadd.f32 1.0, %v11102_v33  ;;  %v18825_v33 = vld [vmem:[#allocation196_spill] sm:$0xff] }
 0x543   :  { %18822 = vst [vmem:[#allocation138_spill] sm:$0xff] %v16116_v17  ;;  %v7504_v31 = vsub.f32 %v7408_v11, %v18823_v48  ;;  %v6354_v45 = vadd.f32 %v6353_v13, %v6161_v60  ;;  %v6583_v39 = vpop.f32.mrf.mxu1  ;;  %8161 = vmatprep.mubr.bf16.mxu0 %v18392_v29  ;;  %11129 = vrcp.f32 %v7035_v10  ;;  %v6391_v58 = vadd.f32 %v6390_v27, %v16104_v22  ;;  %v11110_v19 = vpop.eup %11109 }
 0x544   :  { %v6392_v32 = vpop.f32.mrf.mxu0  ;;  %11131 = vrcp.f32 %v7038_v57  ;;  %v9409_v11 = vmul.f32 -1.442695, %v15661_v52  ;;  %v16126_v60 = vpop.eup %11111  ;;  %v7041_v55 = vadd.f32 1.0, %v11108_v1  ;;  %v9412_v1 = vmul.f32 -1.442695, %v15676_v54 }
 0x545   :  { %v16122_v59 = vmul.f32 %v11106_v36, %v7504_v31  ;;  %v7411_v0 = vmax.f32 %v6354_v45, 0.0  ;;  %v6393_v15 = vadd.f32 %v6392_v32, %v16110_v37  ;;  %v6585_v30 = vpop.f32.mrf.mxu1  ;;  %11133 = vpow2.f32 %v9406_v6  ;;  %v11114_v27 = vpop.eup %11113 }
 0x546   :  { %v6584_v50 = vadd.f32 %v6583_v39, %v6391_v58  ;;  %v6394_v21 = vpop.f32.mrf.mxu0  ;;  %11135 = vrcp.f32 %v7121_v49  ;;  %v7044_v36 = vadd.f32 1.0, %v11110_v19 }
 0x547   :  { %18824 = vst [vmem:[#allocation146_spill] sm:$0xff] %v16122_v59  ;;  %v7507_v10 = vsub.f32 %v7411_v0, %v18825_v33  ;;  %v6586_v13 = vadd.f32 %v6585_v30, %v6393_v15  ;;  %v6395_v40 = vadd.f32 %v6394_v21, %v16104_v22  ;;  %v6587_v57 = vpop.f32.mrf.mxu1  ;;  %v11116_v32 = vpop.eup %11115  ;;  %11137 = vrcp.f32 %v7124_v2  ;;  %v18827_v0 = vld [vmem:[#allocation174_spill] sm:$0xff] }
 0x548   :  { %v7319_v31 = vmax.f32 %v6584_v50, 0.0  ;;  %v6396_v45 = vpop.f32.mrf.mxu0  ;;  %v16132_v59 = vpop.eup %11117  ;;  %11139 = vpow2.f32 %v9409_v11  ;;  %v18828_v2 = vld [vmem:[#allocation10_spill] sm:$0xff]  ;;  %v7047_v54 = vadd.f32 1.0, %v11116_v32  ;;  %v9415_v33 = vmul.f32 -1.442695, %v15702_v3 }
 0x549   :  { %v16130_v6 = vmul.f32 %v11114_v27, %v7507_v10  ;;  %v7320_v52 = vmax.f32 %v6586_v13, 0.0  ;;  %v6588_v39 = vadd.f32 %v6587_v57, %v6395_v40  ;;  %v6589_v58 = vpop.f32.mrf.mxu1  ;;  %v6397_v30 = vadd.f32 %v6396_v45, %v16110_v37  ;;  %v16138_v19 = vpop.eup %11119  ;;  %v18829_v40 = vld [vmem:[#allocation122_spill] sm:$0xff] }
 0x54a   :  { %v7415_v15 = vsub.f32 %v7319_v31, %v18827_v0  ;;  %v6400_v49 = vpop.f32.mrf.mxu0  ;;  %8162 = vmatmul.mubr.bf16.gmra.mxu0 %v15881_v20  ;;  %11141 = vrcp.f32 %v7041_v55  ;;  %v18831_v55 = vld [vmem:[#allocation49_spill] sm:$0xff] }
 0x54b   :  { %18826 = vst [vmem:[#allocation61_spill] sm:$0xff] %v16130_v6  ;;  %v7416_v50 = vsub.f32 %v7320_v52, %v18828_v2  ;;  %v7322_v21 = vmax.f32 %v6588_v39, 0.0  ;;  %v6401_v10 = vadd.f32 %v6400_v49, %v16104_v22  ;;  %v6593_v13 = vpop.f32.mrf.mxu1  ;;  %8171 = vmatprep.mubr.bf16.mxu0 %v18392_v29  ;;  %v11122_v11 = vpop.eup %11121  ;;  %11143 = vrcp.f32 %v7044_v36 }
 0x54c   :  { %v16144_v57 = vmul.f32 %v18829_v40, %v7415_v15  ;;  %v6590_v27 = vadd.f32 %v6589_v58, %v6397_v30  ;;  %v6402_v31 = vpop.f32.mrf.mxu0  ;;  %v16146_v20 = vpop.eup %11123  ;;  %11145 = vpow2.f32 %v9412_v1  ;;  %v18832_v15 = vld [vmem:[#allocation74_spill] sm:$0xff] }
 0x54d   :  { %v16148_v45 = vmul.f32 %v11122_v11, %v7416_v50  ;;  %v7418_v52 = vsub.f32 %v7322_v21, %v18831_v55  ;;  %v6594_v39 = vadd.f32 %v6593_v13, %v6401_v10  ;;  %v6403_v49 = vadd.f32 %v6402_v31, %v16110_v37  ;;  %v6595_v6 = vpop.f32.mrf.mxu1  ;;  %v11126_v48 = vpop.eup %11125  ;;  %v18834_v21 = vld [vmem:[#allocation79_spill] sm:$0xff]  ;;  %v18835_v13 = vld [vmem:[#allocation184_spill] sm:$0xff] }
 0x54e   :  { %v7323_v36 = vmax.f32 %v6590_v27, 0.0  ;;  %v6404_v32 = vpop.f32.mrf.mxu0  ;;  %11147 = vrcp.f32 %v7047_v54  ;;  %v9418_v10 = vmul.f32 -1.442695, %v18834_v21  ;;  %v18836_v27 = vld [vmem:[#allocation53_spill] sm:$0xff]  ;;  %v18838_v21 = vld [vmem:[#allocation70_spill] sm:$0xff] }
 0x54f   :  { %18830 = vst [vmem:[#allocation88_spill] sm:$0xff] %v16148_v45  ;;  %v16154_v40 = vmul.f32 %v18832_v15, %v7418_v52  ;;  %v7325_v58 = vmax.f32 %v6594_v39, 0.0  ;;  %v6596_v30 = vadd.f32 %v6595_v6, %v6403_v49  ;;  %v6405_v50 = vadd.f32 %v6404_v32, %v16104_v22  ;;  %v6597_v11 = vpop.f32.mrf.mxu1  ;;  %v16157_v17 = vpop.eup %11127 }
 0x550   :  { %18833 = vst [vmem:[#allocation18_spill] sm:$0xff] %v16157_v17  ;;  %v7419_v1 = vsub.f32 %v7323_v36, %v18835_v13  ;;  %v6406_v31 = vpop.f32.mrf.mxu0  ;;  %v11130_v3 = vpop.eup %11129  ;;  %v7050_v49 = vadd.f32 1.0, %v11126_v48  ;;  %11149 = vpow2.f32 %v9415_v33  ;;  %v18840_v13 = vld [vmem:[#allocation15_spill] sm:$0xff] }
 0x551   :  { %v7421_v14 = vsub.f32 %v7325_v58, %v18836_v27  ;;  %v7326_v55 = vmax.f32 %v6596_v30, 0.0  ;;  %v6598_v45 = vadd.f32 %v6597_v11, %v6405_v50  ;;  %v6407_v52 = vadd.f32 %v6406_v31, %v16110_v37  ;;  %v6599_v39 = vpop.f32.mrf.mxu1  ;;  %v11132_v6 = vpop.eup %11131  ;;  %v18841_v11 = vld [vmem:[#allocation131_spill] sm:$0xff]  ;;  %v18846_v27 = vld [vmem:[#allocation169_spill] sm:$0xff] }
 0x552   :  { %v16163_v32 = vmul.f32 %v11130_v3, %v7419_v1  ;;  %v6410_v15 = vpop.f32.mrf.mxu0  ;;  %8172 = vmatmul.mubr.bf16.gmra.mxu0 %v15959_v9  ;;  %v11134_v54 = vpop.eup %11133  ;;  %11151 = vpow2.f32 %v9418_v10  ;;  %v9421_v48 = vmul.f32 -1.442695, %v18841_v11  ;;  %v18844_v3 = vld [vmem:[#allocation91_spill] sm:$0xff] }
 0x553   :  { %v16167_v36 = vmul.f32 %v18838_v21, %v7421_v14  ;;  %v7422_v17 = vsub.f32 %v7326_v55, %v18840_v13  ;;  %v7328_v58 = vmax.f32 %v6598_v45, 0.0  ;;  %v6600_v30 = vadd.f32 %v6599_v39, %v6407_v52  ;;  %v6603_v50 = vpop.f32.mrf.mxu1  ;;  %8181 = vmatprep.mubr.bf16.mxu0 %v18392_v29  ;;  %v16173_v31 = vpop.eup %11135 }
 0x554   :  { %18837 = vst [vmem:[#allocation186_spill] sm:$0xff] %v16163_v32  ;;  %v6411_v33 = vadd.f32 %v6410_v15, %v16104_v22  ;;  %v6412_v1 = vpop.f32.mrf.mxu0  ;;  %18842 = vst [vmem:[#allocation118_spill] sm:$0xff] %v16173_v31  ;;  %v16179_v52 = vpop.eup %11137  ;;  %11153 = vrcp.f32 %v7050_v49  ;;  %v7053_v39 = vadd.f32 1.0, %v11134_v54  ;;  %v18848_v32 = vld [vmem:[#allocation150_spill] sm:$0xff] }
 0x555   :  { %18839 = vst [vmem:[#allocation145_spill] sm:$0xff] %v16167_v36  ;;  %v16175_v9 = vmul.f32 %v11132_v6, %v7422_v17  ;;  %v7424_v14 = vsub.f32 %v7328_v58, %v18844_v3  ;;  %v7329_v21 = vmax.f32 %v6600_v30, 0.0  ;;  %v6413_v55 = vadd.f32 %v6412_v1, %v16110_v37  ;;  %v6605_v45 = vpop.f32.mrf.mxu1  ;;  %18845 = vst [vmem:[#allocation166_spill] sm:$0xff] %v16179_v52  ;;  %v11140_v11 = vpop.eup %11139  ;;  %v18849_v1 = vld [vmem:[#allocation83_spill] sm:$0xff] }
 0x556   :  { %v6604_v10 = vadd.f32 %v6603_v50, %v6411_v33  ;;  %v6414_v36 = vpop.f32.mrf.mxu0  ;;  %11155 = vpow2.f32 %v9421_v48  ;;  %v9424_v3 = vmul.f32 -1.442695, %v18849_v1 }
 0x557   :  { %18843 = vst [vmem:[#allocation189_spill] sm:$0xff] %v16175_v9  ;;  %v16182_v15 = vmul.f32 %v18846_v27, %v7424_v14  ;;  %v7425_v31 = vsub.f32 %v7329_v21, %v18848_v32  ;;  %v6606_v17 = vadd.f32 %v6605_v45, %v6413_v55  ;;  %v6415_v6 = vadd.f32 %v6414_v36, %v16104_v22  ;;  %v6607_v58 = vpop.f32.mrf.mxu1  ;;  %v11142_v30 = vpop.eup %11141  ;;  %v18851_v55 = vld [vmem:[#allocation90_spill] sm:$0xff] }
 0x558   :  { %v7331_v9 = vmax.f32 %v6604_v10, 0.0  ;;  %v6416_v52 = vpop.f32.mrf.mxu0  ;;  %v11144_v49 = vpop.eup %11143  ;;  %11157 = vrcp.f32 %v7053_v39  ;;  %v7056_v21 = vadd.f32 1.0, %v11140_v11  ;;  %v18854_v39 = vld [vmem:[#allocation71_spill] sm:$0xff] }
 0x559   :  { %18847 = vst [vmem:[#allocation50_spill] sm:$0xff] %v16182_v15  ;;  %v16187_v54 = vmul.f32 %v11142_v30, %v7425_v31  ;;  %v7332_v50 = vmax.f32 %v6606_v17, 0.0  ;;  %v6608_v33 = vadd.f32 %v6607_v58, %v6415_v6  ;;  %v6417_v27 = vadd.f32 %v6416_v52, %v16110_v37  ;;  %v6609_v14 = vpop.f32.mrf.mxu1  ;;  %v11146_v48 = vpop.eup %11145  ;;  %v18852_v15 = vld [vmem:[#allocation180_spill] sm:$0xff]  ;;  %v18853_v52 = vld [vmem:[#allocation177_spill] sm:$0xff] }
 0x55a   :  { %v7427_v45 = vsub.f32 %v7331_v9, %v18851_v55  ;;  %v6420_v36 = vpop.f32.mrf.mxu0  ;;  %8182 = vmatmul.mubr.bf16.gmra.mxu0 %v15969_v5  ;;  %11159 = vpow2.f32 %v9424_v3  ;;  %v9427_v17 = vmul.f32 -1.442695, %v18853_v52  ;;  %v18856_v5 = vld [vmem:[#allocation187_spill] sm:$0xff] }
 0x55b   :  { %18850 = vst [vmem:[#allocation25_spill] sm:$0xff] %v16187_v54  ;;  %v7428_v1 = vsub.f32 %v7332_v50, %v18852_v15  ;;  %v7334_v10 = vmax.f32 %v6608_v33, 0.0  ;;  %v6610_v32 = vadd.f32 %v6609_v14, %v6417_v27  ;;  %v6421_v31 = vadd.f32 %v6420_v36, %v16104_v22  ;;  %v6613_v30 = vpop.f32.mrf.mxu1  ;;  %8191 = vmatprep.mubr.bf16.mxu0 %v18392_v29  ;;  %v11148_v6 = vpop.eup %11147  ;;  %v18857_v54 = vld [vmem:[#allocation30_spill] sm:$0xff] }
 0x55c   :  { %v16197_v11 = vmul.f32 %v18854_v39, %v7427_v45  ;;  %v6422_v9 = vpop.f32.mrf.mxu0  ;;  %11161 = vrcp.f32 %v7056_v21  ;;  %v7059_v14 = vadd.f32 1.0, %v11146_v48  ;;  %v18859_v45 = vld [vmem:[#allocation144_spill] sm:$0xff] }
 0x55d   :  { %v16199_v58 = vmul.f32 %v11144_v49, %v7428_v1  ;;  %v7430_v55 = vsub.f32 %v7334_v10, %v18856_v5  ;;  %v7335_v50 = vmax.f32 %v6610_v32, 0.0  ;;  %v6614_v33 = vadd.f32 %v6613_v30, %v6421_v31  ;;  %v6615_v27 = vpop.f32.mrf.mxu1  ;;  %v11150_v3 = vpop.eup %11149  ;;  %v18861_v30 = vld [vmem:[#allocation159_spill] sm:$0xff] }
 0x55e   :  { %18855 = vst [vmem:[#allocation46_spill] sm:$0xff] %v16197_v11  ;;  %v6423_v36 = vadd.f32 %v6422_v9, %v16110_v37  ;;  %v6424_v15 = vpop.f32.mrf.mxu0  ;;  %11163 = vpow2.f32 %v9427_v17  ;;  %v9430_v32 = vmul.f32 -1.442695, %v15811_v16  ;;  %v18862_v17 = vld [vmem:[#allocation156_spill] sm:$0xff] }
 0x55f   :  { %v16204_v52 = vmul.f32 %v18857_v54, %v7430_v55  ;;  %v7431_v39 = vsub.f32 %v7335_v50, %v18859_v45  ;;  %v7337_v11 = vmax.f32 %v6614_v33, 0.0  ;;  %v6425_v49 = vadd.f32 %v6424_v15, %v16104_v22  ;;  %v6617_v1 = vpop.f32.mrf.mxu1  ;;  %v11152_v21 = vpop.eup %11151 }
 0x560   :  { %v6616_v10 = vadd.f32 %v6615_v27, %v6423_v36  ;;  %v6426_v31 = vpop.f32.mrf.mxu0  ;;  %11165 = vrcp.f32 %v7059_v14  ;;  %v7062_v50 = vadd.f32 1.0, %v11150_v3 }
 0x561   :  { %18858 = vst [vmem:[#allocation126_spill] sm:$0xff] %v16204_v52  ;;  %v16209_v48 = vmul.f32 %v11148_v6, %v7431_v39  ;;  %v7433_v9 = vsub.f32 %v7337_v11, %v18861_v30  ;;  %v6618_v5 = vadd.f32 %v6617_v1, %v6425_v49  ;;  %v6427_v54 = vadd.f32 %v6426_v31, %v16110_v37  ;;  %v6619_v55 = vpop.f32.mrf.mxu1  ;;  %v11154_v15 = vpop.eup %11153  ;;  %v18864_v49 = vld [vmem:[#allocation94_spill] sm:$0xff] }
 0x562   :  { %v7338_v33 = vmax.f32 %v6616_v10, 0.0  ;;  %v6430_v52 = vpop.f32.mrf.mxu0  ;;  %8192 = vmatmul.mubr.bf16.gmra.mxu0 %v15971_v43  ;;  %v7065_v11 = vadd.f32 1.0, %v11152_v21  ;;  %11167 = vpow2.f32 %v9430_v32  ;;  %v18865_v10 = vld [vmem:[#allocation21_spill] sm:$0xff]  ;;  %v18866_v21 = vld [vmem:[#allocation127_spill] sm:$0xff] }
 0x563   :  { %18860 = vst [vmem:[#allocation178_spill] sm:$0xff] %v16209_v48  ;;  %v16215_v16 = vmul.f32 %v18862_v17, %v7433_v9  ;;  %v7340_v27 = vmax.f32 %v6618_v5, 0.0  ;;  %v6620_v36 = vadd.f32 %v6619_v55, %v6427_v54  ;;  %v6431_v6 = vadd.f32 %v6430_v52, %v16104_v22  ;;  %v6623_v39 = vpop.f32.mrf.mxu1  ;;  %8201 = vmatprep.mubr.bf16.mxu0 %v18392_v29  ;;  %v11156_v1 = vpop.eup %11155 }
 0x564   :  { %v7434_v14 = vsub.f32 %v7338_v33, %v18864_v49  ;;  %v6432_v3 = vpop.f32.mrf.mxu0  ;;  %11169 = vrcp.f32 %v7062_v50  ;;  %v9433_v5 = vmul.f32 -1.442695, %v15831_v23  ;;  %v18868_v33 = vld [vmem:[#allocation58_spill] sm:$0xff] }
 0x565   :  { %18863 = vst [vmem:[#allocation35_spill] sm:$0xff] %v16215_v16  ;;  %v7436_v31 = vsub.f32 %v7340_v27, %v18865_v10  ;;  %v7341_v43 = vmax.f32 %v6620_v36, 0.0  ;;  %v6624_v30 = vadd.f32 %v6623_v39, %v6431_v6  ;;  %v6433_v9 = vadd.f32 %v6432_v3, %v16110_v37  ;;  %v6625_v17 = vpop.f32.mrf.mxu1  ;;  %v11158_v55 = vpop.eup %11157 }
 0x566   :  { %v16223_v52 = vmul.f32 %v11154_v15, %v7434_v14  ;;  %v6434_v54 = vpop.f32.mrf.mxu0  ;;  %v17737_v36 = vmov 0.0   ;;  %11171 = vrcp.f32 %v7065_v11  ;;  %v7068_v6 = vadd.f32 1.0, %v11156_v1  ;;  %v18869_v14 = vld [vmem:[#allocation176_spill] sm:$0xff]  ;;  %v18870_v1 = vld [vmem:[#allocation179_spill] sm:$0xff] }
 0x567   :  { %v16226_v32 = vmul.f32 %v18866_v21, %v7436_v31  ;;  %v7437_v16 = vsub.f32 %v7341_v43, %v18868_v33  ;;  %v7343_v48 = vmax.f32 %v6624_v30, 0.0  ;;  %v6626_v45 = vadd.f32 %v6625_v17, %v6433_v9  ;;  %v6627_v27 = vpop.f32.mrf.mxu1  ;;  %9801 = vmatprep.subr.bf16.mxu0 %v17737_v36  ;;  %v11160_v15 = vpop.eup %11159  ;;  %v18872_v36 = vld [vmem:[#allocation26_spill] sm:$0xff] }
 0x568   :  { %v6435_v50 = vadd.f32 %v6434_v54, %v16104_v22  ;;  %v6436_v23 = vpop.f32.mrf.mxu0  ;;  %11173 = vpow2.f32 %v9433_v5  ;;  %v9436_v30 = vmul.f32 -1.442695, %v15850_v8  ;;  %v7071_v5 = vadd.f32 1.0, %v11160_v15 }
 0x569   :  { %18867 = vst [vmem:[#allocation48_spill] sm:$0xff] %v16226_v32  ;;  %v16231_v39 = vmul.f32 %v11158_v55, %v7437_v16  ;;  %v7439_v3 = vsub.f32 %v7343_v48, %v18869_v14  ;;  %v7344_v31 = vmax.f32 %v6626_v45, 0.0  ;;  %v6437_v21 = vadd.f32 %v6436_v23, %v16110_v37  ;;  %v6629_v43 = vpop.f32.mrf.mxu1  ;;  %v11162_v11 = vpop.eup %11161  ;;  %v18875_v32 = vld [vmem:[#allocation23_spill] sm:$0xff] }
 0x56a   :  { %v6628_v9 = vadd.f32 %v6627_v27, %v6435_v50  ;;  %v6440_v17 = vpop.f32.mrf.mxu0  ;;  %8202 = vmatmul.mubr.bf16.gmra.mxu0 %v16033_v42  ;;  %11175 = vrcp.f32 %v7068_v6 }
 0x56b   :  { %v16238_v54 = vmul.f32 %v18870_v1, %v7439_v3  ;;  %v7440_v16 = vsub.f32 %v7344_v31, %v18872_v36  ;;  %v6630_v55 = vadd.f32 %v6629_v43, %v6437_v21  ;;  %v6441_v48 = vadd.f32 %v6440_v17, %v16104_v22  ;;  %v6633_v45 = vpop.f32.mrf.mxu1  ;;  %8211 = vmatprep.mubr.bf16.mxu0 %v18392_v29  ;;  %v11164_v27 = vpop.eup %11163  ;;  %v18874_v21 = vld [vmem:[#allocation96_spill] sm:$0xff] }
 0x56c   :  { %v7346_v23 = vmax.f32 %v6628_v9, 0.0  ;;  %v6442_v8 = vpop.f32.mrf.mxu0  ;;  %11177 = vpow2.f32 %v9436_v30  ;;  %v9439_v31 = vmul.f32 -1.442695, %v15867_v7  ;;  %v18878_v7 = vld [vmem:[#allocation39_spill] sm:$0xff] }
 0x56d   :  { %18871 = vst [vmem:[#allocation67_spill] sm:$0xff] %v16238_v54  ;;  %v16243_v50 = vmul.f32 %v11162_v11, %v7440_v16  ;;  %v7347_v42 = vmax.f32 %v6630_v55, 0.0  ;;  %v6634_v14 = vadd.f32 %v6633_v45, %v6441_v48  ;;  %v6443_v3 = vadd.f32 %v6442_v8, %v16110_v37  ;;  %v6635_v1 = vpop.f32.mrf.mxu1  ;;  %v11166_v54 = vpop.eup %11165  ;;  %v18876_v55 = vld [vmem:[#allocation11_spill] sm:$0xff] }
 0x56e   :  { %v7442_v43 = vsub.f32 %v7346_v23, %v18874_v21  ;;  %v6444_v17 = vpop.f32.mrf.mxu0  ;;  %11179 = vrcp.f32 %v7071_v5  ;;  %v7074_v16 = vadd.f32 1.0, %v11164_v27  ;;  %v18879_v27 = vld [vmem:[#allocation199_spill] sm:$0xff] }
 0x56f   :  { %18873 = vst [vmem:[#allocation119_spill] sm:$0xff] %v16243_v50  ;;  %v7443_v6 = vsub.f32 %v7347_v42, %v18875_v32  ;;  %v7349_v15 = vmax.f32 %v6634_v14, 0.0  ;;  %v6636_v9 = vadd.f32 %v6635_v1, %v6443_v3  ;;  %v6445_v10 = vadd.f32 %v6444_v17, %v16104_v22  ;;  %v6637_v11 = vpop.f32.mrf.mxu1  ;;  %v11168_v30 = vpop.eup %11167 }
 0x570   :  { %v16251_v48 = vmul.f32 %v18876_v55, %v7442_v43  ;;  %v6446_v45 = vpop.f32.mrf.mxu0  ;;  %11181 = vpow2.f32 %v9439_v31  ;;  %v9442_v14 = vmul.f32 -1.442695, %v15886_v62  ;;  %v18881_v43 = vld [vmem:[#allocation31_spill] sm:$0xff] }
 0x571   :  { %v16253_v8 = vmul.f32 %v11166_v54, %v7443_v6  ;;  %v7445_v23 = vsub.f32 %v7349_v15, %v18878_v7  ;;  %v7350_v21 = vmax.f32 %v6636_v9, 0.0  ;;  %v6638_v50 = vadd.f32 %v6637_v11, %v6445_v10  ;;  %v6639_v36 = vpop.f32.mrf.mxu1  ;;  %v11170_v5 = vpop.eup %11169 }
 0x572   :  { %18877 = vst [vmem:[#allocation17_spill] sm:$0xff] %v16251_v48  ;;  %v6447_v42 = vadd.f32 %v6446_v45, %v16110_v37  ;;  %v6450_v3 = vpop.f32.mrf.mxu0  ;;  %8212 = vmatmul.mubr.bf16.gmra.mxu0 %v16035_v12  ;;  %11183 = vrcp.f32 %v7074_v16  ;;  %v7077_v10 = vadd.f32 1.0, %v11168_v30  ;;  %v18882_v12 = vld [vmem:[#allocation95_spill] sm:$0xff] }
 0x573   :  { %v16260_v1 = vmul.f32 %v18879_v27, %v7445_v23  ;;  %v7446_v54 = vsub.f32 %v7350_v21, %v18881_v43  ;;  %v7352_v17 = vmax.f32 %v6638_v50, 0.0  ;;  %v6451_v6 = vadd.f32 %v6450_v3, %v16104_v22  ;;  %v6643_v15 = vpop.f32.mrf.mxu1  ;;  %8221 = vmatprep.mubr.bf16.mxu0 %v18392_v29  ;;  %v11172_v9 = vpop.eup %11171  ;;  %v18883_v29 = vld [vmem:[#allocation198_spill] sm:$0xff] }
 0x574   :  { %v6640_v62 = vadd.f32 %v6639_v36, %v6447_v42  ;;  %v6452_v31 = vpop.f32.mrf.mxu0  ;;  %11185 = vpow2.f32 %v9442_v14  ;;  %v9445_v50 = vmul.f32 -1.442695, %v15912_v41 }
 0x575   :  { %18880 = vst [vmem:[#allocation137_spill] sm:$0xff] %v16260_v1  ;;  %v16265_v11 = vmul.f32 %v11170_v5, %v7446_v54  ;;  %v7448_v55 = vsub.f32 %v7352_v17, %v18882_v12  ;;  %v6644_v45 = vadd.f32 %v6643_v15, %v6451_v6  ;;  %v6453_v23 = vadd.f32 %v6452_v31, %v16110_v37  ;;  %v6645_v27 = vpop.f32.mrf.mxu1  ;;  %v11174_v1 = vpop.eup %11173  ;;  %v18885_v17 = vld [vmem:[#allocation164_spill] sm:$0xff] }
 0x576   :  { %v7353_v21 = vmax.f32 %v6640_v62, 0.0  ;;  %v6454_v3 = vpop.f32.mrf.mxu0  ;;  %11187 = vrcp.f32 %v7077_v10  ;;  %v9448_v54 = vmul.f32 -1.442695, %v15934_v47  ;;  %v18886_v31 = vld [vmem:[#allocation100_spill] sm:$0xff]  ;;  %v18887_v47 = vld [vmem:[#allocation82_spill] sm:$0xff] }
 0x577   :  { %v16271_v16 = vmul.f32 %v18883_v29, %v7448_v55  ;;  %v7355_v36 = vmax.f32 %v6644_v45, 0.0  ;;  %v6646_v30 = vadd.f32 %v6645_v27, %v6453_v23  ;;  %v6455_v42 = vadd.f32 %v6454_v3, %v16104_v22  ;;  %v6647_v5 = vpop.f32.mrf.mxu1  ;;  %v11176_v14 = vpop.eup %11175 }
 0x578   :  { %v7449_v6 = vsub.f32 %v7353_v21, %v18885_v17  ;;  %v6456_v15 = vpop.f32.mrf.mxu0  ;;  %v7080_v55 = vadd.f32 1.0, %v11174_v1  ;;  %11189 = vpow2.f32 %v9445_v50  ;;  %v18889_v21 = vld [vmem:[#allocation59_spill] sm:$0xff] }
 0x579   :  { %18884 = vst [vmem:[#allocation113_spill] sm:$0xff] %v16271_v16  ;;  %v7451_v41 = vsub.f32 %v7355_v36, %v18886_v31  ;;  %v7356_v62 = vmax.f32 %v6646_v30, 0.0  ;;  %v6648_v12 = vadd.f32 %v6647_v5, %v6455_v42  ;;  %v6457_v7 = vadd.f32 %v6456_v15, %v16110_v37  ;;  %v6649_v29 = vpop.f32.mrf.mxu1  ;;  %v11178_v10 = vpop.eup %11177 }
 0x57a   :  { %v16278_v45 = vmul.f32 %v11172_v9, %v7449_v6  ;;  %v6460_v23 = vpop.f32.mrf.mxu0  ;;  %8222 = vmatmul.mubr.bf16.gmra.mxu0 %v16072_v61  ;;  %11191 = vpow2.f32 %v9448_v54  ;;  %v9451_v42 = vmul.f32 -1.442695, %v15955_v25  ;;  %v18890_v6 = vld [vmem:[#allocation161_spill] sm:$0xff]  ;;  %v18893_v25 = vld [vmem:[#allocation68_spill] sm:$0xff] }
 0x57b   :  { %v16282_v27 = vmul.f32 %v18887_v47, %v7451_v41  ;;  %v7452_v3 = vsub.f32 %v7356_v62, %v18889_v21  ;;  %v7358_v16 = vmax.f32 %v6648_v12, 0.0  ;;  %v6650_v36 = vadd.f32 %v6649_v29, %v6457_v7  ;;  %v6653_v30 = vpop.f32.mrf.mxu1  ;;  %v11180_v9 = vpop.eup %11179  ;;  %v18891_v54 = vld [vmem:[#allocation81_spill] sm:$0xff] }
 0x57c   :  { %v6461_v1 = vadd.f32 %v6460_v23, %v16104_v22  ;;  %v6462_v50 = vpop.f32.mrf.mxu0  ;;  %11193 = vrcp.f32 %v7080_v55  ;;  %v7083_v62 = vadd.f32 1.0, %v11178_v10 }
 0x57d   :  { %18888 = vst [vmem:[#allocation33_spill] sm:$0xff] %v16282_v27  ;;  %v16287_v5 = vmul.f32 %v11176_v14, %v7452_v3  ;;  %v7454_v61 = vsub.f32 %v7358_v16, %v18890_v6  ;;  %v7359_v15 = vmax.f32 %v6650_v36, 0.0  ;;  %v6463_v41 = vadd.f32 %v6462_v50, %v16110_v37  ;;  %v6655_v47 = vpop.f32.mrf.mxu1  ;;  %v11182_v29 = vpop.eup %11181 }
 0x57e   :  { %v6654_v12 = vadd.f32 %v6653_v30, %v6461_v1  ;;  %v6464_v7 = vpop.f32.mrf.mxu0  ;;  %11195 = vpow2.f32 %v9451_v42  ;;  %v9454_v16 = vmul.f32 -1.442695, %v15975_v56 }
 0x57f   :  { %v16292_v27 = vmul.f32 %v18891_v54, %v7454_v61  ;;  %v7455_v23 = vsub.f32 %v7359_v15, %v18893_v25  ;;  %v6656_v31 = vadd.f32 %v6655_v47, %v6463_v41  ;;  %v6465_v14 = vadd.f32 %v6464_v7, %v16104_v22  ;;  %v6657_v3 = vpop.f32.mrf.mxu1  ;;  %v11184_v6 = vpop.eup %11183  ;;  %v18894_v15 = vld [vmem:[#allocation107_spill] sm:$0xff] }
 0x580   :  { %v7361_v36 = vmax.f32 %v6654_v12, 0.0  ;;  %v6466_v50 = vpop.f32.mrf.mxu0  ;;  %11197 = vrcp.f32 %v7083_v62  ;;  %v7086_v54 = vadd.f32 1.0, %v11182_v29 }
 0x581   :  { %18892 = vst [vmem:[#allocation157_spill] sm:$0xff] %v16292_v27  ;;  %v16297_v55 = vmul.f32 %v11180_v9, %v7455_v23  ;;  %v7362_v10 = vmax.f32 %v6656_v31, 0.0  ;;  %v6658_v30 = vadd.f32 %v6657_v3, %v6465_v14  ;;  %v6467_v1 = vadd.f32 %v6466_v50, %v16110_v37  ;;  %v6659_v61 = vpop.f32.mrf.mxu1  ;;  %v11186_v7 = vpop.eup %11185  ;;  %v18895_v27 = vld [vmem:[#allocation123_spill] sm:$0xff]  ;;  %v18897_v14 = vld [vmem:[#allocation62_spill] sm:$0xff] }
 0x582   :  { %v7457_v41 = vsub.f32 %v7361_v36, %v18894_v15  ;;  %v6470_v47 = vpop.f32.mrf.mxu0  ;;  %11199 = vpow2.f32 %v9454_v16  ;;  %v9457_v31 = vmul.f32 -1.442695, %v16001_v51 }
 0x583   :  { %v7458_v42 = vsub.f32 %v7362_v10, %v18895_v27  ;;  %v7364_v48 = vmax.f32 %v6658_v30, 0.0  ;;  %v6660_v56 = vadd.f32 %v6659_v61, %v6467_v1  ;;  %v6471_v12 = vadd.f32 %v6470_v47, %v16104_v22  ;;  %v6663_v25 = vpop.f32.mrf.mxu1  ;;  %v11188_v62 = vpop.eup %11187 }
 0x584   :  { %v16305_v9 = vmul.f32 %v15805_v63, %v7457_v41  ;;  %v6472_v23 = vpop.f32.mrf.mxu0  ;;  %11201 = vrcp.f32 %v7086_v54  ;;  %v7089_v30 = vadd.f32 1.0, %v11186_v7  ;;  %v18899_v63 = vld [vmem:[#allocation102_spill] sm:$0xff] }
 0x585   :  { %v16307_v29 = vmul.f32 %v11184_v6, %v7458_v42  ;;  %v7460_v3 = vsub.f32 %v7364_v48, %v18897_v14  ;;  %v7365_v36 = vmax.f32 %v6660_v56, 0.0  ;;  %v6664_v50 = vadd.f32 %v6663_v25, %v6471_v12  ;;  %v6665_v10 = vpop.f32.mrf.mxu1  ;;  %v11190_v16 = vpop.eup %11189  ;;  %v18900_v12 = vld [vmem:[#allocation154_spill] sm:$0xff] }
 0x586   :  { %18896 = vst [vmem:[#allocation87_spill] sm:$0xff] %v16305_v9  ;;  %v6473_v1 = vadd.f32 %v6472_v23, %v16110_v37  ;;  %v6474_v61 = vpop.f32.mrf.mxu0  ;;  %11203 = vpow2.f32 %v9457_v31  ;;  %v9460_v48 = vmul.f32 -1.442695, %v16014_v34 }
 0x587   :  { %v16312_v51 = vmul.f32 %v15827_v35, %v7460_v3  ;;  %v7461_v41 = vsub.f32 %v7365_v36, %v18899_v63  ;;  %v7367_v47 = vmax.f32 %v6664_v50, 0.0  ;;  %v6475_v6 = vadd.f32 %v6474_v61, %v16104_v22  ;;  %v6667_v42 = vpop.f32.mrf.mxu1  ;;  %v11192_v54 = vpop.eup %11191 }
 0x588   :  { %v6666_v25 = vadd.f32 %v6665_v10, %v6473_v1  ;;  %v6476_v56 = vpop.f32.mrf.mxu0  ;;  %11205 = vrcp.f32 %v7089_v30  ;;  %v7092_v36 = vadd.f32 1.0, %v11190_v16 }
 0x589   :  { %18898 = vst [vmem:[#allocation197_spill] sm:$0xff] %v16312_v51  ;;  %v16317_v7 = vmul.f32 %v11188_v62, %v7461_v41  ;;  %v7463_v23 = vsub.f32 %v7367_v47, %v18900_v12  ;;  %v6668_v14 = vadd.f32 %v6667_v42, %v6475_v6  ;;  %v6477_v35 = vadd.f32 %v6476_v56, %v16110_v37  ;;  %v6669_v3 = vpop.f32.mrf.mxu1  ;;  %v11194_v61 = vpop.eup %11193  ;;  %v18902_v47 = vld [vmem:[#allocation103_spill] sm:$0xff]  ;;  %v18903_v12 = vld [vmem:[#allocation98_spill] sm:$0xff] }
 0x58a   :  { %v7368_v50 = vmax.f32 %v6666_v25, 0.0  ;;  %v6480_v51 = vpop.f32.mrf.mxu0  ;;  %v7095_v41 = vadd.f32 1.0, %v11192_v54  ;;  %11207 = vpow2.f32 %v9460_v48  ;;  %v18906_v54 = vld [vmem:[#allocation163_spill] sm:$0xff] }
 0x58b   :  { %v16322_v31 = vmul.f32 %v15865_v46, %v7463_v23  ;;  %v7370_v34 = vmax.f32 %v6668_v14, 0.0  ;;  %v6670_v10 = vadd.f32 %v6669_v3, %v6477_v35  ;;  %v6481_v1 = vadd.f32 %v6480_v51, %v16104_v22  ;;  %v6673_v62 = vpop.f32.mrf.mxu1  ;;  %v11196_v56 = vpop.eup %11195 }
 0x58c   :  { %v7464_v6 = vsub.f32 %v7368_v50, %v18902_v47  ;;  %v6482_v42 = vpop.f32.mrf.mxu0  ;;  %11209 = vrcp.f32 %v7092_v36  ;;  %v9463_v46 = vmul.f32 -1.442695, %v16040_v38  ;;  %v18908_v38 = vld [vmem:[#allocation101_spill] sm:$0xff] }
 0x58d   :  { %18901 = vst [vmem:[#allocation65_spill] sm:$0xff] %v16322_v31  ;;  %v7466_v30 = vsub.f32 %v7370_v34, %v18903_v12  ;;  %v7371_v16 = vmax.f32 %v6670_v10, 0.0  ;;  %v6674_v25 = vadd.f32 %v6673_v62, %v6481_v1  ;;  %v6483_v9 = vadd.f32 %v6482_v42, %v16110_v37  ;;  %v6675_v15 = vpop.f32.mrf.mxu1  ;;  %v11198_v23 = vpop.eup %11197 }
 0x58e   :  { %v16329_v14 = vmul.f32 %v11194_v61, %v7464_v6  ;;  %v6484_v51 = vpop.f32.mrf.mxu0  ;;  %11211 = vrcp.f32 %v7095_v41  ;;  %v7098_v10 = vadd.f32 1.0, %v11196_v56  ;;  %v18909_v41 = vld [vmem:[#allocation173_spill] sm:$0xff] }
 0x58f   :  { %v16332_v48 = vmul.f32 %v15891_v18, %v7466_v30  ;;  %v7467_v35 = vsub.f32 %v7371_v16, %v18906_v54  ;;  %v7373_v3 = vmax.f32 %v6674_v25, 0.0  ;;  %v6676_v50 = vadd.f32 %v6675_v15, %v6483_v9  ;;  %v6677_v34 = vpop.f32.mrf.mxu1  ;;  %v11200_v36 = vpop.eup %11199  ;;  %v18911_v25 = vld [vmem:[#allocation92_spill] sm:$0xff]  ;;  %v18918_v54 = vld [vmem:[#allocation43_spill] sm:$0xff] }
 0x590   :  { %18904 = vst [vmem:[#allocation69_spill] sm:$0xff] %v16329_v14  ;;  %v6485_v1 = vadd.f32 %v6484_v51, %v16104_v22  ;;  %v6486_v62 = vpop.f32.mrf.mxu0  ;;  %11213 = vpow2.f32 %v9463_v46  ;;  %v9466_v30 = vmul.f32 -1.442695, %v16058_v44  ;;  %v18913_v46 = vld [vmem:[#allocation40_spill] sm:$0xff] }
 0x591   :  { %18905 = vst [vmem:[#allocation55_spill] sm:$0xff] %v16332_v48  ;;  %v16336_v42 = vmul.f32 %v11198_v23, %v7467_v35  ;;  %v7469_v61 = vsub.f32 %v7373_v3, %v18908_v38  ;;  %v7374_v6 = vmax.f32 %v6676_v50, 0.0  ;;  %v6487_v12 = vadd.f32 %v6486_v62, %v16110_v37  ;;  %v6679_v18 = vpop.f32.mrf.mxu1  ;;  %v11202_v9 = vpop.eup %11201  ;;  %v18912_v38 = vld [vmem:[#allocation188_spill] sm:$0xff] }
 0x592   :  { %v6678_v16 = vadd.f32 %v6677_v34, %v6485_v1  ;;  %v6490_v15 = vpop.f32.mrf.mxu0  ;;  %11215 = vrcp.f32 %v7098_v10  ;;  %v7101_v3 = vadd.f32 1.0, %v11200_v36  ;;  %v7606_v31 = vadd.f32 %v18913_v46, %v18912_v38  ;;  %v18916_v36 = vld [vmem:[#allocation190_spill] sm:$0xff] }
 0x593   :  { %18907 = vst [vmem:[#allocation140_spill] sm:$0xff] %v16336_v42  ;;  %v16342_v56 = vmul.f32 %v18909_v41, %v7469_v61  ;;  %v7470_v51 = vsub.f32 %v7374_v6, %v18911_v25  ;;  %v6680_v48 = vadd.f32 %v6679_v18, %v6487_v12  ;;  %v6491_v23 = vadd.f32 %v6490_v15, %v16104_v22  ;;  %v6683_v35 = vpop.f32.mrf.mxu1  ;;  %v11204_v44 = vpop.eup %11203  ;;  %v18915_v6 = vld [vmem:[#allocation105_spill] sm:$0xff] }
 0x594   :  { %v7376_v50 = vmax.f32 %v6678_v16, 0.0  ;;  %v6492_v62 = vpop.f32.mrf.mxu0  ;;  %11217 = vpow2.f32 %v9466_v30  ;;  %v9469_v12 = vmul.f32 -1.442695, %v16069_v28  ;;  %v18917_v16 = vld [vmem:[#allocation124_spill] sm:$0xff] }
 0x595   :  { %18910 = vst [vmem:[#allocation162_spill] sm:$0xff] %v16342_v56  ;;  %v16348_v34 = vmul.f32 %v11202_v9, %v7470_v51  ;;  %v7377_v1 = vmax.f32 %v6680_v48, 0.0  ;;  %v6684_v42 = vadd.f32 %v6683_v35, %v6491_v23  ;;  %v6493_v61 = vadd.f32 %v6492_v62, %v16110_v37  ;;  %v6685_v41 = vpop.f32.mrf.mxu1  ;;  %v11206_v56 = vpop.eup %11205 }
 0x596   :  { %v7472_v18 = vsub.f32 %v7376_v50, %v18915_v6  ;;  %v6494_v10 = vpop.f32.mrf.mxu0  ;;  %v7609_v15 = vadd.f32 %v18917_v16, %v18916_v36  ;;  %11219 = vrcp.f32 %v7101_v3  ;;  %v7104_v23 = vadd.f32 1.0, %v11204_v44  ;;  %v18921_v36 = vld [vmem:[#allocation86_spill] sm:$0xff] }
 0x597   :  { %18914 = vst [vmem:[#allocation202_spill] sm:$0xff] %v16348_v34  ;;  %v7473_v38 = vsub.f32 %v7377_v1, %v18918_v54  ;;  %v7379_v46 = vmax.f32 %v6684_v42, 0.0  ;;  %v6686_v9 = vadd.f32 %v6685_v41, %v6493_v61  ;;  %v6495_v48 = vadd.f32 %v6494_v10, %v16104_v22  ;;  %v6687_v51 = vpop.f32.mrf.mxu1  ;;  %v11208_v50 = vpop.eup %11207  ;;  %v18931_v54 = vld [vmem:[#allocation170_spill] sm:$0xff] }
 0x598   :  { %v16358_v30 = vmul.f32 %v15949_v4, %v7472_v18  ;;  %v6496_v28 = vpop.f32.mrf.mxu0  ;;  %v16360_v35 = vadd.f32 1.0, %v7606_v31  ;;  %11221 = vpow2.f32 %v9469_v12  ;;  %v9472_v61 = vmul.f32 -1.442695, %v16085_v53  ;;  %v18923_v18 = vld [vmem:[#allocation64_spill] sm:$0xff] }
 0x599   :  { %v16362_v62 = vmul.f32 %v11206_v56, %v7473_v38  ;;  %v7475_v16 = vsub.f32 %v7379_v46, %v18921_v36  ;;  %v7380_v6 = vmax.f32 %v6686_v9, 0.0  ;;  %v6688_v1 = vadd.f32 %v6687_v51, %v6495_v48  ;;  %v6689_v42 = vpop.f32.mrf.mxu1  ;;  %v11210_v4 = vpop.eup %11209  ;;  %v18924_v53 = vld [vmem:[#allocation16_spill] sm:$0xff]  ;;  %v18925_v51 = vld [vmem:[#allocation77_spill] sm:$0xff] }
 0x59a   :  { %18919 = vst [vmem:[#allocation114_spill] sm:$0xff] %v16358_v30  ;;  %v6497_v3 = vadd.f32 %v6496_v28, %v16110_v37  ;;  %v6500_v44 = vpop.f32.mrf.mxu0  ;;  %v16367_v41 = vadd.f32 1.0, %v7609_v15  ;;  %11223 = vrcp.f32 %v7104_v23  ;;  %v7107_v9 = vadd.f32 1.0, %v11208_v50  ;;  %v18927_v30 = vld [vmem:[#allocation106_spill] sm:$0xff]  ;;  %v18929_v50 = vld [vmem:[#allocation160_spill] sm:$0xff] }
 0x59b   :  { %18920 = vst [vmem:[#allocation153_spill] sm:$0xff] %v16362_v62  ;;  %v16370_v31 = vmul.f32 %v15961_v26, %v7475_v16  ;;  %v7476_v56 = vsub.f32 %v7380_v6, %v18923_v18  ;;  %v7382_v10 = vmax.f32 %v6688_v1, 0.0  ;;  %v6501_v38 = vadd.f32 %v6500_v44, %v16104_v22  ;;  %v6693_v46 = vpop.f32.mrf.mxu1  ;;  %v11212_v36 = vpop.eup %11211  ;;  %v18928_v1 = vld [vmem:[#allocation99_spill] sm:$0xff] }
 0x59c   :  { %v6690_v12 = vadd.f32 %v6689_v42, %v6497_v3  ;;  %v6502_v48 = vpop.f32.mrf.mxu0  ;;  %v7612_v28 = vadd.f32 %v18925_v51, %v18924_v53  ;;  %11225 = vpow2.f32 %v9472_v61  ;;  %v9475_v44 = vmul.f32 -1.442695, %v18928_v1  ;;  %v18930_v42 = vld [vmem:[#allocation125_spill] sm:$0xff]  ;;  %v18935_v1 = vld [vmem:[#allocation8_spill] sm:$0xff] }
 0x59d   :  { %18922 = vst [vmem:[#allocation121_spill] sm:$0xff] %v16370_v31  ;;  %v16376_v15 = vmul.f32 %v11210_v4, %v7476_v56  ;;  %v7478_v62 = vsub.f32 %v7382_v10, %v18927_v30  ;;  %v6694_v26 = vadd.f32 %v6693_v46, %v6501_v38  ;;  %v6503_v16 = vadd.f32 %v6502_v48, %v16110_v37  ;;  %v6695_v6 = vpop.f32.mrf.mxu1  ;;  %v11214_v18 = vpop.eup %11213  ;;  %v18933_v46 = vld [vmem:[#allocation116_spill] sm:$0xff] }
 0x59e   :  { %v7383_v31 = vmax.f32 %v6690_v12, 0.0  ;;  %v6504_v23 = vpop.f32.mrf.mxu0  ;;  %v7615_v3 = vadd.f32 %v18930_v42, %v18929_v50  ;;  %11227 = vrcp.f32 %v7107_v9  ;;  %v16388_v51 = vadd.f32 1.0, %v7612_v28  ;;  %v18934_v12 = vld [vmem:[#allocation22_spill] sm:$0xff]  ;;  %v18936_v50 = vld [vmem:[#allocation44_spill] sm:$0xff] }
 0x59f   :  { %18926 = vst [vmem:[#allocation60_spill] sm:$0xff] %v16376_v15  ;;  %v16384_v53 = vmul.f32 %v18931_v54, %v7478_v62  ;;  %v7385_v4 = vmax.f32 %v6694_v26, 0.0  ;;  %v6696_v56 = vadd.f32 %v6695_v6, %v6503_v16  ;;  %v6505_v10 = vadd.f32 %v6504_v23, %v16104_v22  ;;  %v6697_v38 = vpop.f32.mrf.mxu1  ;;  %v11216_v15 = vpop.eup %11215  ;;  %v18938_v23 = vld [vmem:[#allocation20_spill] sm:$0xff] }
 0x5a0   :  { %v7479_v48 = vsub.f32 %v7383_v31, %v18933_v46  ;;  %v6506_v61 = vpop.f32.mrf.mxu0  ;;  %v7618_v30 = vadd.f32 %v18935_v1, %v18934_v12  ;;  %v7110_v16 = vadd.f32 1.0, %v11214_v18  ;;  %11229 = vpow2.f32 %v9475_v44  ;;  %v18940_v12 = vld [vmem:[#allocation28_spill] sm:$0xff] }
 0x5a1   :  { %18932 = vst [vmem:[#allocation136_spill] sm:$0xff] %v16384_v53  ;;  %v7481_v42 = vsub.f32 %v7385_v4, %v18936_v50  ;;  %v7386_v14 = vmax.f32 %v6696_v56, 0.0  ;;  %v6698_v54 = vadd.f32 %v6697_v38, %v6505_v10  ;;  %v6507_v62 = vadd.f32 %v6506_v61, %v16110_v37  ;;  %v6699_v26 = vpop.f32.mrf.mxu1  ;;  %v11218_v28 = vpop.eup %11217 }
 0x5a2   :  { %v16394_v6 = vmul.f32 %v11212_v36, %v7479_v48  ;;  %v6510_v9 = vpop.f32.mrf.mxu0  ;;  %v16396_v31 = vadd.f32 1.0, %v7615_v3  ;;  %v9478_v10 = vmul.f32 -1.442695, %v16112_v24  ;;  %v16404_v44 = vadd.f32 1.0, %v7618_v30  ;;  %v18941_v36 = vld [vmem:[#allocation19_spill] sm:$0xff]  ;;  %v18942_v48 = vld [vmem:[#allocation76_spill] sm:$0xff] }
 0x5a3   :  { %v16399_v53 = vmul.f32 %v18938_v23, %v7481_v42  ;;  %v7482_v1 = vsub.f32 %v7386_v14, %v18940_v12  ;;  %v7388_v46 = vmax.f32 %v6698_v54, 0.0  ;;  %v6700_v4 = vadd.f32 %v6699_v26, %v6507_v62  ;;  %v6703_v56 = vpop.f32.mrf.mxu1  ;;  %v11220_v61 = vpop.eup %11219  ;;  %v18944_v42 = vld [vmem:[#allocation47_spill] sm:$0xff]  ;;  %v18947_v12 = vld [vmem:[#allocation108_spill] sm:$0xff] }
 0x5a4   :  { %18937 = vst [vmem:[#allocation66_spill] sm:$0xff] %v16394_v6  ;;  %v6511_v38 = vadd.f32 %v6510_v9, %v16104_v22  ;;  %v6512_v18 = vpop.f32.mrf.mxu0  ;;  %v7621_v3 = vadd.f32 %v18942_v48, %v18941_v36  ;;  %11231 = vrcp.f32 %v7110_v16  ;;  %v7113_v62 = vadd.f32 1.0, %v11218_v28  ;;  %v18945_v6 = vld [vmem:[#allocation182_spill] sm:$0xff] }
 0x5a5   :  { %18939 = vst [vmem:[#allocation181_spill] sm:$0xff] %v16399_v53  ;;  %v16408_v50 = vmul.f32 %v11216_v15, %v7482_v1  ;;  %v7484_v23 = vsub.f32 %v7388_v46, %v18944_v42  ;;  %v7389_v53 = vmax.f32 %v6700_v4, 0.0  ;;  %v6513_v14 = vadd.f32 %v6512_v18, %v16110_v37  ;;  %v6705_v54 = vpop.f32.mrf.mxu1  ;;  %v11222_v9 = vpop.eup %11221 }
 0x5a6   :  { %v6704_v24 = vadd.f32 %v6703_v56, %v6511_v38  ;;  %v6514_v26 = vpop.f32.mrf.mxu0  ;;  %v18948_v46 = vmov 0.0   ;;  %11233 = vpow2.f32 %v9478_v10  ;;  %v16419_v28 = vadd.f32 1.0, %v7621_v3  ;;  %v18949_v56 = vld [vmem:[#allocation27_spill] sm:$0xff] }
 0x5a7   :  { %18943 = vst [vmem:[#allocation158_spill] sm:$0xff] %v16408_v50  ;;  %v16413_v30 = vmul.f32 %v18945_v6, %v7484_v23  ;;  %v7485_v47 = vsub.f32 %v7389_v53, %v18947_v12  ;;  %v6706_v36 = vadd.f32 %v6705_v54, %v6513_v14  ;;  %v6515_v15 = vadd.f32 %v6514_v26, %v16104_v22  ;;  %v6707_v1 = vpop.f32.mrf.mxu1  ;;  %v18950_v38 = vld [vmem:[#allocation183_spill] sm:$0xff]  ;;  %v11224_v6 = vpop.eup %11223  ;;  %v18954_v12 = vld [vmem:[#allocation89_spill] sm:$0xff] }
 0x5a8   :  { %9817 = vmatprep.mubr.msk.bf16.mxu0 %vm11309_vm0, %v18948_v46  ;;  %v7391_v4 = vmax.f32 %v6704_v24, 0.0  ;;  %v6516_v16 = vpop.f32.mrf.mxu0  ;;  %v7624_v18 = vadd.f32 %v18950_v38, %v18949_v56  ;;  %11235 = vrcp.f32 %v7113_v62  ;;  %v7116_v26 = vadd.f32 1.0, %v11222_v9  ;;  %v18953_v24 = vld [vmem:[#allocation142_spill] sm:$0xff]  ;;  %v18955_v50 = vld [vmem:[#allocation117_spill] sm:$0xff] }
 0x5a9   :  { %18946 = vst [vmem:[#allocation148_spill] sm:$0xff] %v16413_v30  ;;  %v16423_v48 = vmul.f32 %v11220_v61, %v7485_v47  ;;  %v7392_v53 = vmax.f32 %v6706_v36, 0.0  ;;  %v6708_v23 = vadd.f32 %v6707_v1, %v6515_v15  ;;  %v6517_v14 = vadd.f32 %v6516_v16, %v16110_v37  ;;  %v6709_v54 = vpop.f32.mrf.mxu1  ;;  %v18952_v30 = vld [vmem:[#allocation168_spill] sm:$0xff]  ;;  %v11226_v46 = vpop.eup %11225  ;;  %v18956_v36 = vld [vmem:[#allocation63_spill] sm:$0xff]  ;;  %v18958_v9 = vld [vmem:[#allocation193_spill] sm:$0xff] }
 0x5aa   :  { %v7487_v42 = vsub.f32 %v7391_v4, %v18952_v30  ;;  %v6520_v10 = vpop.f32.mrf.mxu0  ;;  %v7627_v3 = vadd.f32 %v18954_v12, %v18953_v24  ;;  %v16434_v62 = vadd.f32 1.0, %v7624_v18  ;;  %v18959_v4 = vld [vmem:[#allocation128_spill] sm:$0xff]  ;;  %v18960_v30 = vld [vmem:[#allocation167_spill] sm:$0xff]  ;;  %11237 = vrcp.f32 %v7116_v26  ;;  %v18967_v26 = vld [vmem:[#allocation194_spill] sm:$0xff] }
 0x5ab   :  { %18951 = vst [vmem:[#allocation75_spill] sm:$0xff] %v16423_v48  ;;  %v7488_v34 = vsub.f32 %v7392_v53, %v18955_v50  ;;  %v7394_v56 = vmax.f32 %v6708_v23, 0.0  ;;  %v6710_v38 = vadd.f32 %v6709_v54, %v6517_v14  ;;  %v6521_v47 = vadd.f32 %v6520_v10, %v16104_v22  ;;  %v6713_v61 = vpop.f32.mrf.mxu1  ;;  %v18961_v48 = vld [vmem:[#allocation130_spill] sm:$0xff]  ;;  %v11228_v24 = vpop.eup %11227  ;;  %v18963_v53 = vld [vmem:[#allocation120_spill] sm:$0xff] }
 0x5ac   :  { %v16432_v15 = vmul.f32 %v18956_v36, %v7487_v42  ;;  %v6522_v1 = vpop.f32.mrf.mxu0  ;;  %v7630_v16 = vadd.f32 %v18959_v4, %v18958_v9  ;;  %v7633_v12 = vadd.f32 %v18961_v48, %v18960_v30  ;;  %v7119_v42 = vadd.f32 1.0, %v11226_v46  ;;  %v18965_v30 = vld [vmem:[#allocation132_spill] sm:$0xff] }
 0x5ad   :  { %v16440_v25 = vmul.f32 %v11224_v6, %v7488_v34  ;;  %v7490_v23 = vsub.f32 %v7394_v56, %v18963_v53  ;;  %v7395_v14 = vmax.f32 %v6710_v38, 0.0  ;;  %v6714_v54 = vadd.f32 %v6713_v61, %v6521_v47  ;;  %v6715_v10 = vpop.f32.mrf.mxu1  ;;  %v11230_v50 = vpop.eup %11229  ;;  %v18970_v53 = vld [vmem:[#allocation9_spill] sm:$0xff] }
 0x5ae   :  { %18957 = vst [vmem:[#allocation45_spill] sm:$0xff] %v16432_v15  ;;  %v6523_v36 = vadd.f32 %v6522_v1, %v16110_v37  ;;  %v6524_v18 = vpop.f32.mrf.mxu0  ;;  %v16444_v15 = vadd.f32 1.0, %v7627_v3  ;;  %v16451_v61 = vadd.f32 1.0, %v7630_v16  ;;  %v16453_v46 = vadd.f32 1.0, %v7633_v12  ;;  %v18968_v1 = vld [vmem:[#allocation80_spill] sm:$0xff] }
 0x5af   :  { %18962 = vst [vmem:[#allocation78_spill] sm:$0xff] %v16440_v25  ;;  %v16447_v9 = vmul.f32 %v16126_v60, %v7490_v23  ;;  %v7491_v48 = vsub.f32 %v7395_v14, %v18965_v30  ;;  %v7397_v34 = vmax.f32 %v6714_v54, 0.0  ;;  %v6525_v6 = vadd.f32 %v6524_v18, %v16104_v22  ;;  %v6717_v56 = vpop.f32.mrf.mxu1  ;;  %v18972_v16 = vld [vmem:[#allocation200_spill] sm:$0xff] }
 0x5b0   :  { %v6716_v38 = vadd.f32 %v6715_v10, %v6523_v36  ;;  %v6526_v47 = vpop.f32.mrf.mxu0  ;;  %18966 = vst [vmem:[#allocation10_spill] sm:$0xff] %v16453_v46  ;;  %v7636_v3 = vadd.f32 %v18968_v1, %v18967_v26  ;;  %11239 = vrcp.f32 %v7119_v42  ;;  %v7122_v18 = vadd.f32 1.0, %v11230_v50  ;;  %v18971_v36 = vld [vmem:[#allocation41_spill] sm:$0xff]  ;;  %v18976_v50 = vld [vmem:[#allocation38_spill] sm:$0xff]  ;;  %v18980_v46 = vld [vmem:[#allocation51_spill] sm:$0xff] }
 0x5b1   :  { %18964 = vst [vmem:[#allocation174_spill] sm:$0xff] %v16447_v9  ;;  %v16457_v4 = vmul.f32 %v11228_v24, %v7491_v48  ;;  %v7493_v60 = vsub.f32 %v7397_v34, %v18970_v53  ;;  %v6718_v23 = vadd.f32 %v6717_v56, %v6525_v6  ;;  %v6527_v14 = vadd.f32 %v6526_v47, %v16110_v37  ;;  %v6719_v54 = vpop.f32.mrf.mxu1  ;;  %v11232_v12 = vpop.eup %11231  ;;  %v18974_v6 = vld [vmem:[#allocation52_spill] sm:$0xff]  ;;  %v18977_v42 = vld [vmem:[#allocation133_spill] sm:$0xff] }
 0x5b2   :  { %v7398_v9 = vmax.f32 %v6716_v38, 0.0  ;;  %v6530_v10 = vpop.f32.mrf.mxu0  ;;  %v7639_v30 = vadd.f32 %v18972_v16, %v18971_v36  ;;  %v16468_v1 = vadd.f32 1.0, %v7636_v3  ;;  %v7642_v38 = vadd.f32 %v18977_v42, %v18976_v50  ;;  %v18978_v53 = vld [vmem:[#allocation104_spill] sm:$0xff] }
 0x5b3   :  { %18969 = vst [vmem:[#allocation122_spill] sm:$0xff] %v16457_v4  ;;  %v16464_v25 = vmul.f32 %v16132_v59, %v7493_v60  ;;  %v7400_v26 = vmax.f32 %v6718_v23, 0.0  ;;  %v6720_v24 = vadd.f32 %v6719_v54, %v6527_v14  ;;  %v6531_v48 = vadd.f32 %v6530_v10, %v16104_v22  ;;  %v18979_v4 = vld [vmem:[#allocation203_spill] sm:$0xff]  ;;  %v11234_v16 = vpop.eup %11233 }
 0x5b4   :  { %v6723_v34 = vpop.f32.mrf.mxu1  ;;  %v7494_v56 = vsub.f32 %v7398_v9, %v18974_v6  ;;  %v6532_v47 = vpop.f32.mrf.mxu0  ;;  %18975 = vst [vmem:[#allocation79_spill] sm:$0xff] %v16468_v1  ;;  %v7645_v36 = vadd.f32 %v18979_v4, %v18978_v53  ;;  %11241 = vrcp.f32 %v7122_v18  ;;  %v16478_v3 = vadd.f32 1.0, %v7639_v30  ;;  %v18983_v1 = vld [vmem:[#allocation172_spill] sm:$0xff]  ;;  %v18985_v4 = vld [vmem:[#allocation111_spill] sm:$0xff] }
 0x5b5   :  { %18973 = vst [vmem:[#allocation74_spill] sm:$0xff] %v16464_v25  ;;  %v7496_v59 = vsub.f32 %v7400_v26, %v18980_v46  ;;  %v7401_v60 = vmax.f32 %v6720_v24, 0.0  ;;  %v6724_v23 = vadd.f32 %v6723_v34, %v6531_v48  ;;  %v6533_v14 = vadd.f32 %v6532_v47, %v16110_v37  ;;  %v18982_v25 = vld [vmem:[#allocation129_spill] sm:$0xff]  ;;  %v11236_v42 = vpop.eup %11235  ;;  %v7798_v18 = vld [vmem:[%s17234_s9] sm:$0x7] }
 0x5b6   :  { %v6725_v54 = vpop.f32.mrf.mxu1  ;;  %v16476_v10 = vmul.f32 %v11232_v12, %v7494_v56  ;;  %v6534_v9 = vpop.f32.mrf.mxu0  ;;  %18981 = vst [vmem:[#allocation70_spill] sm:$0xff] %v16478_v3  ;;  %v7648_v50 = vadd.f32 %v18983_v1, %v18982_v25  ;;  %v7125_v12 = vadd.f32 1.0, %v11234_v16  ;;  %v16490_v47 = vadd.f32 1.0, %v7642_v38  ;;  %v18990_v46 = vld [vmem:[#allocation149_spill] sm:$0xff]  ;;  %v18993_v38 = vld [vmem:[#allocation84_spill] sm:$0xff] }
 0x5b7   :  { %v16483_v53 = vmul.f32 %v16138_v19, %v7496_v59  ;;  %v7497_v26 = vsub.f32 %v7401_v60, %v18985_v4  ;;  %v7403_v24 = vmax.f32 %v6724_v23, 0.0  ;;  %v6726_v48 = vadd.f32 %v6725_v54, %v6533_v14  ;;  %v18989_v19 = vld [vmem:[#allocation112_spill] sm:$0xff] }
 0x5b8   :  { %v6727_v34 = vpop.f32.mrf.mxu1  ;;  %v6535_v30 = vadd.f32 %v6534_v9, %v16104_v22  ;;  %v6536_v56 = vpop.f32.mrf.mxu0  ;;  %18986 = vst [vmem:[#allocation131_spill] sm:$0xff] %v16490_v47  ;;  %v16492_v25 = vadd.f32 1.0, %v7645_v36  ;;  %v16499_v4 = vrot.slane %v7798_v18, %v18990_v46  ;;  %v16501_v16 = vadd.f32 1.0, %v7648_v50  ;;  %v18992_v9 = vld [vmem:[#allocation141_spill] sm:$0xff] }
 0x5b9   :  { %18984 = vst [vmem:[#allocation15_spill] sm:$0xff] %v16483_v53  ;;  %v16494_v1 = vmul.f32 %v11236_v42, %v7497_v26  ;;  %v7499_v59 = vsub.f32 %v7403_v24, %v18989_v19  ;;  %v7404_v60 = vmax.f32 %v6726_v48, 0.0  ;;  %v6537_v23 = vadd.f32 %v6536_v56, %v16110_v37  ;;  %v11238_v36 = vpop.eup %11237  ;;  %v18995_v26 = vld [vmem:[#allocation13_spill] sm:$0xff]  ;;  %v18996_v19 = vld [vmem:[#allocation88_spill] sm:$0xff] }
 0x5ba   :  { %18987 = vst [vmem:[#allocation169_spill] sm:$0xff] %v16492_v25  ;;  %v6729_v14 = vpop.f32.mrf.mxu1  ;;  %v6728_v54 = vadd.f32 %v6727_v34, %v6535_v30  ;;  %v6540_v53 = vpop.f32.mrf.mxu0  ;;  %18991 = vst [vmem:[#allocation177_spill] sm:$0xff] %v16501_v16  ;;  %v16505_v47 = vadd.f32 %v18993_v38, %v18992_v9  ;;  %11243 = vrcp.f32 %v7125_v12  ;;  %v7607_v50 = vadd.f32 %v16144_v57, %v18827_v0  ;;  %v19001_v0 = vld [vmem:[#allocation49_spill] sm:$0xff] }
 0x5bb   :  { %18988 = vst [vmem:[#allocation83_spill] sm:$0xff] %v16494_v1  ;;  %v16508_v42 = vmul.f32 %v16146_v20, %v7499_v59  ;;  %v7500_v24 = vsub.f32 %v7404_v60, %v18995_v26  ;;  %v6730_v48 = vadd.f32 %v6729_v14, %v6537_v23  ;;  %v6541_v56 = vadd.f32 %v6540_v53, %v16104_v22  ;;  %v18998_v23 = vld [vmem:[#allocation72_spill] sm:$0xff] }
 0x5bc   :  { %v6733_v34 = vpop.f32.mrf.mxu1  ;;  %v7406_v30 = vmax.f32 %v6728_v54, 0.0  ;;  %v6542_v46 = vpop.f32.mrf.mxu0  ;;  %v7608_v9 = vadd.f32 %v18996_v19, %v18828_v2  ;;  %v19000_v54 = vld [vmem:[#allocation152_spill] sm:$0xff]  ;;  %v7610_v57 = vadd.f32 %v16154_v40, %v19001_v0  ;;  %v19002_v19 = vld [vmem:[#allocation155_spill] sm:$0xff] }
 0x5bd   :  { %18994 = vst [vmem:[#allocation71_spill] sm:$0xff] %v16508_v42  ;;  %v16516_v38 = vmul.f32 %v11238_v36, %v7500_v24  ;;  %v7407_v16 = vmax.f32 %v6730_v48, 0.0  ;;  %v6734_v20 = vadd.f32 %v6733_v34, %v6541_v56  ;;  %v6543_v59 = vadd.f32 %v6542_v46, %v16110_v37  ;;  %v18999_v42 = vld [vmem:[#allocation185_spill] sm:$0xff]  ;;  %v11240_v2 = vpop.eup %11239  ;;  %v19003_v34 = vld [vmem:[#allocation18_spill] sm:$0xff]  ;;  %v19006_v40 = vld [vmem:[#allocation56_spill] sm:$0xff] }
 0x5be   :  { %v6735_v60 = vpop.f32.mrf.mxu1  ;;  %v7502_v14 = vsub.f32 %v7406_v30, %v18998_v23  ;;  %v6544_v53 = vpop.f32.mrf.mxu0  ;;  %v16521_v12 = vrot.slane %v7798_v18, %v18999_v42  ;;  %v16524_v26 = vrot.slane %v7798_v18, %v19000_v54  ;;  %v19005_v42 = vld [vmem:[#allocation189_spill] sm:$0xff]  ;;  %v8394_v18 = vadd.f32 1.0, %v7607_v50  ;;  %v19011_v50 = vld [vmem:[#allocation118_spill] sm:$0xff] }
 0x5bf   :  { %18997 = vst [vmem:[#allocation30_spill] sm:$0xff] %v16516_v38  ;;  %v7503_v36 = vsub.f32 %v7407_v16, %v19002_v19  ;;  %v7409_v24 = vmax.f32 %v6734_v20, 0.0  ;;  %v6736_v48 = vadd.f32 %v6735_v60, %v6543_v59  ;;  %v6545_v46 = vadd.f32 %v6544_v53, %v16104_v22  ;;  %v19007_v53 = vld [vmem:[#allocation184_spill] sm:$0xff]  ;;  %v19010_v19 = vld [vmem:[#allocation145_spill] sm:$0xff] }
 0x5c0   :  { %v6737_v56 = vpop.f32.mrf.mxu1  ;;  %v16531_v30 = vmul.f32 %v19003_v34, %v7502_v14  ;;  %v6546_v23 = vpop.f32.mrf.mxu0  ;;  %v7614_v38 = vadd.f32 %v19005_v42, %v18840_v13  ;;  %v8395_v54 = vadd.f32 1.0, %v7608_v9  ;;  %v8397_v60 = vadd.f32 1.0, %v7610_v57  ;;  %v19008_v14 = vld [vmem:[#allocation186_spill] sm:$0xff] }
 0x5c1   :  { %v16535_v25 = vmul.f32 %v11240_v2, %v7503_v36  ;;  %v7505_v0 = vsub.f32 %v7409_v24, %v19006_v40  ;;  %v7410_v1 = vmax.f32 %v6736_v48, 0.0  ;;  %v6738_v16 = vadd.f32 %v6737_v56, %v6545_v46  ;;  %v11242_v13 = vpop.eup %11241  ;;  %v19013_v2 = vld [vmem:[#allocation34_spill] sm:$0xff] }
 0x5c2   :  { %19004 = vst [vmem:[#allocation156_spill] sm:$0xff] %v16531_v30  ;;  %v6739_v20 = vpop.f32.mrf.mxu1  ;;  %v6547_v59 = vadd.f32 %v6546_v23, %v16110_v37  ;;  %v8073_v22 = vpop.f32.mrf.mxu0  ;;  %v7611_v34 = vadd.f32 %v19008_v14, %v19007_v53  ;;  %v19009_v30 = vld [vmem:[#allocation53_spill] sm:$0xff]  ;;  %v8401_v23 = vadd.f32 1.0, %v7614_v38  ;;  %v19014_v42 = vld [vmem:[#allocation150_spill] sm:$0xff] }
 0x5c3   :  { %v7613_v3 = vadd.f32 %v19010_v19, %v19009_v30  ;;  %v16544_v9 = vmul.f32 %v19011_v50, %v7505_v0  ;;  %v7506_v36 = vsub.f32 %v7410_v1, %v19013_v2  ;;  %v7412_v24 = vmax.f32 %v6738_v16, 0.0  ;;  %v19015_v53 = vld [vmem:[#allocation25_spill] sm:$0xff]  ;;  %v19016_v19 = vld [vmem:[#allocation115_spill] sm:$0xff] }
 0x5c4   :  { %v8074_v48 = vadd.f32 %v8073_v22, %v16499_v4  ;;  %v9771_v46 = vpop.f32.mrf.mxu1  ;;  %v6740_v56 = vadd.f32 %v6739_v20, %v6547_v59  ;;  %v8075_v57 = vpop.f32.mrf.mxu0  ;;  %v7617_v14 = vadd.f32 %v19015_v53, %v19014_v42  ;;  %v8398_v59 = vadd.f32 1.0, %v7611_v34 }
 0x5c5   :  { %19012 = vst [vmem:[#allocation94_spill] sm:$0xff] %v16544_v9  ;;  %v8275_v37 = vadd.f32 %v9771_v46, %v16521_v12  ;;  %v16551_v40 = vmul.f32 %v11242_v13, %v7506_v36  ;;  %v7508_v30 = vsub.f32 %v7412_v24, %v19016_v19  ;;  %v8076_v1 = vadd.f32 %v8075_v57, %v16524_v26  ;;  %v19018_v46 = vld [vmem:[#allocation166_spill] sm:$0xff]  ;;  %v19023_v57 = vld [vmem:[#allocation201_spill] sm:$0xff] }
 0x5c6   :  { %v16555_v0 = vmul.f32 %v16360_v35, %v8074_v48  ;;  %v8266_v16 = vpop.f32.mrf.mxu1  ;;  %v7413_v22 = vmax.f32 %v6740_v56, 0.0  ;;  %v8077_v38 = vpop.f32.mrf.mxu0  ;;  %v19021_v35 = vld [vmem:[#allocation91_spill] sm:$0xff]  ;;  %v19022_v48 = vld [vmem:[#allocation50_spill] sm:$0xff] }
 0x5c7   :  { %v16558_v50 = vmul.f32 %v8401_v23, %v8275_v37  ;;  %v8267_v20 = vadd.f32 %v8266_v16, %v16521_v12  ;;  %v16562_v9 = vmul.f32 %v19018_v46, %v7508_v30  ;;  %v16564_v13 = vmul.f32 %v8394_v18, %v8076_v1  ;;  %v11244_v34 = vpop.eup %11243  ;;  %v19025_v46 = vld [vmem:[#allocation90_spill] sm:$0xff] }
 0x5c8   :  { %19017 = vst [vmem:[#allocation127_spill] sm:$0xff] %v16555_v0  ;;  %v8078_v36 = vadd.f32 %v8077_v38, %v16499_v4  ;;  %v9772_v24 = vpop.f32.mrf.mxu1  ;;  %v7616_v42 = vadd.f32 %v19022_v48, %v19021_v35  ;;  %v7509_v53 = vsub.f32 %v7413_v22, %v19023_v57  ;;  %v8404_v23 = vadd.f32 1.0, %v7617_v14  ;;  %v8079_v16 = vpop.f32.mrf.mxu0  ;;  %v19027_v14 = vld [vmem:[#allocation180_spill] sm:$0xff]  ;;  %v19038_v0 = vld [vmem:[#allocation159_spill] sm:$0xff] }
 0x5c9   :  { %19019 = vst [vmem:[#allocation58_spill] sm:$0xff] %v16562_v9  ;;  %19020 = vst [vmem:[#allocation179_spill] sm:$0xff] %v16564_v13  ;;  %v16570_v56 = vmul.f32 %v8395_v54, %v8267_v20  ;;  %v8278_v37 = vadd.f32 %v9772_v24, %v16521_v12  ;;  %v8080_v18 = vadd.f32 %v8079_v16, %v16524_v26  ;;  %v8400_v38 = vadd.f32 1.0, %v7613_v3  ;;  %v19026_v9 = vld [vmem:[#allocation46_spill] sm:$0xff] }
 0x5ca   :  { %v16574_v30 = vmul.f32 %v16367_v41, %v8078_v36  ;;  %v8269_v1 = vpop.f32.mrf.mxu1  ;;  %v7619_v19 = vadd.f32 %v19026_v9, %v19025_v46  ;;  %v16579_v35 = vmul.f32 %v11244_v34, %v7509_v53  ;;  %v8083_v20 = vpop.f32.mrf.mxu0  ;;  %v7620_v24 = vadd.f32 %v16199_v58, %v19027_v14  ;;  %v19035_v41 = vld [vmem:[#allocation126_spill] sm:$0xff] }
 0x5cb   :  { %v16581_v22 = vmul.f32 %v8404_v23, %v8278_v37  ;;  %v8270_v54 = vadd.f32 %v8269_v1, %v16521_v12  ;;  %v16588_v36 = vmul.f32 %v8397_v60, %v8080_v18  ;;  %v8084_v3 = vadd.f32 %v8083_v20, %v16499_v4  ;;  %v16602_v60 = vld [vmem:[%s17235_s10] sm:$0xff]  ;;  %v19032_v1 = vld [vmem:[#allocation178_spill] sm:$0xff] }
 0x5cc   :  { %19024 = vst [vmem:[#allocation23_spill] sm:$0xff] %v16574_v30  ;;  %v9775_v48 = vpop.f32.mrf.mxu1  ;;  %v8403_v16 = vadd.f32 1.0, %v7616_v42  ;;  %v7626_v37 = vadd.f32 %v16223_v52, %v18864_v49  ;;  %v8085_v23 = vpop.f32.mrf.mxu0  ;;  %v7629_v58 = vadd.f32 %v16231_v39, %v18868_v33  ;;  %19029 = vst [vmem:[#allocation199_spill] sm:$0xff] %v16602_v60  ;;  %v8407_v39 = vadd.f32 1.0, %v7620_v24  ;;  %v19041_v30 = vld [vmem:[#allocation119_spill] sm:$0xff] }
 0x5cd   :  { %19028 = vst [vmem:[#allocation11_spill] sm:$0xff] %v16588_v36  ;;  %v16593_v53 = vmul.f32 %v8398_v59, %v8270_v54  ;;  %v16605_v34 = vmul.f32 %v16388_v51, %v8084_v3  ;;  %v8086_v42 = vadd.f32 %v8085_v23, %v16524_v26  ;;  %v19031_v59 = vld [vmem:[#allocation144_spill] sm:$0xff]  ;;  %v8291_v33 = vadd.f32 %v9775_v48, %v16521_v12  ;;  %v19034_v23 = vld [vmem:[#allocation187_spill] sm:$0xff] }
 0x5ce   :  { %v8282_v18 = vpop.f32.mrf.mxu1  ;;  %v7623_v46 = vadd.f32 %v19032_v1, %v19031_v59  ;;  %v8087_v54 = vpop.f32.mrf.mxu0  ;;  %v8406_v20 = vadd.f32 1.0, %v7619_v19  ;;  %v7622_v9 = vadd.f32 %v19035_v41, %v19034_v23  ;;  %v16622_v59 = vcombine.high %v16602_v60, %v16602_v60  ;;  %v19039_v41 = vld [vmem:[#allocation35_spill] sm:$0xff] }
 0x5cf   :  { %19030 = vst [vmem:[#allocation31_spill] sm:$0xff] %v16605_v34  ;;  %v16615_v14 = vmul.f32 %v8400_v38, %v8086_v42  ;;  %v8088_v51 = vadd.f32 %v8087_v54, %v16499_v4  ;;  %v8413_v1 = vadd.f32 1.0, %v7626_v37  ;;  %v8283_v49 = vadd.f32 %v8282_v18, %v16521_v12 }
 0x5d0   :  { %v9776_v3 = vpop.f32.mrf.mxu1  ;;  %19036 = vst [vmem:[#allocation164_spill] sm:$0xff] %v16622_v59  ;;  %v8416_v24 = vadd.f32 1.0, %v7629_v58  ;;  %v8089_v52 = vpop.f32.mrf.mxu0  ;;  %v8410_v54 = vadd.f32 1.0, %v7623_v46  ;;  %v7625_v23 = vadd.f32 %v19039_v41, %v19038_v0  ;;  %8684 = vmatprep.mubr.bf16.mxu1 %v16622_v59  ;;  %v7638_v0 = vadd.f32 %v16265_v11, %v18881_v43 }
 0x5d1   :  { %19033 = vst [vmem:[#allocation198_spill] sm:$0xff] %v16615_v14  ;;  %v8294_v48 = vadd.f32 %v9776_v3, %v16521_v12  ;;  %v16627_v19 = vmul.f32 %v16396_v31, %v8088_v51  ;;  %v8090_v38 = vadd.f32 %v8089_v52, %v16524_v26  ;;  %v16633_v60 = vmul.f32 %v8413_v1, %v8291_v33  ;;  %v19040_v3 = vld [vmem:[#allocation26_spill] sm:$0xff]  ;;  %v19084_v14 = vld [vmem:[#allocation161_spill] sm:$0xff] }
 0x5d2   :  { %v8285_v42 = vpop.f32.mrf.mxu1  ;;  %v8093_v58 = vpop.f32.mrf.mxu0  ;;  %v7632_v31 = vadd.f32 %v19041_v30, %v19040_v3  ;;  %v16647_v1 = vmul.f32 %v8407_v39, %v8283_v49  ;;  %v7641_v30 = vadd.f32 %v16278_v45, %v18885_v17  ;;  %v7635_v43 = vadd.f32 %v16253_v8, %v18875_v32  ;;  %v19042_v32 = vld [vmem:[#allocation21_spill] sm:$0xff]  ;;  %v19043_v8 = vld [vmem:[#allocation48_spill] sm:$0xff] }
 0x5d3   :  { %19037 = vst [vmem:[#allocation82_spill] sm:$0xff] %v16627_v19  ;;  %v16635_v37 = vmul.f32 %v8416_v24, %v8294_v48  ;;  %v8286_v18 = vadd.f32 %v8285_v42, %v16521_v12  ;;  %v16642_v51 = vmul.f32 %v8403_v16, %v8090_v38  ;;  %v8094_v46 = vadd.f32 %v8093_v58, %v16499_v4 }
 0x5d4   :  { %v9779_v33 = vpop.f32.mrf.mxu1  ;;  %v8095_v42 = vpop.f32.mrf.mxu0  ;;  %v16667_v17 = vadd.f32 1.0, %v16505_v47  ;;  %v8412_v3 = vadd.f32 1.0, %v7625_v23 }
 0x5d5   :  { %v16651_v24 = vmul.f32 %v8410_v54, %v8286_v18  ;;  %v16656_v16 = vmul.f32 %v16404_v44, %v8094_v46  ;;  %v8096_v38 = vadd.f32 %v8095_v42, %v16524_v26  ;;  %v8307_v39 = vadd.f32 %v9779_v33, %v16521_v12 }
 0x5d6   :  { %v8298_v41 = vpop.f32.mrf.mxu1  ;;  %v8097_v54 = vpop.f32.mrf.mxu0  ;;  %v8409_v18 = vadd.f32 1.0, %v7622_v9  ;;  %v7628_v46 = vadd.f32 %v19043_v8, %v19042_v32  ;;  %v8425_v42 = vadd.f32 1.0, %v7638_v0  ;;  %v8428_v33 = vadd.f32 1.0, %v7641_v30 }
 0x5d7   :  { %v16669_v45 = vmul.f32 %v8406_v20, %v8096_v38  ;;  %v8098_v44 = vadd.f32 %v8097_v54, %v16499_v4  ;;  %v8299_v52 = vadd.f32 %v8298_v41, %v16521_v12  ;;  %v8419_v9 = vadd.f32 1.0, %v7632_v31 }
 0x5d8   :  { %v9780_v58 = vpop.f32.mrf.mxu1  ;;  %v8099_v49 = vpop.f32.mrf.mxu0  ;;  %v8422_v54 = vadd.f32 1.0, %v7635_v43  ;;  %v16680_v48 = vmul.f32 %v8425_v42, %v8307_v39  ;;  %v7644_v41 = vadd.f32 %v16287_v5, %v18889_v21  ;;  %v7650_v43 = vadd.f32 %v16307_v29, %v18895_v27  ;;  %v19044_v42 = vld [vmem:[#allocation68_spill] sm:$0xff] }
 0x5d9   :  { %v8310_v11 = vadd.f32 %v9780_v58, %v16521_v12  ;;  %v16677_v47 = vmul.f32 %v16419_v28, %v8098_v44  ;;  %v8100_v20 = vadd.f32 %v8099_v49, %v16524_v26  ;;  %v16694_v39 = vmul.f32 %v8419_v9, %v8299_v52 }
 0x5da   :  { %v8301_v38 = vpop.f32.mrf.mxu1  ;;  %v8103_v32 = vpop.f32.mrf.mxu0  ;;  %v7653_v21 = vadd.f32 %v16317_v7, %v18899_v63  ;;  %v8415_v8 = vadd.f32 1.0, %v7628_v46  ;;  %v7647_v27 = vadd.f32 %v16297_v55, %v19044_v42  ;;  %v19047_v7 = vld [vmem:[#allocation176_spill] sm:$0xff]  ;;  %v19050_v42 = vld [vmem:[#allocation17_spill] sm:$0xff]  ;;  %v8437_v29 = vadd.f32 1.0, %v7650_v43 }
 0x5db   :  { %v16682_v23 = vmul.f32 %v8428_v33, %v8310_v11  ;;  %v8302_v0 = vadd.f32 %v8301_v38, %v16521_v12  ;;  %v16689_v30 = vmul.f32 %v8409_v18, %v8100_v20  ;;  %v8104_v28 = vadd.f32 %v8103_v32, %v16499_v4  ;;  %v19045_v20 = vld [vmem:[#allocation92_spill] sm:$0xff]  ;;  %v19046_v38 = vld [vmem:[#allocation202_spill] sm:$0xff] }
 0x5dc   :  { %v9783_v49 = vpop.f32.mrf.mxu1  ;;  %v8105_v58 = vpop.f32.mrf.mxu0  ;;  %v7662_v63 = vadd.f32 %v19046_v38, %v19045_v20  ;;  %v8440_v11 = vadd.f32 1.0, %v7653_v21 }
 0x5dd   :  { %v16698_v44 = vmul.f32 %v8422_v54, %v8302_v0  ;;  %v16703_v5 = vmul.f32 %v16434_v62, %v8104_v28  ;;  %v8323_v33 = vadd.f32 %v9783_v49, %v16521_v12  ;;  %v19048_v62 = vld [vmem:[#allocation67_spill] sm:$0xff]  ;;  %v8106_v46 = vadd.f32 %v8105_v58, %v16524_v26  ;;  %v19049_v28 = vld [vmem:[#allocation96_spill] sm:$0xff] }
 0x5de   :  { %v8314_v18 = vpop.f32.mrf.mxu1  ;;  %v8107_v9 = vpop.f32.mrf.mxu0  ;;  %v7631_v54 = vadd.f32 %v19048_v62, %v19047_v7  ;;  %v8431_v0 = vadd.f32 1.0, %v7644_v41  ;;  %v7634_v31 = vadd.f32 %v19050_v42, %v19049_v28  ;;  %v8434_v41 = vadd.f32 1.0, %v7647_v27  ;;  %v19051_v7 = vld [vmem:[#allocation103_spill] sm:$0xff] }
 0x5df   :  { %v8108_v55 = vadd.f32 %v8107_v9, %v16499_v4  ;;  %v8315_v52 = vadd.f32 %v8314_v18, %v16521_v12  ;;  %v19052_v9 = vld [vmem:[#allocation69_spill] sm:$0xff]  ;;  %v8533_v13 = vmul.f32 %v8437_v29, %v8323_v33  ;;  %v8449_v18 = vadd.f32 1.0, %v7662_v63 }
 0x5e0   :  { %v9784_v32 = vpop.f32.mrf.mxu1  ;;  %v8109_v59 = vpop.f32.mrf.mxu0  ;;  %v7656_v62 = vadd.f32 %v19052_v9, %v19051_v7  ;;  %v16729_v42 = vmul.f32 %v8412_v3, %v8106_v46  ;;  %v8418_v63 = vadd.f32 1.0, %v7631_v54 }
 0x5e1   :  { %v8326_v49 = vadd.f32 %v9784_v32, %v16521_v12  ;;  %v16723_v20 = vmul.f32 %v16444_v15, %v8108_v55  ;;  %v8110_v38 = vadd.f32 %v8109_v59, %v16524_v26  ;;  %v19053_v59 = vld [vmem:[#allocation43_spill] sm:$0xff]  ;;  %v19054_v32 = vld [vmem:[#allocation153_spill] sm:$0xff]  ;;  %v8527_v34 = vmul.f32 %v8431_v0, %v8315_v52 }
 0x5e2   :  { %v8317_v58 = vpop.f32.mrf.mxu1  ;;  %v8113_v28 = vpop.f32.mrf.mxu0  ;;  %v7665_v27 = vadd.f32 %v19054_v32, %v19053_v59  ;;  %v8443_v46 = vadd.f32 1.0, %v7656_v62  ;;  %v19058_v62 = vld [vmem:[#allocation28_spill] sm:$0xff]  ;;  %v19060_v59 = vmov 0.0  }
 0x5e3   :  { %v8536_v36 = vmul.f32 %v8440_v11, %v8326_v49  ;;  %v8318_v43 = vadd.f32 %v8317_v58, %v16521_v12  ;;  %v16733_v15 = vmul.f32 %v8415_v8, %v8110_v38  ;;  %v8114_v33 = vadd.f32 %v8113_v28, %v16499_v4  ;;  %v19059_v28 = vld [vmem:[#allocation158_spill] sm:$0xff]  ;;  %v19068_v49 = vld [vmem:[#allocation95_spill] sm:$0xff] }
 0x5e4   :  { %v9787_v55 = vpop.f32.mrf.mxu1  ;;  %v8115_v29 = vpop.f32.mrf.mxu0  ;;  %v8452_v32 = vadd.f32 1.0, %v7665_v27 }
 0x5e5   :  { %v8608_v19 = vpack.c.bf16 %v8536_v36, %v8533_v13  ;;  %v8530_v7 = vmul.f32 %v8434_v41, %v8318_v43  ;;  %v8339_v11 = vadd.f32 %v9787_v55, %v16521_v12  ;;  %v19056_v13 = vld [vmem:[#allocation163_spill] sm:$0xff]  ;;  %v19057_v36 = vld [vmem:[#allocation140_spill] sm:$0xff]  ;;  %v8116_v0 = vadd.f32 %v8115_v29, %v16524_v26 }
 0x5e6   :  { %v8330_v3 = vpop.f32.mrf.mxu1  ;;  %v8117_v9 = vpop.f32.mrf.mxu0  ;;  %v7659_v52 = vadd.f32 %v19057_v36, %v19056_v13  ;;  %v8421_v43 = vadd.f32 1.0, %v7634_v31  ;;  %v7674_v55 = vadd.f32 %v19059_v28, %v19058_v62  ;;  %v16757_v29 = vmul.f32 %v16451_v61, %v8114_v33  ;;  %v19065_v62 = vld [vmem:[#allocation64_spill] sm:$0xff] }
 0x5e7   :  { %v8605_v8 = vpack.c.bf16 %v8530_v7, %v8527_v34  ;;  %v16741_v38 = vmul.f32 %v8449_v18, %v8339_v11  ;;  %v8331_v58 = vadd.f32 %v8330_v3, %v16521_v12  ;;  %9802 = vmatpush3.bf16.xpose.msra.mxu0 %v8608_v19  ;;  %v8118_v41 = vadd.f32 %v8117_v9, %v16499_v4  ;;  %v19062_v7 = vld [vmem:[#allocation39_spill] sm:$0xff]  ;;  %v19063_v11 = vld [vmem:[#allocation137_spill] sm:$0xff]  ;;  %v19064_v9 = vld [vmem:[#allocation10_spill] sm:$0xff] }
 0x5e8   :  { %v9788_v54 = vpop.f32.mrf.mxu1  ;;  %9803 = vmatprep.subr.bf16.mxu0 %v19060_v59  ;;  %v8119_v19 = vpop.f32.mrf.mxu0  ;;  %v7637_v3 = vadd.f32 %v19063_v11, %v19062_v7  ;;  %v19066_v28 = vld [vmem:[#allocation60_spill] sm:$0xff]  ;;  %v19069_v7 = vld [vmem:[#allocation113_spill] sm:$0xff]  ;;  %v16770_v61 = vmul.f32 %v8418_v63, %v8116_v0 }
 0x5e9   :  { %19055 = vst [vmem:[#allocation59_spill] sm:$0xff] %v16741_v38  ;;  %v16751_v34 = vmul.f32 %v8443_v46, %v8331_v58  ;;  %v8342_v18 = vadd.f32 %v9788_v54, %v16521_v12  ;;  %v16760_v13 = vmul.f32 %v19064_v9, %v8118_v41  ;;  %v8120_v31 = vadd.f32 %v8119_v19, %v16524_v26  ;;  %v19082_v38 = vld [vmem:[#allocation78_spill] sm:$0xff] }
 0x5ea   :  { %v8333_v36 = vpop.f32.mrf.mxu1  ;;  %v7668_v46 = vadd.f32 %v19066_v28, %v19065_v62  ;;  %v8446_v54 = vadd.f32 1.0, %v7659_v52  ;;  %v8123_v21 = vpop.f32.mrf.mxu0  ;;  %v7640_v11 = vadd.f32 %v19069_v7, %v19068_v49  ;;  %v8461_v9 = vadd.f32 1.0, %v7674_v55  ;;  %v19071_v62 = vld [vmem:[#allocation108_spill] sm:$0xff]  ;;  %v19072_v28 = vld [vmem:[#allocation75_spill] sm:$0xff] }
 0x5eb   :  { %19061 = vst [vmem:[#allocation81_spill] sm:$0xff] %v16751_v34  ;;  %v16765_v58 = vmul.f32 %v8452_v32, %v8342_v18  ;;  %v8334_v27 = vadd.f32 %v8333_v36, %v16521_v12  ;;  %v16774_v41 = vmul.f32 %v8421_v43, %v8120_v31  ;;  %v7677_v49 = vadd.f32 %v19072_v28, %v19071_v62  ;;  %v19075_v18 = vld [vmem:[#allocation66_spill] sm:$0xff]  ;;  %v19077_v55 = vld [vmem:[#allocation100_spill] sm:$0xff]  ;;  %v19078_v34 = vld [vmem:[#allocation33_spill] sm:$0xff] }
 0x5ec   :  { %v9791_v19 = vpop.f32.mrf.mxu1  ;;  %v8125_v36 = vpop.f32.mrf.mxu0  ;;  %v8124_v63 = vadd.f32 %v8123_v21, %v16499_v4  ;;  %v8424_v0 = vadd.f32 1.0, %v7637_v3  ;;  %v8455_v33 = vadd.f32 1.0, %v7668_v46  ;;  %v8427_v28 = vadd.f32 1.0, %v7640_v11 }
 0x5ed   :  { %19067 = vst [vmem:[#allocation123_spill] sm:$0xff] %v16765_v58  ;;  %v16778_v32 = vmul.f32 %v8446_v54, %v8334_v27  ;;  %v8355_v52 = vadd.f32 %v9791_v19, %v16521_v12  ;;  %v19074_v19 = vld [vmem:[#allocation116_spill] sm:$0xff]  ;;  %v8126_v21 = vadd.f32 %v8125_v36, %v16524_v26  ;;  %v7686_v43 = vadd.f32 %v16476_v10, %v18974_v6  ;;  %v19081_v10 = vld [vmem:[#allocation117_spill] sm:$0xff] }
 0x5ee   :  { %v8346_v7 = vpop.f32.mrf.mxu1  ;;  %v8127_v54 = vpop.f32.mrf.mxu0  ;;  %v7671_v62 = vadd.f32 %v19075_v18, %v19074_v19  ;;  %v7643_v18 = vadd.f32 %v19078_v34, %v19077_v55  ;;  %v19079_v19 = vld [vmem:[#allocation79_spill] sm:$0xff]  ;;  %v19085_v34 = vld [vmem:[#allocation157_spill] sm:$0xff] }
 0x5ef   :  { %19070 = vst [vmem:[#allocation102_spill] sm:$0xff] %v16778_v32  ;;  %v16788_v31 = vmul.f32 %v8461_v9, %v8355_v52  ;;  %v8347_v27 = vadd.f32 %v8346_v7, %v16521_v12  ;;  %9804 = vmatpush3.bf16.xpose.msra.mxu0 %v8605_v8  ;;  %v8128_v3 = vadd.f32 %v8127_v54, %v16499_v4  ;;  %v8464_v7 = vadd.f32 1.0, %v7677_v49  ;;  %v19080_v54 = vld [vmem:[#allocation70_spill] sm:$0xff] }
 0x5f0   :  { %v9792_v46 = vpop.f32.mrf.mxu1  ;;  %9805 = vmatprep.subr.bf16.mxu0 %v19060_v59  ;;  %v8129_v8 = vpop.f32.mrf.mxu0  ;;  %v16804_v36 = vmul.f32 %v19079_v19, %v8124_v63  ;;  %v7646_v55 = vadd.f32 %v19085_v34, %v19084_v14  ;;  %v16817_v63 = vmul.f32 %v8424_v0, %v8126_v21 }
 0x5f1   :  { %19073 = vst [vmem:[#allocation173_spill] sm:$0xff] %v16788_v31  ;;  %v16798_v9 = vmul.f32 %v8455_v33, %v8347_v27  ;;  %v8358_v52 = vadd.f32 %v9792_v46, %v16521_v12  ;;  %v16807_v32 = vmul.f32 %v19080_v54, %v8128_v3  ;;  %v8130_v11 = vadd.f32 %v8129_v8, %v16524_v26  ;;  %v19089_v3 = vld [vmem:[#allocation143_spill] sm:$0xff] }
 0x5f2   :  { %v8349_v6 = vpop.f32.mrf.mxu1  ;;  %v7680_v33 = vadd.f32 %v19082_v38, %v19081_v10  ;;  %v8458_v46 = vadd.f32 1.0, %v7671_v62  ;;  %v8133_v58 = vpop.f32.mrf.mxu0  ;;  %v8473_v54 = vadd.f32 1.0, %v7686_v43  ;;  %v19088_v10 = vld [vmem:[#allocation83_spill] sm:$0xff] }
 0x5f3   :  { %19076 = vst [vmem:[#allocation188_spill] sm:$0xff] %v16798_v9  ;;  %v16812_v27 = vmul.f32 %v8464_v7, %v8358_v52  ;;  %v8350_v49 = vadd.f32 %v8349_v6, %v16521_v12  ;;  %v16821_v19 = vmul.f32 %v8427_v28, %v8130_v11  ;;  %v19087_v6 = vld [vmem:[#allocation111_spill] sm:$0xff]  ;;  %v8134_v0 = vadd.f32 %v8133_v58, %v16499_v4  ;;  %v19090_v28 = vld [vmem:[#allocation24_spill] sm:$0xff]  ;;  %v19098_v9 = vld [vmem:[#allocation13_spill] sm:$0xff] }
 0x5f4   :  { %v9795_v8 = vpop.f32.mrf.mxu1  ;;  %v8135_v7 = vpop.f32.mrf.mxu0  ;;  %v7689_v14 = vadd.f32 %v19088_v10, %v19087_v6  ;;  %v8467_v34 = vadd.f32 1.0, %v7680_v33  ;;  %v7654_v11 = vadd.f32 %v19090_v28, %v19089_v3  ;;  %v19092_v6 = vpack.c.bf16 %v16682_v23, %v16680_v48  ;;  %v19093_v58 = vld [vmem:[#allocation132_spill] sm:$0xff]  ;;  %v19094_v33 = vld [vmem:[#allocation122_spill] sm:$0xff] }
 0x5f5   :  { %19083 = vst [vmem:[#allocation40_spill] sm:$0xff] %v16812_v27  ;;  %v16825_v52 = vmul.f32 %v8458_v46, %v8350_v49  ;;  %v8371_v62 = vadd.f32 %v9795_v8, %v16521_v12  ;;  %v7683_v10 = vadd.f32 %v19094_v33, %v19093_v58  ;;  %v8136_v3 = vadd.f32 %v8135_v7, %v16524_v26  ;;  %v19096_v49 = vld [vmem:[#allocation131_spill] sm:$0xff]  ;;  %v19097_v7 = vld [vmem:[#allocation169_spill] sm:$0xff] }
 0x5f6   :  { %v8362_v21 = vpop.f32.mrf.mxu1  ;;  %v8137_v38 = vpop.f32.mrf.mxu0  ;;  %v8430_v28 = vadd.f32 1.0, %v7643_v18  ;;  %v8476_v48 = vadd.f32 1.0, %v7689_v14  ;;  %v16854_v58 = vmul.f32 %v19096_v49, %v8134_v0 }
 0x5f7   :  { %19086 = vst [vmem:[#allocation190_spill] sm:$0xff] %v16825_v52  ;;  %v16837_v46 = vmul.f32 %v8473_v54, %v8371_v62  ;;  %v8363_v8 = vadd.f32 %v8362_v21, %v16521_v12  ;;  %9806 = vmatpush3.bf16.xpose.msra.mxu0 %v19092_v6  ;;  %v8138_v43 = vadd.f32 %v8137_v38, %v16499_v4  ;;  %v8433_v6 = vadd.f32 1.0, %v7646_v55  ;;  %v19101_v55 = vld [vmem:[#allocation87_spill] sm:$0xff] }
 0x5f8   :  { %v9796_v31 = vpop.f32.mrf.mxu1  ;;  %v7698_v54 = vadd.f32 %v16551_v40, %v19013_v2  ;;  %9807 = vmatprep.subr.bf16.mxu0 %v19060_v59  ;;  %v8139_v23 = vpop.f32.mrf.mxu0  ;;  %v19099_v40 = vld [vmem:[#allocation30_spill] sm:$0xff]  ;;  %v16867_v0 = vmul.f32 %v8430_v28, %v8136_v3 }
 0x5f9   :  { %19091 = vst [vmem:[#allocation124_spill] sm:$0xff] %v16837_v46  ;;  %v16850_v62 = vmul.f32 %v8467_v34, %v8363_v8  ;;  %v8374_v21 = vadd.f32 %v9796_v31, %v16521_v12  ;;  %v16857_v18 = vmul.f32 %v19097_v7, %v8138_v43  ;;  %v8140_v38 = vadd.f32 %v8139_v23, %v16524_v26  ;;  %v19100_v8 = vld [vmem:[#allocation107_spill] sm:$0xff] }
 0x5fa   :  { %v8365_v33 = vpop.f32.mrf.mxu1  ;;  %v7692_v2 = vadd.f32 %v19099_v40, %v19098_v9  ;;  %v8470_v31 = vadd.f32 1.0, %v7683_v10  ;;  %v8143_v14 = vpop.f32.mrf.mxu0  ;;  %v7649_v27 = vadd.f32 %v19101_v55, %v19100_v8  ;;  %v8485_v7 = vadd.f32 1.0, %v7698_v54  ;;  %v19103_v8 = vld [vmem:[#allocation62_spill] sm:$0xff]  ;;  %v19109_v9 = vld [vmem:[#allocation177_spill] sm:$0xff] }
 0x5fb   :  { %19095 = vst [vmem:[#allocation16_spill] sm:$0xff] %v16850_v62  ;;  %v16862_v52 = vmul.f32 %v8476_v48, %v8374_v21  ;;  %v8366_v34 = vadd.f32 %v8365_v33, %v16521_v12  ;;  %v16871_v49 = vmul.f32 %v8433_v6, %v8140_v38  ;;  %v7701_v33 = vadd.f32 %v16579_v35, %v19023_v57  ;;  %v19104_v6 = vld [vmem:[#allocation197_spill] sm:$0xff]  ;;  %v19106_v35 = vld [vmem:[#allocation155_spill] sm:$0xff] }
 0x5fc   :  { %v9799_v23 = vpop.f32.mrf.mxu1  ;;  %v8145_v48 = vpop.f32.mrf.mxu0  ;;  %v8144_v3 = vadd.f32 %v8143_v14, %v16499_v4  ;;  %v8479_v40 = vadd.f32 1.0, %v7692_v2  ;;  %v7652_v38 = vadd.f32 %v19104_v6, %v19103_v8  ;;  %v19105_v57 = vpack.c.bf16 %v16698_v44, %v16694_v39  ;;  %v19107_v39 = vld [vmem:[#allocation154_spill] sm:$0xff]  ;;  %v19108_v44 = vld [vmem:[#allocation65_spill] sm:$0xff] }
 0x5fd   :  { %v16875_v21 = vmul.f32 %v8470_v31, %v8366_v34  ;;  %v8387_v10 = vadd.f32 %v9799_v23, %v16521_v12  ;;  %v8604_v54 = vpack.c.bf16 %v16871_v49, %v16867_v0  ;;  %v7695_v2 = vadd.f32 %v16535_v25, %v19106_v35 }
 0x5fe   :  { %v8378_v28 = vpop.f32.mrf.mxu1  ;;  %v8147_v23 = vpop.f32.mrf.mxu0  ;;  %v8146_v14 = vadd.f32 %v8145_v48, %v16524_v26  ;;  %v8436_v8 = vadd.f32 1.0, %v7649_v27  ;;  %v8441_v6 = vadd.f32 1.0, %v7654_v11  ;;  %v8531_v25 = vmul.f32 %v19109_v9, %v8144_v3 }
 0x5ff   :  { %19102 = vst [vmem:[#allocation77_spill] sm:$0xff] %v16875_v21  ;;  %v16887_v31 = vmul.f32 %v8485_v7, %v8387_v10  ;;  %v8379_v55 = vadd.f32 %v8378_v28, %v16521_v12  ;;  %9808 = vmatpush3.bf16.xpose.msra.mxu0 %v19105_v57  ;;  %v8148_v0 = vadd.f32 %v8147_v23, %v16499_v4  ;;  %v8488_v28 = vadd.f32 1.0, %v7701_v33  ;;  %v19111_v33 = vld [vmem:[#allocation134_spill] sm:$0xff] }
 0x600   :  { %v9800_v49 = vpop.f32.mrf.mxu1  ;;  %9809 = vmatprep.subr.bf16.mxu0 %v19060_v59  ;;  %v8149_v34 = vpop.f32.mrf.mxu0  ;;  %v7655_v57 = vadd.f32 %v19108_v44, %v19107_v39  ;;  %v8439_v23 = vadd.f32 1.0, %v7652_v38  ;;  %v8532_v21 = vmul.f32 %v8436_v8, %v8146_v14 }
 0x601   :  { %v16898_v7 = vmul.f32 %v8479_v40, %v8379_v55  ;;  %v8390_v10 = vadd.f32 %v9800_v49, %v16521_v12  ;;  %v8534_v48 = vmul.f32 %v16667_v17, %v8148_v0  ;;  %v8150_v27 = vadd.f32 %v8149_v34, %v16524_v26  ;;  %v19110_v49 = vld [vmem:[#allocation139_spill] sm:$0xff] }
 0x602   :  { %v8381_v35 = vpop.f32.mrf.mxu1  ;;  %v8482_v55 = vadd.f32 1.0, %v7695_v2  ;;  %v8153_v43 = vpop.f32.mrf.mxu0  ;;  %v7657_v62 = vadd.f32 %v19111_v33, %v19110_v49  ;;  %v8442_v34 = vadd.f32 1.0, %v7655_v57 }
 0x603   :  { %v16906_v11 = vmul.f32 %v8488_v28, %v8390_v10  ;;  %v8382_v40 = vadd.f32 %v8381_v35, %v16521_v12  ;;  %v8606_v46 = vpack.c.bf16 %v8534_v48, %v8531_v25  ;;  %v8535_v39 = vmul.f32 %v8439_v23, %v8150_v27  ;;  %v19112_v10 = vld [vmem:[#allocation98_spill] sm:$0xff]  ;;  %v19113_v28 = vld [vmem:[#allocation55_spill] sm:$0xff]  ;;  %v19116_v48 = vld [vmem:[#allocation85_spill] sm:$0xff] }
 0x604   :  { %v8154_v9 = vadd.f32 %v8153_v43, %v16499_v4  ;;  %v8155_v38 = vpop.f32.mrf.mxu0  ;;  %v7658_v44 = vadd.f32 %v19113_v28, %v19112_v10  ;;  %v19114_v43 = vpack.c.bf16 %v16635_v37, %v16633_v60  ;;  %v19115_v25 = vld [vmem:[#allocation110_spill] sm:$0xff]  ;;  %v8444_v23 = vadd.f32 1.0, %v7657_v62 }
 0x605   :  { %v8632_v17 = vpack.c.bf16 %v16906_v11, %v16887_v31  ;;  %v16914_v3 = vmul.f32 %v8482_v55, %v8382_v40  ;;  %v8156_v12 = vadd.f32 %v8155_v38, %v16524_v26  ;;  %v8607_v2 = vpack.c.bf16 %v8535_v39, %v8532_v21  ;;  %v8635_v21 = vld [vmem:[%s17236_s11] sm:$0xff]  ;;  %v19117_v40 = vld [vmem:[#allocation101_spill] sm:$0xff]  ;;  %v19118_v60 = vld [vmem:[#allocation162_spill] sm:$0xff] }
 0x606   :  { %v16916_v0 = vmul.f32 %v8441_v6, %v8154_v9  ;;  %v8157_v8 = vpop.f32.mrf.mxu0  ;;  %v7660_v27 = vadd.f32 %v19116_v48, %v19115_v25  ;;  %v7661_v37 = vadd.f32 %v19118_v60, %v19117_v40  ;;  %8638 = vperm.xlu0 %9848, %v8635_v21   ;;  %v8445_v33 = vadd.f32 1.0, %v7658_v44 }
 0x607   :  { %v8629_v14 = vpack.c.bf16 %v16914_v3, %v16898_v7  ;;  %9810 = vmatpush3.bf16.xpose.msra.mxu0 %v19114_v43  ;;  %v16928_v57 = vmul.f32 %v8442_v34, %v8156_v12  ;;  %v8158_v6 = vadd.f32 %v8157_v8, %v16499_v4  ;;  %8652 = vmatprep.subr.bf16.mxu1 %v8607_v2  ;;  %v19120_v12 = vld [vmem:[#allocation151_spill] sm:$0xff]  ;;  %v19122_v43 = vld [vmem:[#allocation114_spill] sm:$0xff] }
 0x608   :  { %9811 = vmatprep.subr.bf16.mxu0 %v19060_v59  ;;  %v8159_v35 = vpop.f32.mrf.mxu0  ;;  %8653 = vmatpush1.bf16.xpose.msra.mxu1 %v8606_v46  ;;  %v8447_v39 = vadd.f32 1.0, %v7660_v27  ;;  %v19119_v46 = vld [vmem:[#allocation93_spill] sm:$0xff]  ;;  %v8448_v28 = vadd.f32 1.0, %v7661_v37 }
 0x609   :  { %v16937_v55 = vmul.f32 %v8444_v23, %v8158_v6  ;;  %v8160_v49 = vadd.f32 %v8159_v35, %v16524_v26  ;;  %8654 = vmatprep.subr.bf16.mxu1 %v8604_v54  ;;  %v7663_v2 = vadd.f32 %v19120_v12, %v19119_v46  ;;  %v19121_v54 = vld [vmem:[#allocation105_spill] sm:$0xff]  ;;  %v19123_v6 = vpack.c.bf16 %v16651_v24, %v16647_v1  ;;  %v19125_v35 = vld [vmem:[#allocation191_spill] sm:$0xff] }
 0x60a   :  { %v8163_v62 = vpop.f32.mrf.mxu0  ;;  %8757 = vperm.xlu0 %9848, %v8635_v21   ;;  %v7664_v25 = vadd.f32 %v19122_v43, %v19121_v54  ;;  %v19124_v23 = vld [vmem:[#allocation57_spill] sm:$0xff]  ;;  %v19129_v12 = vpack.c.bf16 %v16821_v19, %v16817_v63  ;;  %v19131_v54 = vld [vmem:[#allocation14_spill] sm:$0xff]  ;;  %v19133_v19 = vld [vmem:[#allocation136_spill] sm:$0xff] }
 0x60b   :  { %v8609_v9 = vpack.c.bf16 %v16937_v55, %v16916_v0  ;;  %v16942_v38 = vmul.f32 %v8445_v33, %v8160_v49  ;;  %v8164_v34 = vadd.f32 %v8163_v62, %v16499_v4  ;;  %v7666_v40 = vadd.f32 %v19125_v35, %v19124_v23  ;;  %v19127_v62 = vld [vmem:[#allocation86_spill] sm:$0xff] }
 0x60c   :  { %v8165_v10 = vpop.f32.mrf.mxu0  ;;  %v8450_v37 = vadd.f32 1.0, %v7663_v2  ;;  %v19126_v33 = vpack.c.bf16 %v16857_v18, %v16854_v58  ;;  %v8451_v46 = vadd.f32 1.0, %v7664_v25  ;;  %v19130_v18 = vld [vmem:[#allocation97_spill] sm:$0xff]  ;;  %v19132_v63 = vld [vmem:[#allocation106_spill] sm:$0xff] }
 0x60d   :  { %v16947_v8 = vmul.f32 %v8447_v39, %v8164_v34  ;;  %v8166_v44 = vadd.f32 %v8165_v10, %v16524_v26  ;;  %v8610_v48 = vpack.c.bf16 %v16942_v38, %v16928_v57  ;;  %v19128_v39 = vld [vmem:[#allocation121_spill] sm:$0xff]  ;;  %v8453_v10 = vadd.f32 1.0, %v7666_v40 }
 0x60e   :  { %v8167_v27 = vpop.f32.mrf.mxu0  ;;  %v7667_v34 = vadd.f32 %v19128_v39, %v19127_v62  ;;  %v7669_v43 = vadd.f32 %v19131_v54, %v19130_v18  ;;  %v7670_v35 = vadd.f32 %v19133_v19, %v19132_v63  ;;  %v19141_v19 = vld [vmem:[#allocation44_spill] sm:$0xff] }
 0x60f   :  { %9812 = vmatpush3.bf16.xpose.msra.mxu0 %v19123_v6  ;;  %v16959_v60 = vmul.f32 %v8448_v28, %v8166_v44  ;;  %v8168_v21 = vadd.f32 %v8167_v27, %v16499_v4 }
 0x610   :  { %9813 = vmatprep.subr.bf16.mxu0 %v19060_v59  ;;  %v8169_v49 = vpop.f32.mrf.mxu0  ;;  %8655 = vmatpush1.bf16.xpose.msra.mxu1 %v19126_v33  ;;  %v8454_v6 = vadd.f32 1.0, %v7667_v34  ;;  %v19136_v33 = vld [vmem:[#allocation54_spill] sm:$0xff] }
 0x611   :  { %v16968_v1 = vmul.f32 %v8450_v37, %v8168_v21  ;;  %v8170_v24 = vadd.f32 %v8169_v49, %v16524_v26  ;;  %8656 = vmatprep.subr.bf16.mxu1 %v19129_v12  ;;  %v19134_v37 = vpack.c.bf16 %v16581_v22, %v16558_v50  ;;  %v19135_v49 = vld [vmem:[#allocation32_spill] sm:$0xff]  ;;  %v19137_v12 = vpack.c.bf16 %v16807_v32, %v16804_v36 }
 0x612   :  { %v8173_v2 = vpop.f32.mrf.mxu0  ;;  %v7672_v62 = vadd.f32 %v19136_v33, %v19135_v49  ;;  %v8457_v22 = vadd.f32 1.0, %v7670_v35  ;;  %v19139_v32 = vld [vmem:[#allocation36_spill] sm:$0xff]  ;;  %v19142_v35 = vld [vmem:[#allocation181_spill] sm:$0xff] }
 0x613   :  { %v8612_v28 = vpack.c.bf16 %v16968_v1, %v16947_v8  ;;  %v16976_v44 = vmul.f32 %v8451_v46, %v8170_v24  ;;  %v8174_v58 = vadd.f32 %v8173_v2, %v16499_v4  ;;  %v8456_v24 = vadd.f32 1.0, %v7669_v43  ;;  %v19140_v36 = vld [vmem:[#allocation12_spill] sm:$0xff] }
 0x614   :  { %v8175_v27 = vpop.f32.mrf.mxu0  ;;  %v8459_v18 = vadd.f32 1.0, %v7672_v62  ;;  %v19145_v62 = vpack.c.bf16 %v16593_v53, %v16570_v56  ;;  %v19147_v56 = vpack.c.bf16 %v16733_v15, %v16729_v42  ;;  %v10473_v53 = vld [vmem:[%s17235_s10 + $0x8] ss:$0 sps:$4 sm:$0xff]   ;;  %v19152_v42 = vld [vmem:[#allocation168_spill] sm:$0xff]  ;;  %v19213_v8 = vmov 0  }
 0x615   :  { %v16981_v23 = vmul.f32 %v8453_v10, %v8174_v58  ;;  %v8176_v25 = vadd.f32 %v8175_v27, %v16524_v26  ;;  %v8613_v40 = vpack.c.bf16 %v16976_v44, %v16959_v60  ;;  %v19138_v10 = vpack.c.bf16 %v16774_v41, %v16770_v61  ;;  %v19143_v61 = vld [vmem:[#allocation47_spill] sm:$0xff]  ;;  %v19144_v41 = vld [vmem:[#allocation148_spill] sm:$0xff]  ;;  %v19153_v15 = vld [vmem:[#allocation45_spill] sm:$0xff] }
 0x616   :  { %v8177_v21 = vpop.f32.mrf.mxu0  ;;  %v8732_v60 = vld [vmem:[%s17227_s2] sm:$0x1]  ;;  %v19214_v44 = vld [vmem:[#allocation149_spill] sm:$0xff] }
 0x617   :  { %9814 = vmatpush3.bf16.xpose.msra.mxu0 %v19134_v37  ;;  %v16993_v39 = vmul.f32 %v8454_v6, %v8176_v25  ;;  %v8178_v34 = vadd.f32 %v8177_v21, %v16499_v4  ;;  %v7675_v6 = vadd.f32 %v19140_v36, %v19139_v32  ;;  %v7673_v21 = vadd.f32 %v19142_v35, %v19141_v19  ;;  %v19149_v32 = vld [vmem:[#allocation192_spill] sm:$0xff]  ;;  %v19150_v19 = vld [vmem:[#allocation42_spill] sm:$0xff]  ;;  %v19151_v35 = vld [vmem:[#allocation147_spill] sm:$0xff] }
 0x618   :  { %9815 = vmatprep.subr.bf16.mxu0 %v19060_v59  ;;  %v8179_v46 = vpop.f32.mrf.mxu0  ;;  %8657 = vmatpush1.bf16.xpose.msra.mxu1 %v19137_v12  ;;  %v7676_v37 = vadd.f32 %v19144_v41, %v19143_v61  ;;  %v7679_v61 = vadd.f32 %v19153_v15, %v19152_v42  ;;  %v19160_v42 = vld [vmem:[#allocation109_spill] sm:$0xff]  ;;  %vm8733_vm1 = vcmp.ne.s32.totalorder %v8732_v60, 0 }
 0x619   :  { %v17000_v2 = vmul.f32 %v8456_v24, %v8178_v34  ;;  %v8180_v50 = vadd.f32 %v8179_v46, %v16524_v26  ;;  %8658 = vmatprep.subr.bf16.mxu1 %v19138_v10  ;;  %v8462_v46 = vadd.f32 1.0, %v7675_v6  ;;  %v19161_v15 = vld [vmem:[#allocation73_spill] sm:$0xff]  ;;  %v8734_v1 = vsel %vm8733_vm1, 1, %v19213_v8 }
 0x61a   :  { %v8183_v58 = vpop.f32.mrf.mxu0  ;;  %v8738_v57 = vrot.slane %v8734_v1, %v19214_v44 }
 0x61b   :  { %v8615_v54 = vpack.c.bf16 %v17000_v2, %v16981_v23  ;;  %v17008_v43 = vmul.f32 %v8457_v22, %v8180_v50  ;;  %v8184_v27 = vadd.f32 %v8183_v58, %v16499_v4  ;;  %v19146_v50 = vpack.c.bf16 %v16760_v13, %v16757_v29 }
 0x61c   :  { %v8185_v25 = vpop.f32.mrf.mxu0  ;;  %v8460_v22 = vadd.f32 1.0, %v7673_v21  ;;  %v7681_v21 = vadd.f32 %v19151_v35, %v19150_v19  ;;  %vm8739_vm2 = vcmp.eq.s32.totalorder %v8738_v57, 1 }
 0x61d   :  { %v17013_v63 = vmul.f32 %v8459_v18, %v8184_v27  ;;  %v8616_v49 = vpack.c.bf16 %v17008_v43, %v16993_v39  ;;  %v8186_v34 = vadd.f32 %v8185_v25, %v16524_v26  ;;  %v8463_v18 = vadd.f32 1.0, %v7676_v37  ;;  %v19148_v27 = vld [vmem:[#allocation37_spill] sm:$0xff] }
 0x61e   :  { %v8187_v33 = vpop.f32.mrf.mxu0  ;;  %v7678_v36 = vadd.f32 %v19149_v32, %v19148_v27  ;;  %v19157_v32 = vpack.c.bf16 %v16689_v30, %v16669_v45  ;;  %v19164_v30 = vld [vmem:[#allocation51_spill] sm:$0xff] }
 0x61f   :  { %9816 = vmatpush3.bf16.xpose.msra.mxu0 %v19145_v62  ;;  %v8188_v24 = vadd.f32 %v8187_v33, %v16499_v4  ;;  %v17041_v29 = vmul.f32 %v8460_v22, %v8186_v34  ;;  %v19154_v33 = vld [vmem:[#allocation120_spill] sm:$0xff]  ;;  %v19155_v62 = vld [vmem:[#allocation174_spill] sm:$0xff] }
 0x620   :  { %9821 = vmatprep.subr.bf16.mxu0 %v19060_v59  ;;  %v8189_v12 = vpop.f32.mrf.mxu0  ;;  %8659 = vmatpush1.bf16.xpose.msra.mxu1 %v19146_v50 }
 0x621   :  { %v17030_v10 = vmul.f32 %v8462_v46, %v8188_v24  ;;  %v8190_v58 = vadd.f32 %v8189_v12, %v16524_v26  ;;  %8660 = vmatprep.subr.bf16.mxu1 %v19147_v56  ;;  %v7682_v24 = vadd.f32 %v19155_v62, %v19154_v33  ;;  %v8465_v12 = vadd.f32 1.0, %v7678_v36  ;;  %v19158_v36 = vld [vmem:[#allocation175_spill] sm:$0xff] }
 0x622   :  { %v8193_v6 = vpop.f32.mrf.mxu0 }
 0x623   :  { %v8618_v13 = vpack.c.bf16 %v17030_v10, %v17013_v63  ;;  %v17045_v25 = vmul.f32 %v8463_v18, %v8190_v58  ;;  %v8194_v37 = vadd.f32 %v8193_v6, %v16499_v4  ;;  %v8468_v58 = vadd.f32 1.0, %v7681_v21  ;;  %v19159_v6 = vld [vmem:[#allocation29_spill] sm:$0xff] }
 0x624   :  { %v8195_v41 = vpop.f32.mrf.mxu0  ;;  %v8466_v18 = vadd.f32 1.0, %v7679_v61  ;;  %v7684_v19 = vadd.f32 %v19159_v6, %v19158_v36  ;;  %v7687_v61 = vadd.f32 %v19161_v15, %v19160_v42 }
 0x625   :  { %v8619_v34 = vpack.c.bf16 %v17045_v25, %v17041_v29  ;;  %v8196_v50 = vadd.f32 %v8195_v41, %v16524_v26  ;;  %v17067_v27 = vmul.f32 %v8465_v12, %v8194_v37  ;;  %v19162_v41 = vld [vmem:[#allocation9_spill] sm:$0xff]  ;;  %v19163_v37 = vld [vmem:[#allocation74_spill] sm:$0xff] }
 0x626   :  { %9818 = vmatmul.mubr.bf16.vlgmr.msra.gmra.mxu0 %v10473_v53  ;;  %v8197_v46 = vpop.f32.mrf.mxu0  ;;  %v19156_v53 = vpack.c.bf16 %v16723_v20, %v16703_v5  ;;  %v7685_v33 = vadd.f32 %v19163_v37, %v19162_v41  ;;  %v19171_v41 = vld [vmem:[#allocation135_spill] sm:$0xff]  ;;  %v19172_v37 = vld [vmem:[#allocation138_spill] sm:$0xff] }
 0x627   :  { %9822 = vmatpush3.bf16.xpose.msra.mxu0 %v8632_v17  ;;  %9837 = vmatprep.mubr.msk.bf16.mxu0 %vm11309_vm0, %v19060_v59  ;;  %v8198_v22 = vadd.f32 %v8197_v46, %v16499_v4  ;;  %v8469_v17 = vadd.f32 1.0, %v7682_v24  ;;  %v17077_v21 = vmul.f32 %v8466_v18, %v8196_v50  ;;  %v19165_v24 = vld [vmem:[#allocation15_spill] sm:$0xff] }
 0x628   :  { %9823 = vmatprep.subr.bf16.mxu0 %v19060_v59  ;;  %v8199_v56 = vpop.f32.mrf.mxu0  ;;  %8661 = vmatpush1.bf16.xpose.msra.mxu1 %v19156_v53  ;;  %v7688_v46 = vadd.f32 %v19165_v24, %v19164_v30  ;;  %v8472_v53 = vadd.f32 1.0, %v7685_v33  ;;  %v7693_v33 = vadd.f32 %v19172_v37, %v19171_v41  ;;  %v19182_v37 = vld [vmem:[#allocation11_spill] sm:$0xff] }
 0x629   :  { %v17069_v31 = vmul.f32 %v8468_v58, %v8198_v22  ;;  %v8200_v11 = vadd.f32 %v8199_v56, %v16524_v26  ;;  %8662 = vmatprep.subr.bf16.mxu1 %v19157_v32  ;;  %v8471_v22 = vadd.f32 1.0, %v7684_v19  ;;  %v8474_v56 = vadd.f32 1.0, %v7687_v61  ;;  %v19169_v19 = vld [vmem:[#allocation195_spill] sm:$0xff] }
 0x62a   :  { %v8203_v35 = vpop.f32.mrf.mxu0  ;;  %v8475_v3 = vadd.f32 1.0, %v7688_v46  ;;  %v19175_v46 = vld [vmem:[#allocation72_spill] sm:$0xff] }
 0x62b   :  { %v8621_v5 = vpack.c.bf16 %v17069_v31, %v17067_v27  ;;  %v17081_v20 = vmul.f32 %v8469_v17, %v8200_v11  ;;  %v8204_v45 = vadd.f32 %v8203_v35, %v16499_v4  ;;  %v19166_v17 = vpack.c.bf16 %v16677_v47, %v16656_v16  ;;  %v19170_v35 = vld [vmem:[#allocation165_spill] sm:$0xff] }
 0x62c   :  { %v8205_v62 = vpop.f32.mrf.mxu0  ;;  %v7690_v42 = vadd.f32 %v19170_v35, %v19169_v19  ;;  %v19179_v19 = vld [vmem:[#allocation82_spill] sm:$0xff]  ;;  %v19180_v35 = vld [vmem:[#allocation31_spill] sm:$0xff] }
 0x62d   :  { %v8622_v12 = vpack.c.bf16 %v17081_v20, %v17077_v21  ;;  %v8206_v58 = vadd.f32 %v8205_v62, %v16524_v26  ;;  %v17101_v32 = vmul.f32 %v8471_v22, %v8204_v45  ;;  %v19173_v62 = vld [vmem:[#allocation112_spill] sm:$0xff]  ;;  %v19174_v45 = vld [vmem:[#allocation71_spill] sm:$0xff] }
 0x62e   :  { %v8207_v50 = vpop.f32.mrf.mxu0  ;;  %v7691_v30 = vadd.f32 %v19174_v45, %v19173_v62  ;;  %v19185_v45 = vld [vmem:[#allocation171_spill] sm:$0xff] }
 0x62f   :  { %9824 = vmatpush3.bf16.xpose.msra.mxu0 %v8629_v14  ;;  %v8208_v18 = vadd.f32 %v8207_v50, %v16499_v4  ;;  %v19167_v14 = vld [vmem:[#allocation198_spill] sm:$0xff]  ;;  %v17111_v61 = vmul.f32 %v8472_v53, %v8206_v58  ;;  %v19176_v50 = vld [vmem:[#allocation156_spill] sm:$0xff] }
 0x630   :  { %9825 = vmatprep.subr.bf16.mxu0 %v19060_v59  ;;  %v8209_v11 = vpop.f32.mrf.mxu0  ;;  %8663 = vmatpush1.bf16.xpose.msra.mxu1 %v19166_v17  ;;  %v19168_v6 = vpack.c.bf16 %v16642_v51, %v19167_v14  ;;  %v7694_v22 = vadd.f32 %v19176_v50, %v19175_v46  ;;  %v8478_v14 = vadd.f32 1.0, %v7691_v30 }
 0x631   :  { %v17103_v36 = vmul.f32 %v8474_v56, %v8208_v18  ;;  %v8210_v7 = vadd.f32 %v8209_v11, %v16524_v26  ;;  %v19177_v56 = vld [vmem:[#allocation124_spill] sm:$0xff]  ;;  %v8477_v11 = vadd.f32 1.0, %v7690_v42  ;;  %v19183_v42 = vld [vmem:[#allocation179_spill] sm:$0xff] }
 0x632   :  { %8664 = vmatprep.subr.bf16.mxu1 %v19168_v6  ;;  %v8213_v15 = vpop.f32.mrf.mxu0  ;;  %v19178_v53 = vpack.c.bf16 %v16862_v52, %v19177_v56  ;;  %v8481_v52 = vadd.f32 1.0, %v7694_v22  ;;  %v19184_v62 = vpack.c.bf16 %v19182_v37, %v19183_v42  ;;  %v19187_v56 = vld [vmem:[#allocation196_spill] sm:$0xff] }
 0x633   :  { %v8624_v16 = vpack.c.bf16 %v17103_v36, %v17101_v32  ;;  %v8571_v47 = vmul.f32 %v8475_v3, %v8210_v7  ;;  %v8214_v51 = vadd.f32 %v8213_v15, %v16499_v4  ;;  %v8480_v3 = vadd.f32 1.0, %v7693_v33 }
 0x634   :  { %v8215_v24 = vpop.f32.mrf.mxu0  ;;  %v19181_v15 = vpack.c.bf16 %v19179_v19, %v19180_v35  ;;  %v19189_v35 = vld [vmem:[#allocation56_spill] sm:$0xff] }
 0x635   :  { %v8625_v18 = vpack.c.bf16 %v8571_v47, %v17111_v61  ;;  %v8216_v17 = vadd.f32 %v8215_v24, %v16524_v26  ;;  %v8573_v61 = vmul.f32 %v8477_v11, %v8214_v51  ;;  %v19186_v24 = vld [vmem:[#allocation146_spill] sm:$0xff] }
 0x636   :  { %v8217_v58 = vpop.f32.mrf.mxu0  ;;  %v7696_v33 = vadd.f32 %v19186_v24, %v19185_v45  ;;  %v19190_v51 = vld [vmem:[#allocation94_spill] sm:$0xff]  ;;  %v19194_v45 = vld [vmem:[#allocation16_spill] sm:$0xff] }
 0x637   :  { %9826 = vmatpush3.bf16.xpose.msra.mxu0 %v19178_v53  ;;  %v8218_v7 = vadd.f32 %v8217_v58, %v16499_v4  ;;  %v8574_v50 = vmul.f32 %v8478_v14, %v8216_v17  ;;  %v19188_v53 = vld [vmem:[#allocation61_spill] sm:$0xff]  ;;  %v7697_v11 = vadd.f32 %v19190_v51, %v19189_v35 }
 0x638   :  { %9827 = vmatprep.subr.bf16.mxu0 %v19060_v59  ;;  %v8219_v6 = vpop.f32.mrf.mxu0  ;;  %8665 = vmatpush1.bf16.xpose.msra.mxu1 %v19181_v15  ;;  %v7699_v19 = vadd.f32 %v19188_v53, %v19187_v56  ;;  %v8483_v17 = vadd.f32 1.0, %v7696_v33  ;;  %v19197_v56 = vld [vmem:[#allocation127_spill] sm:$0xff] }
 0x639   :  { %v8576_v47 = vmul.f32 %v8480_v3, %v8218_v7  ;;  %v8220_v41 = vadd.f32 %v8219_v6, %v16524_v26  ;;  %8666 = vmatprep.subr.bf16.mxu1 %v19184_v62  ;;  %v19191_v3 = vld [vmem:[#allocation115_spill] sm:$0xff]  ;;  %v19192_v6 = vld [vmem:[#allocation58_spill] sm:$0xff]  ;;  %v19193_v62 = vld [vmem:[#allocation77_spill] sm:$0xff] }
 0x63a   :  { %v8223_v46 = vpop.f32.mrf.mxu0  ;;  %v7700_v15 = vadd.f32 %v19192_v6, %v19191_v3  ;;  %v19195_v24 = vpack.c.bf16 %v19193_v62, %v19194_v45  ;;  %v19201_v62 = vld [vmem:[#allocation173_spill] sm:$0xff] }
 0x63b   :  { %v8627_v30 = vpack.c.bf16 %v8576_v47, %v8573_v61  ;;  %v8577_v58 = vmul.f32 %v8481_v52, %v8220_v41  ;;  %v8224_v22 = vadd.f32 %v8223_v46, %v16499_v4  ;;  %v8486_v47 = vadd.f32 1.0, %v7699_v19  ;;  %v19196_v46 = vld [vmem:[#allocation23_spill] sm:$0xff] }
 0x63c   :  { %v8225_v7 = vpop.f32.mrf.mxu0  ;;  %v8484_v41 = vadd.f32 1.0, %v7697_v11  ;;  %v19198_v53 = vpack.c.bf16 %v19196_v46, %v19197_v56  ;;  %v8487_v51 = vadd.f32 1.0, %v7700_v15  ;;  %v19205_v15 = vld [vmem:[#allocation188_spill] sm:$0xff] }
 0x63d   :  { %v8628_v37 = vpack.c.bf16 %v8577_v58, %v8574_v50  ;;  %v8226_v14 = vadd.f32 %v8225_v7, %v16524_v26  ;;  %v8579_v50 = vmul.f32 %v8483_v17, %v8224_v22  ;;  %v19199_v7 = vld [vmem:[#allocation199_spill] sm:$0xff]  ;;  %v19203_v22 = vld [vmem:[#allocation164_spill] sm:$0xff] }
 0x63e   :  { %v8227_v42 = vpop.f32.mrf.mxu0  ;;  %v19208_v17 = vld [vmem:[#allocation59_spill] sm:$0xff] }
 0x63f   :  { %9828 = vmatpush3.bf16.xpose.msra.mxu0 %v19195_v24  ;;  %v8228_v61 = vadd.f32 %v8227_v42, %v16499_v4  ;;  %v8580_v3 = vmul.f32 %v8484_v41, %v8226_v14  ;;  %v9519_v4 = vcombine.low %v19199_v7, %v19199_v7  ;;  %v19200_v42 = vld [vmem:[#allocation40_spill] sm:$0xff]  ;;  %v19207_v24 = vld [vmem:[#allocation123_spill] sm:$0xff] }
 0x640   :  { %9829 = vmatprep.subr.bf16.mxu0 %v19060_v59  ;;  %v8229_v52 = vpop.f32.mrf.mxu0  ;;  %8667 = vmatpush1.bf16.xpose.msra.mxu1 %v19198_v53  ;;  %v19202_v11 = vpack.c.bf16 %v19200_v42, %v19201_v62  ;;  %v19209_v14 = vpack.c.bf16 %v19207_v24, %v19208_v17 }
 0x641   :  { %v8582_v58 = vmul.f32 %v8486_v47, %v8228_v61  ;;  %v8230_v35 = vadd.f32 %v8229_v52, %v16524_v26  ;;  %v19204_v26 = vld [vmem:[#allocation190_spill] sm:$0xff]  ;;  %v19211_v61 = vld [vmem:[#allocation81_spill] sm:$0xff] }
 0x642   :  { %v19206_v45 = vpack.c.bf16 %v19204_v26, %v19205_v15 }
 0x643   :  { %v8630_v33 = vpack.c.bf16 %v8582_v58, %v8579_v50  ;;  %v8583_v6 = vmul.f32 %v8487_v51, %v8230_v35 }
 0x645   :  { %v8631_v19 = vpack.c.bf16 %v8583_v6, %v8580_v3 }
 0x647   :  { %9830 = vmatpush3.bf16.xpose.msra.mxu0 %v19202_v11  ;;  %8685 = vmatmul.mubr.bf16.vlgmr.msra.gmra.mxu1 %v9519_v4 }
 0x648   :  { %8771 = vmatprep.subr.bf16.mxu1 %v8631_v19  ;;  %9831 = vmatprep.subr.bf16.mxu0 %v19060_v59 }
 0x649   :  { %8772 = vmatpush1.bf16.xpose.msra.mxu1 %v8630_v33  ;;  %8803 = vmatprep.mubr.bf16.mxu1 %v19203_v22 }
 0x64a   :  { %8773 = vmatprep.subr.bf16.mxu1 %v8628_v37  ;;  %v19210_v37 = vld [vmem:[#allocation102_spill] sm:$0xff] }
 0x64b   :  { %v19212_v47 = vpack.c.bf16 %v19210_v37, %v19211_v61 }
 0x64f   :  { %9832 = vmatpush3.bf16.xpose.msra.mxu0 %v19206_v45 }
 0x650   :  { %9833 = vmatprep.subr.bf16.mxu0 %v19060_v59 }
 0x651   :  { %8774 = vmatpush1.bf16.xpose.msra.mxu1 %v8627_v30 }
 0x652   :  { %8775 = vmatprep.subr.bf16.mxu1 %v8625_v18 }
 0x657   :  { %9834 = vmatpush3.bf16.xpose.msra.mxu0 %v19209_v14 }
 0x658   :  { %9835 = vmatprep.subr.bf16.mxu0 %v19060_v59  ;;  %v10476_v59 = vld [vmem:[%s17235_s10 + $0x8] ss:$0 sps:$4 sm:$0xff]  }
 0x659   :  { %8776 = vmatpush1.bf16.xpose.msra.mxu1 %v8624_v16 }
 0x65a   :  { %8777 = vmatprep.subr.bf16.mxu1 %v8622_v12 }
 0x65f   :  { %9836 = vmatpush3.bf16.xpose.msra.mxu0 %v19212_v47 }
 0x661   :  { %8778 = vmatpush1.bf16.xpose.msra.mxu1 %v8621_v5 }
 0x662   :  { %8779 = vmatprep.subr.bf16.mxu1 %v8619_v34 }
 0x666   :  { %9838 = vmatmul.mubr.bf16.vlgmr.msra.gmra.mxu0 %v10476_v59 }
 0x669   :  { %8780 = vmatpush1.bf16.xpose.msra.mxu1 %v8618_v13  ;;  %v9525_v13 = vld [vmem:[%s17227_s2 + $0x1] sm:$0x1] }
 0x66a   :  { %8781 = vmatprep.subr.bf16.mxu1 %v8616_v49  ;;  %vm8853_vm3 = vcmp.ne.s32.totalorder %v9525_v13, 0 }
 0x66b   :  { %v8854_v25 = vsel %vm8853_vm3, 1, %v19213_v8 }
 0x66c   :  { %v8858_v34 = vrot.slane %v8854_v25, %v19214_v44 }
 0x66e   :  { %vm8859_vm4 = vcmp.eq.s32.totalorder %v8858_v34, 1 }
 0x671   :  { %8782 = vmatpush1.bf16.xpose.msra.mxu1 %v8615_v54 }
 0x672   :  { %8783 = vmatprep.subr.bf16.mxu1 %v8613_v40 }
 0x679   :  { %8784 = vmatpush1.bf16.xpose.msra.mxu1 %v8612_v28 }
 0x67a   :  { %8785 = vmatprep.subr.bf16.mxu1 %v8610_v48 }
 0x681   :  { %8786 = vmatpush1.bf16.xpose.msra.mxu1 %v8609_v9  ;;  %v8639_v28 = vpop.permute.xlu0 %8638 }
 0x685   :  { %v8758_v27 = vpop.permute.xlu0 %8757 }
 0x688   :  { %8804 = vmatmul.mubr.bf16.vlgmr.msra.gmra.mxu1 %v9519_v4 }
 0x6e6   :  { %v8726_v39 = vpop.f32.mrf.mxu0 }
 0x6e8   :  { %v9819_v23 = vpop.f32.mrf.mxu0 }
 0x6ea   :  { %v8729_v2 = vpop.f32.mrf.mxu0 }
 0x6ec   :  { %v9820_v54 = vpop.f32.mrf.mxu0 }
 0x707   :  { %v8686_v38 = vpop.f32.mrf.mxu1 }
 0x708   :  { %v8687_v48 = vadd.f32 %v8686_v38, %v8639_v28 }
 0x709   :  { %v8688_v0 = vpop.f32.mrf.mxu1 }
 0x70a   :  { %v8727_v55 = vadd.f32 %v8726_v39, %v8687_v48 }
 0x70b   :  { %v8689_v9 = vpop.f32.mrf.mxu1 }
 0x70c   :  { %v8740_v40 = vsel %vm8739_vm2, %v8727_v55, -1e+30 }
 0x70d   :  { %8741 = vmax.xlane.f32.xlu1 %v8740_v40  ;;  %v8690_v43 = vpop.f32.mrf.mxu1 }
 0x726   :  { %v8845_v63 = vpop.f32.mrf.mxu0 }
 0x728   :  { %v9839_v49 = vpop.f32.mrf.mxu0 }
 0x72a   :  { %v8848_v10 = vpop.f32.mrf.mxu0 }
 0x72c   :  { %v9840_v29 = vpop.f32.mrf.mxu0 }
 0x748   :  { %v8805_v31 = vpop.f32.mrf.mxu1 }
 0x749   :  { %v8806_v21 = vadd.f32 %v8805_v31, %v8758_v27 }
 0x74a   :  { %v8807_v5 = vpop.f32.mrf.mxu1 }
 0x74b   :  { %v8846_v20 = vadd.f32 %v8845_v63, %v8806_v21 }
 0x74c   :  { %v8808_v12 = vpop.f32.mrf.mxu1 }
 0x74d   :  { %v8860_v32 = vsel %vm8859_vm4, %v8846_v20, -1e+30 }
 0x74e   :  { %8861 = vmax.xlane.f32.xlu1 %v8860_v32  ;;  %v8809_v36 = vpop.f32.mrf.mxu1 }
 0x796   :  { %v8742_v16 = vpop.xlane.xlu1 %8741 }
 0x797   :  { %v8743_v18 = vsub.f32 %v8740_v40, %v8742_v16 }
 0x799   :  { %v8744_v30 = vmul.f32 1.442695, %v8743_v18 }
 0x79b   :  { %11245 = vpow2.f32 %v8744_v30 }
 0x7a8   :  { %v11246_v41 = vpop.eup %11245 }
 0x7a9   :  { %8746 = vadd.xlane.f32.xlu0 %v11246_v41 }
 0x7d7   :  { %v8862_v52 = vpop.xlane.xlu1 %8861 }
 0x7d8   :  { %v8863_v46 = vsub.f32 %v8860_v32, %v8862_v52 }
 0x7da   :  { %v8864_v56 = vmul.f32 1.442695, %v8863_v46 }
 0x7dc   :  { %11247 = vpow2.f32 %v8864_v56 }
 0x7e9   :  { %v11248_v53 = vpop.eup %11247 }
 0x7ea   :  { %8866 = vadd.xlane.f32.xlu1 %v11248_v53 }
 0x832   :  { %v8747_v50 = vpop.xlane.xlu0 %8746 }
 0x833   :  { %11249 = vlog2.f32 %v8747_v50 }
 0x840   :  { %v11250_v58 = vpop.eup %11249 }
 0x841   :  { %v8749_v35 = vmul.f32 0.6931472, %v11250_v58 }
 0x843   :  { %v8750_v51 = vsub.f32 %v8743_v18, %v8749_v35 }
 0x845   :  { %8751 = vst [vmem:[%s17237_s12] sm:$0xff] %v8750_v51 }
 0x873   :  { %v8867_v3 = vpop.xlane.xlu1 %8866 }
 0x874   :  { %11251 = vlog2.f32 %v8867_v3 }
 0x881   :  { %v11252_v33 = vpop.eup %11251 }
 0x882   :  { %v8869_v6 = vmul.f32 0.6931472, %v11252_v33 }
 0x884   :  { %v8870_v7 = vsub.f32 %v8863_v46, %v8869_v6 }
 0x886   :  { %9526 = vst [vmem:[%s17237_s12 + $0x8] sm:$0xff] %v8870_v7 }
 0x887   :  { %8877 = vsyncpa [#allocation3], 1 }
 0x888   :  { %8878 = vsyncpa [#allocation5], 1 }

</bundles_post_ra>
